<compile_context>
chip_gen: v5e
topology: v5e:2x2
jax: 0.10.0
libtpu: 0.0.40
codegen_flags: <defaults>
</compile_context>

<pallas_src>
import functools

import numpy as np
import jax
import jax.numpy as jnp
from jax.experimental import pallas as pl
from jax.experimental.pallas import tpu as pltpu


KERNEL_SIZE = 3
STRIDE = 2
PADDING = 1
LEAKY_SLOPE = 0.01           # nn.LeakyReLU() default
BN_EPS = 1e-5
HIDDEN_DIMS = (32, 64, 128, 256)


# ----------------------------------------------------------------------------
# helpers
# ----------------------------------------------------------------------------
def _round_up(x, m):
    return (x + m - 1) // m * m


def _conv_out(n, k=KERNEL_SIZE, s=STRIDE, p=PADDING):
    return (n + 2 * p - k) // s + 1


def _zero_map(ndim):
    zeros = (0,) * ndim
    return lambda i: zeros


def _build_tap_selectors(B, H, W, Ho, Wo, k=KERNEL_SIZE, stride=STRIDE, pad=PADDING):
    """0/1 gather matrices, one per 3x3 tap: S[t] @ act_rows == strided/shifted im2col tap.
    Row/col index = b*(H*W) + i*W + j; out-of-bounds taps stay all-zero (== zero padding)."""
    S = np.zeros((k * k, B * Ho * Wo, B * H * W), np.float32)
    for ki in range(k):
        for kj in range(k):
            t = ki * k + kj
            for oi in range(Ho):
                ii = stride * oi + ki - pad
                if ii < 0 or ii >= H:
                    continue
                for oj in range(Wo):
                    jj = stride * oj + kj - pad
                    if jj < 0 or jj >= W:
                        continue
                    for b in range(B):
                        S[t, b * Ho * Wo + oi * Wo + oj, b * H * W + ii * W + jj] = 1.0
    return S


# ----------------------------------------------------------------------------
# The single fused kernel
#   refs = [x_rows,
#           (S_l, Wtaps_l, shift_l) for each conv layer,
#           (esel if final spatial > 1),
#           w1p, b1, w2, b2, wh, bh,
#           out]
# ----------------------------------------------------------------------------
def _encoder_kernel(*refs, n_layers, n_taps, use_esel):
    idx = 0
    act = refs[idx][...]                                   # [B*H*W, Cin]  bf16
    idx += 1

    # --- conv stack: conv(3x3,s2,p1) + folded BN + LeakyReLU (Dropout2d == id in eval) ---
    for _ in range(n_layers):
        s_ref, w_ref, sh_ref = refs[idx], refs[idx + 1], refs[idx + 2]
        idx += 3
        acc = None
        for t in range(n_taps):
            col = jnp.dot(s_ref[t], act,                   # 0/1 gather of this tap's rows
                          preferred_element_type=jnp.float32)
            z = jnp.dot(col.astype(jnp.bfloat16), w_ref[t],
                        preferred_element_type=jnp.float32)
            acc = z if acc is None else acc + z
        y = acc + sh_ref[...]                              # folded conv-bias + BN shift
        y = jnp.where(y > 0, y, LEAKY_SLOPE * y)           # LeakyReLU
        act = y.astype(jnp.bfloat16)                       # stays on-chip

    # --- NCHW flatten + MLP tail + packed [embedding | log_covariance] heads ---
    if use_esel:
        e_ref = refs[idx]
        idx += 1
    w1_ref, b1_ref, w2_ref, b2_ref, wh_ref, bh_ref = refs[idx:idx + 6]
    o_ref = refs[idx + 6]

    hw4 = w1_ref.shape[0]
    if use_esel:
        h1 = None
        for s in range(hw4):                               # sum over final spatial positions
            f = jnp.dot(e_ref[s], act, preferred_element_type=jnp.float32)
            v = jnp.dot(f.astype(jnp.bfloat16), w1_ref[s],
                        preferred_element_type=jnp.float32)
            h1 = v if h1 is None else h1 + v
    else:                                                  # final spatial is 1x1 (demo config)
        h1 = jnp.dot(act, w1_ref[0], preferred_element_type=jnp.float32)
    h1 = jnp.maximum(h1 + b1_ref[...], 0.0)                # fc1 + ReLU  (Dropout == id)
    h2 = jnp.dot(h1.astype(jnp.bfloat16), w2_ref[...],
                 preferred_element_type=jnp.float32) + b2_ref[...]
    h2 = jnp.maximum(h2, 0.0)                              # fc2 + ReLU  (Dropout == id)
    o = jnp.dot(h2.astype(jnp.bfloat16), wh_ref[...],
                preferred_element_type=jnp.float32) + bh_ref[...]
    o_ref[...] = o.astype(o_ref.dtype)                     # lane-dense packed heads


# ----------------------------------------------------------------------------
# One-time operand preparation (outside jit): BN/bias folding, tap selectors, packing.
# ----------------------------------------------------------------------------
def prepare_operands(params, input_dim, batch, bn_eps=BN_EPS):
    C, H, W = input_dim
    B = batch
    ops = []
    flops = 0
    h, w, cin = H, W, C
    for layer in params["conv"]:
        cout = layer["w"].shape[0]
        ho, wo = _conv_out(h), _conv_out(w)
        S = _build_tap_selectors(B, h, w, ho, wo)
        scale = layer["gamma"] / jnp.sqrt(layer["var"] + bn_eps)          # [Cout]
        shift = layer["beta"] + scale * (layer["b"] - layer["mean"])      # [Cout]
        # PyTorch OIHW -> per-tap [k*k, Cin, Cout], BN scale folded into columns
        w_taps = jnp.transpose(layer["w"], (2, 3, 1, 0)).reshape(
            KERNEL_SIZE * KERNEL_SIZE, cin, cout) * scale[None, None, :]
        ops += [jnp.asarray(S, jnp.bfloat16),
                w_taps.astype(jnp.bfloat16),
                shift.reshape(1, cout).astype(jnp.float32)]
        m_in, m_out = B * h * w, B * ho * wo
        flops += 2 * (KERNEL_SIZE ** 2) * (m_out * m_in * cin + m_out * cin * cout)
        h, w, cin = ho, wo, cout
    hw4, c4 = h * w, cin

    latent = params["embedding"]["w"].shape[0]
    h1_dim = params["fc1"]["w"].shape[0]
    h2_dim = params["fc2"]["w"].shape[0]
    nh = _round_up(2 * latent, 128)

    use_esel = hw4 > 1
    if use_esel:
        # selectors mapping rows (b, spatial s) of the last conv output to batch rows
        E = np.zeros((hw4, B, B * hw4), np.float32)
        for s in range(hw4):
            for b in range(B):
                E[s, b, b * hw4 + s] = 1.0
        ops.append(jnp.asarray(E, jnp.bfloat16))

    # fc1 weight permuted so it consumes our (b,i,j)-row / c-column features in
    # PyTorch's NCHW flatten order:  w1p[s, c, o] = W1[o, c*hw4 + s]
    w1p = jnp.transpose(params["fc1"]["w"].reshape(h1_dim, c4, hw4), (2, 1, 0))
    ops += [w1p.astype(jnp.bfloat16),
            params["fc1"]["b"].reshape(1, h1_dim).astype(jnp.float32),
            params["fc2"]["w"].T.astype(jnp.bfloat16),
            params["fc2"]["b"].reshape(1, h2_dim).astype(jnp.float32)]
    wh = jnp.concatenate([params["embedding"]["w"].T,
                          params["log_covariance"]["w"].T], axis=1)
    bh = jnp.concatenate([params["embedding"]["b"], params["log_covariance"]["b"]])
    ops += [jnp.pad(wh, ((0, 0), (0, nh - 2 * latent))).astype(jnp.bfloat16),
            jnp.pad(bh, (0, nh - 2 * latent)).reshape(1, nh).astype(jnp.float32)]

    flops += 2 * B * (c4 * hw4 * h1_dim + h1_dim * h2_dim + h2_dim * 2 * latent)
    meta = dict(n_layers=len(params["conv"]), n_taps=KERNEL_SIZE * KERNEL_SIZE,
                use_esel=use_esel, latent=latent, nh=nh, flops=int(flops))
    return ops, meta


# ----------------------------------------------------------------------------
# Forward pass: input layout fix + ONE pallas_call + head split.
# ----------------------------------------------------------------------------
def encoder_forward(ops, x, *, meta):
    B, C, H, W = x.shape
    x_rows = jnp.transpose(x, (0, 2, 3, 1)).reshape(B * H * W, C).astype(jnp.bfloat16)
    operands = (x_rows,) + tuple(ops)

    bytes_accessed = sum(int(o.size) * o.dtype.itemsize for o in operands)
    bytes_accessed += B * meta["nh"] * 4

    packed = pl.pallas_call(
        functools.partial(_encoder_kernel, n_layers=meta["n_layers"],
                          n_taps=meta["n_taps"], use_esel=meta["use_esel"]),
        out_shape=jax.ShapeDtypeStruct((B, meta["nh"]), jnp.float32),
        grid=(1,),
        in_specs=[pl.BlockSpec(op.shape, _zero_map(op.ndim)) for op in operands],
        out_specs=pl.BlockSpec((B, meta["nh"]), lambda i: (0, 0)),
        compiler_params=pltpu.CompilerParams(
            dimension_semantics=("arbitrary",),
            vmem_limit_bytes=32 * 1024 * 1024),
        cost_estimate=pl.CostEstimate(flops=meta["flops"], transcendentals=0,
                                      bytes_accessed=int(bytes_accessed)),
    )(*operands)

    latent = meta["latent"]
    return {"embedding": packed[:, :latent],
            "log_covariance": packed[:, latent:2 * latent]}


# ----------------------------------------------------------------------------
# Parameter construction (deterministic; PyTorch-default-inspired inits, non-trivial BN stats)
# ----------------------------------------------------------------------------
def make_params(key, input_dim, latent_dim, hidden_dims=HIDDEN_DIMS):
    params = {}
    in_channels = input_dim[0]
    keys = jax.random.split(key, 6 * len(hidden_dims) + 8)
    ki = 0
    conv_layers = []
    for hd in hidden_dims:
        fan_in = in_channels * KERNEL_SIZE * KERNEL_SIZE
        w = jax.random.normal(keys[ki], (hd, in_channels, KERNEL_SIZE, KERNEL_SIZE),
                              jnp.float32) * (1.0 / jnp.sqrt(fan_in)); ki += 1
        b = jax.random.normal(keys[ki], (hd,), jnp.float32) * 0.01; ki += 1
        gamma = 1.0 + 0.1 * jax.random.normal(keys[ki], (hd,), jnp.float32); ki += 1
        beta = 0.1 * jax.random.normal(keys[ki], (hd,), jnp.float32); ki += 1
        mean = 0.1 * jax.random.normal(keys[ki], (hd,), jnp.float32); ki += 1
        var = 1.0 + 0.1 * jnp.abs(jax.random.normal(keys[ki], (hd,), jnp.float32)); ki += 1
        conv_layers.append(dict(w=w, b=b, gamma=gamma, beta=beta, mean=mean, var=var))
        in_channels = hd
    params["conv"] = conv_layers

    H, W = input_dim[1], input_dim[2]
    for _ in hidden_dims:
        H, W = _conv_out(H), _conv_out(W)
    flattened = hidden_dims[-1] * H * W

    def linear(kw, kb, fan_in, fan_out):
        w = jax.random.normal(kw, (fan_out, fan_in), jnp.float32) / jnp.sqrt(fan_in)
        b = jax.random.normal(kb, (fan_out,), jnp.float32) * 0.01
        return dict(w=w, b=b)

    params["fc1"] = linear(keys[ki], keys[ki + 1], flattened, 512); ki += 2
    params["fc2"] = linear(keys[ki], keys[ki + 1], 512, 256); ki += 2
    params["embedding"] = linear(keys[ki], keys[ki + 1], 256, latent_dim); ki += 2
    params["log_covariance"] = linear(keys[ki], keys[ki + 1], 256, latent_dim); ki += 2
    return params, flattened


# ----------------------------------------------------------------------------
# Pure-JAX f32 reference (for correctness check)
# ----------------------------------------------------------------------------
def reference_forward(params, x, bn_eps=BN_EPS):
    h = x
    for layer in params["conv"]:
        y = jax.lax.conv_general_dilated(
            h, layer["w"], window_strides=(STRIDE, STRIDE),
            padding=((PADDING, PADDING), (PADDING, PADDING)),
            dimension_numbers=("NCHW", "OIHW", "NCHW"))
        y = y + layer["b"][None, :, None, None]
        inv_std = 1.0 / jnp.sqrt(layer["var"] + bn_eps)
        y = ((y - layer["mean"][None, :, None, None])
             * (layer["gamma"] * inv_std)[None, :, None, None]
             + layer["beta"][None, :, None, None])
        h = jnp.where(y > 0, y, LEAKY_SLOPE * y)
    feats = h.reshape(h.shape[0], -1)
    hid = jnp.maximum(feats @ params["fc1"]["w"].T + params["fc1"]["b"], 0.0)
    hid = jnp.maximum(hid @ params["fc2"]["w"].T + params["fc2"]["b"], 0.0)
    emb = hid @ params["embedding"]["w"].T + params["embedding"]["b"]
    lc = hid @ params["log_covariance"]["w"].T + params["log_covariance"]["b"]
    return emb, lc


if __name__ == "__main__":
    key = jax.random.PRNGKey(0)
    k_x, k_p = jax.random.split(key)

    input_dim = (4, 16, 16)     # (C, H, W) — matches the module's input_dim
    latent_dim = 8
    batch = 2

    x = jax.random.normal(k_x, (batch,) + input_dim, jnp.float32)     # NCHW
    params, flattened = make_params(k_p, input_dim, latent_dim)

    # one-time weight folding / selector construction (outside jit)
    ops, meta = prepare_operands(params, input_dim, batch)

    fwd = jax.jit(functools.partial(encoder_forward, meta=meta))
    out = fwd(ops, x)
    jax.block_until_ready(out["embedding"])
    jax.block_until_ready(out["log_covariance"])

    assert out["embedding"].shape == (batch, latent_dim)
    assert out["log_covariance"].shape == (batch, latent_dim)

    # numerical check vs f32 reference (bf16 MXU operands -> loose tolerance)
    ref_emb, ref_lc = reference_forward(params, x)
    err = max(float(jnp.max(jnp.abs(out["embedding"] - ref_emb))),
              float(jnp.max(jnp.abs(out["log_covariance"] - ref_lc))))
    assert err < 1e-1, f"max abs error vs reference: {err}"

    print("KERNEL_OK")
</pallas_src>

<mosaic_0001>
module attributes {stable_mosaic.version = 11 : i64} {
  func.func @_encoder_kernel(%arg0: i32, %arg1: memref<512x4xbf16, #tpu.memory_space<vmem>>, %arg2: memref<9x128x512xbf16, #tpu.memory_space<vmem>>, %arg3: memref<9x4x32xbf16, #tpu.memory_space<vmem>>, %arg4: memref<1x32xf32, #tpu.memory_space<vmem>>, %arg5: memref<9x32x128xbf16, #tpu.memory_space<vmem>>, %arg6: memref<9x32x64xbf16, #tpu.memory_space<vmem>>, %arg7: memref<1x64xf32, #tpu.memory_space<vmem>>, %arg8: memref<9x8x32xbf16, #tpu.memory_space<vmem>>, %arg9: memref<9x64x128xbf16, #tpu.memory_space<vmem>>, %arg10: memref<1x128xf32, #tpu.memory_space<vmem>>, %arg11: memref<9x2x8xbf16, #tpu.memory_space<vmem>>, %arg12: memref<9x128x256xbf16, #tpu.memory_space<vmem>>, %arg13: memref<1x256xf32, #tpu.memory_space<vmem>>, %arg14: memref<1x256x512xbf16, #tpu.memory_space<vmem>>, %arg15: memref<1x512xf32, #tpu.memory_space<vmem>>, %arg16: memref<512x256xbf16, #tpu.memory_space<vmem>>, %arg17: memref<1x256xf32, #tpu.memory_space<vmem>>, %arg18: memref<256x128xbf16, #tpu.memory_space<vmem>>, %arg19: memref<1x128xf32, #tpu.memory_space<vmem>>, %arg20: memref<2x128xf32, #tpu.memory_space<vmem>>) attributes {dimension_semantics = [#tpu.dimension_semantics<arbitrary>], iteration_bounds = array<i64: 1>, scalar_prefetch = 0 : i64, scratch_operands = 0 : i64, tpu.core_type = #tpu.core_type<tc>, window_params = [{pipeline_mode = #tpu.pipeline_mode<synchronous>, transform_indices = @transform_0, window_bounds = array<i64: 512, 4>}, {pipeline_mode = #tpu.pipeline_mode<synchronous>, transform_indices = @transform_1, window_bounds = array<i64: 9, 128, 512>}, {pipeline_mode = #tpu.pipeline_mode<synchronous>, transform_indices = @transform_2, window_bounds = array<i64: 9, 4, 32>}, {pipeline_mode = #tpu.pipeline_mode<synchronous>, transform_indices = @transform_3, window_bounds = array<i64: 1, 32>}, {pipeline_mode = #tpu.pipeline_mode<synchronous>, transform_indices = @transform_4, window_bounds = array<i64: 9, 32, 128>}, {pipeline_mode = #tpu.pipeline_mode<synchronous>, transform_indices = @transform_5, window_bounds = array<i64: 9, 32, 64>}, {pipeline_mode = #tpu.pipeline_mode<synchronous>, transform_indices = @transform_6, window_bounds = array<i64: 1, 64>}, {pipeline_mode = #tpu.pipeline_mode<synchronous>, transform_indices = @transform_7, window_bounds = array<i64: 9, 8, 32>}, {pipeline_mode = #tpu.pipeline_mode<synchronous>, transform_indices = @transform_8, window_bounds = array<i64: 9, 64, 128>}, {pipeline_mode = #tpu.pipeline_mode<synchronous>, transform_indices = @transform_9, window_bounds = array<i64: 1, 128>}, {pipeline_mode = #tpu.pipeline_mode<synchronous>, transform_indices = @transform_10, window_bounds = array<i64: 9, 2, 8>}, {pipeline_mode = #tpu.pipeline_mode<synchronous>, transform_indices = @transform_11, window_bounds = array<i64: 9, 128, 256>}, {pipeline_mode = #tpu.pipeline_mode<synchronous>, transform_indices = @transform_12, window_bounds = array<i64: 1, 256>}, {pipeline_mode = #tpu.pipeline_mode<synchronous>, transform_indices = @transform_13, window_bounds = array<i64: 1, 256, 512>}, {pipeline_mode = #tpu.pipeline_mode<synchronous>, transform_indices = @transform_14, window_bounds = array<i64: 1, 512>}, {pipeline_mode = #tpu.pipeline_mode<synchronous>, transform_indices = @transform_15, window_bounds = array<i64: 512, 256>}, {pipeline_mode = #tpu.pipeline_mode<synchronous>, transform_indices = @transform_16, window_bounds = array<i64: 1, 256>}, {pipeline_mode = #tpu.pipeline_mode<synchronous>, transform_indices = @transform_17, window_bounds = array<i64: 256, 128>}, {pipeline_mode = #tpu.pipeline_mode<synchronous>, transform_indices = @transform_18, window_bounds = array<i64: 1, 128>}, {pipeline_mode = #tpu.pipeline_mode<synchronous>, transform_indices = @transform_19, window_bounds = array<i64: 2, 128>}]} {
    %c0 = arith.constant 0 : index
    %c0_0 = arith.constant 0 : index
    %0 = vector.load %arg1[%c0, %c0_0] : memref<512x4xbf16, #tpu.memory_space<vmem>>, vector<512x4xbf16>
    %c0_1 = arith.constant 0 : index
    %c0_2 = arith.constant 0 : index
    %c0_3 = arith.constant 0 : index
    %1 = vector.load %arg2[%c0_1, %c0_2, %c0_3] : memref<9x128x512xbf16, #tpu.memory_space<vmem>>, vector<1x128x512xbf16>
    %2 = vector.shape_cast %1 : vector<1x128x512xbf16> to vector<128x512xbf16>
    %cst = arith.constant dense<0.000000e+00> : vector<128x4xf32>
    %3 = tpu.matmul %2, %0, %cst {dimension_numbers = #tpu.dot_dimension_numbers<[1], [0], [0], [1], [0, 0, 1, 1], [], []>} : vector<128x512xbf16>, vector<512x4xbf16>, vector<128x4xf32> -> vector<128x4xf32>
    %4 = arith.truncf %3 : vector<128x4xf32> to vector<128x4xbf16>
    %c0_4 = arith.constant 0 : index
    %c0_5 = arith.constant 0 : index
    %c0_6 = arith.constant 0 : index
    %5 = vector.load %arg3[%c0_4, %c0_5, %c0_6] : memref<9x4x32xbf16, #tpu.memory_space<vmem>>, vector<1x4x32xbf16>
    %6 = vector.shape_cast %5 : vector<1x4x32xbf16> to vector<4x32xbf16>
    %cst_7 = arith.constant dense<0.000000e+00> : vector<128x32xf32>
    %7 = tpu.matmul %4, %6, %cst_7 {dimension_numbers = #tpu.dot_dimension_numbers<[1], [0], [0], [1], [0, 0, 1, 1], [], []>} : vector<128x4xbf16>, vector<4x32xbf16>, vector<128x32xf32> -> vector<128x32xf32>
    %c1 = arith.constant 1 : index
    %c0_8 = arith.constant 0 : index
    %c0_9 = arith.constant 0 : index
    %8 = vector.load %arg2[%c1, %c0_8, %c0_9] : memref<9x128x512xbf16, #tpu.memory_space<vmem>>, vector<1x128x512xbf16>
    %9 = vector.shape_cast %8 : vector<1x128x512xbf16> to vector<128x512xbf16>
    %cst_10 = arith.constant dense<0.000000e+00> : vector<128x4xf32>
    %10 = tpu.matmul %9, %0, %cst_10 {dimension_numbers = #tpu.dot_dimension_numbers<[1], [0], [0], [1], [0, 0, 1, 1], [], []>} : vector<128x512xbf16>, vector<512x4xbf16>, vector<128x4xf32> -> vector<128x4xf32>
    %11 = arith.truncf %10 : vector<128x4xf32> to vector<128x4xbf16>
    %c1_11 = arith.constant 1 : index
    %c0_12 = arith.constant 0 : index
    %c0_13 = arith.constant 0 : index
    %12 = vector.load %arg3[%c1_11, %c0_12, %c0_13] : memref<9x4x32xbf16, #tpu.memory_space<vmem>>, vector<1x4x32xbf16>
    %13 = vector.shape_cast %12 : vector<1x4x32xbf16> to vector<4x32xbf16>
    %cst_14 = arith.constant dense<0.000000e+00> : vector<128x32xf32>
    %14 = tpu.matmul %11, %13, %cst_14 {dimension_numbers = #tpu.dot_dimension_numbers<[1], [0], [0], [1], [0, 0, 1, 1], [], []>} : vector<128x4xbf16>, vector<4x32xbf16>, vector<128x32xf32> -> vector<128x32xf32>
    %15 = arith.addf %7, %14 : vector<128x32xf32>
    %c2 = arith.constant 2 : index
    %c0_15 = arith.constant 0 : index
    %c0_16 = arith.constant 0 : index
    %16 = vector.load %arg2[%c2, %c0_15, %c0_16] : memref<9x128x512xbf16, #tpu.memory_space<vmem>>, vector<1x128x512xbf16>
    %17 = vector.shape_cast %16 : vector<1x128x512xbf16> to vector<128x512xbf16>
    %cst_17 = arith.constant dense<0.000000e+00> : vector<128x4xf32>
    %18 = tpu.matmul %17, %0, %cst_17 {dimension_numbers = #tpu.dot_dimension_numbers<[1], [0], [0], [1], [0, 0, 1, 1], [], []>} : vector<128x512xbf16>, vector<512x4xbf16>, vector<128x4xf32> -> vector<128x4xf32>
    %19 = arith.truncf %18 : vector<128x4xf32> to vector<128x4xbf16>
    %c2_18 = arith.constant 2 : index
    %c0_19 = arith.constant 0 : index
    %c0_20 = arith.constant 0 : index
    %20 = vector.load %arg3[%c2_18, %c0_19, %c0_20] : memref<9x4x32xbf16, #tpu.memory_space<vmem>>, vector<1x4x32xbf16>
    %21 = vector.shape_cast %20 : vector<1x4x32xbf16> to vector<4x32xbf16>
    %cst_21 = arith.constant dense<0.000000e+00> : vector<128x32xf32>
    %22 = tpu.matmul %19, %21, %cst_21 {dimension_numbers = #tpu.dot_dimension_numbers<[1], [0], [0], [1], [0, 0, 1, 1], [], []>} : vector<128x4xbf16>, vector<4x32xbf16>, vector<128x32xf32> -> vector<128x32xf32>
    %23 = arith.addf %15, %22 : vector<128x32xf32>
    %c3 = arith.constant 3 : index
    %c0_22 = arith.constant 0 : index
    %c0_23 = arith.constant 0 : index
    %24 = vector.load %arg2[%c3, %c0_22, %c0_23] : memref<9x128x512xbf16, #tpu.memory_space<vmem>>, vector<1x128x512xbf16>
    %25 = vector.shape_cast %24 : vector<1x128x512xbf16> to vector<128x512xbf16>
    %cst_24 = arith.constant dense<0.000000e+00> : vector<128x4xf32>
    %26 = tpu.matmul %25, %0, %cst_24 {dimension_numbers = #tpu.dot_dimension_numbers<[1], [0], [0], [1], [0, 0, 1, 1], [], []>} : vector<128x512xbf16>, vector<512x4xbf16>, vector<128x4xf32> -> vector<128x4xf32>
    %27 = arith.truncf %26 : vector<128x4xf32> to vector<128x4xbf16>
    %c3_25 = arith.constant 3 : index
    %c0_26 = arith.constant 0 : index
    %c0_27 = arith.constant 0 : index
    %28 = vector.load %arg3[%c3_25, %c0_26, %c0_27] : memref<9x4x32xbf16, #tpu.memory_space<vmem>>, vector<1x4x32xbf16>
    %29 = vector.shape_cast %28 : vector<1x4x32xbf16> to vector<4x32xbf16>
    %cst_28 = arith.constant dense<0.000000e+00> : vector<128x32xf32>
    %30 = tpu.matmul %27, %29, %cst_28 {dimension_numbers = #tpu.dot_dimension_numbers<[1], [0], [0], [1], [0, 0, 1, 1], [], []>} : vector<128x4xbf16>, vector<4x32xbf16>, vector<128x32xf32> -> vector<128x32xf32>
    %31 = arith.addf %23, %30 : vector<128x32xf32>
    %c4 = arith.constant 4 : index
    %c0_29 = arith.constant 0 : index
    %c0_30 = arith.constant 0 : index
    %32 = vector.load %arg2[%c4, %c0_29, %c0_30] : memref<9x128x512xbf16, #tpu.memory_space<vmem>>, vector<1x128x512xbf16>
    %33 = vector.shape_cast %32 : vector<1x128x512xbf16> to vector<128x512xbf16>
    %cst_31 = arith.constant dense<0.000000e+00> : vector<128x4xf32>
    %34 = tpu.matmul %33, %0, %cst_31 {dimension_numbers = #tpu.dot_dimension_numbers<[1], [0], [0], [1], [0, 0, 1, 1], [], []>} : vector<128x512xbf16>, vector<512x4xbf16>, vector<128x4xf32> -> vector<128x4xf32>
    %35 = arith.truncf %34 : vector<128x4xf32> to vector<128x4xbf16>
    %c4_32 = arith.constant 4 : index
    %c0_33 = arith.constant 0 : index
    %c0_34 = arith.constant 0 : index
    %36 = vector.load %arg3[%c4_32, %c0_33, %c0_34] : memref<9x4x32xbf16, #tpu.memory_space<vmem>>, vector<1x4x32xbf16>
    %37 = vector.shape_cast %36 : vector<1x4x32xbf16> to vector<4x32xbf16>
    %cst_35 = arith.constant dense<0.000000e+00> : vector<128x32xf32>
    %38 = tpu.matmul %35, %37, %cst_35 {dimension_numbers = #tpu.dot_dimension_numbers<[1], [0], [0], [1], [0, 0, 1, 1], [], []>} : vector<128x4xbf16>, vector<4x32xbf16>, vector<128x32xf32> -> vector<128x32xf32>
    %39 = arith.addf %31, %38 : vector<128x32xf32>
    %c5 = arith.constant 5 : index
    %c0_36 = arith.constant 0 : index
    %c0_37 = arith.constant 0 : index
    %40 = vector.load %arg2[%c5, %c0_36, %c0_37] : memref<9x128x512xbf16, #tpu.memory_space<vmem>>, vector<1x128x512xbf16>
    %41 = vector.shape_cast %40 : vector<1x128x512xbf16> to vector<128x512xbf16>
    %cst_38 = arith.constant dense<0.000000e+00> : vector<128x4xf32>
    %42 = tpu.matmul %41, %0, %cst_38 {dimension_numbers = #tpu.dot_dimension_numbers<[1], [0], [0], [1], [0, 0, 1, 1], [], []>} : vector<128x512xbf16>, vector<512x4xbf16>, vector<128x4xf32> -> vector<128x4xf32>
    %43 = arith.truncf %42 : vector<128x4xf32> to vector<128x4xbf16>
    %c5_39 = arith.constant 5 : index
    %c0_40 = arith.constant 0 : index
    %c0_41 = arith.constant 0 : index
    %44 = vector.load %arg3[%c5_39, %c0_40, %c0_41] : memref<9x4x32xbf16, #tpu.memory_space<vmem>>, vector<1x4x32xbf16>
    %45 = vector.shape_cast %44 : vector<1x4x32xbf16> to vector<4x32xbf16>
    %cst_42 = arith.constant dense<0.000000e+00> : vector<128x32xf32>
    %46 = tpu.matmul %43, %45, %cst_42 {dimension_numbers = #tpu.dot_dimension_numbers<[1], [0], [0], [1], [0, 0, 1, 1], [], []>} : vector<128x4xbf16>, vector<4x32xbf16>, vector<128x32xf32> -> vector<128x32xf32>
    %47 = arith.addf %39, %46 : vector<128x32xf32>
    %c6 = arith.constant 6 : index
    %c0_43 = arith.constant 0 : index
    %c0_44 = arith.constant 0 : index
    %48 = vector.load %arg2[%c6, %c0_43, %c0_44] : memref<9x128x512xbf16, #tpu.memory_space<vmem>>, vector<1x128x512xbf16>
    %49 = vector.shape_cast %48 : vector<1x128x512xbf16> to vector<128x512xbf16>
    %cst_45 = arith.constant dense<0.000000e+00> : vector<128x4xf32>
    %50 = tpu.matmul %49, %0, %cst_45 {dimension_numbers = #tpu.dot_dimension_numbers<[1], [0], [0], [1], [0, 0, 1, 1], [], []>} : vector<128x512xbf16>, vector<512x4xbf16>, vector<128x4xf32> -> vector<128x4xf32>
    %51 = arith.truncf %50 : vector<128x4xf32> to vector<128x4xbf16>
    %c6_46 = arith.constant 6 : index
    %c0_47 = arith.constant 0 : index
    %c0_48 = arith.constant 0 : index
    %52 = vector.load %arg3[%c6_46, %c0_47, %c0_48] : memref<9x4x32xbf16, #tpu.memory_space<vmem>>, vector<1x4x32xbf16>
    %53 = vector.shape_cast %52 : vector<1x4x32xbf16> to vector<4x32xbf16>
    %cst_49 = arith.constant dense<0.000000e+00> : vector<128x32xf32>
    %54 = tpu.matmul %51, %53, %cst_49 {dimension_numbers = #tpu.dot_dimension_numbers<[1], [0], [0], [1], [0, 0, 1, 1], [], []>} : vector<128x4xbf16>, vector<4x32xbf16>, vector<128x32xf32> -> vector<128x32xf32>
    %55 = arith.addf %47, %54 : vector<128x32xf32>
    %c7 = arith.constant 7 : index
    %c0_50 = arith.constant 0 : index
    %c0_51 = arith.constant 0 : index
    %56 = vector.load %arg2[%c7, %c0_50, %c0_51] : memref<9x128x512xbf16, #tpu.memory_space<vmem>>, vector<1x128x512xbf16>
    %57 = vector.shape_cast %56 : vector<1x128x512xbf16> to vector<128x512xbf16>
    %cst_52 = arith.constant dense<0.000000e+00> : vector<128x4xf32>
    %58 = tpu.matmul %57, %0, %cst_52 {dimension_numbers = #tpu.dot_dimension_numbers<[1], [0], [0], [1], [0, 0, 1, 1], [], []>} : vector<128x512xbf16>, vector<512x4xbf16>, vector<128x4xf32> -> vector<128x4xf32>
    %59 = arith.truncf %58 : vector<128x4xf32> to vector<128x4xbf16>
    %c7_53 = arith.constant 7 : index
    %c0_54 = arith.constant 0 : index
    %c0_55 = arith.constant 0 : index
    %60 = vector.load %arg3[%c7_53, %c0_54, %c0_55] : memref<9x4x32xbf16, #tpu.memory_space<vmem>>, vector<1x4x32xbf16>
    %61 = vector.shape_cast %60 : vector<1x4x32xbf16> to vector<4x32xbf16>
    %cst_56 = arith.constant dense<0.000000e+00> : vector<128x32xf32>
    %62 = tpu.matmul %59, %61, %cst_56 {dimension_numbers = #tpu.dot_dimension_numbers<[1], [0], [0], [1], [0, 0, 1, 1], [], []>} : vector<128x4xbf16>, vector<4x32xbf16>, vector<128x32xf32> -> vector<128x32xf32>
    %63 = arith.addf %55, %62 : vector<128x32xf32>
    %c8 = arith.constant 8 : index
    %c0_57 = arith.constant 0 : index
    %c0_58 = arith.constant 0 : index
    %64 = vector.load %arg2[%c8, %c0_57, %c0_58] : memref<9x128x512xbf16, #tpu.memory_space<vmem>>, vector<1x128x512xbf16>
    %65 = vector.shape_cast %64 : vector<1x128x512xbf16> to vector<128x512xbf16>
    %cst_59 = arith.constant dense<0.000000e+00> : vector<128x4xf32>
    %66 = tpu.matmul %65, %0, %cst_59 {dimension_numbers = #tpu.dot_dimension_numbers<[1], [0], [0], [1], [0, 0, 1, 1], [], []>} : vector<128x512xbf16>, vector<512x4xbf16>, vector<128x4xf32> -> vector<128x4xf32>
    %67 = arith.truncf %66 : vector<128x4xf32> to vector<128x4xbf16>
    %c8_60 = arith.constant 8 : index
    %c0_61 = arith.constant 0 : index
    %c0_62 = arith.constant 0 : index
    %68 = vector.load %arg3[%c8_60, %c0_61, %c0_62] : memref<9x4x32xbf16, #tpu.memory_space<vmem>>, vector<1x4x32xbf16>
    %69 = vector.shape_cast %68 : vector<1x4x32xbf16> to vector<4x32xbf16>
    %cst_63 = arith.constant dense<0.000000e+00> : vector<128x32xf32>
    %70 = tpu.matmul %67, %69, %cst_63 {dimension_numbers = #tpu.dot_dimension_numbers<[1], [0], [0], [1], [0, 0, 1, 1], [], []>} : vector<128x4xbf16>, vector<4x32xbf16>, vector<128x32xf32> -> vector<128x32xf32>
    %71 = arith.addf %63, %70 : vector<128x32xf32>
    %c0_64 = arith.constant 0 : index
    %c0_65 = arith.constant 0 : index
    %72 = vector.load %arg4[%c0_64, %c0_65] : memref<1x32xf32, #tpu.memory_space<vmem>>, vector<1x32xf32>
    %73 = vector.broadcast %72 : vector<1x32xf32> to vector<128x32xf32>
    %74 = arith.addf %71, %73 : vector<128x32xf32>
    %cst_66 = arith.constant 0.000000e+00 : f32
    %75 = vector.broadcast %cst_66 : f32 to vector<128x32xf32>
    %76 = arith.cmpf ogt, %74, %75 : vector<128x32xf32>
    %cst_67 = arith.constant 0.00999999977 : f32
    %77 = vector.broadcast %cst_67 : f32 to vector<128x32xf32>
    %78 = arith.mulf %77, %74 : vector<128x32xf32>
    %79 = arith.select %76, %74, %78 : vector<128x32xi1>, vector<128x32xf32>
    %80 = arith.truncf %79 : vector<128x32xf32> to vector<128x32xbf16>
    %c0_68 = arith.constant 0 : index
    %c0_69 = arith.constant 0 : index
    %c0_70 = arith.constant 0 : index
    %81 = vector.load %arg5[%c0_68, %c0_69, %c0_70] : memref<9x32x128xbf16, #tpu.memory_space<vmem>>, vector<1x32x128xbf16>
    %82 = vector.shape_cast %81 : vector<1x32x128xbf16> to vector<32x128xbf16>
    %cst_71 = arith.constant dense<0.000000e+00> : vector<32x32xf32>
    %83 = tpu.matmul %82, %80, %cst_71 {dimension_numbers = #tpu.dot_dimension_numbers<[1], [0], [0], [1], [0, 0, 1, 1], [], []>} : vector<32x128xbf16>, vector<128x32xbf16>, vector<32x32xf32> -> vector<32x32xf32>
    %84 = arith.truncf %83 : vector<32x32xf32> to vector<32x32xbf16>
    %c0_72 = arith.constant 0 : index
    %c0_73 = arith.constant 0 : index
    %c0_74 = arith.constant 0 : index
    %85 = vector.load %arg6[%c0_72, %c0_73, %c0_74] : memref<9x32x64xbf16, #tpu.memory_space<vmem>>, vector<1x32x64xbf16>
    %86 = vector.shape_cast %85 : vector<1x32x64xbf16> to vector<32x64xbf16>
    %cst_75 = arith.constant dense<0.000000e+00> : vector<32x64xf32>
    %87 = tpu.matmul %84, %86, %cst_75 {dimension_numbers = #tpu.dot_dimension_numbers<[1], [0], [0], [1], [0, 0, 1, 1], [], []>} : vector<32x32xbf16>, vector<32x64xbf16>, vector<32x64xf32> -> vector<32x64xf32>
    %c1_76 = arith.constant 1 : index
    %c0_77 = arith.constant 0 : index
    %c0_78 = arith.constant 0 : index
    %88 = vector.load %arg5[%c1_76, %c0_77, %c0_78] : memref<9x32x128xbf16, #tpu.memory_space<vmem>>, vector<1x32x128xbf16>
    %89 = vector.shape_cast %88 : vector<1x32x128xbf16> to vector<32x128xbf16>
    %cst_79 = arith.constant dense<0.000000e+00> : vector<32x32xf32>
    %90 = tpu.matmul %89, %80, %cst_79 {dimension_numbers = #tpu.dot_dimension_numbers<[1], [0], [0], [1], [0, 0, 1, 1], [], []>} : vector<32x128xbf16>, vector<128x32xbf16>, vector<32x32xf32> -> vector<32x32xf32>
    %91 = arith.truncf %90 : vector<32x32xf32> to vector<32x32xbf16>
    %c1_80 = arith.constant 1 : index
    %c0_81 = arith.constant 0 : index
    %c0_82 = arith.constant 0 : index
    %92 = vector.load %arg6[%c1_80, %c0_81, %c0_82] : memref<9x32x64xbf16, #tpu.memory_space<vmem>>, vector<1x32x64xbf16>
    %93 = vector.shape_cast %92 : vector<1x32x64xbf16> to vector<32x64xbf16>
    %cst_83 = arith.constant dense<0.000000e+00> : vector<32x64xf32>
    %94 = tpu.matmul %91, %93, %cst_83 {dimension_numbers = #tpu.dot_dimension_numbers<[1], [0], [0], [1], [0, 0, 1, 1], [], []>} : vector<32x32xbf16>, vector<32x64xbf16>, vector<32x64xf32> -> vector<32x64xf32>
    %95 = arith.addf %87, %94 : vector<32x64xf32>
    %c2_84 = arith.constant 2 : index
    %c0_85 = arith.constant 0 : index
    %c0_86 = arith.constant 0 : index
    %96 = vector.load %arg5[%c2_84, %c0_85, %c0_86] : memref<9x32x128xbf16, #tpu.memory_space<vmem>>, vector<1x32x128xbf16>
    %97 = vector.shape_cast %96 : vector<1x32x128xbf16> to vector<32x128xbf16>
    %cst_87 = arith.constant dense<0.000000e+00> : vector<32x32xf32>
    %98 = tpu.matmul %97, %80, %cst_87 {dimension_numbers = #tpu.dot_dimension_numbers<[1], [0], [0], [1], [0, 0, 1, 1], [], []>} : vector<32x128xbf16>, vector<128x32xbf16>, vector<32x32xf32> -> vector<32x32xf32>
    %99 = arith.truncf %98 : vector<32x32xf32> to vector<32x32xbf16>
    %c2_88 = arith.constant 2 : index
    %c0_89 = arith.constant 0 : index
    %c0_90 = arith.constant 0 : index
    %100 = vector.load %arg6[%c2_88, %c0_89, %c0_90] : memref<9x32x64xbf16, #tpu.memory_space<vmem>>, vector<1x32x64xbf16>
    %101 = vector.shape_cast %100 : vector<1x32x64xbf16> to vector<32x64xbf16>
    %cst_91 = arith.constant dense<0.000000e+00> : vector<32x64xf32>
    %102 = tpu.matmul %99, %101, %cst_91 {dimension_numbers = #tpu.dot_dimension_numbers<[1], [0], [0], [1], [0, 0, 1, 1], [], []>} : vector<32x32xbf16>, vector<32x64xbf16>, vector<32x64xf32> -> vector<32x64xf32>
    %103 = arith.addf %95, %102 : vector<32x64xf32>
    %c3_92 = arith.constant 3 : index
    %c0_93 = arith.constant 0 : index
    %c0_94 = arith.constant 0 : index
    %104 = vector.load %arg5[%c3_92, %c0_93, %c0_94] : memref<9x32x128xbf16, #tpu.memory_space<vmem>>, vector<1x32x128xbf16>
    %105 = vector.shape_cast %104 : vector<1x32x128xbf16> to vector<32x128xbf16>
    %cst_95 = arith.constant dense<0.000000e+00> : vector<32x32xf32>
    %106 = tpu.matmul %105, %80, %cst_95 {dimension_numbers = #tpu.dot_dimension_numbers<[1], [0], [0], [1], [0, 0, 1, 1], [], []>} : vector<32x128xbf16>, vector<128x32xbf16>, vector<32x32xf32> -> vector<32x32xf32>
    %107 = arith.truncf %106 : vector<32x32xf32> to vector<32x32xbf16>
    %c3_96 = arith.constant 3 : index
    %c0_97 = arith.constant 0 : index
    %c0_98 = arith.constant 0 : index
    %108 = vector.load %arg6[%c3_96, %c0_97, %c0_98] : memref<9x32x64xbf16, #tpu.memory_space<vmem>>, vector<1x32x64xbf16>
    %109 = vector.shape_cast %108 : vector<1x32x64xbf16> to vector<32x64xbf16>
    %cst_99 = arith.constant dense<0.000000e+00> : vector<32x64xf32>
    %110 = tpu.matmul %107, %109, %cst_99 {dimension_numbers = #tpu.dot_dimension_numbers<[1], [0], [0], [1], [0, 0, 1, 1], [], []>} : vector<32x32xbf16>, vector<32x64xbf16>, vector<32x64xf32> -> vector<32x64xf32>
    %111 = arith.addf %103, %110 : vector<32x64xf32>
    %c4_100 = arith.constant 4 : index
    %c0_101 = arith.constant 0 : index
    %c0_102 = arith.constant 0 : index
    %112 = vector.load %arg5[%c4_100, %c0_101, %c0_102] : memref<9x32x128xbf16, #tpu.memory_space<vmem>>, vector<1x32x128xbf16>
    %113 = vector.shape_cast %112 : vector<1x32x128xbf16> to vector<32x128xbf16>
    %cst_103 = arith.constant dense<0.000000e+00> : vector<32x32xf32>
    %114 = tpu.matmul %113, %80, %cst_103 {dimension_numbers = #tpu.dot_dimension_numbers<[1], [0], [0], [1], [0, 0, 1, 1], [], []>} : vector<32x128xbf16>, vector<128x32xbf16>, vector<32x32xf32> -> vector<32x32xf32>
    %115 = arith.truncf %114 : vector<32x32xf32> to vector<32x32xbf16>
    %c4_104 = arith.constant 4 : index
    %c0_105 = arith.constant 0 : index
    %c0_106 = arith.constant 0 : index
    %116 = vector.load %arg6[%c4_104, %c0_105, %c0_106] : memref<9x32x64xbf16, #tpu.memory_space<vmem>>, vector<1x32x64xbf16>
    %117 = vector.shape_cast %116 : vector<1x32x64xbf16> to vector<32x64xbf16>
    %cst_107 = arith.constant dense<0.000000e+00> : vector<32x64xf32>
    %118 = tpu.matmul %115, %117, %cst_107 {dimension_numbers = #tpu.dot_dimension_numbers<[1], [0], [0], [1], [0, 0, 1, 1], [], []>} : vector<32x32xbf16>, vector<32x64xbf16>, vector<32x64xf32> -> vector<32x64xf32>
    %119 = arith.addf %111, %118 : vector<32x64xf32>
    %c5_108 = arith.constant 5 : index
    %c0_109 = arith.constant 0 : index
    %c0_110 = arith.constant 0 : index
    %120 = vector.load %arg5[%c5_108, %c0_109, %c0_110] : memref<9x32x128xbf16, #tpu.memory_space<vmem>>, vector<1x32x128xbf16>
    %121 = vector.shape_cast %120 : vector<1x32x128xbf16> to vector<32x128xbf16>
    %cst_111 = arith.constant dense<0.000000e+00> : vector<32x32xf32>
    %122 = tpu.matmul %121, %80, %cst_111 {dimension_numbers = #tpu.dot_dimension_numbers<[1], [0], [0], [1], [0, 0, 1, 1], [], []>} : vector<32x128xbf16>, vector<128x32xbf16>, vector<32x32xf32> -> vector<32x32xf32>
    %123 = arith.truncf %122 : vector<32x32xf32> to vector<32x32xbf16>
    %c5_112 = arith.constant 5 : index
    %c0_113 = arith.constant 0 : index
    %c0_114 = arith.constant 0 : index
    %124 = vector.load %arg6[%c5_112, %c0_113, %c0_114] : memref<9x32x64xbf16, #tpu.memory_space<vmem>>, vector<1x32x64xbf16>
    %125 = vector.shape_cast %124 : vector<1x32x64xbf16> to vector<32x64xbf16>
    %cst_115 = arith.constant dense<0.000000e+00> : vector<32x64xf32>
    %126 = tpu.matmul %123, %125, %cst_115 {dimension_numbers = #tpu.dot_dimension_numbers<[1], [0], [0], [1], [0, 0, 1, 1], [], []>} : vector<32x32xbf16>, vector<32x64xbf16>, vector<32x64xf32> -> vector<32x64xf32>
    %127 = arith.addf %119, %126 : vector<32x64xf32>
    %c6_116 = arith.constant 6 : index
    %c0_117 = arith.constant 0 : index
    %c0_118 = arith.constant 0 : index
    %128 = vector.load %arg5[%c6_116, %c0_117, %c0_118] : memref<9x32x128xbf16, #tpu.memory_space<vmem>>, vector<1x32x128xbf16>
    %129 = vector.shape_cast %128 : vector<1x32x128xbf16> to vector<32x128xbf16>
    %cst_119 = arith.constant dense<0.000000e+00> : vector<32x32xf32>
    %130 = tpu.matmul %129, %80, %cst_119 {dimension_numbers = #tpu.dot_dimension_numbers<[1], [0], [0], [1], [0, 0, 1, 1], [], []>} : vector<32x128xbf16>, vector<128x32xbf16>, vector<32x32xf32> -> vector<32x32xf32>
    %131 = arith.truncf %130 : vector<32x32xf32> to vector<32x32xbf16>
    %c6_120 = arith.constant 6 : index
    %c0_121 = arith.constant 0 : index
    %c0_122 = arith.constant 0 : index
    %132 = vector.load %arg6[%c6_120, %c0_121, %c0_122] : memref<9x32x64xbf16, #tpu.memory_space<vmem>>, vector<1x32x64xbf16>
    %133 = vector.shape_cast %132 : vector<1x32x64xbf16> to vector<32x64xbf16>
    %cst_123 = arith.constant dense<0.000000e+00> : vector<32x64xf32>
    %134 = tpu.matmul %131, %133, %cst_123 {dimension_numbers = #tpu.dot_dimension_numbers<[1], [0], [0], [1], [0, 0, 1, 1], [], []>} : vector<32x32xbf16>, vector<32x64xbf16>, vector<32x64xf32> -> vector<32x64xf32>
    %135 = arith.addf %127, %134 : vector<32x64xf32>
    %c7_124 = arith.constant 7 : index
    %c0_125 = arith.constant 0 : index
    %c0_126 = arith.constant 0 : index
    %136 = vector.load %arg5[%c7_124, %c0_125, %c0_126] : memref<9x32x128xbf16, #tpu.memory_space<vmem>>, vector<1x32x128xbf16>
    %137 = vector.shape_cast %136 : vector<1x32x128xbf16> to vector<32x128xbf16>
    %cst_127 = arith.constant dense<0.000000e+00> : vector<32x32xf32>
    %138 = tpu.matmul %137, %80, %cst_127 {dimension_numbers = #tpu.dot_dimension_numbers<[1], [0], [0], [1], [0, 0, 1, 1], [], []>} : vector<32x128xbf16>, vector<128x32xbf16>, vector<32x32xf32> -> vector<32x32xf32>
    %139 = arith.truncf %138 : vector<32x32xf32> to vector<32x32xbf16>
    %c7_128 = arith.constant 7 : index
    %c0_129 = arith.constant 0 : index
    %c0_130 = arith.constant 0 : index
    %140 = vector.load %arg6[%c7_128, %c0_129, %c0_130] : memref<9x32x64xbf16, #tpu.memory_space<vmem>>, vector<1x32x64xbf16>
    %141 = vector.shape_cast %140 : vector<1x32x64xbf16> to vector<32x64xbf16>
    %cst_131 = arith.constant dense<0.000000e+00> : vector<32x64xf32>
    %142 = tpu.matmul %139, %141, %cst_131 {dimension_numbers = #tpu.dot_dimension_numbers<[1], [0], [0], [1], [0, 0, 1, 1], [], []>} : vector<32x32xbf16>, vector<32x64xbf16>, vector<32x64xf32> -> vector<32x64xf32>
    %143 = arith.addf %135, %142 : vector<32x64xf32>
    %c8_132 = arith.constant 8 : index
    %c0_133 = arith.constant 0 : index
    %c0_134 = arith.constant 0 : index
    %144 = vector.load %arg5[%c8_132, %c0_133, %c0_134] : memref<9x32x128xbf16, #tpu.memory_space<vmem>>, vector<1x32x128xbf16>
    %145 = vector.shape_cast %144 : vector<1x32x128xbf16> to vector<32x128xbf16>
    %cst_135 = arith.constant dense<0.000000e+00> : vector<32x32xf32>
    %146 = tpu.matmul %145, %80, %cst_135 {dimension_numbers = #tpu.dot_dimension_numbers<[1], [0], [0], [1], [0, 0, 1, 1], [], []>} : vector<32x128xbf16>, vector<128x32xbf16>, vector<32x32xf32> -> vector<32x32xf32>
    %147 = arith.truncf %146 : vector<32x32xf32> to vector<32x32xbf16>
    %c8_136 = arith.constant 8 : index
    %c0_137 = arith.constant 0 : index
    %c0_138 = arith.constant 0 : index
    %148 = vector.load %arg6[%c8_136, %c0_137, %c0_138] : memref<9x32x64xbf16, #tpu.memory_space<vmem>>, vector<1x32x64xbf16>
    %149 = vector.shape_cast %148 : vector<1x32x64xbf16> to vector<32x64xbf16>
    %cst_139 = arith.constant dense<0.000000e+00> : vector<32x64xf32>
    %150 = tpu.matmul %147, %149, %cst_139 {dimension_numbers = #tpu.dot_dimension_numbers<[1], [0], [0], [1], [0, 0, 1, 1], [], []>} : vector<32x32xbf16>, vector<32x64xbf16>, vector<32x64xf32> -> vector<32x64xf32>
    %151 = arith.addf %143, %150 : vector<32x64xf32>
    %c0_140 = arith.constant 0 : index
    %c0_141 = arith.constant 0 : index
    %152 = vector.load %arg7[%c0_140, %c0_141] : memref<1x64xf32, #tpu.memory_space<vmem>>, vector<1x64xf32>
    %153 = vector.broadcast %152 : vector<1x64xf32> to vector<32x64xf32>
    %154 = arith.addf %151, %153 : vector<32x64xf32>
    %cst_142 = arith.constant 0.000000e+00 : f32
    %155 = vector.broadcast %cst_142 : f32 to vector<32x64xf32>
    %156 = arith.cmpf ogt, %154, %155 : vector<32x64xf32>
    %cst_143 = arith.constant 0.00999999977 : f32
    %157 = vector.broadcast %cst_143 : f32 to vector<32x64xf32>
    %158 = arith.mulf %157, %154 : vector<32x64xf32>
    %159 = arith.select %156, %154, %158 : vector<32x64xi1>, vector<32x64xf32>
    %160 = arith.truncf %159 : vector<32x64xf32> to vector<32x64xbf16>
    %c0_144 = arith.constant 0 : index
    %c0_145 = arith.constant 0 : index
    %c0_146 = arith.constant 0 : index
    %161 = vector.load %arg8[%c0_144, %c0_145, %c0_146] : memref<9x8x32xbf16, #tpu.memory_space<vmem>>, vector<1x8x32xbf16>
    %162 = vector.shape_cast %161 : vector<1x8x32xbf16> to vector<8x32xbf16>
    %cst_147 = arith.constant dense<0.000000e+00> : vector<8x64xf32>
    %163 = tpu.matmul %162, %160, %cst_147 {dimension_numbers = #tpu.dot_dimension_numbers<[1], [0], [0], [1], [0, 0, 1, 1], [], []>} : vector<8x32xbf16>, vector<32x64xbf16>, vector<8x64xf32> -> vector<8x64xf32>
    %164 = arith.truncf %163 : vector<8x64xf32> to vector<8x64xbf16>
    %c0_148 = arith.constant 0 : index
    %c0_149 = arith.constant 0 : index
    %c0_150 = arith.constant 0 : index
    %165 = vector.load %arg9[%c0_148, %c0_149, %c0_150] : memref<9x64x128xbf16, #tpu.memory_space<vmem>>, vector<1x64x128xbf16>
    %166 = vector.shape_cast %165 : vector<1x64x128xbf16> to vector<64x128xbf16>
    %cst_151 = arith.constant dense<0.000000e+00> : vector<8x128xf32>
    %167 = tpu.matmul %164, %166, %cst_151 {dimension_numbers = #tpu.dot_dimension_numbers<[1], [0], [0], [1], [0, 0, 1, 1], [], []>} : vector<8x64xbf16>, vector<64x128xbf16>, vector<8x128xf32> -> vector<8x128xf32>
    %c1_152 = arith.constant 1 : index
    %c0_153 = arith.constant 0 : index
    %c0_154 = arith.constant 0 : index
    %168 = vector.load %arg8[%c1_152, %c0_153, %c0_154] : memref<9x8x32xbf16, #tpu.memory_space<vmem>>, vector<1x8x32xbf16>
    %169 = vector.shape_cast %168 : vector<1x8x32xbf16> to vector<8x32xbf16>
    %cst_155 = arith.constant dense<0.000000e+00> : vector<8x64xf32>
    %170 = tpu.matmul %169, %160, %cst_155 {dimension_numbers = #tpu.dot_dimension_numbers<[1], [0], [0], [1], [0, 0, 1, 1], [], []>} : vector<8x32xbf16>, vector<32x64xbf16>, vector<8x64xf32> -> vector<8x64xf32>
    %171 = arith.truncf %170 : vector<8x64xf32> to vector<8x64xbf16>
    %c1_156 = arith.constant 1 : index
    %c0_157 = arith.constant 0 : index
    %c0_158 = arith.constant 0 : index
    %172 = vector.load %arg9[%c1_156, %c0_157, %c0_158] : memref<9x64x128xbf16, #tpu.memory_space<vmem>>, vector<1x64x128xbf16>
    %173 = vector.shape_cast %172 : vector<1x64x128xbf16> to vector<64x128xbf16>
    %cst_159 = arith.constant dense<0.000000e+00> : vector<8x128xf32>
    %174 = tpu.matmul %171, %173, %cst_159 {dimension_numbers = #tpu.dot_dimension_numbers<[1], [0], [0], [1], [0, 0, 1, 1], [], []>} : vector<8x64xbf16>, vector<64x128xbf16>, vector<8x128xf32> -> vector<8x128xf32>
    %175 = arith.addf %167, %174 : vector<8x128xf32>
    %c2_160 = arith.constant 2 : index
    %c0_161 = arith.constant 0 : index
    %c0_162 = arith.constant 0 : index
    %176 = vector.load %arg8[%c2_160, %c0_161, %c0_162] : memref<9x8x32xbf16, #tpu.memory_space<vmem>>, vector<1x8x32xbf16>
    %177 = vector.shape_cast %176 : vector<1x8x32xbf16> to vector<8x32xbf16>
    %cst_163 = arith.constant dense<0.000000e+00> : vector<8x64xf32>
    %178 = tpu.matmul %177, %160, %cst_163 {dimension_numbers = #tpu.dot_dimension_numbers<[1], [0], [0], [1], [0, 0, 1, 1], [], []>} : vector<8x32xbf16>, vector<32x64xbf16>, vector<8x64xf32> -> vector<8x64xf32>
    %179 = arith.truncf %178 : vector<8x64xf32> to vector<8x64xbf16>
    %c2_164 = arith.constant 2 : index
    %c0_165 = arith.constant 0 : index
    %c0_166 = arith.constant 0 : index
    %180 = vector.load %arg9[%c2_164, %c0_165, %c0_166] : memref<9x64x128xbf16, #tpu.memory_space<vmem>>, vector<1x64x128xbf16>
    %181 = vector.shape_cast %180 : vector<1x64x128xbf16> to vector<64x128xbf16>
    %cst_167 = arith.constant dense<0.000000e+00> : vector<8x128xf32>
    %182 = tpu.matmul %179, %181, %cst_167 {dimension_numbers = #tpu.dot_dimension_numbers<[1], [0], [0], [1], [0, 0, 1, 1], [], []>} : vector<8x64xbf16>, vector<64x128xbf16>, vector<8x128xf32> -> vector<8x128xf32>
    %183 = arith.addf %175, %182 : vector<8x128xf32>
    %c3_168 = arith.constant 3 : index
    %c0_169 = arith.constant 0 : index
    %c0_170 = arith.constant 0 : index
    %184 = vector.load %arg8[%c3_168, %c0_169, %c0_170] : memref<9x8x32xbf16, #tpu.memory_space<vmem>>, vector<1x8x32xbf16>
    %185 = vector.shape_cast %184 : vector<1x8x32xbf16> to vector<8x32xbf16>
    %cst_171 = arith.constant dense<0.000000e+00> : vector<8x64xf32>
    %186 = tpu.matmul %185, %160, %cst_171 {dimension_numbers = #tpu.dot_dimension_numbers<[1], [0], [0], [1], [0, 0, 1, 1], [], []>} : vector<8x32xbf16>, vector<32x64xbf16>, vector<8x64xf32> -> vector<8x64xf32>
    %187 = arith.truncf %186 : vector<8x64xf32> to vector<8x64xbf16>
    %c3_172 = arith.constant 3 : index
    %c0_173 = arith.constant 0 : index
    %c0_174 = arith.constant 0 : index
    %188 = vector.load %arg9[%c3_172, %c0_173, %c0_174] : memref<9x64x128xbf16, #tpu.memory_space<vmem>>, vector<1x64x128xbf16>
    %189 = vector.shape_cast %188 : vector<1x64x128xbf16> to vector<64x128xbf16>
    %cst_175 = arith.constant dense<0.000000e+00> : vector<8x128xf32>
    %190 = tpu.matmul %187, %189, %cst_175 {dimension_numbers = #tpu.dot_dimension_numbers<[1], [0], [0], [1], [0, 0, 1, 1], [], []>} : vector<8x64xbf16>, vector<64x128xbf16>, vector<8x128xf32> -> vector<8x128xf32>
    %191 = arith.addf %183, %190 : vector<8x128xf32>
    %c4_176 = arith.constant 4 : index
    %c0_177 = arith.constant 0 : index
    %c0_178 = arith.constant 0 : index
    %192 = vector.load %arg8[%c4_176, %c0_177, %c0_178] : memref<9x8x32xbf16, #tpu.memory_space<vmem>>, vector<1x8x32xbf16>
    %193 = vector.shape_cast %192 : vector<1x8x32xbf16> to vector<8x32xbf16>
    %cst_179 = arith.constant dense<0.000000e+00> : vector<8x64xf32>
    %194 = tpu.matmul %193, %160, %cst_179 {dimension_numbers = #tpu.dot_dimension_numbers<[1], [0], [0], [1], [0, 0, 1, 1], [], []>} : vector<8x32xbf16>, vector<32x64xbf16>, vector<8x64xf32> -> vector<8x64xf32>
    %195 = arith.truncf %194 : vector<8x64xf32> to vector<8x64xbf16>
    %c4_180 = arith.constant 4 : index
    %c0_181 = arith.constant 0 : index
    %c0_182 = arith.constant 0 : index
    %196 = vector.load %arg9[%c4_180, %c0_181, %c0_182] : memref<9x64x128xbf16, #tpu.memory_space<vmem>>, vector<1x64x128xbf16>
    %197 = vector.shape_cast %196 : vector<1x64x128xbf16> to vector<64x128xbf16>
    %cst_183 = arith.constant dense<0.000000e+00> : vector<8x128xf32>
    %198 = tpu.matmul %195, %197, %cst_183 {dimension_numbers = #tpu.dot_dimension_numbers<[1], [0], [0], [1], [0, 0, 1, 1], [], []>} : vector<8x64xbf16>, vector<64x128xbf16>, vector<8x128xf32> -> vector<8x128xf32>
    %199 = arith.addf %191, %198 : vector<8x128xf32>
    %c5_184 = arith.constant 5 : index
    %c0_185 = arith.constant 0 : index
    %c0_186 = arith.constant 0 : index
    %200 = vector.load %arg8[%c5_184, %c0_185, %c0_186] : memref<9x8x32xbf16, #tpu.memory_space<vmem>>, vector<1x8x32xbf16>
    %201 = vector.shape_cast %200 : vector<1x8x32xbf16> to vector<8x32xbf16>
    %cst_187 = arith.constant dense<0.000000e+00> : vector<8x64xf32>
    %202 = tpu.matmul %201, %160, %cst_187 {dimension_numbers = #tpu.dot_dimension_numbers<[1], [0], [0], [1], [0, 0, 1, 1], [], []>} : vector<8x32xbf16>, vector<32x64xbf16>, vector<8x64xf32> -> vector<8x64xf32>
    %203 = arith.truncf %202 : vector<8x64xf32> to vector<8x64xbf16>
    %c5_188 = arith.constant 5 : index
    %c0_189 = arith.constant 0 : index
    %c0_190 = arith.constant 0 : index
    %204 = vector.load %arg9[%c5_188, %c0_189, %c0_190] : memref<9x64x128xbf16, #tpu.memory_space<vmem>>, vector<1x64x128xbf16>
    %205 = vector.shape_cast %204 : vector<1x64x128xbf16> to vector<64x128xbf16>
    %cst_191 = arith.constant dense<0.000000e+00> : vector<8x128xf32>
    %206 = tpu.matmul %203, %205, %cst_191 {dimension_numbers = #tpu.dot_dimension_numbers<[1], [0], [0], [1], [0, 0, 1, 1], [], []>} : vector<8x64xbf16>, vector<64x128xbf16>, vector<8x128xf32> -> vector<8x128xf32>
    %207 = arith.addf %199, %206 : vector<8x128xf32>
    %c6_192 = arith.constant 6 : index
    %c0_193 = arith.constant 0 : index
    %c0_194 = arith.constant 0 : index
    %208 = vector.load %arg8[%c6_192, %c0_193, %c0_194] : memref<9x8x32xbf16, #tpu.memory_space<vmem>>, vector<1x8x32xbf16>
    %209 = vector.shape_cast %208 : vector<1x8x32xbf16> to vector<8x32xbf16>
    %cst_195 = arith.constant dense<0.000000e+00> : vector<8x64xf32>
    %210 = tpu.matmul %209, %160, %cst_195 {dimension_numbers = #tpu.dot_dimension_numbers<[1], [0], [0], [1], [0, 0, 1, 1], [], []>} : vector<8x32xbf16>, vector<32x64xbf16>, vector<8x64xf32> -> vector<8x64xf32>
    %211 = arith.truncf %210 : vector<8x64xf32> to vector<8x64xbf16>
    %c6_196 = arith.constant 6 : index
    %c0_197 = arith.constant 0 : index
    %c0_198 = arith.constant 0 : index
    %212 = vector.load %arg9[%c6_196, %c0_197, %c0_198] : memref<9x64x128xbf16, #tpu.memory_space<vmem>>, vector<1x64x128xbf16>
    %213 = vector.shape_cast %212 : vector<1x64x128xbf16> to vector<64x128xbf16>
    %cst_199 = arith.constant dense<0.000000e+00> : vector<8x128xf32>
    %214 = tpu.matmul %211, %213, %cst_199 {dimension_numbers = #tpu.dot_dimension_numbers<[1], [0], [0], [1], [0, 0, 1, 1], [], []>} : vector<8x64xbf16>, vector<64x128xbf16>, vector<8x128xf32> -> vector<8x128xf32>
    %215 = arith.addf %207, %214 : vector<8x128xf32>
    %c7_200 = arith.constant 7 : index
    %c0_201 = arith.constant 0 : index
    %c0_202 = arith.constant 0 : index
    %216 = vector.load %arg8[%c7_200, %c0_201, %c0_202] : memref<9x8x32xbf16, #tpu.memory_space<vmem>>, vector<1x8x32xbf16>
    %217 = vector.shape_cast %216 : vector<1x8x32xbf16> to vector<8x32xbf16>
    %cst_203 = arith.constant dense<0.000000e+00> : vector<8x64xf32>
    %218 = tpu.matmul %217, %160, %cst_203 {dimension_numbers = #tpu.dot_dimension_numbers<[1], [0], [0], [1], [0, 0, 1, 1], [], []>} : vector<8x32xbf16>, vector<32x64xbf16>, vector<8x64xf32> -> vector<8x64xf32>
    %219 = arith.truncf %218 : vector<8x64xf32> to vector<8x64xbf16>
    %c7_204 = arith.constant 7 : index
    %c0_205 = arith.constant 0 : index
    %c0_206 = arith.constant 0 : index
    %220 = vector.load %arg9[%c7_204, %c0_205, %c0_206] : memref<9x64x128xbf16, #tpu.memory_space<vmem>>, vector<1x64x128xbf16>
    %221 = vector.shape_cast %220 : vector<1x64x128xbf16> to vector<64x128xbf16>
    %cst_207 = arith.constant dense<0.000000e+00> : vector<8x128xf32>
    %222 = tpu.matmul %219, %221, %cst_207 {dimension_numbers = #tpu.dot_dimension_numbers<[1], [0], [0], [1], [0, 0, 1, 1], [], []>} : vector<8x64xbf16>, vector<64x128xbf16>, vector<8x128xf32> -> vector<8x128xf32>
    %223 = arith.addf %215, %222 : vector<8x128xf32>
    %c8_208 = arith.constant 8 : index
    %c0_209 = arith.constant 0 : index
    %c0_210 = arith.constant 0 : index
    %224 = vector.load %arg8[%c8_208, %c0_209, %c0_210] : memref<9x8x32xbf16, #tpu.memory_space<vmem>>, vector<1x8x32xbf16>
    %225 = vector.shape_cast %224 : vector<1x8x32xbf16> to vector<8x32xbf16>
    %cst_211 = arith.constant dense<0.000000e+00> : vector<8x64xf32>
    %226 = tpu.matmul %225, %160, %cst_211 {dimension_numbers = #tpu.dot_dimension_numbers<[1], [0], [0], [1], [0, 0, 1, 1], [], []>} : vector<8x32xbf16>, vector<32x64xbf16>, vector<8x64xf32> -> vector<8x64xf32>
    %227 = arith.truncf %226 : vector<8x64xf32> to vector<8x64xbf16>
    %c8_212 = arith.constant 8 : index
    %c0_213 = arith.constant 0 : index
    %c0_214 = arith.constant 0 : index
    %228 = vector.load %arg9[%c8_212, %c0_213, %c0_214] : memref<9x64x128xbf16, #tpu.memory_space<vmem>>, vector<1x64x128xbf16>
    %229 = vector.shape_cast %228 : vector<1x64x128xbf16> to vector<64x128xbf16>
    %cst_215 = arith.constant dense<0.000000e+00> : vector<8x128xf32>
    %230 = tpu.matmul %227, %229, %cst_215 {dimension_numbers = #tpu.dot_dimension_numbers<[1], [0], [0], [1], [0, 0, 1, 1], [], []>} : vector<8x64xbf16>, vector<64x128xbf16>, vector<8x128xf32> -> vector<8x128xf32>
    %231 = arith.addf %223, %230 : vector<8x128xf32>
    %c0_216 = arith.constant 0 : index
    %c0_217 = arith.constant 0 : index
    %232 = vector.load %arg10[%c0_216, %c0_217] : memref<1x128xf32, #tpu.memory_space<vmem>>, vector<1x128xf32>
    %233 = vector.broadcast %232 : vector<1x128xf32> to vector<8x128xf32>
    %234 = arith.addf %231, %233 : vector<8x128xf32>
    %cst_218 = arith.constant 0.000000e+00 : f32
    %235 = vector.broadcast %cst_218 : f32 to vector<8x128xf32>
    %236 = arith.cmpf ogt, %234, %235 : vector<8x128xf32>
    %cst_219 = arith.constant 0.00999999977 : f32
    %237 = vector.broadcast %cst_219 : f32 to vector<8x128xf32>
    %238 = arith.mulf %237, %234 : vector<8x128xf32>
    %239 = arith.select %236, %234, %238 : vector<8x128xi1>, vector<8x128xf32>
    %240 = arith.truncf %239 : vector<8x128xf32> to vector<8x128xbf16>
    %c0_220 = arith.constant 0 : index
    %c0_221 = arith.constant 0 : index
    %c0_222 = arith.constant 0 : index
    %241 = vector.load %arg11[%c0_220, %c0_221, %c0_222] : memref<9x2x8xbf16, #tpu.memory_space<vmem>>, vector<1x2x8xbf16>
    %242 = vector.shape_cast %241 : vector<1x2x8xbf16> to vector<2x8xbf16>
    %cst_223 = arith.constant dense<0.000000e+00> : vector<2x128xf32>
    %243 = tpu.matmul %242, %240, %cst_223 {dimension_numbers = #tpu.dot_dimension_numbers<[1], [0], [0], [1], [0, 0, 1, 1], [], []>} : vector<2x8xbf16>, vector<8x128xbf16>, vector<2x128xf32> -> vector<2x128xf32>
    %244 = arith.truncf %243 : vector<2x128xf32> to vector<2x128xbf16>
    %c0_224 = arith.constant 0 : index
    %c0_225 = arith.constant 0 : index
    %c0_226 = arith.constant 0 : index
    %245 = vector.load %arg12[%c0_224, %c0_225, %c0_226] : memref<9x128x256xbf16, #tpu.memory_space<vmem>>, vector<1x128x256xbf16>
    %246 = vector.shape_cast %245 : vector<1x128x256xbf16> to vector<128x256xbf16>
    %cst_227 = arith.constant dense<0.000000e+00> : vector<2x256xf32>
    %247 = tpu.matmul %244, %246, %cst_227 {dimension_numbers = #tpu.dot_dimension_numbers<[1], [0], [0], [1], [0, 0, 1, 1], [], []>} : vector<2x128xbf16>, vector<128x256xbf16>, vector<2x256xf32> -> vector<2x256xf32>
    %c1_228 = arith.constant 1 : index
    %c0_229 = arith.constant 0 : index
    %c0_230 = arith.constant 0 : index
    %248 = vector.load %arg11[%c1_228, %c0_229, %c0_230] : memref<9x2x8xbf16, #tpu.memory_space<vmem>>, vector<1x2x8xbf16>
    %249 = vector.shape_cast %248 : vector<1x2x8xbf16> to vector<2x8xbf16>
    %cst_231 = arith.constant dense<0.000000e+00> : vector<2x128xf32>
    %250 = tpu.matmul %249, %240, %cst_231 {dimension_numbers = #tpu.dot_dimension_numbers<[1], [0], [0], [1], [0, 0, 1, 1], [], []>} : vector<2x8xbf16>, vector<8x128xbf16>, vector<2x128xf32> -> vector<2x128xf32>
    %251 = arith.truncf %250 : vector<2x128xf32> to vector<2x128xbf16>
    %c1_232 = arith.constant 1 : index
    %c0_233 = arith.constant 0 : index
    %c0_234 = arith.constant 0 : index
    %252 = vector.load %arg12[%c1_232, %c0_233, %c0_234] : memref<9x128x256xbf16, #tpu.memory_space<vmem>>, vector<1x128x256xbf16>
    %253 = vector.shape_cast %252 : vector<1x128x256xbf16> to vector<128x256xbf16>
    %cst_235 = arith.constant dense<0.000000e+00> : vector<2x256xf32>
    %254 = tpu.matmul %251, %253, %cst_235 {dimension_numbers = #tpu.dot_dimension_numbers<[1], [0], [0], [1], [0, 0, 1, 1], [], []>} : vector<2x128xbf16>, vector<128x256xbf16>, vector<2x256xf32> -> vector<2x256xf32>
    %255 = arith.addf %247, %254 : vector<2x256xf32>
    %c2_236 = arith.constant 2 : index
    %c0_237 = arith.constant 0 : index
    %c0_238 = arith.constant 0 : index
    %256 = vector.load %arg11[%c2_236, %c0_237, %c0_238] : memref<9x2x8xbf16, #tpu.memory_space<vmem>>, vector<1x2x8xbf16>
    %257 = vector.shape_cast %256 : vector<1x2x8xbf16> to vector<2x8xbf16>
    %cst_239 = arith.constant dense<0.000000e+00> : vector<2x128xf32>
    %258 = tpu.matmul %257, %240, %cst_239 {dimension_numbers = #tpu.dot_dimension_numbers<[1], [0], [0], [1], [0, 0, 1, 1], [], []>} : vector<2x8xbf16>, vector<8x128xbf16>, vector<2x128xf32> -> vector<2x128xf32>
    %259 = arith.truncf %258 : vector<2x128xf32> to vector<2x128xbf16>
    %c2_240 = arith.constant 2 : index
    %c0_241 = arith.constant 0 : index
    %c0_242 = arith.constant 0 : index
    %260 = vector.load %arg12[%c2_240, %c0_241, %c0_242] : memref<9x128x256xbf16, #tpu.memory_space<vmem>>, vector<1x128x256xbf16>
    %261 = vector.shape_cast %260 : vector<1x128x256xbf16> to vector<128x256xbf16>
    %cst_243 = arith.constant dense<0.000000e+00> : vector<2x256xf32>
    %262 = tpu.matmul %259, %261, %cst_243 {dimension_numbers = #tpu.dot_dimension_numbers<[1], [0], [0], [1], [0, 0, 1, 1], [], []>} : vector<2x128xbf16>, vector<128x256xbf16>, vector<2x256xf32> -> vector<2x256xf32>
    %263 = arith.addf %255, %262 : vector<2x256xf32>
    %c3_244 = arith.constant 3 : index
    %c0_245 = arith.constant 0 : index
    %c0_246 = arith.constant 0 : index
    %264 = vector.load %arg11[%c3_244, %c0_245, %c0_246] : memref<9x2x8xbf16, #tpu.memory_space<vmem>>, vector<1x2x8xbf16>
    %265 = vector.shape_cast %264 : vector<1x2x8xbf16> to vector<2x8xbf16>
    %cst_247 = arith.constant dense<0.000000e+00> : vector<2x128xf32>
    %266 = tpu.matmul %265, %240, %cst_247 {dimension_numbers = #tpu.dot_dimension_numbers<[1], [0], [0], [1], [0, 0, 1, 1], [], []>} : vector<2x8xbf16>, vector<8x128xbf16>, vector<2x128xf32> -> vector<2x128xf32>
    %267 = arith.truncf %266 : vector<2x128xf32> to vector<2x128xbf16>
    %c3_248 = arith.constant 3 : index
    %c0_249 = arith.constant 0 : index
    %c0_250 = arith.constant 0 : index
    %268 = vector.load %arg12[%c3_248, %c0_249, %c0_250] : memref<9x128x256xbf16, #tpu.memory_space<vmem>>, vector<1x128x256xbf16>
    %269 = vector.shape_cast %268 : vector<1x128x256xbf16> to vector<128x256xbf16>
    %cst_251 = arith.constant dense<0.000000e+00> : vector<2x256xf32>
    %270 = tpu.matmul %267, %269, %cst_251 {dimension_numbers = #tpu.dot_dimension_numbers<[1], [0], [0], [1], [0, 0, 1, 1], [], []>} : vector<2x128xbf16>, vector<128x256xbf16>, vector<2x256xf32> -> vector<2x256xf32>
    %271 = arith.addf %263, %270 : vector<2x256xf32>
    %c4_252 = arith.constant 4 : index
    %c0_253 = arith.constant 0 : index
    %c0_254 = arith.constant 0 : index
    %272 = vector.load %arg11[%c4_252, %c0_253, %c0_254] : memref<9x2x8xbf16, #tpu.memory_space<vmem>>, vector<1x2x8xbf16>
    %273 = vector.shape_cast %272 : vector<1x2x8xbf16> to vector<2x8xbf16>
    %cst_255 = arith.constant dense<0.000000e+00> : vector<2x128xf32>
    %274 = tpu.matmul %273, %240, %cst_255 {dimension_numbers = #tpu.dot_dimension_numbers<[1], [0], [0], [1], [0, 0, 1, 1], [], []>} : vector<2x8xbf16>, vector<8x128xbf16>, vector<2x128xf32> -> vector<2x128xf32>
    %275 = arith.truncf %274 : vector<2x128xf32> to vector<2x128xbf16>
    %c4_256 = arith.constant 4 : index
    %c0_257 = arith.constant 0 : index
    %c0_258 = arith.constant 0 : index
    %276 = vector.load %arg12[%c4_256, %c0_257, %c0_258] : memref<9x128x256xbf16, #tpu.memory_space<vmem>>, vector<1x128x256xbf16>
    %277 = vector.shape_cast %276 : vector<1x128x256xbf16> to vector<128x256xbf16>
    %cst_259 = arith.constant dense<0.000000e+00> : vector<2x256xf32>
    %278 = tpu.matmul %275, %277, %cst_259 {dimension_numbers = #tpu.dot_dimension_numbers<[1], [0], [0], [1], [0, 0, 1, 1], [], []>} : vector<2x128xbf16>, vector<128x256xbf16>, vector<2x256xf32> -> vector<2x256xf32>
    %279 = arith.addf %271, %278 : vector<2x256xf32>
    %c5_260 = arith.constant 5 : index
    %c0_261 = arith.constant 0 : index
    %c0_262 = arith.constant 0 : index
    %280 = vector.load %arg11[%c5_260, %c0_261, %c0_262] : memref<9x2x8xbf16, #tpu.memory_space<vmem>>, vector<1x2x8xbf16>
    %281 = vector.shape_cast %280 : vector<1x2x8xbf16> to vector<2x8xbf16>
    %cst_263 = arith.constant dense<0.000000e+00> : vector<2x128xf32>
    %282 = tpu.matmul %281, %240, %cst_263 {dimension_numbers = #tpu.dot_dimension_numbers<[1], [0], [0], [1], [0, 0, 1, 1], [], []>} : vector<2x8xbf16>, vector<8x128xbf16>, vector<2x128xf32> -> vector<2x128xf32>
    %283 = arith.truncf %282 : vector<2x128xf32> to vector<2x128xbf16>
    %c5_264 = arith.constant 5 : index
    %c0_265 = arith.constant 0 : index
    %c0_266 = arith.constant 0 : index
    %284 = vector.load %arg12[%c5_264, %c0_265, %c0_266] : memref<9x128x256xbf16, #tpu.memory_space<vmem>>, vector<1x128x256xbf16>
    %285 = vector.shape_cast %284 : vector<1x128x256xbf16> to vector<128x256xbf16>
    %cst_267 = arith.constant dense<0.000000e+00> : vector<2x256xf32>
    %286 = tpu.matmul %283, %285, %cst_267 {dimension_numbers = #tpu.dot_dimension_numbers<[1], [0], [0], [1], [0, 0, 1, 1], [], []>} : vector<2x128xbf16>, vector<128x256xbf16>, vector<2x256xf32> -> vector<2x256xf32>
    %287 = arith.addf %279, %286 : vector<2x256xf32>
    %c6_268 = arith.constant 6 : index
    %c0_269 = arith.constant 0 : index
    %c0_270 = arith.constant 0 : index
    %288 = vector.load %arg11[%c6_268, %c0_269, %c0_270] : memref<9x2x8xbf16, #tpu.memory_space<vmem>>, vector<1x2x8xbf16>
    %289 = vector.shape_cast %288 : vector<1x2x8xbf16> to vector<2x8xbf16>
    %cst_271 = arith.constant dense<0.000000e+00> : vector<2x128xf32>
    %290 = tpu.matmul %289, %240, %cst_271 {dimension_numbers = #tpu.dot_dimension_numbers<[1], [0], [0], [1], [0, 0, 1, 1], [], []>} : vector<2x8xbf16>, vector<8x128xbf16>, vector<2x128xf32> -> vector<2x128xf32>
    %291 = arith.truncf %290 : vector<2x128xf32> to vector<2x128xbf16>
    %c6_272 = arith.constant 6 : index
    %c0_273 = arith.constant 0 : index
    %c0_274 = arith.constant 0 : index
    %292 = vector.load %arg12[%c6_272, %c0_273, %c0_274] : memref<9x128x256xbf16, #tpu.memory_space<vmem>>, vector<1x128x256xbf16>
    %293 = vector.shape_cast %292 : vector<1x128x256xbf16> to vector<128x256xbf16>
    %cst_275 = arith.constant dense<0.000000e+00> : vector<2x256xf32>
    %294 = tpu.matmul %291, %293, %cst_275 {dimension_numbers = #tpu.dot_dimension_numbers<[1], [0], [0], [1], [0, 0, 1, 1], [], []>} : vector<2x128xbf16>, vector<128x256xbf16>, vector<2x256xf32> -> vector<2x256xf32>
    %295 = arith.addf %287, %294 : vector<2x256xf32>
    %c7_276 = arith.constant 7 : index
    %c0_277 = arith.constant 0 : index
    %c0_278 = arith.constant 0 : index
    %296 = vector.load %arg11[%c7_276, %c0_277, %c0_278] : memref<9x2x8xbf16, #tpu.memory_space<vmem>>, vector<1x2x8xbf16>
    %297 = vector.shape_cast %296 : vector<1x2x8xbf16> to vector<2x8xbf16>
    %cst_279 = arith.constant dense<0.000000e+00> : vector<2x128xf32>
    %298 = tpu.matmul %297, %240, %cst_279 {dimension_numbers = #tpu.dot_dimension_numbers<[1], [0], [0], [1], [0, 0, 1, 1], [], []>} : vector<2x8xbf16>, vector<8x128xbf16>, vector<2x128xf32> -> vector<2x128xf32>
    %299 = arith.truncf %298 : vector<2x128xf32> to vector<2x128xbf16>
    %c7_280 = arith.constant 7 : index
    %c0_281 = arith.constant 0 : index
    %c0_282 = arith.constant 0 : index
    %300 = vector.load %arg12[%c7_280, %c0_281, %c0_282] : memref<9x128x256xbf16, #tpu.memory_space<vmem>>, vector<1x128x256xbf16>
    %301 = vector.shape_cast %300 : vector<1x128x256xbf16> to vector<128x256xbf16>
    %cst_283 = arith.constant dense<0.000000e+00> : vector<2x256xf32>
    %302 = tpu.matmul %299, %301, %cst_283 {dimension_numbers = #tpu.dot_dimension_numbers<[1], [0], [0], [1], [0, 0, 1, 1], [], []>} : vector<2x128xbf16>, vector<128x256xbf16>, vector<2x256xf32> -> vector<2x256xf32>
    %303 = arith.addf %295, %302 : vector<2x256xf32>
    %c8_284 = arith.constant 8 : index
    %c0_285 = arith.constant 0 : index
    %c0_286 = arith.constant 0 : index
    %304 = vector.load %arg11[%c8_284, %c0_285, %c0_286] : memref<9x2x8xbf16, #tpu.memory_space<vmem>>, vector<1x2x8xbf16>
    %305 = vector.shape_cast %304 : vector<1x2x8xbf16> to vector<2x8xbf16>
    %cst_287 = arith.constant dense<0.000000e+00> : vector<2x128xf32>
    %306 = tpu.matmul %305, %240, %cst_287 {dimension_numbers = #tpu.dot_dimension_numbers<[1], [0], [0], [1], [0, 0, 1, 1], [], []>} : vector<2x8xbf16>, vector<8x128xbf16>, vector<2x128xf32> -> vector<2x128xf32>
    %307 = arith.truncf %306 : vector<2x128xf32> to vector<2x128xbf16>
    %c8_288 = arith.constant 8 : index
    %c0_289 = arith.constant 0 : index
    %c0_290 = arith.constant 0 : index
    %308 = vector.load %arg12[%c8_288, %c0_289, %c0_290] : memref<9x128x256xbf16, #tpu.memory_space<vmem>>, vector<1x128x256xbf16>
    %309 = vector.shape_cast %308 : vector<1x128x256xbf16> to vector<128x256xbf16>
    %cst_291 = arith.constant dense<0.000000e+00> : vector<2x256xf32>
    %310 = tpu.matmul %307, %309, %cst_291 {dimension_numbers = #tpu.dot_dimension_numbers<[1], [0], [0], [1], [0, 0, 1, 1], [], []>} : vector<2x128xbf16>, vector<128x256xbf16>, vector<2x256xf32> -> vector<2x256xf32>
    %311 = arith.addf %303, %310 : vector<2x256xf32>
    %c0_292 = arith.constant 0 : index
    %c0_293 = arith.constant 0 : index
    %312 = vector.load %arg13[%c0_292, %c0_293] : memref<1x256xf32, #tpu.memory_space<vmem>>, vector<1x256xf32>
    %313 = vector.broadcast %312 : vector<1x256xf32> to vector<2x256xf32>
    %314 = arith.addf %311, %313 : vector<2x256xf32>
    %cst_294 = arith.constant 0.000000e+00 : f32
    %315 = vector.broadcast %cst_294 : f32 to vector<2x256xf32>
    %316 = arith.cmpf ogt, %314, %315 : vector<2x256xf32>
    %cst_295 = arith.constant 0.00999999977 : f32
    %317 = vector.broadcast %cst_295 : f32 to vector<2x256xf32>
    %318 = arith.mulf %317, %314 : vector<2x256xf32>
    %319 = arith.select %316, %314, %318 : vector<2x256xi1>, vector<2x256xf32>
    %320 = arith.truncf %319 : vector<2x256xf32> to vector<2x256xbf16>
    %c0_296 = arith.constant 0 : index
    %c0_297 = arith.constant 0 : index
    %c0_298 = arith.constant 0 : index
    %321 = vector.load %arg14[%c0_296, %c0_297, %c0_298] : memref<1x256x512xbf16, #tpu.memory_space<vmem>>, vector<1x256x512xbf16>
    %322 = vector.shape_cast %321 : vector<1x256x512xbf16> to vector<256x512xbf16>
    %cst_299 = arith.constant dense<0.000000e+00> : vector<2x512xf32>
    %323 = tpu.matmul %320, %322, %cst_299 {dimension_numbers = #tpu.dot_dimension_numbers<[1], [0], [0], [1], [0, 0, 1, 1], [], []>} : vector<2x256xbf16>, vector<256x512xbf16>, vector<2x512xf32> -> vector<2x512xf32>
    %c0_300 = arith.constant 0 : index
    %c0_301 = arith.constant 0 : index
    %324 = vector.load %arg15[%c0_300, %c0_301] : memref<1x512xf32, #tpu.memory_space<vmem>>, vector<1x512xf32>
    %325 = vector.broadcast %324 : vector<1x512xf32> to vector<2x512xf32>
    %326 = arith.addf %323, %325 : vector<2x512xf32>
    %cst_302 = arith.constant 0.000000e+00 : f32
    %327 = vector.broadcast %cst_302 : f32 to vector<2x512xf32>
    %328 = arith.maximumf %326, %327 : vector<2x512xf32>
    %329 = arith.truncf %328 : vector<2x512xf32> to vector<2x512xbf16>
    %c0_303 = arith.constant 0 : index
    %c0_304 = arith.constant 0 : index
    %330 = vector.load %arg16[%c0_303, %c0_304] : memref<512x256xbf16, #tpu.memory_space<vmem>>, vector<512x256xbf16>
    %cst_305 = arith.constant dense<0.000000e+00> : vector<2x256xf32>
    %331 = tpu.matmul %329, %330, %cst_305 {dimension_numbers = #tpu.dot_dimension_numbers<[1], [0], [0], [1], [0, 0, 1, 1], [], []>} : vector<2x512xbf16>, vector<512x256xbf16>, vector<2x256xf32> -> vector<2x256xf32>
    %c0_306 = arith.constant 0 : index
    %c0_307 = arith.constant 0 : index
    %332 = vector.load %arg17[%c0_306, %c0_307] : memref<1x256xf32, #tpu.memory_space<vmem>>, vector<1x256xf32>
    %333 = vector.broadcast %332 : vector<1x256xf32> to vector<2x256xf32>
    %334 = arith.addf %331, %333 : vector<2x256xf32>
    %cst_308 = arith.constant 0.000000e+00 : f32
    %335 = vector.broadcast %cst_308 : f32 to vector<2x256xf32>
    %336 = arith.maximumf %334, %335 : vector<2x256xf32>
    %337 = arith.truncf %336 : vector<2x256xf32> to vector<2x256xbf16>
    %c0_309 = arith.constant 0 : index
    %c0_310 = arith.constant 0 : index
    %338 = vector.load %arg18[%c0_309, %c0_310] : memref<256x128xbf16, #tpu.memory_space<vmem>>, vector<256x128xbf16>
    %cst_311 = arith.constant dense<0.000000e+00> : vector<2x128xf32>
    %339 = tpu.matmul %337, %338, %cst_311 {dimension_numbers = #tpu.dot_dimension_numbers<[1], [0], [0], [1], [0, 0, 1, 1], [], []>} : vector<2x256xbf16>, vector<256x128xbf16>, vector<2x128xf32> -> vector<2x128xf32>
    %c0_312 = arith.constant 0 : index
    %c0_313 = arith.constant 0 : index
    %340 = vector.load %arg19[%c0_312, %c0_313] : memref<1x128xf32, #tpu.memory_space<vmem>>, vector<1x128xf32>
    %341 = vector.broadcast %340 : vector<1x128xf32> to vector<2x128xf32>
    %342 = arith.addf %339, %341 : vector<2x128xf32>
    %c0_314 = arith.constant 0 : index
    %c0_315 = arith.constant 0 : index
    %343 = vector.load %arg20[%c0_314, %c0_315] : memref<2x128xf32, #tpu.memory_space<vmem>>, vector<2x128xf32>
    tpu.vector_store %arg20[%c0_314, %c0_315], %342 {strides = array<i32>} : memref<2x128xf32, #tpu.memory_space<vmem>>, vector<2x128xf32>,
    return
  }
  func.func @transform_0(%arg0: i32) -> (i32, i32) {
    %c0_i32 = arith.constant 0 : i32
    %c0_i32_0 = arith.constant 0 : i32
    %c0_i32_1 = arith.constant 0 : i32
    return %c0_i32, %c0_i32_0 : i32, i32
  }
  func.func @transform_1(%arg0: i32) -> (i32, i32, i32) {
    %c0_i32 = arith.constant 0 : i32
    %c0_i32_0 = arith.constant 0 : i32
    %c0_i32_1 = arith.constant 0 : i32
    %c0_i32_2 = arith.constant 0 : i32
    return %c0_i32, %c0_i32_0, %c0_i32_1 : i32, i32, i32
  }
  func.func @transform_2(%arg0: i32) -> (i32, i32, i32) {
    %c0_i32 = arith.constant 0 : i32
    %c0_i32_0 = arith.constant 0 : i32
    %c0_i32_1 = arith.constant 0 : i32
    %c0_i32_2 = arith.constant 0 : i32
    return %c0_i32, %c0_i32_0, %c0_i32_1 : i32, i32, i32
  }
  func.func @transform_3(%arg0: i32) -> (i32, i32) {
    %c0_i32 = arith.constant 0 : i32
    %c0_i32_0 = arith.constant 0 : i32
    %c0_i32_1 = arith.constant 0 : i32
    return %c0_i32, %c0_i32_0 : i32, i32
  }
  func.func @transform_4(%arg0: i32) -> (i32, i32, i32) {
    %c0_i32 = arith.constant 0 : i32
    %c0_i32_0 = arith.constant 0 : i32
    %c0_i32_1 = arith.constant 0 : i32
    %c0_i32_2 = arith.constant 0 : i32
    return %c0_i32, %c0_i32_0, %c0_i32_1 : i32, i32, i32
  }
  func.func @transform_5(%arg0: i32) -> (i32, i32, i32) {
    %c0_i32 = arith.constant 0 : i32
    %c0_i32_0 = arith.constant 0 : i32
    %c0_i32_1 = arith.constant 0 : i32
    %c0_i32_2 = arith.constant 0 : i32
    return %c0_i32, %c0_i32_0, %c0_i32_1 : i32, i32, i32
  }
  func.func @transform_6(%arg0: i32) -> (i32, i32) {
    %c0_i32 = arith.constant 0 : i32
    %c0_i32_0 = arith.constant 0 : i32
    %c0_i32_1 = arith.constant 0 : i32
    return %c0_i32, %c0_i32_0 : i32, i32
  }
  func.func @transform_7(%arg0: i32) -> (i32, i32, i32) {
    %c0_i32 = arith.constant 0 : i32
    %c0_i32_0 = arith.constant 0 : i32
    %c0_i32_1 = arith.constant 0 : i32
    %c0_i32_2 = arith.constant 0 : i32
    return %c0_i32, %c0_i32_0, %c0_i32_1 : i32, i32, i32
  }
  func.func @transform_8(%arg0: i32) -> (i32, i32, i32) {
    %c0_i32 = arith.constant 0 : i32
    %c0_i32_0 = arith.constant 0 : i32
    %c0_i32_1 = arith.constant 0 : i32
    %c0_i32_2 = arith.constant 0 : i32
    return %c0_i32, %c0_i32_0, %c0_i32_1 : i32, i32, i32
  }
  func.func @transform_9(%arg0: i32) -> (i32, i32) {
    %c0_i32 = arith.constant 0 : i32
    %c0_i32_0 = arith.constant 0 : i32
    %c0_i32_1 = arith.constant 0 : i32
    return %c0_i32, %c0_i32_0 : i32, i32
  }
  func.func @transform_10(%arg0: i32) -> (i32, i32, i32) {
    %c0_i32 = arith.constant 0 : i32
    %c0_i32_0 = arith.constant 0 : i32
    %c0_i32_1 = arith.constant 0 : i32
    %c0_i32_2 = arith.constant 0 : i32
    return %c0_i32, %c0_i32_0, %c0_i32_1 : i32, i32, i32
  }
  func.func @transform_11(%arg0: i32) -> (i32, i32, i32) {
    %c0_i32 = arith.constant 0 : i32
    %c0_i32_0 = arith.constant 0 : i32
    %c0_i32_1 = arith.constant 0 : i32
    %c0_i32_2 = arith.constant 0 : i32
    return %c0_i32, %c0_i32_0, %c0_i32_1 : i32, i32, i32
  }
  func.func @transform_12(%arg0: i32) -> (i32, i32) {
    %c0_i32 = arith.constant 0 : i32
    %c0_i32_0 = arith.constant 0 : i32
    %c0_i32_1 = arith.constant 0 : i32
    return %c0_i32, %c0_i32_0 : i32, i32
  }
  func.func @transform_13(%arg0: i32) -> (i32, i32, i32) {
    %c0_i32 = arith.constant 0 : i32
    %c0_i32_0 = arith.constant 0 : i32
    %c0_i32_1 = arith.constant 0 : i32
    %c0_i32_2 = arith.constant 0 : i32
    return %c0_i32, %c0_i32_0, %c0_i32_1 : i32, i32, i32
  }
  func.func @transform_14(%arg0: i32) -> (i32, i32) {
    %c0_i32 = arith.constant 0 : i32
    %c0_i32_0 = arith.constant 0 : i32
    %c0_i32_1 = arith.constant 0 : i32
    return %c0_i32, %c0_i32_0 : i32, i32
  }
  func.func @transform_15(%arg0: i32) -> (i32, i32) {
    %c0_i32 = arith.constant 0 : i32
    %c0_i32_0 = arith.constant 0 : i32
    %c0_i32_1 = arith.constant 0 : i32
    return %c0_i32, %c0_i32_0 : i32, i32
  }
  func.func @transform_16(%arg0: i32) -> (i32, i32) {
    %c0_i32 = arith.constant 0 : i32
    %c0_i32_0 = arith.constant 0 : i32
    %c0_i32_1 = arith.constant 0 : i32
    return %c0_i32, %c0_i32_0 : i32, i32
  }
  func.func @transform_17(%arg0: i32) -> (i32, i32) {
    %c0_i32 = arith.constant 0 : i32
    %c0_i32_0 = arith.constant 0 : i32
    %c0_i32_1 = arith.constant 0 : i32
    return %c0_i32, %c0_i32_0 : i32, i32
  }
  func.func @transform_18(%arg0: i32) -> (i32, i32) {
    %c0_i32 = arith.constant 0 : i32
    %c0_i32_0 = arith.constant 0 : i32
    %c0_i32_1 = arith.constant 0 : i32
    return %c0_i32, %c0_i32_0 : i32, i32
  }
  func.func @transform_19(%arg0: i32) -> (i32, i32) {
    %c0_i32 = arith.constant 0 : i32
    %c0_i32_0 = arith.constant 0 : i32
    %c0_i32_1 = arith.constant 0 : i32
    return %c0_i32, %c0_i32_0 : i32, i32
  }
}

</mosaic_0001>

<bundles_post_ra>
// kernel: encoder_forward.1
= control target key start
LH: loop header
LB: loop body
LE: loop exit
PB: predicated region body
PF: predicated region fallthrough
CT: control target
= control target key end

     0   :  { %s14846_s0 = inlined_call_operand.vmem [shape: bf16[512,4], index: 0, kind: input, shape index: {}]   ;;  %s14847_s1 = inlined_call_operand.hbm [shape: bf16[9,128,512], index: 1, kind: input, shape index: {}]   ;;  %s14848_s2 = inlined_call_operand.hbm [shape: bf16[9,4,32], index: 2, kind: input, shape index: {}]   ;;  %s14849_s3 = inlined_call_operand.hbm [shape: f32[1,32], index: 3, kind: input, shape index: {}]   ;;  %s14850_s4 = inlined_call_operand.hbm [shape: bf16[9,32,128], index: 4, kind: input, shape index: {}]   ;;  %s14851_s5 = inlined_call_operand.hbm [shape: bf16[9,32,64], index: 5, kind: input, shape index: {}]   ;;  %s14852_s6 = inlined_call_operand.hbm [shape: f32[1,64], index: 6, kind: input, shape index: {}]   ;;  %s14853_s7 = inlined_call_operand.hbm [shape: bf16[9,8,32], index: 7, kind: input, shape index: {}]   ;;  %s14854_s8 = inlined_call_operand.hbm [shape: bf16[9,64,128], index: 8, kind: input, shape index: {}]   ;;  %s14855_s9 = inlined_call_operand.hbm [shape: f32[1,128], index: 9, kind: input, shape index: {}]   ;;  %s14856_s10 = inlined_call_operand.vmem [shape: bf16[9,2,8], index: 10, kind: input, shape index: {}]   ;;  %s14857_s11 = inlined_call_operand.hbm [shape: bf16[9,128,256], index: 11, kind: input, shape index: {}]   ;;  %s14858_s12 = inlined_call_operand.hbm [shape: f32[1,256], index: 12, kind: input, shape index: {}]   ;;  %s14859_s13 = inlined_call_operand.hbm [shape: bf16[1,256,512], index: 13, kind: input, shape index: {}]   ;;  %s14860_s14 = inlined_call_operand.hbm [shape: f32[1,512], index: 14, kind: input, shape index: {}]   ;;  %s14861_s15 = inlined_call_operand.hbm [shape: bf16[512,256], index: 15, kind: input, shape index: {}]   ;;  %s14862_s16 = inlined_call_operand.hbm [shape: f32[1,256], index: 16, kind: input, shape index: {}]   ;;  %s14863_s17 = inlined_call_operand.hbm [shape: bf16[256,128], index: 17, kind: input, shape index: {}]   ;;  %s14864_s18 = inlined_call_operand.hbm [shape: f32[1,128], index: 18, kind: input, shape index: {}]   ;;  %s14865_s19 = inlined_call_operand.vmem [shape: f32[2,128], index: 19, kind: output, shape index: {}]  }
   0x1   :  { %14867 = sst [smem:[#allocation53_spill]] %s14846_s0 }
   0x2   :  { %14868 = sst [smem:[#allocation54_spill]] %s14847_s1 }
   0x3   :  { %14869 = sst [smem:[#allocation55_spill]] %s14848_s2 }
   0x4   :  { %14870 = sst [smem:[#allocation56_spill]] %s14849_s3 }
   0x5   :  { %24 = vsyncpa [#allocation3], 0 }
   0x6   :  { %25 = vsyncpa [#allocation5], 0 }
   0x7   :  { %26 = vsyncpa [#allocation8], 0 }
   0x8   :  { %27 = vsyncpa [#allocation11], 0 }
   0x9   :  { %28 = vsyncpa [#allocation14], 0 }
   0xa   :  { %29 = vsyncpa [#allocation17], 0 }
   0xb   :  { %30 = vsyncpa [#allocation20], 0 }
   0xc   :  { %31 = vsyncpa [#allocation23], 0  ;;  %s14871_s20 = sld [smem:[#allocation55_spill]] }
  0x12   :  { %s52_s21 = sshll.u32 %s14871_s20, 4  ;;  %s53_s21 = int_to_ptr.hbm [resolvable:$true] %s52_s21 }
  0x13   :  { %32 = vsyncpa [#allocation26], 0  ;;  %s12991_s1 = smov [#allocation4]   ;;  %s76_s24 = sshll.u32 %s14850_s4, 4  ;;  %s77_s24 = int_to_ptr.hbm [resolvable:$true] %s76_s24 }
  0x14   :  { %s54_s22 = sshll.u32 %s12991_s1, 4  ;;  %s12992_s25 = smov 32   ;;  %s55_s22 = int_to_ptr.vmem [resolvable:$true] %s54_s22 }
  0x15   :  { %s12993_s3 = smov 2   ;;  %s12994_s26 = smov [#allocation7]  }
  0x16   :  { %60 = dma.hbm_to_vmem [thread:$0]  %s53_s21, 288, %s55_s22, [#allocation5], %s12992_s25, %s12992_s25, %s12993_s3  }
  0x17   :  { %s78_s27 = sshll.u32 %s12994_s26, 4  ;;  %s12995_s28 = smov 64   ;;  %s79_s27 = int_to_ptr.vmem [resolvable:$true] %s78_s27 }
  0x18   :  { %s12996_s29 = smov 4   ;;  %s103_s20 = sshll.u32 %s14852_s6, 4  ;;  %s104_s20 = int_to_ptr.hbm [resolvable:$true] %s103_s20 }
  0x19   :  { %84 = dma.hbm_to_vmem [thread:$0]  %s77_s24, 2304, %s79_s27, [#allocation8], %s12995_s28, %s12995_s28, %s12996_s29  }
  0x1a   :  { %s12997_s1 = smov [#allocation10]   ;;  %s126_s22 = sshll.u32 %s14854_s8, 4  ;;  %s127_s22 = int_to_ptr.hbm [resolvable:$true] %s126_s22 }
  0x1b   :  { %s105_s4 = sshll.u32 %s12997_s1, 4  ;;  %s12998_s23 = smov [#allocation13]   ;;  %s106_s4 = int_to_ptr.vmem [resolvable:$true] %s105_s4 }
  0x1c   :  { %108 = dma.hbm_to_vmem [thread:$0]  %s104_s20, 16, %s106_s4, [#allocation11]  }
  0x1d   :  { %s128_s25 = sshll.u32 %s12998_s23, 4  ;;  %s152_s24 = sshll.u32 %s14857_s11, 4  ;;  %s129_s25 = int_to_ptr.vmem [resolvable:$true] %s128_s25  ;;  %s153_s24 = int_to_ptr.hbm [resolvable:$true] %s152_s24 }
  0x1e   :  { %134 = dma.hbm_to_vmem [thread:$0]  %s127_s22, 4608, %s129_s25, [#allocation14], %s12995_s28, %s12995_s28, %s12996_s29  }
  0x1f   :  { %s12999_s6 = smov [#allocation16]   ;;  %s13000_s0 = smov 128  }
  0x20   :  { %s154_s27 = sshll.u32 %s12999_s6, 4  ;;  %s13001_s30 = smov 8   ;;  %s155_s27 = int_to_ptr.vmem [resolvable:$true] %s154_s27 }
  0x21   :  { %160 = dma.hbm_to_vmem [thread:$0]  %s153_s24, 18432, %s155_s27, [#allocation17], %s13000_s0, %s13000_s0, %s13001_s30  }
  0x22   :  { %s176_s1 = sshll.u32 %s14859_s13, 4  ;;  %s13002_s4 = smov [#allocation19]   ;;  %s177_s1 = int_to_ptr.hbm [resolvable:$true] %s176_s1 }
  0x23   :  { %s178_s2 = sshll.u32 %s13002_s4, 4  ;;  %s200_s23 = sshll.u32 %s14861_s15, 4  ;;  %s179_s2 = int_to_ptr.vmem [resolvable:$true] %s178_s2  ;;  %s201_s23 = int_to_ptr.hbm [resolvable:$true] %s200_s23 }
  0x24   :  { %s13003_s22 = smov 256   ;;  %s13004_s25 = smov 16  }
  0x25   :  { %184 = dma.hbm_to_vmem [thread:$0]  %s177_s1, 8192, %s179_s2, [#allocation20], %s13003_s22, %s13003_s22, %s13004_s25  }
  0x26   :  { %s224_s24 = sshll.u32 %s14863_s17, 4  ;;  %s13005_s6 = smov [#allocation22]   ;;  %s225_s24 = int_to_ptr.hbm [resolvable:$true] %s224_s24 }
  0x27   :  { %s202_s27 = sshll.u32 %s13005_s6, 4  ;;  %s13006_s13 = smov [#allocation25]   ;;  %s203_s27 = int_to_ptr.vmem [resolvable:$true] %s202_s27 }
  0x28   :  { %208 = dma.hbm_to_vmem [thread:$0]  %s201_s23, 8192, %s203_s27, [#allocation23], %s13000_s0, %s13000_s0, %s13001_s30  }
  0x29   :  { %s226_s8 = sshll.u32 %s13006_s13, 4  ;;  %s14872_s11 = sld [smem:[#allocation54_spill]]  ;;  %s227_s8 = int_to_ptr.vmem [resolvable:$true] %s226_s8 }
  0x2a   :  { %232 = dma.hbm_to_vmem [thread:$0]  %s225_s24, 2048, %s227_s8, [#allocation26], %s12995_s28, %s12995_s28, %s12996_s29  }
  0x2b   :  { %s14873_s17 = sld [smem:[#allocation56_spill]]  ;;  %s13007_s3 = smov [#allocation2]  }
  0x2c   :  { %s41_s26 = sshll.u32 %s13007_s3, 4  ;;  %s13008_s0 = smov [#allocation6]   ;;  %s42_s26 = int_to_ptr.vmem [resolvable:$true] %s41_s26 }
  0x2d   :  { %s68_s30 = sshll.u32 %s13008_s0, 4  ;;  %s89_s27 = sshll.u32 %s14851_s5, 4  ;;  %s69_s30 = int_to_ptr.vmem [resolvable:$true] %s68_s30  ;;  %s90_s27 = int_to_ptr.hbm [resolvable:$true] %s89_s27 }
  0x2e   :  { %s113_s8 = sshll.u32 %s14853_s7, 4  ;;  %s13009_s20 = smov [#allocation9]   ;;  %s114_s8 = int_to_ptr.hbm [resolvable:$true] %s113_s8 }
  0x2f   :  { %s39_s15 = sshll.u32 %s14872_s11, 4  ;;  %s91_s4 = sshll.u32 %s13009_s20, 4  ;;  %s40_s15 = int_to_ptr.hbm [resolvable:$true] %s39_s15  ;;  %s92_s4 = int_to_ptr.vmem [resolvable:$true] %s91_s4 }
  0x30   :  { %47 = dma.hbm_to_vmem [thread:$0]  %s40_s15, 36864, %s42_s26, [#allocation3], %s13003_s22, %s13003_s22, %s13004_s25  }
  0x31   :  { %s66_s21 = sshll.u32 %s14873_s17, 4  ;;  %s13010_s22 = smov [#allocation12]   ;;  %s67_s21 = int_to_ptr.hbm [resolvable:$true] %s66_s21 }
  0x32   :  { %71 = dma.hbm_to_vmem [thread:$0]  %s67_s21, 16, %s69_s30, [#allocation5]  }
  0x33   :  { %97 = dma.hbm_to_vmem [thread:$0]  %s90_s27, 2304, %s92_s4, [#allocation8], %s12995_s28, %s12995_s28, %s12996_s29  }
  0x34   :  { %s115_s25 = sshll.u32 %s13010_s22, 4  ;;  %s140_s5 = sshll.u32 %s14855_s9, 4  ;;  %s116_s25 = int_to_ptr.vmem [resolvable:$true] %s115_s25  ;;  %s141_s5 = int_to_ptr.hbm [resolvable:$true] %s140_s5 }
  0x35   :  { %121 = dma.hbm_to_vmem [thread:$0]  %s114_s8, 576, %s116_s25, [#allocation11], %s12995_s28, %s12995_s28, %s12996_s29  }
  0x36   :  { %s166_s2 = sshll.u32 %s14858_s12, 4  ;;  %s13011_s17 = smov [#allocation15]   ;;  %s167_s2 = int_to_ptr.hbm [resolvable:$true] %s166_s2 }
  0x37   :  { %s142_s21 = sshll.u32 %s13011_s17, 4  ;;  %s13012_s3 = smov [#allocation18]   ;;  %s143_s21 = int_to_ptr.vmem [resolvable:$true] %s142_s21 }
  0x38   :  { %145 = dma.hbm_to_vmem [thread:$0]  %s141_s5, 16, %s143_s21, [#allocation14]  }
  0x39   :  { %s168_s26 = sshll.u32 %s13012_s3, 4  ;;  %s190_s9 = sshll.u32 %s14860_s14, 4  ;;  %s169_s26 = int_to_ptr.vmem [resolvable:$true] %s168_s26  ;;  %s191_s9 = int_to_ptr.hbm [resolvable:$true] %s190_s9 }
  0x3a   :  { %171 = dma.hbm_to_vmem [thread:$0]  %s167_s2, 32, %s169_s26, [#allocation17]  }
  0x3b   :  { %s214_s29 = sshll.u32 %s14862_s16, 4  ;;  %s13013_s6 = smov [#allocation21]   ;;  %s215_s29 = int_to_ptr.hbm [resolvable:$true] %s214_s29 }
  0x3c   :  { %s192_s12 = sshll.u32 %s13013_s6, 4  ;;  %s13014_s27 = smov [#allocation24]   ;;  %s193_s12 = int_to_ptr.vmem [resolvable:$true] %s192_s12 }
  0x3d   :  { %195 = dma.hbm_to_vmem [thread:$0]  %s191_s9, 64, %s193_s12, [#allocation20]  }
  0x3e   :  { %s216_s13 = sshll.u32 %s13014_s27, 4  ;;  %s238_s20 = sshll.u32 %s14864_s18, 4  ;;  %s217_s13 = int_to_ptr.vmem [resolvable:$true] %s216_s13  ;;  %s239_s20 = int_to_ptr.hbm [resolvable:$true] %s238_s20 }
  0x3f   :  { %219 = dma.hbm_to_vmem [thread:$0]  %s215_s29, 32, %s217_s13, [#allocation23]  }
  0x40   :  { %s13015_s14 = smov [#allocation27]  }
  0x41   :  { %s240_s4 = sshll.u32 %s13015_s14, 4  ;;  %s241_s4 = int_to_ptr.vmem [resolvable:$true] %s240_s4 }
  0x42   :  { %243 = dma.hbm_to_vmem [thread:$0]  %s239_s20, 16, %s241_s4, [#allocation26]  }
  0x43   :  { %12973 = dma.done.wait [#allocation3], 36864  }
  0x44   :  { %12974 = vsyncadd [#allocation3], 4294930432 }
  0x45   :  { %12975 = dma.done.wait [#allocation5], 304  }
  0x46   :  { %12976 = vsyncadd [#allocation5], 4294966992 }
  0x47   :  { %12977 = dma.done.wait [#allocation8], 4608  }
  0x48   :  { %12978 = vsyncadd [#allocation8], 4294962688 }
  0x49   :  { %12979 = dma.done.wait [#allocation11], 592  }
  0x4a   :  { %12980 = vsyncadd [#allocation11], 4294966704 }
  0x4b   :  { %12981 = dma.done.wait [#allocation14], 4624  }
  0x4c   :  { %12982 = vsyncadd [#allocation14], 4294962672 }
  0x4d   :  { %12983 = dma.done.wait [#allocation17], 18464  }
  0x4e   :  { %12984 = vsyncadd [#allocation17], 4294948832 }
  0x4f   :  { %12985 = dma.done.wait [#allocation20], 8256  }
  0x50   :  { %12986 = vsyncadd [#allocation20], 4294959040 }
  0x51   :  { %12987 = dma.done.wait [#allocation23], 8224  }
  0x52   :  { %12988 = vsyncadd [#allocation23], 4294959072 }
  0x53   :  { %12989 = dma.done.wait [#allocation26], 2064  }
  0x54   :  { %12990 = vsyncadd [#allocation26], 4294965232  ;;  %s14874_s22 = sld [smem:[#allocation53_spill]]  ;;  %v8917_v32 = vld [vmem:[#allocation2] sm:$0xf]  ;;  %vm1390_vm0 = vcmask 1041408  }
  0x55   :  { %v11794_v33 = vld [vmem:[#allocation2 + $0xc] sm:$0xf0]  ;;  %v11792_v34 = vld [vmem:[#allocation2 + $0x4] sm:$0xf]  ;;  %v8919_v35 = vld [vmem:[#allocation2 + $0x10] sm:$0xf0] }
  0x56   :  { %v8925_v36 = vld [vmem:[#allocation2 + $0x8] sm:$0xf]  ;;  %v11795_v37 = vld [vmem:[#allocation2 + $0x14] sm:$0xf0]  ;;  %v11793_v38 = vld [vmem:[#allocation2 + $0xc] sm:$0xf]  ;;  %v8918_v40 = vor.u32 %v11794_v33, %v8917_v32  ;;  %v8922_v41 = vor.u32 %v11792_v34, %v8919_v35 }
  0x57   :  { %v8927_v39 = vld [vmem:[#allocation2 + $0x18] sm:$0xf0]  ;;  %v8926_v42 = vor.u32 %v11795_v37, %v8925_v36  ;;  %v8933_v44 = vld [vmem:[#allocation2 + $0x20] sm:$0xf]  ;;  %v11798_v45 = vld [vmem:[#allocation2 + $0x2c] sm:$0xf0] }
  0x58   :  { %v8930_v43 = vor.u32 %v11793_v38, %v8927_v39  ;;  %v11796_v46 = vld [vmem:[#allocation2 + $0x24] sm:$0xf]  ;;  %v8935_v47 = vld [vmem:[#allocation2 + $0x30] sm:$0xf0]  ;;  %v8941_v48 = vld [vmem:[#allocation2 + $0x28] sm:$0xf]  ;;  %v8934_v52 = vor.u32 %v11798_v45, %v8933_v44 }
  0x59   :  { %v11799_v49 = vld [vmem:[#allocation2 + $0x34] sm:$0xf0]  ;;  %v11797_v50 = vld [vmem:[#allocation2 + $0x2c] sm:$0xf]  ;;  %v8943_v51 = vld [vmem:[#allocation2 + $0x38] sm:$0xf0]  ;;  %v8938_v53 = vor.u32 %v11796_v46, %v8935_v47 }
  0x5a   :  { %v13185_v0 = vld [vmem:[%s14874_s22 + $0x38] sm:$0xff]  ;;  %v13207_v4 = vld [vmem:[%s14874_s22 + $0x30] sm:$0xff]  ;;  %v13231_v8 = vld [vmem:[%s14874_s22 + $0x28] sm:$0xff]  ;;  %v8942_v54 = vor.u32 %v11799_v49, %v8941_v48  ;;  %v8946_v55 = vor.u32 %v11797_v50, %v8943_v51  ;;  %vm1365_vm1 = vcmask 31744  }
  0x5b   :  { %v13190_v1 = vld [vmem:[%s14874_s22 + $0x78] sm:$0xff]  ;;  %761 = vmatpush.bf16.msra.mxu0 %v13185_v0  ;;  %v13212_v5 = vld [vmem:[%s14874_s22 + $0x70] sm:$0xff]  ;;  %v13236_v9 = vld [vmem:[%s14874_s22 + $0x68] sm:$0xff] }
  0x5c   :  { %v13195_v2 = vld [vmem:[%s14874_s22 + $0xb8] sm:$0xff]  ;;  %810 = vmatpush.bf16.msra.mxu1 %v13190_v1  ;;  %v13219_v6 = vld [vmem:[%s14874_s22 + $0xb0] sm:$0xff]  ;;  %v13243_v10 = vld [vmem:[%s14874_s22 + $0xa8] sm:$0xff] }
  0x5d   :  { %v13200_v3 = vld [vmem:[%s14874_s22 + $0xf8] sm:$0xff]  ;;  %859 = vmatpush.bf16.msra.mxu2 %v13195_v2  ;;  %v13224_v7 = vld [vmem:[%s14874_s22 + $0xf0] sm:$0xff]  ;;  %v13248_v11 = vld [vmem:[%s14874_s22 + $0xe8] sm:$0xff] }
  0x5e   :  { %908 = vmatpush.bf16.msra.mxu3 %v13200_v3  ;;  %v13255_v12 = vld [vmem:[%s14874_s22 + $0x20] sm:$0xff]  ;;  %v13277_v16 = vld [vmem:[%s14874_s22 + $0x18] sm:$0xff]  ;;  %v13303_v20 = vld [vmem:[%s14874_s22 + $0x10] sm:$0xff] }
  0x5f   :  { %762 = vmatpush.bf16.msra.mxu0 %v13207_v4  ;;  %v13260_v13 = vld [vmem:[%s14874_s22 + $0x60] sm:$0xff]  ;;  %v13282_v17 = vld [vmem:[%s14874_s22 + $0x58] sm:$0xff]  ;;  %v13308_v21 = vld [vmem:[%s14874_s22 + $0x50] sm:$0xff] }
  0x60   :  { %811 = vmatpush.bf16.msra.mxu1 %v13212_v5  ;;  %v13267_v14 = vld [vmem:[%s14874_s22 + $0xa0] sm:$0xff]  ;;  %v13291_v18 = vld [vmem:[%s14874_s22 + $0x98] sm:$0xff]  ;;  %v13315_v22 = vld [vmem:[%s14874_s22 + $0x90] sm:$0xff] }
  0x61   :  { %860 = vmatpush.bf16.msra.mxu2 %v13219_v6  ;;  %v13272_v15 = vld [vmem:[%s14874_s22 + $0xe0] sm:$0xff]  ;;  %v13296_v19 = vld [vmem:[%s14874_s22 + $0xd8] sm:$0xff]  ;;  %v13320_v23 = vld [vmem:[%s14874_s22 + $0xd0] sm:$0xff] }
  0x62   :  { %909 = vmatpush.bf16.msra.mxu3 %v13224_v7  ;;  %v13327_v24 = vld [vmem:[%s14874_s22 + $0x8] sm:$0xff]  ;;  %v13349_v28 = vld [vmem:[%s14874_s22] sm:$0xff]  ;;  %v11802_v57 = vld [vmem:[#allocation2 + $0x4c] sm:$0xf0] }
  0x63   :  { %763 = vmatpush.bf16.msra.mxu0 %v13231_v8  ;;  %v13332_v25 = vld [vmem:[%s14874_s22 + $0x48] sm:$0xff]  ;;  %v13354_v29 = vld [vmem:[%s14874_s22 + $0x40] sm:$0xff]  ;;  %v8951_v59 = vld [vmem:[#allocation2 + $0x50] sm:$0xf0] }
  0x64   :  { %812 = vmatpush.bf16.msra.mxu1 %v13236_v9  ;;  %v13339_v26 = vld [vmem:[%s14874_s22 + $0x88] sm:$0xff]  ;;  %v13359_v30 = vld [vmem:[%s14874_s22 + $0x80] sm:$0xff]  ;;  %v11803_v61 = vld [vmem:[#allocation2 + $0x54] sm:$0xf0] }
  0x65   :  { %861 = vmatpush.bf16.msra.mxu2 %v13243_v10  ;;  %v13344_v27 = vld [vmem:[%s14874_s22 + $0xc8] sm:$0xff]  ;;  %v13364_v31 = vld [vmem:[%s14874_s22 + $0xc0] sm:$0xff]  ;;  %v8959_v63 = vld [vmem:[#allocation2 + $0x58] sm:$0xf0] }
  0x66   :  { %910 = vmatpush.bf16.msra.mxu3 %v13248_v11  ;;  %v8949_v56 = vld [vmem:[#allocation2 + $0x40] sm:$0xf]  ;;  %v11800_v58 = vld [vmem:[#allocation2 + $0x44] sm:$0xf]  ;;  %v8957_v60 = vld [vmem:[#allocation2 + $0x48] sm:$0xf] }
  0x67   :  { %764 = vmatpush.bf16.msra.mxu0 %v13255_v12  ;;  %v11801_v62 = vld [vmem:[#allocation2 + $0x4c] sm:$0xf]  ;;  %v8950_v32 = vor.u32 %v11802_v57, %v8949_v56  ;;  %v8954_v33 = vor.u32 %v11800_v58, %v8951_v59  ;;  %v8958_v34 = vor.u32 %v11803_v61, %v8957_v60  ;;  %v8965_v36 = vld [vmem:[#allocation2 + $0x60] sm:$0xf]  ;;  %v11806_v37 = vld [vmem:[#allocation2 + $0x6c] sm:$0xf0] }
  0x68   :  { %813 = vmatpush.bf16.msra.mxu1 %v13260_v13  ;;  %v8962_v35 = vor.u32 %v11801_v62, %v8959_v63  ;;  %v11804_v38 = vld [vmem:[#allocation2 + $0x64] sm:$0xf]  ;;  %v8967_v39 = vld [vmem:[#allocation2 + $0x70] sm:$0xf0]  ;;  %v8989_v48 = vld [vmem:[#allocation2 + $0x88] sm:$0xf] }
  0x69   :  { %862 = vmatpush.bf16.msra.mxu2 %v13267_v14  ;;  %v8970_v44 = vor.u32 %v11804_v38, %v8967_v39  ;;  %v11808_v46 = vld [vmem:[#allocation2 + $0x84] sm:$0xf]  ;;  %v8983_v47 = vld [vmem:[#allocation2 + $0x90] sm:$0xf0]  ;;  %v11811_v49 = vld [vmem:[#allocation2 + $0x94] sm:$0xf0] }
  0x6a   :  { %911 = vmatpush.bf16.msra.mxu3 %v13272_v15  ;;  %v11809_v50 = vld [vmem:[#allocation2 + $0x8c] sm:$0xf]  ;;  %v8999_v56 = vld [vmem:[#allocation2 + $0xb0] sm:$0xf0]  ;;  %v9005_v57 = vld [vmem:[#allocation2 + $0xa8] sm:$0xf] }
  0x6b   :  { %765 = vmatpush.bf16.msra.mxu0 %v13277_v16  ;;  %v11815_v58 = vld [vmem:[#allocation2 + $0xb4] sm:$0xf0]  ;;  %v11813_v59 = vld [vmem:[#allocation2 + $0xac] sm:$0xf]  ;;  %v9007_v60 = vld [vmem:[#allocation2 + $0xb8] sm:$0xf0] }
  0x6c   :  { %814 = vmatpush.bf16.msra.mxu1 %v13282_v17  ;;  %v9006_v63 = vor.u32 %v11815_v58, %v9005_v57  ;;  %v11817_v38 = vld [vmem:[#allocation2 + $0xcc] sm:$0xf]  ;;  %v9023_v39 = vld [vmem:[#allocation2 + $0xd8] sm:$0xf0] }
  0x6d   :  { %863 = vmatpush.bf16.msra.mxu2 %v13291_v18 }
  0x6e   :  { %912 = vmatpush.bf16.msra.mxu3 %v13296_v19 }
  0x6f   :  { %766 = vmatpush.bf16.msra.mxu0 %v13303_v20 }
  0x70   :  { %815 = vmatpush.bf16.msra.mxu1 %v13308_v21 }
  0x71   :  { %864 = vmatpush.bf16.msra.mxu2 %v13315_v22 }
  0x72   :  { %913 = vmatpush.bf16.msra.mxu3 %v13320_v23 }
  0x73   :  { %767 = vmatpush.bf16.msra.mxu0 %v13327_v24 }
  0x74   :  { %816 = vmatpush.bf16.msra.mxu1 %v13332_v25 }
  0x75   :  { %865 = vmatpush.bf16.msra.mxu2 %v13339_v26 }
  0x76   :  { %914 = vmatpush.bf16.msra.mxu3 %v13344_v27 }
  0x77   :  { %768 = vmatpush.bf16.msra.mxu0 %v13349_v28 }
  0x78   :  { %817 = vmatpush.bf16.msra.mxu1 %v13354_v29 }
  0x79   :  { %866 = vmatpush.bf16.msra.mxu2 %v13359_v30 }
  0x7a   :  { %915 = vmatpush.bf16.msra.mxu3 %v13364_v31  ;;  %769 = vmatmul.bf16.vlgmr.msra.gmra.mxu0 %v8918_v40  ;;  %v8973_v40 = vld [vmem:[#allocation2 + $0x68] sm:$0xf] }
  0x7b   :  { %1159 = vmatpush.bf16.msrb.mxu0 %v13185_v0  ;;  %818 = vmatmul.bf16.vlgmr.msra.gmra.mxu1 %v8922_v41  ;;  %v11807_v41 = vld [vmem:[#allocation2 + $0x74] sm:$0xf0] }
  0x7c   :  { %1208 = vmatpush.bf16.msrb.mxu1 %v13190_v1  ;;  %867 = vmatmul.bf16.vlgmr.msra.gmra.mxu2 %v8926_v42  ;;  %v11805_v42 = vld [vmem:[#allocation2 + $0x6c] sm:$0xf]  ;;  %v8974_v45 = vor.u32 %v11807_v41, %v8973_v40 }
  0x7d   :  { %916 = vmatmul.bf16.vlgmr.msra.gmra.mxu3 %v8930_v43  ;;  %1257 = vmatpush.bf16.msrb.mxu2 %v13195_v2  ;;  %v8966_v43 = vor.u32 %v11806_v37, %v8965_v36  ;;  %v9021_v36 = vld [vmem:[#allocation2 + $0xc8] sm:$0xf]  ;;  %v11819_v37 = vld [vmem:[#allocation2 + $0xd4] sm:$0xf0] }
  0x7e   :  { %1306 = vmatpush.bf16.msrb.mxu3 %v13200_v3 }
  0x7f   :  { %1160 = vmatpush.bf16.msrb.mxu0 %v13207_v4 }
  0x80   :  { %1209 = vmatpush.bf16.msrb.mxu1 %v13212_v5 }
  0x81   :  { %1258 = vmatpush.bf16.msrb.mxu2 %v13219_v6 }
  0x82   :  { %1307 = vmatpush.bf16.msrb.mxu3 %v13224_v7 }
  0x83   :  { %1161 = vmatpush.bf16.msrb.mxu0 %v13231_v8 }
  0x84   :  { %1210 = vmatpush.bf16.msrb.mxu1 %v13236_v9 }
  0x85   :  { %1259 = vmatpush.bf16.msrb.mxu2 %v13243_v10 }
  0x86   :  { %1308 = vmatpush.bf16.msrb.mxu3 %v13248_v11 }
  0x87   :  { %1162 = vmatpush.bf16.msrb.mxu0 %v13255_v12 }
  0x88   :  { %1211 = vmatpush.bf16.msrb.mxu1 %v13260_v13 }
  0x89   :  { %1260 = vmatpush.bf16.msrb.mxu2 %v13267_v14 }
  0x8a   :  { %1309 = vmatpush.bf16.msrb.mxu3 %v13272_v15  ;;  %774 = vmatmul.bf16.gmra.mxu0 %v8934_v52  ;;  %v8986_v52 = vor.u32 %v11808_v46, %v8983_v47  ;;  %v11821_v46 = vld [vmem:[#allocation2 + $0xec] sm:$0xf]  ;;  %v9039_v47 = vld [vmem:[#allocation2 + $0xf8] sm:$0xf0] }
  0x8b   :  { %1163 = vmatpush.bf16.msrb.mxu0 %v13277_v16  ;;  %823 = vmatmul.bf16.gmra.mxu1 %v8938_v53  ;;  %v8990_v53 = vor.u32 %v11811_v49, %v8989_v48 }
  0x8c   :  { %1212 = vmatpush.bf16.msrb.mxu1 %v13282_v17  ;;  %872 = vmatmul.bf16.gmra.mxu2 %v8942_v54  ;;  %v11814_v54 = vld [vmem:[#allocation2 + $0xac] sm:$0xf0] }
  0x8d   :  { %921 = vmatmul.bf16.gmra.mxu3 %v8946_v55  ;;  %1261 = vmatpush.bf16.msrb.mxu2 %v13291_v18  ;;  %v11812_v55 = vld [vmem:[#allocation2 + $0xa4] sm:$0xf] }
  0x8e   :  { %1310 = vmatpush.bf16.msrb.mxu3 %v13296_v19  ;;  %v9002_v62 = vor.u32 %v11812_v55, %v8999_v56  ;;  %v11825_v55 = vld [vmem:[#allocation2 + $0x10c] sm:$0xf]  ;;  %v9183_v56 = vld [vmem:[#allocation2 + $0x118] sm:$0xf0] }
  0x8f   :  { %1164 = vmatpush.bf16.msrb.mxu0 %v13303_v20 }
  0x90   :  { %1213 = vmatpush.bf16.msrb.mxu1 %v13308_v21 }
  0x91   :  { %1262 = vmatpush.bf16.msrb.mxu2 %v13315_v22 }
  0x92   :  { %1311 = vmatpush.bf16.msrb.mxu3 %v13320_v23 }
  0x93   :  { %1165 = vmatpush.bf16.msrb.mxu0 %v13327_v24 }
  0x94   :  { %1214 = vmatpush.bf16.msrb.mxu1 %v13332_v25 }
  0x95   :  { %1263 = vmatpush.bf16.msrb.mxu2 %v13339_v26 }
  0x96   :  { %1312 = vmatpush.bf16.msrb.mxu3 %v13344_v27 }
  0x97   :  { %1166 = vmatpush.bf16.msrb.mxu0 %v13349_v28 }
  0x98   :  { %1215 = vmatpush.bf16.msrb.mxu1 %v13354_v29 }
  0x99   :  { %1264 = vmatpush.bf16.msrb.mxu2 %v13359_v30 }
  0x9a   :  { %1313 = vmatpush.bf16.msrb.mxu3 %v13364_v31  ;;  %779 = vmatmul.bf16.gmra.mxu0 %v8950_v32  ;;  %v9013_v32 = vld [vmem:[#allocation2 + $0xc0] sm:$0xf] }
  0x9b   :  { %828 = vmatmul.bf16.gmra.mxu1 %v8954_v33  ;;  %v11818_v33 = vld [vmem:[#allocation2 + $0xcc] sm:$0xf0] }
  0x9c   :  { %877 = vmatmul.bf16.gmra.mxu2 %v8958_v34  ;;  %v11816_v34 = vld [vmem:[#allocation2 + $0xc4] sm:$0xf]  ;;  %v9014_v40 = vor.u32 %v11818_v33, %v9013_v32 }
  0x9d   :  { %1712 = vmatpush.bf16.msra.mxu2 %v13185_v0  ;;  %926 = vmatmul.bf16.gmra.mxu3 %v8962_v35  ;;  %v9015_v35 = vld [vmem:[#allocation2 + $0xd0] sm:$0xf0] }
  0x9e   :  { %1761 = vmatpush.bf16.msra.mxu3 %v13190_v1  ;;  %v8975_v1 = vld [vmem:[#allocation2 + $0x78] sm:$0xf0]  ;;  %v9018_v41 = vor.u32 %v11816_v34, %v9015_v35 }
  0xa1   :  { %1713 = vmatpush.bf16.msra.mxu2 %v13207_v4 }
  0xa2   :  { %1762 = vmatpush.bf16.msra.mxu3 %v13212_v5  ;;  %v8978_v5 = vor.u32 %v11805_v42, %v8975_v1  ;;  %v9022_v42 = vor.u32 %v11819_v37, %v9021_v36  ;;  %v9026_v1 = vor.u32 %v11817_v38, %v9023_v39  ;;  %v9189_v38 = vld [vmem:[#allocation2 + $0x120] sm:$0xf]  ;;  %v11830_v39 = vld [vmem:[#allocation2 + $0x12c] sm:$0xf0] }
  0xa5   :  { %1714 = vmatpush.bf16.msra.mxu2 %v13231_v8 }
  0xa6   :  { %1763 = vmatpush.bf16.msra.mxu3 %v13236_v9  ;;  %v8981_v9 = vld [vmem:[#allocation2 + $0x80] sm:$0xf] }
  0xa9   :  { %1715 = vmatpush.bf16.msra.mxu2 %v13255_v12 }
  0xaa   :  { %1764 = vmatpush.bf16.msra.mxu3 %v13260_v13  ;;  %784 = vmatmul.bf16.gmra.mxu0 %v8966_v43  ;;  %v11810_v13 = vld [vmem:[#allocation2 + $0x8c] sm:$0xf0]  ;;  %v9029_v43 = vld [vmem:[#allocation2 + $0xe0] sm:$0xf] }
  0xab   :  { %833 = vmatmul.bf16.gmra.mxu1 %v8970_v44  ;;  %v8982_v51 = vor.u32 %v11810_v13, %v8981_v9  ;;  %v11822_v44 = vld [vmem:[#allocation2 + $0xec] sm:$0xf0]  ;;  %v9037_v9 = vld [vmem:[#allocation2 + $0xe8] sm:$0xf]  ;;  %v11823_v13 = vld [vmem:[#allocation2 + $0xf4] sm:$0xf0] }
  0xac   :  { %882 = vmatmul.bf16.gmra.mxu2 %v8974_v45  ;;  %v11820_v45 = vld [vmem:[#allocation2 + $0xe4] sm:$0xf]  ;;  %v9030_v48 = vor.u32 %v11822_v44, %v9029_v43  ;;  %v11829_v43 = vld [vmem:[#allocation2 + $0x12c] sm:$0xf]  ;;  %v9199_v44 = vld [vmem:[#allocation2 + $0x138] sm:$0xf0] }
  0xad   :  { %1716 = vmatpush.bf16.msra.mxu2 %v13277_v16  ;;  %931 = vmatmul.bf16.gmra.mxu3 %v8978_v5  ;;  %v9031_v5 = vld [vmem:[#allocation2 + $0xf0] sm:$0xf0] }
  0xae   :  { %1765 = vmatpush.bf16.msra.mxu3 %v13282_v17  ;;  %v8991_v17 = vld [vmem:[#allocation2 + $0x98] sm:$0xf0]  ;;  %v9034_v49 = vor.u32 %v11820_v45, %v9031_v5  ;;  %v9190_v5 = vor.u32 %v11830_v39, %v9189_v38 }
  0xb1   :  { %1717 = vmatpush.bf16.msra.mxu2 %v13303_v20 }
  0xb2   :  { %1766 = vmatpush.bf16.msra.mxu3 %v13308_v21  ;;  %v8994_v21 = vor.u32 %v11809_v50, %v8991_v17  ;;  %v9038_v50 = vor.u32 %v11823_v13, %v9037_v9  ;;  %v9042_v17 = vor.u32 %v11821_v46, %v9039_v47 }
  0xb5   :  { %1718 = vmatpush.bf16.msra.mxu2 %v13327_v24 }
  0xb6   :  { %1767 = vmatpush.bf16.msra.mxu3 %v13332_v25  ;;  %v8997_v25 = vld [vmem:[#allocation2 + $0xa0] sm:$0xf] }
  0xb7   :  { %v8998_v61 = vor.u32 %v11814_v54, %v8997_v25  ;;  %v9181_v25 = vld [vmem:[#allocation2 + $0x108] sm:$0xf]  ;;  %v11827_v54 = vld [vmem:[#allocation2 + $0x114] sm:$0xf0] }
  0xb9   :  { %1719 = vmatpush.bf16.msra.mxu2 %v13349_v28 }
  0xba   :  { %1768 = vmatpush.bf16.msra.mxu3 %v13354_v29  ;;  %789 = vmatmul.bf16.gmra.mxu0 %v8982_v51  ;;  %v9010_v29 = vor.u32 %v11813_v59, %v9007_v60  ;;  %v9173_v51 = vld [vmem:[#allocation2 + $0x100] sm:$0xf] }
  0xbb   :  { %838 = vmatmul.bf16.gmra.mxu1 %v8986_v52  ;;  %v11826_v52 = vld [vmem:[#allocation2 + $0x10c] sm:$0xf0] }
  0xbc   :  { %887 = vmatmul.bf16.gmra.mxu2 %v8990_v53  ;;  %v11824_v53 = vld [vmem:[#allocation2 + $0x104] sm:$0xf]  ;;  %v9174_v57 = vor.u32 %v11826_v52, %v9173_v51 }
  0xbd   :  { %936 = vmatmul.bf16.gmra.mxu3 %v8994_v21  ;;  %v9175_v21 = vld [vmem:[#allocation2 + $0x110] sm:$0xf0] }
  0xbe   :  { %v9178_v58 = vor.u32 %v11824_v53, %v9175_v21 }
  0xca   :  { %794 = vmatmul.bf16.gmra.mxu0 %v8998_v61  ;;  %v9182_v61 = vor.u32 %v11827_v54, %v9181_v25  ;;  %v9205_v54 = vld [vmem:[#allocation2 + $0x140] sm:$0xf] }
  0xcb   :  { %843 = vmatmul.bf16.gmra.mxu1 %v9002_v62  ;;  %v9186_v62 = vor.u32 %v11825_v55, %v9183_v56  ;;  %v11834_v55 = vld [vmem:[#allocation2 + $0x14c] sm:$0xf0]  ;;  %v11832_v56 = vld [vmem:[#allocation2 + $0x144] sm:$0xf] }
  0xcc   :  { %892 = vmatmul.bf16.gmra.mxu2 %v9006_v63 }
  0xcd   :  { %941 = vmatmul.bf16.gmra.mxu3 %v9010_v29 }
  0xda   :  { %799 = vmatmul.bf16.gmra.mxu0 %v9014_v40  ;;  %v11828_v40 = vld [vmem:[#allocation2 + $0x124] sm:$0xf] }
  0xdb   :  { %848 = vmatmul.bf16.gmra.mxu1 %v9018_v41  ;;  %v9191_v41 = vld [vmem:[#allocation2 + $0x130] sm:$0xf0] }
  0xdc   :  { %897 = vmatmul.bf16.gmra.mxu2 %v9022_v42  ;;  %v9197_v42 = vld [vmem:[#allocation2 + $0x128] sm:$0xf]  ;;  %v9194_v9 = vor.u32 %v11828_v40, %v9191_v41 }
  0xdd   :  { %946 = vmatmul.bf16.gmra.mxu3 %v9026_v1  ;;  %v11831_v1 = vld [vmem:[#allocation2 + $0x134] sm:$0xf0] }
  0xea   :  { %804 = vmatmul.bf16.gmra.mxu0 %v9030_v48  ;;  %v9202_v48 = vor.u32 %v11829_v43, %v9199_v44 }
  0xeb   :  { %853 = vmatmul.bf16.gmra.mxu1 %v9034_v49 }
  0xec   :  { %902 = vmatmul.bf16.gmra.mxu2 %v9038_v50 }
  0xed   :  { %951 = vmatmul.bf16.gmra.mxu3 %v9042_v17 }
  0xf7   :  { %v770_v59 = vpop.f32.mrf.mxu0 }
  0xf8   :  { %v819_v60 = vpop.f32.mrf.mxu1 }
  0xf9   :  { %v820_v63 = vadd.f32 %v819_v60, %v770_v59  ;;  %v11835_v59 = vld [vmem:[#allocation2 + $0x154] sm:$0xf0]  ;;  %v11833_v60 = vld [vmem:[#allocation2 + $0x14c] sm:$0xf] }
  0xfa   :  { %1167 = vmatmul.bf16.vlgmr.msrb.gmra.mxu0 %v9174_v57  ;;  %v9207_v57 = vld [vmem:[#allocation2 + $0x150] sm:$0xf0] }
  0xfb   :  { %1216 = vmatmul.bf16.vlgmr.msrb.gmra.mxu1 %v9178_v58  ;;  %v9213_v58 = vld [vmem:[#allocation2 + $0x148] sm:$0xf] }
  0xfc   :  { %1265 = vmatmul.bf16.vlgmr.msrb.gmra.mxu2 %v9182_v61  ;;  %v9215_v61 = vld [vmem:[#allocation2 + $0x158] sm:$0xf0] }
  0xfd   :  { %1314 = vmatmul.bf16.vlgmr.msrb.gmra.mxu3 %v9186_v62 }
  0xfe   :  { %2203 = vmatpush.bf16.msrb.mxu3 %v13185_v0 }
  0xff   :  { %v868_v29 = vpop.f32.mrf.mxu2  ;;  %v772_v34 = vpop.f32.mrf.mxu0 }
 0x100   :  { %v917_v32 = vpop.f32.mrf.mxu3  ;;  %v869_v33 = vadd.f32 %v868_v29, %v820_v63  ;;  %v821_v35 = vpop.f32.mrf.mxu1  ;;  %v9206_v63 = vor.u32 %v11834_v55, %v9205_v54  ;;  %v9210_v29 = vor.u32 %v11832_v56, %v9207_v57 }
 0x101   :  { %v822_v36 = vadd.f32 %v821_v35, %v772_v34  ;;  %v9218_v35 = vor.u32 %v11833_v60, %v9215_v61 }
 0x102   :  { %2204 = vmatpush.bf16.msrb.mxu3 %v13207_v4  ;;  %v13424_v37 = vadd.f32 %v917_v32, %v869_v33  ;;  %v9198_v4 = vor.u32 %v11831_v1, %v9197_v42 }
 0x106   :  { %2205 = vmatpush.bf16.msrb.mxu3 %v13231_v8 }
 0x107   :  { %v870_v0 = vpop.f32.mrf.mxu2  ;;  %v775_v46 = vpop.f32.mrf.mxu0 }
 0x108   :  { %v919_v45 = vpop.f32.mrf.mxu3  ;;  %v871_v13 = vadd.f32 %v870_v0, %v822_v36  ;;  %v824_v47 = vpop.f32.mrf.mxu1  ;;  %v9221_v0 = vld [vmem:[#allocation2 + $0x160] sm:$0xf] }
 0x109   :  { %v825_v49 = vadd.f32 %v824_v47, %v775_v46  ;;  %v11837_v46 = vld [vmem:[#allocation2 + $0x16c] sm:$0xf]  ;;  %v9231_v47 = vld [vmem:[#allocation2 + $0x178] sm:$0xf0] }
 0x10a   :  { %2206 = vmatpush.bf16.msrb.mxu3 %v13255_v12  ;;  %v13428_v50 = vadd.f32 %v919_v45, %v871_v13  ;;  %1172 = vmatmul.bf16.gmra.mxu0 %v9190_v5  ;;  %v11838_v45 = vld [vmem:[#allocation2 + $0x16c] sm:$0xf0]  ;;  %v9223_v5 = vld [vmem:[#allocation2 + $0x170] sm:$0xf0]  ;;  %v11839_v13 = vld [vmem:[#allocation2 + $0x174] sm:$0xf0] }
 0x10b   :  { %1221 = vmatmul.bf16.gmra.mxu1 %v9194_v9  ;;  %v9229_v9 = vld [vmem:[#allocation2 + $0x168] sm:$0xf] }
 0x10c   :  { %v957_v17 = vpack.c.bf16 %v13428_v50, %v13424_v37  ;;  %1270 = vmatmul.bf16.gmra.mxu2 %v9198_v4  ;;  %v13509_v37 = vld [vmem:[%s14874_s22 + $0xb0] sm:$0xff] }
 0x10d   :  { %1319 = vmatmul.bf16.gmra.mxu3 %v9202_v48 }
 0x10e   :  { %2207 = vmatpush.bf16.msrb.mxu3 %v13277_v16 }
 0x10f   :  { %v873_v8 = vpop.f32.mrf.mxu2  ;;  %v777_v53 = vpop.f32.mrf.mxu0 }
 0x110   :  { %v922_v51 = vpop.f32.mrf.mxu3  ;;  %v874_v52 = vadd.f32 %v873_v8, %v825_v49  ;;  %v826_v21 = vpop.f32.mrf.mxu1  ;;  %v9222_v49 = vor.u32 %v11838_v45, %v9221_v0 }
 0x111   :  { %v827_v25 = vadd.f32 %v826_v21, %v777_v53  ;;  %v9230_v21 = vor.u32 %v11839_v13, %v9229_v9 }
 0x112   :  { %2208 = vmatpush.bf16.msrb.mxu3 %v13303_v20  ;;  %v13434_v12 = vadd.f32 %v922_v51, %v874_v52  ;;  %v9214_v20 = vor.u32 %v11835_v59, %v9213_v58 }
 0x116   :  { %2209 = vmatpush.bf16.msrb.mxu3 %v13327_v24 }
 0x117   :  { %v875_v16 = vpop.f32.mrf.mxu2  ;;  %v780_v33 = vpop.f32.mrf.mxu0 }
 0x118   :  { %v924_v62 = vpop.f32.mrf.mxu3  ;;  %v876_v32 = vadd.f32 %v875_v16, %v827_v25  ;;  %v829_v34 = vpop.f32.mrf.mxu1  ;;  %v9234_v25 = vor.u32 %v11837_v46, %v9231_v47 }
 0x119   :  { %v830_v36 = vadd.f32 %v829_v34, %v780_v33  ;;  %v9239_v33 = vld [vmem:[#allocation2 + $0x190] sm:$0xf0]  ;;  %v9245_v34 = vld [vmem:[#allocation2 + $0x188] sm:$0xf] }
 0x11a   :  { %2210 = vmatpush.bf16.msrb.mxu3 %v13349_v28  ;;  %v13438_v38 = vadd.f32 %v924_v62, %v876_v32  ;;  %1177 = vmatmul.bf16.gmra.mxu0 %v9206_v63  ;;  %v11836_v28 = vld [vmem:[#allocation2 + $0x164] sm:$0xf]  ;;  %v9237_v63 = vld [vmem:[#allocation2 + $0x180] sm:$0xf] }
 0x11b   :  { %1226 = vmatmul.bf16.gmra.mxu1 %v9210_v29  ;;  %v9226_v8 = vor.u32 %v11836_v28, %v9223_v5  ;;  %v11842_v29 = vld [vmem:[#allocation2 + $0x18c] sm:$0xf0]  ;;  %v11840_v32 = vld [vmem:[#allocation2 + $0x184] sm:$0xf] }
 0x11c   :  { %v958_v39 = vpack.c.bf16 %v13438_v38, %v13434_v12  ;;  %1275 = vmatmul.bf16.gmra.mxu2 %v9214_v20  ;;  %v11843_v20 = vld [vmem:[#allocation2 + $0x194] sm:$0xf0] }
 0x11d   :  { %1324 = vmatmul.bf16.gmra.mxu3 %v9218_v35  ;;  %v11841_v35 = vld [vmem:[#allocation2 + $0x18c] sm:$0xf]  ;;  %v9246_v45 = vor.u32 %v11843_v20, %v9245_v34 }
 0x11f   :  { %v878_v24 = vpop.f32.mrf.mxu2  ;;  %v782_v42 = vpop.f32.mrf.mxu0 }
 0x120   :  { %v927_v40 = vpop.f32.mrf.mxu3  ;;  %v879_v41 = vadd.f32 %v878_v24, %v830_v36  ;;  %v831_v1 = vpop.f32.mrf.mxu1  ;;  %v9247_v36 = vld [vmem:[#allocation2 + $0x198] sm:$0xf0] }
 0x121   :  { %v832_v43 = vadd.f32 %v831_v1, %v782_v42  ;;  %v9242_v42 = vor.u32 %v11840_v32, %v9239_v33  ;;  %v9250_v28 = vor.u32 %v11841_v35, %v9247_v36 }
 0x122   :  { %v13442_v44 = vadd.f32 %v927_v40, %v879_v41  ;;  %v9238_v41 = vor.u32 %v11842_v29, %v9237_v63 }
 0x127   :  { %v880_v4 = vpop.f32.mrf.mxu2  ;;  %v785_v52 = vpop.f32.mrf.mxu0 }
 0x128   :  { %v929_v48 = vpop.f32.mrf.mxu3  ;;  %v881_v51 = vadd.f32 %v880_v4, %v832_v43  ;;  %v834_v53 = vpop.f32.mrf.mxu1 }
 0x129   :  { %v835_v54 = vadd.f32 %v834_v53, %v785_v52  ;;  %v11846_v52 = vld [vmem:[#allocation2 + $0x1ac] sm:$0xf0]  ;;  %v11844_v53 = vld [vmem:[#allocation2 + $0x1a4] sm:$0xf] }
 0x12a   :  { %v13444_v55 = vadd.f32 %v929_v48, %v881_v51  ;;  %1182 = vmatmul.bf16.gmra.mxu0 %v9222_v49  ;;  %v9253_v51 = vld [vmem:[#allocation2 + $0x1a0] sm:$0xf] }
 0x12b   :  { %1231 = vmatmul.bf16.gmra.mxu1 %v9226_v8 }
 0x12c   :  { %v959_v56 = vpack.c.bf16 %v13444_v55, %v13442_v44  ;;  %1280 = vmatmul.bf16.gmra.mxu2 %v9230_v21  ;;  %v9255_v21 = vld [vmem:[#allocation2 + $0x1b0] sm:$0xf0] }
 0x12d   :  { %1329 = vmatmul.bf16.gmra.mxu3 %v9234_v25  ;;  %v9261_v25 = vld [vmem:[#allocation2 + $0x1a8] sm:$0xf]  ;;  %v9258_v63 = vor.u32 %v11844_v53, %v9255_v21  ;;  %v11849_v53 = vld [vmem:[#allocation2 + $0x1cc] sm:$0xf]  ;;  %v9279_v21 = vld [vmem:[#allocation2 + $0x1d8] sm:$0xf0] }
 0x12f   :  { %v883_v57 = vpop.f32.mrf.mxu2  ;;  %v787_v60 = vpop.f32.mrf.mxu0 }
 0x130   :  { %v932_v58 = vpop.f32.mrf.mxu3  ;;  %v884_v59 = vadd.f32 %v883_v57, %v835_v54  ;;  %v836_v61 = vpop.f32.mrf.mxu1  ;;  %v11847_v54 = vld [vmem:[#allocation2 + $0x1b4] sm:$0xf0]  ;;  %v11845_v57 = vld [vmem:[#allocation2 + $0x1ac] sm:$0xf] }
 0x131   :  { %v837_v16 = vadd.f32 %v836_v61, %v787_v60  ;;  %v9262_v34 = vor.u32 %v11847_v54, %v9261_v25 }
 0x132   :  { %v13448_v62 = vadd.f32 %v932_v58, %v884_v59  ;;  %v9263_v58 = vld [vmem:[#allocation2 + $0x1b8] sm:$0xf0] }
 0x133   :  { %v9266_v20 = vor.u32 %v11845_v57, %v9263_v58 }
 0x137   :  { %v885_v24 = vpop.f32.mrf.mxu2  ;;  %v790_v43 = vpop.f32.mrf.mxu0 }
 0x138   :  { %v934_v40 = vpop.f32.mrf.mxu3  ;;  %v886_v1 = vadd.f32 %v885_v24, %v837_v16  ;;  %v839_v0 = vpop.f32.mrf.mxu1  ;;  %v9254_v16 = vor.u32 %v11846_v52, %v9253_v51  ;;  %v9277_v51 = vld [vmem:[#allocation2 + $0x1c8] sm:$0xf]  ;;  %v11851_v52 = vld [vmem:[#allocation2 + $0x1d4] sm:$0xf0] }
 0x139   :  { %v840_v5 = vadd.f32 %v839_v0, %v790_v43 }
 0x13a   :  { %v13450_v9 = vadd.f32 %v934_v40, %v886_v1  ;;  %1187 = vmatmul.bf16.gmra.mxu0 %v9238_v41 }
 0x13b   :  { %1236 = vmatmul.bf16.gmra.mxu1 %v9242_v42 }
 0x13c   :  { %v960_v13 = vpack.c.bf16 %v13450_v9, %v13448_v62  ;;  %1285 = vmatmul.bf16.gmra.mxu2 %v9246_v45  ;;  %v1364_v45 = vld [vmem:[#allocation4 + $0x2] sm:$0x3] }
 0x13d   :  { %1334 = vmatmul.bf16.gmra.mxu3 %v9250_v28  ;;  %v965_v28 = vld [vmem:[#allocation4] sm:$0x3] }
 0x13f   :  { %v888_v46 = vpop.f32.mrf.mxu2  ;;  %v792_v48 = vpop.f32.mrf.mxu0 }
 0x140   :  { %v937_v47 = vpop.f32.mrf.mxu3  ;;  %v889_v4 = vadd.f32 %v888_v46, %v840_v5  ;;  %v841_v49 = vpop.f32.mrf.mxu1  ;;  %v9269_v5 = vld [vmem:[#allocation2 + $0x1c0] sm:$0xf]  ;;  %v11850_v46 = vld [vmem:[#allocation2 + $0x1cc] sm:$0xf0] }
 0x141   :  { %v842_v59 = vadd.f32 %v841_v49, %v792_v48  ;;  %v11848_v48 = vld [vmem:[#allocation2 + $0x1c4] sm:$0xf]  ;;  %v9271_v49 = vld [vmem:[#allocation2 + $0x1d0] sm:$0xf0]  ;;  %v9270_v58 = vor.u32 %v11850_v46, %v9269_v5 }
 0x142   :  { %v13454_v8 = vadd.f32 %v937_v47, %v889_v4  ;;  %v1392_v47 = vsel %vm1390_vm0, %v1364_v45, 0  ;;  %v1468_v4 = vsel %vm1390_vm0, %v965_v28, 0  ;;  %v11855_v45 = vld [vmem:[#allocation2 + $0x1f4] sm:$0xf0]  ;;  %v9295_v28 = vld [vmem:[#allocation2 + $0x1f8] sm:$0xf0] }
 0x143   :  { %1401 = vmatpush.bf16.msra.mxu0 %v1392_v47  ;;  %1477 = vmatpush.bf16.msra.mxu1 %v1468_v4 }
 0x147   :  { %v890_v60 = vpop.f32.mrf.mxu2  ;;  %v795_v32 = vpop.f32.mrf.mxu0  ;;  %1859 = vmatpush.bf16.msrb.mxu1 %v13200_v3  ;;  %1810 = vmatpush.bf16.msrb.mxu0 %v13195_v2 }
 0x148   :  { %v939_v61 = vpop.f32.mrf.mxu3  ;;  %v891_v29 = vadd.f32 %v890_v60, %v842_v59  ;;  %v844_v33 = vpop.f32.mrf.mxu1  ;;  %v9274_v59 = vor.u32 %v11848_v48, %v9271_v49 }
 0x149   :  { %v845_v35 = vadd.f32 %v844_v33, %v795_v32 }
 0x14a   :  { %v13456_v36 = vadd.f32 %v939_v61, %v891_v29  ;;  %1192 = vmatmul.bf16.gmra.mxu0 %v9254_v16  ;;  %v9282_v29 = vor.u32 %v11849_v53, %v9279_v21 }
 0x14b   :  { %1241 = vmatmul.bf16.gmra.mxu1 %v9258_v63  ;;  %v9278_v63 = vor.u32 %v11851_v52, %v9277_v51  ;;  %1811 = vmatpush.bf16.msrb.mxu0 %v13219_v6 }
 0x14c   :  { %v961_v24 = vpack.c.bf16 %v13456_v36, %v13454_v8  ;;  %1290 = vmatmul.bf16.gmra.mxu2 %v9262_v34  ;;  %1860 = vmatpush.bf16.msrb.mxu1 %v13224_v7 }
 0x14d   :  { %1339 = vmatmul.bf16.gmra.mxu3 %v9266_v20 }
 0x14f   :  { %v893_v40 = vpop.f32.mrf.mxu2  ;;  %v797_v1 = vpop.f32.mrf.mxu0  ;;  %1812 = vmatpush.bf16.msrb.mxu0 %v13243_v10 }
 0x150   :  { %v942_v41 = vpop.f32.mrf.mxu3  ;;  %v894_v42 = vadd.f32 %v893_v40, %v845_v35  ;;  %v846_v43 = vpop.f32.mrf.mxu1  ;;  %1861 = vmatpush.bf16.msrb.mxu1 %v13248_v11  ;;  %v9285_v40 = vld [vmem:[#allocation2 + $0x1e0] sm:$0xf]  ;;  %v11853_v11 = vld [vmem:[#allocation2 + $0x1ec] sm:$0xf] }
 0x151   :  { %v847_v25 = vadd.f32 %v846_v43, %v797_v1  ;;  %v9287_v1 = vld [vmem:[#allocation2 + $0x1f0] sm:$0xf0]  ;;  %v9293_v43 = vld [vmem:[#allocation2 + $0x1e8] sm:$0xf]  ;;  %v9298_v51 = vor.u32 %v11853_v11, %v9295_v28  ;;  %v13521_v11 = vld [vmem:[%s14874_s22 + $0xa0] sm:$0xff] }
 0x152   :  { %v13460_v0 = vadd.f32 %v942_v41, %v894_v42  ;;  %v11854_v41 = vld [vmem:[#allocation2 + $0x1ec] sm:$0xf0]  ;;  %v11852_v42 = vld [vmem:[#allocation2 + $0x1e4] sm:$0xf]  ;;  %v9294_v49 = vor.u32 %v11855_v45, %v9293_v43 }
 0x153   :  { %1813 = vmatpush.bf16.msrb.mxu0 %v13267_v14  ;;  %v9290_v47 = vor.u32 %v11852_v42, %v9287_v1 }
 0x154   :  { %1862 = vmatpush.bf16.msrb.mxu1 %v13272_v15  ;;  %v9286_v15 = vor.u32 %v11854_v41, %v9285_v40 }
 0x157   :  { %v895_v54 = vpop.f32.mrf.mxu2  ;;  %v800_v61 = vpop.f32.mrf.mxu0  ;;  %1814 = vmatpush.bf16.msrb.mxu0 %v13291_v18 }
 0x158   :  { %v944_v57 = vpop.f32.mrf.mxu3  ;;  %v896_v60 = vadd.f32 %v895_v54, %v847_v25  ;;  %v849_v16 = vpop.f32.mrf.mxu1  ;;  %1863 = vmatpush.bf16.msrb.mxu1 %v13296_v19 }
 0x159   :  { %v850_v32 = vadd.f32 %v849_v16, %v800_v61 }
 0x15a   :  { %v13468_v33 = vadd.f32 %v944_v57, %v896_v60  ;;  %1197 = vmatmul.bf16.gmra.mxu0 %v9270_v58 }
 0x15b   :  { %1246 = vmatmul.bf16.gmra.mxu1 %v9274_v59  ;;  %1815 = vmatpush.bf16.msrb.mxu0 %v13315_v22 }
 0x15c   :  { %v962_v2 = vpack.c.bf16 %v13468_v33, %v13460_v0  ;;  %1295 = vmatmul.bf16.gmra.mxu2 %v9278_v63  ;;  %1864 = vmatpush.bf16.msrb.mxu1 %v13320_v23  ;;  %v9317_v0 = vld [vmem:[#allocation2 + $0x200] sm:$0xf]  ;;  %v11858_v33 = vld [vmem:[#allocation2 + $0x20c] sm:$0xf0] }
 0x15d   :  { %1344 = vmatmul.bf16.gmra.mxu3 %v9282_v29 }
 0x15f   :  { %v898_v3 = vpop.f32.mrf.mxu2  ;;  %v802_v35 = vpop.f32.mrf.mxu0  ;;  %1816 = vmatpush.bf16.msrb.mxu0 %v13339_v26 }
 0x160   :  { %v947_v34 = vpop.f32.mrf.mxu3  ;;  %v899_v20 = vadd.f32 %v898_v3, %v850_v32  ;;  %v851_v7 = vpop.f32.mrf.mxu1  ;;  %1865 = vmatpush.bf16.msrb.mxu1 %v13344_v27  ;;  %v13503_v32 = vld [vmem:[%s14874_s22 + $0xb8] sm:$0xff] }
 0x161   :  { %v852_v10 = vadd.f32 %v851_v7, %v802_v35 }
 0x162   :  { %v13476_v6 = vadd.f32 %v947_v34, %v899_v20 }
 0x163   :  { %1817 = vmatpush.bf16.msrb.mxu0 %v13359_v30 }
 0x164   :  { %1866 = vmatpush.bf16.msrb.mxu1 %v13364_v31 }
 0x167   :  { %v900_v5 = vpop.f32.mrf.mxu2  ;;  %v805_v4 = vpop.f32.mrf.mxu0 }
 0x168   :  { %v949_v46 = vpop.f32.mrf.mxu3  ;;  %v901_v14 = vadd.f32 %v900_v5, %v852_v10  ;;  %v854_v48 = vpop.f32.mrf.mxu1 }
 0x169   :  { %v855_v52 = vadd.f32 %v854_v48, %v805_v4 }
 0x16a   :  { %v13482_v53 = vadd.f32 %v949_v46, %v901_v14  ;;  %1202 = vmatmul.bf16.gmra.mxu0 %v9286_v15 }
 0x16b   :  { %1251 = vmatmul.bf16.gmra.mxu1 %v9290_v47  ;;  %v13533_v47 = vld [vmem:[%s14874_s22 + $0x78] sm:$0xff] }
 0x16c   :  { %v963_v19 = vpack.c.bf16 %v13482_v53, %v13476_v6  ;;  %1300 = vmatmul.bf16.gmra.mxu2 %v9294_v49 }
 0x16d   :  { %1349 = vmatmul.bf16.gmra.mxu3 %v9298_v51  ;;  %v13547_v51 = vld [vmem:[%s14874_s22 + $0x68] sm:$0xff] }
 0x16f   :  { %v903_v21 = vpop.f32.mrf.mxu2  ;;  %v807_v57 = vpop.f32.mrf.mxu0 }
 0x170   :  { %v952_v25 = vpop.f32.mrf.mxu3  ;;  %v904_v54 = vadd.f32 %v903_v21, %v855_v52  ;;  %v856_v23 = vpop.f32.mrf.mxu1 }
 0x171   :  { %v857_v59 = vadd.f32 %v856_v23, %v807_v57 }
 0x172   :  { %v13490_v58 = vadd.f32 %v952_v25, %v904_v54 }
 0x177   :  { %v905_v60 = vpop.f32.mrf.mxu2  ;;  %v1168_v63 = vpop.f32.mrf.mxu0 }
 0x178   :  { %v954_v61 = vpop.f32.mrf.mxu3  ;;  %v906_v16 = vadd.f32 %v905_v60, %v857_v59  ;;  %v1217_v29 = vpop.f32.mrf.mxu1  ;;  %v13571_v60 = vld [vmem:[%s14874_s22 + $0x50] sm:$0xff] }
 0x179   :  { %v1218_v50 = vadd.f32 %v1217_v29, %v1168_v63 }
 0x17a   :  { %v13492_v27 = vadd.f32 %v954_v61, %v906_v16 }
 0x17b   :  { %9307 = vmatmul.msk.bf16.vlgmr.msra.gmra.mxu1 %vm1365_vm1, %v957_v17  ;;  %v13515_v17 = vld [vmem:[%s14874_s22 + $0xa8] sm:$0xff] }
 0x17c   :  { %v964_v31 = vpack.c.bf16 %v13492_v27, %v13490_v58  ;;  %2301 = vmatpush.bf16.msra.mxu1 %v13503_v32  ;;  %v9327_v58 = vld [vmem:[#allocation2 + $0x218] sm:$0xf0] }
 0x17f   :  { %v1266_v3 = vpop.f32.mrf.mxu2  ;;  %v1170_v20 = vpop.f32.mrf.mxu0 }
 0x180   :  { %v1315_v34 = vpop.f32.mrf.mxu3  ;;  %v1219_v35 = vpop.f32.mrf.mxu1  ;;  %2302 = vmatpush.bf16.msra.mxu1 %v13509_v37  ;;  %v1267_v7 = vadd.f32 %v1266_v3, %v1218_v50  ;;  %v13577_v3 = vld [vmem:[%s14874_s22 + $0x48] sm:$0xff] }
 0x181   :  { %v1220_v40 = vadd.f32 %v1219_v35, %v1170_v20 }
 0x182   :  { %v1316_v28 = vadd.f32 %v1315_v34, %v1267_v7 }
 0x184   :  { %2303 = vmatpush.bf16.msra.mxu1 %v13515_v17 }
 0x187   :  { %v1268_v41 = vpop.f32.mrf.mxu2  ;;  %v1173_v43 = vpop.f32.mrf.mxu0 }
 0x188   :  { %v1317_v42 = vpop.f32.mrf.mxu3  ;;  %v1269_v1 = vadd.f32 %v1268_v41, %v1220_v40  ;;  %v1222_v45 = vpop.f32.mrf.mxu1  ;;  %2304 = vmatpush.bf16.msra.mxu1 %v13521_v11  ;;  %v13587_v40 = vld [vmem:[%s14874_s22 + $0x40] sm:$0xff] }
 0x189   :  { %v1223_v12 = vadd.f32 %v1222_v45, %v1173_v43 }
 0x18a   :  { %v1318_v10 = vadd.f32 %v1317_v42, %v1269_v1 }
 0x18b   :  { %9308 = vmatmul.msk.bf16.gmra.mxu1 %vm1365_vm1, %v958_v39 }
 0x18c   :  { %v1355_v5 = vpack.c.bf16 %v1318_v10, %v1316_v28  ;;  %2305 = vmatpush.bf16.msra.mxu1 %v13291_v18  ;;  %v13540_v18 = vld [vmem:[%s14874_s22 + $0x70] sm:$0xff] }
 0x18e   :  { %9299 = vmatmul.msk.bf16.vlgmr.msra.gmra.mxu0 %vm1365_vm1, %v1355_v5 }
 0x18f   :  { %v1271_v46 = vpop.f32.mrf.mxu2  ;;  %2252 = vmatpush.bf16.msra.mxu0 %v13533_v47  ;;  %v1175_v14 = vpop.f32.mrf.mxu0 }
 0x190   :  { %v1320_v15 = vpop.f32.mrf.mxu3  ;;  %v1224_v4 = vpop.f32.mrf.mxu1  ;;  %2306 = vmatpush.bf16.msra.mxu1 %v13315_v22  ;;  %v1272_v38 = vadd.f32 %v1271_v46, %v1223_v12 }
 0x191   :  { %v1225_v39 = vadd.f32 %v1224_v4, %v1175_v14 }
 0x192   :  { %v1321_v25 = vadd.f32 %v1320_v15, %v1272_v38 }
 0x193   :  { %2253 = vmatpush.bf16.msra.mxu0 %v13540_v18 }
 0x194   :  { %2307 = vmatpush.bf16.msra.mxu1 %v13339_v26  ;;  %v13558_v26 = vld [vmem:[%s14874_s22 + $0x60] sm:$0xff] }
 0x197   :  { %v1273_v48 = vpop.f32.mrf.mxu2  ;;  %2254 = vmatpush.bf16.msra.mxu0 %v13547_v51  ;;  %v1178_v52 = vpop.f32.mrf.mxu0 }
 0x198   :  { %v1322_v49 = vpop.f32.mrf.mxu3  ;;  %v1274_v22 = vadd.f32 %v1273_v48, %v1225_v39  ;;  %v1227_v21 = vpop.f32.mrf.mxu1  ;;  %2308 = vmatpush.bf16.msra.mxu1 %v13359_v30  ;;  %v13565_v30 = vld [vmem:[%s14874_s22 + $0x58] sm:$0xff] }
 0x19a   :  { %v1323_v54 = vadd.f32 %v1322_v49, %v1274_v22 }
 0x19b   :  { %9309 = vmatmul.msk.bf16.gmra.mxu1 %vm1365_vm1, %v959_v56  ;;  %2255 = vmatpush.bf16.msra.mxu0 %v13558_v26  ;;  %v1228_v56 = vadd.f32 %v1227_v21, %v1178_v52 }
 0x19c   :  { %v1356_v57 = vpack.c.bf16 %v1323_v54, %v1321_v25 }
 0x19e   :  { %9300 = vmatmul.msk.bf16.gmra.mxu0 %vm1365_vm1, %v1356_v57 }
 0x19f   :  { %v1276_v23 = vpop.f32.mrf.mxu2  ;;  %2256 = vmatpush.bf16.msra.mxu0 %v13565_v30  ;;  %v1180_v44 = vpop.f32.mrf.mxu0 }
 0x1a0   :  { %v1325_v59 = vpop.f32.mrf.mxu3  ;;  %v1229_v55 = vpop.f32.mrf.mxu1  ;;  %v1277_v61 = vadd.f32 %v1276_v23, %v1228_v56 }
 0x1a1   :  { %v1230_v16 = vadd.f32 %v1229_v55, %v1180_v44 }
 0x1a2   :  { %v1326_v50 = vadd.f32 %v1325_v59, %v1277_v61 }
 0x1a3   :  { %2257 = vmatpush.bf16.msra.mxu0 %v13571_v60 }
 0x1a7   :  { %v1278_v63 = vpop.f32.mrf.mxu2  ;;  %2258 = vmatpush.bf16.msra.mxu0 %v13577_v3  ;;  %v1183_v20 = vpop.f32.mrf.mxu0 }
 0x1a8   :  { %v1327_v29 = vpop.f32.mrf.mxu3  ;;  %v1279_v34 = vadd.f32 %v1278_v63, %v1230_v16  ;;  %v1232_v35 = vpop.f32.mrf.mxu1 }
 0x1a9   :  { %v1233_v28 = vadd.f32 %v1232_v35, %v1183_v20 }
 0x1aa   :  { %v1328_v7 = vadd.f32 %v1327_v29, %v1279_v34 }
 0x1ab   :  { %9310 = vmatmul.msk.bf16.gmra.mxu1 %vm1365_vm1, %v960_v13  ;;  %2259 = vmatpush.bf16.msra.mxu0 %v13587_v40 }
 0x1ac   :  { %v1357_v41 = vpack.c.bf16 %v1328_v7, %v1326_v50 }
 0x1ae   :  { %9301 = vmatmul.msk.bf16.gmra.mxu0 %vm1365_vm1, %v1357_v41 }
 0x1af   :  { %v1281_v42 = vpop.f32.mrf.mxu2  ;;  %v1185_v43 = vpop.f32.mrf.mxu0 }
 0x1b0   :  { %v1330_v1 = vpop.f32.mrf.mxu3  ;;  %v1234_v45 = vpop.f32.mrf.mxu1  ;;  %v1282_v10 = vadd.f32 %v1281_v42, %v1233_v28 }
 0x1b1   :  { %v1235_v5 = vadd.f32 %v1234_v45, %v1185_v43  ;;  %v9318_v43 = vor.u32 %v11858_v33, %v9317_v0  ;;  %v9319_v45 = vld [vmem:[#allocation2 + $0x210] sm:$0xf0]  ;;  %v11861_v0 = vld [vmem:[#allocation2 + $0x22c] sm:$0xf]  ;;  %v9343_v33 = vld [vmem:[#allocation2 + $0x238] sm:$0xf0] }
 0x1b2   :  { %v1331_v14 = vadd.f32 %v1330_v1, %v1282_v10 }
 0x1b3   :  { %1720 = vmatmul.bf16.vlgmr.msra.gmra.mxu2 %v9318_v43  ;;  %v9346_v43 = vor.u32 %v11861_v0, %v9343_v33  ;;  %v9399_v0 = vld [vmem:[#allocation2 + $0x2b0] sm:$0xf0] }
 0x1b7   :  { %v1283_v62 = vpop.f32.mrf.mxu2  ;;  %v1188_v46 = vpop.f32.mrf.mxu0 }
 0x1b8   :  { %v1332_v9 = vpop.f32.mrf.mxu3  ;;  %v1284_v13 = vadd.f32 %v1283_v62, %v1235_v5  ;;  %v1237_v15 = vpop.f32.mrf.mxu1 }
 0x1b9   :  { %v1238_v22 = vadd.f32 %v1237_v15, %v1188_v46 }
 0x1ba   :  { %v1333_v4 = vadd.f32 %v1332_v9, %v1284_v13 }
 0x1bb   :  { %9311 = vmatmul.msk.bf16.gmra.mxu1 %vm1365_vm1, %v961_v24 }
 0x1bc   :  { %v1358_v12 = vpack.c.bf16 %v1333_v4, %v1331_v14 }
 0x1be   :  { %9302 = vmatmul.msk.bf16.gmra.mxu0 %vm1365_vm1, %v1358_v12 }
 0x1bf   :  { %v1286_v38 = vpop.f32.mrf.mxu2  ;;  %v1190_v48 = vpop.f32.mrf.mxu0 }
 0x1c0   :  { %v1335_v39 = vpop.f32.mrf.mxu3  ;;  %v1239_v49 = vpop.f32.mrf.mxu1  ;;  %v1287_v52 = vadd.f32 %v1286_v38, %v1238_v22 }
 0x1c1   :  { %v1240_v21 = vadd.f32 %v1239_v49, %v1190_v48  ;;  %v11862_v48 = vld [vmem:[#allocation2 + $0x22c] sm:$0xf0]  ;;  %v11860_v49 = vld [vmem:[#allocation2 + $0x224] sm:$0xf] }
 0x1c2   :  { %v1336_v44 = vadd.f32 %v1335_v39, %v1287_v52  ;;  %v9333_v39 = vld [vmem:[#allocation2 + $0x220] sm:$0xf] }
 0x1c3   :  { %v9334_v52 = vor.u32 %v11862_v48, %v9333_v39  ;;  %v11863_v39 = vld [vmem:[#allocation2 + $0x234] sm:$0xf0] }
 0x1c5   :  { %1725 = vmatmul.bf16.gmra.mxu2 %v9334_v52 }
 0x1c7   :  { %v1288_v25 = vpop.f32.mrf.mxu2  ;;  %v1193_v23 = vpop.f32.mrf.mxu0 }
 0x1c8   :  { %v1337_v54 = vpop.f32.mrf.mxu3  ;;  %v1289_v57 = vadd.f32 %v1288_v25, %v1240_v21  ;;  %v1242_v59 = vpop.f32.mrf.mxu1  ;;  %v9335_v21 = vld [vmem:[#allocation2 + $0x230] sm:$0xf0] }
 0x1c9   :  { %v1243_v16 = vadd.f32 %v1242_v59, %v1193_v23  ;;  %v9338_v25 = vor.u32 %v11860_v49, %v9335_v21  ;;  %v9381_v21 = vld [vmem:[#allocation2 + $0x280] sm:$0xf] }
 0x1ca   :  { %v1338_v55 = vadd.f32 %v1337_v54, %v1289_v57 }
 0x1cb   :  { %9312 = vmatmul.msk.bf16.gmra.mxu1 %vm1365_vm1, %v962_v2  ;;  %v11856_v2 = vld [vmem:[#allocation2 + $0x204] sm:$0xf] }
 0x1cc   :  { %v1359_v8 = vpack.c.bf16 %v1338_v55, %v1336_v44  ;;  %v9322_v28 = vor.u32 %v11856_v2, %v9319_v45  ;;  %v11857_v55 = vld [vmem:[#allocation2 + $0x20c] sm:$0xf]  ;;  %v9325_v2 = vld [vmem:[#allocation2 + $0x208] sm:$0xf] }
 0x1ce   :  { %9303 = vmatmul.msk.bf16.gmra.mxu0 %vm1365_vm1, %v1359_v8  ;;  %1769 = vmatmul.bf16.vlgmr.msra.gmra.mxu3 %v9322_v28 }
 0x1cf   :  { %v1291_v36 = vpop.f32.mrf.mxu2  ;;  %v1195_v56 = vpop.f32.mrf.mxu0 }
 0x1d0   :  { %v1340_v24 = vpop.f32.mrf.mxu3  ;;  %v1244_v61 = vpop.f32.mrf.mxu1  ;;  %v1292_v63 = vadd.f32 %v1291_v36, %v1243_v16  ;;  %v9330_v36 = vor.u32 %v11857_v55, %v9327_v58 }
 0x1d1   :  { %v1245_v29 = vadd.f32 %v1244_v61, %v1195_v56 }
 0x1d2   :  { %v1341_v41 = vadd.f32 %v1340_v24, %v1292_v63 }
 0x1d7   :  { %v1293_v34 = vpop.f32.mrf.mxu2  ;;  %v1198_v50 = vpop.f32.mrf.mxu0 }
 0x1d8   :  { %v1342_v20 = vpop.f32.mrf.mxu3  ;;  %v1294_v35 = vadd.f32 %v1293_v34, %v1245_v29  ;;  %v1247_v7 = vpop.f32.mrf.mxu1  ;;  %v9349_v29 = vld [vmem:[#allocation2 + $0x240] sm:$0xf]  ;;  %v11866_v34 = vld [vmem:[#allocation2 + $0x24c] sm:$0xf0] }
 0x1d9   :  { %v1248_v13 = vadd.f32 %v1247_v7, %v1198_v50  ;;  %v9350_v50 = vor.u32 %v11866_v34, %v9349_v29  ;;  %v9351_v7 = vld [vmem:[#allocation2 + $0x250] sm:$0xf0] }
 0x1da   :  { %v1343_v42 = vadd.f32 %v1342_v20, %v1294_v35  ;;  %v11864_v20 = vld [vmem:[#allocation2 + $0x244] sm:$0xf] }
 0x1db   :  { %9313 = vmatmul.msk.bf16.gmra.mxu1 %vm1365_vm1, %v963_v19  ;;  %1730 = vmatmul.bf16.gmra.mxu2 %v9350_v50  ;;  %v11876_v50 = vld [vmem:[#allocation2 + $0x2a4] sm:$0xf] }
 0x1dc   :  { %v1360_v1 = vpack.c.bf16 %v1343_v42, %v1341_v41  ;;  %v9354_v41 = vor.u32 %v11864_v20, %v9351_v7  ;;  %v9397_v20 = vld [vmem:[#allocation2 + $0x2a0] sm:$0xf]  ;;  %v9402_v33 = vor.u32 %v11876_v50, %v9399_v0  ;;  %v9405_v50 = vld [vmem:[#allocation2 + $0x2a8] sm:$0xf] }
 0x1dd   :  { %v13673_v7 = vld [vmem:[%s14874_s22] sm:$0xff] }
 0x1de   :  { %9304 = vmatmul.msk.bf16.gmra.mxu0 %vm1365_vm1, %v1360_v1  ;;  %1774 = vmatmul.bf16.gmra.mxu3 %v9338_v25  ;;  %v11859_v1 = vld [vmem:[#allocation2 + $0x214] sm:$0xf0]  ;;  %v11874_v25 = vld [vmem:[#allocation2 + $0x28c] sm:$0xf0] }
 0x1df   :  { %v1296_v10 = vpop.f32.mrf.mxu2  ;;  %v1200_v62 = vpop.f32.mrf.mxu0  ;;  %v9326_v28 = vor.u32 %v11859_v1, %v9325_v2 }
 0x1e0   :  { %v1345_v5 = vpop.f32.mrf.mxu3  ;;  %v1249_v9 = vpop.f32.mrf.mxu1  ;;  %v1297_v46 = vadd.f32 %v1296_v10, %v1248_v13 }
 0x1e1   :  { %v1250_v6 = vadd.f32 %v1249_v9, %v1200_v62  ;;  %v11870_v62 = vld [vmem:[#allocation2 + $0x26c] sm:$0xf0]  ;;  %v11868_v9 = vld [vmem:[#allocation2 + $0x264] sm:$0xf] }
 0x1e2   :  { %v1346_v12 = vadd.f32 %v1345_v5, %v1297_v46  ;;  %v9365_v5 = vld [vmem:[#allocation2 + $0x260] sm:$0xf] }
 0x1e3   :  { %v9366_v46 = vor.u32 %v11870_v62, %v9365_v5  ;;  %v11871_v5 = vld [vmem:[#allocation2 + $0x274] sm:$0xf0] }
 0x1e7   :  { %v1298_v53 = vpop.f32.mrf.mxu2  ;;  %v1203_v4 = vpop.f32.mrf.mxu0 }
 0x1e8   :  { %v1347_v19 = vpop.f32.mrf.mxu3  ;;  %v1299_v15 = vadd.f32 %v1298_v53, %v1250_v6  ;;  %v1252_v14 = vpop.f32.mrf.mxu1 }
 0x1e9   :  { %v1253_v59 = vadd.f32 %v1252_v14, %v1203_v4  ;;  %v11865_v4 = vld [vmem:[#allocation2 + $0x24c] sm:$0xf] }
 0x1ea   :  { %v1348_v38 = vadd.f32 %v1347_v19, %v1299_v15  ;;  %v13629_v15 = vld [vmem:[%s14874_s22 + $0x30] sm:$0xff] }
 0x1eb   :  { %9314 = vmatmul.msk.bf16.gmra.mxu1 %vm1365_vm1, %v964_v31  ;;  %1735 = vmatmul.bf16.gmra.mxu2 %v9366_v46 }
 0x1ec   :  { %v1361_v22 = vpack.c.bf16 %v1348_v38, %v1346_v12  ;;  %v9359_v12 = vld [vmem:[#allocation2 + $0x258] sm:$0xf0]  ;;  %v9341_v38 = vld [vmem:[#allocation2 + $0x228] sm:$0xf] }
 0x1ed   :  { %v9362_v48 = vor.u32 %v11865_v4, %v9359_v12 }
 0x1ee   :  { %9305 = vmatmul.msk.bf16.gmra.mxu0 %vm1365_vm1, %v1361_v22  ;;  %1779 = vmatmul.bf16.gmra.mxu3 %v9354_v41  ;;  %v9342_v22 = vor.u32 %v11863_v39, %v9341_v38  ;;  %v9415_v38 = vld [vmem:[#allocation2 + $0x2d0] sm:$0xf0] }
 0x1ef   :  { %v1301_v54 = vpop.f32.mrf.mxu2  ;;  %v1205_v44 = vpop.f32.mrf.mxu0 }
 0x1f0   :  { %v1350_v57 = vpop.f32.mrf.mxu3  ;;  %v1254_v23 = vpop.f32.mrf.mxu1  ;;  %v1302_v27 = vadd.f32 %v1301_v54, %v1253_v59  ;;  %v11872_v54 = vld [vmem:[#allocation2 + $0x284] sm:$0xf]  ;;  %v9383_v59 = vld [vmem:[#allocation2 + $0x290] sm:$0xf0] }
 0x1f1   :  { %v1255_v31 = vadd.f32 %v1254_v23, %v1205_v44  ;;  %v9382_v23 = vor.u32 %v11874_v25, %v9381_v21  ;;  %v9386_v44 = vor.u32 %v11872_v54, %v9383_v59  ;;  %v9407_v21 = vld [vmem:[#allocation2 + $0x2b8] sm:$0xf0]  ;;  %v9389_v25 = vld [vmem:[#allocation2 + $0x288] sm:$0xf]  ;;  %v11875_v54 = vld [vmem:[#allocation2 + $0x294] sm:$0xf0] }
 0x1f2   :  { %v1351_v16 = vadd.f32 %v1350_v57, %v1302_v27  ;;  %v13659_v27 = vld [vmem:[%s14874_s22 + $0x10] sm:$0xff] }
 0x1f7   :  { %v1303_v8 = vpop.f32.mrf.mxu2 }
 0x1f8   :  { %v1304_v24 = vadd.f32 %v1303_v8, %v1255_v31  ;;  %v1479_v56 = vpop.f32.mrf.mxu1  ;;  %v1352_v61 = vpop.f32.mrf.mxu3  ;;  %v11869_v8 = vld [vmem:[#allocation2 + $0x26c] sm:$0xf] }
 0x1fa   :  { %v1353_v63 = vadd.f32 %v1352_v61, %v1304_v24  ;;  %v9357_v24 = vld [vmem:[#allocation2 + $0x248] sm:$0xf] }
 0x1fb   :  { %1867 = vmatmul.bf16.vlgmr.msrb.gmra.mxu1 %v9330_v36  ;;  %1740 = vmatmul.bf16.gmra.mxu2 %v9382_v23  ;;  %v9375_v36 = vld [vmem:[#allocation2 + $0x278] sm:$0xf0] }
 0x1fc   :  { %v1362_v35 = vpack.c.bf16 %v1353_v63, %v1351_v16  ;;  %2743 = vmatpush.bf16.msrb.mxu1 %v13533_v47  ;;  %v9378_v61 = vor.u32 %v11869_v8, %v9375_v36  ;;  %v13667_v16 = vld [vmem:[%s14874_s22 + $0x8] sm:$0xff]  ;;  %v11886_v8 = vld [vmem:[#allocation2 + $0x2ec] sm:$0xf0]  ;;  %v11884_v36 = vld [vmem:[#allocation2 + $0x2e4] sm:$0xf] }
 0x1fe   :  { %9306 = vmatmul.msk.bf16.gmra.mxu0 %vm1365_vm1, %v1362_v35  ;;  %v11878_v35 = vld [vmem:[#allocation2 + $0x2ac] sm:$0xf0] }
 0x200   :  { %v1481_v42 = vpop.f32.mrf.mxu1  ;;  %2744 = vmatpush.bf16.msrb.mxu1 %v13540_v18  ;;  %v9367_v18 = vld [vmem:[#allocation2 + $0x270] sm:$0xf0] }
 0x201   :  { %v9370_v6 = vor.u32 %v11868_v9, %v9367_v18 }
 0x203   :  { %1784 = vmatmul.bf16.gmra.mxu3 %v9370_v6  ;;  %v9413_v6 = vld [vmem:[#allocation2 + $0x2c0] sm:$0xf] }
 0x204   :  { %2745 = vmatpush.bf16.msrb.mxu1 %v13547_v51  ;;  %v13622_v51 = vld [vmem:[%s14874_s22 + $0x38] sm:$0xff] }
 0x208   :  { %v1484_v45 = vpop.f32.mrf.mxu1  ;;  %2746 = vmatpush.bf16.msrb.mxu1 %v13558_v26 }
 0x20b   :  { %v1403_v10 = vpop.f32.mrf.mxu0  ;;  %1872 = vmatmul.bf16.gmra.mxu1 %v9346_v43 }
 0x20c   :  { %v13616_v13 = vadd.f32 %v1479_v56, %v1403_v10  ;;  %2747 = vmatpush.bf16.msrb.mxu1 %v13565_v30  ;;  %v11867_v56 = vld [vmem:[#allocation2 + $0x254] sm:$0xf0]  ;;  %v9373_v10 = vld [vmem:[#allocation2 + $0x268] sm:$0xf] }
 0x20d   :  { %v9358_v29 = vor.u32 %v11867_v56, %v9357_v24  ;;  %v9374_v46 = vor.u32 %v11871_v5, %v9373_v10  ;;  %v13698_v5 = vld [vmem:[%s14874_s22 + $0xf8] sm:$0xff] }
 0x20e   :  { %1818 = vmatmul.bf16.vlgmr.msrb.gmra.mxu0 %v9326_v28  ;;  %v9391_v28 = vld [vmem:[#allocation2 + $0x298] sm:$0xf0] }
 0x20f   :  { %2694 = vmatpush.bf16.msrb.mxu0 %v13622_v51 }
 0x210   :  { %v1486_v53 = vpop.f32.mrf.mxu1  ;;  %2748 = vmatpush.bf16.msrb.mxu1 %v13571_v60  ;;  %v13638_v60 = vld [vmem:[%s14874_s22 + $0x28] sm:$0xff] }
 0x213   :  { %v1405_v19 = vpop.f32.mrf.mxu0  ;;  %2695 = vmatpush.bf16.msrb.mxu0 %v13629_v15  ;;  %1789 = vmatmul.bf16.gmra.mxu3 %v9386_v44  ;;  %v9390_v44 = vor.u32 %v11875_v54, %v9389_v25  ;;  %v13720_v54 = vld [vmem:[%s14874_s22 + $0xe0] sm:$0xff] }
 0x214   :  { %v13632_v14 = vadd.f32 %v1481_v42, %v1405_v19  ;;  %2749 = vmatpush.bf16.msrb.mxu1 %v13577_v3  ;;  %v13645_v3 = vld [vmem:[%s14874_s22 + $0x20] sm:$0xff]  ;;  %v9398_v42 = vor.u32 %v11878_v35, %v9397_v20  ;;  %v11881_v20 = vld [vmem:[#allocation2 + $0x2cc] sm:$0xf]  ;;  %v9423_v35 = vld [vmem:[#allocation2 + $0x2d8] sm:$0xf0] }
 0x215   :  { %v11880_v19 = vld [vmem:[#allocation2 + $0x2c4] sm:$0xf]  ;;  %v9426_v0 = vor.u32 %v11881_v20, %v9423_v35 }
 0x216   :  { %1745 = vmatmul.bf16.gmra.mxu2 %v9398_v42  ;;  %v9418_v39 = vor.u32 %v11880_v19, %v9415_v38  ;;  %v11879_v42 = vld [vmem:[#allocation2 + $0x2b4] sm:$0xf0]  ;;  %v13714_v38 = vld [vmem:[%s14874_s22 + $0xe8] sm:$0xff] }
 0x217   :  { %2696 = vmatpush.bf16.msrb.mxu0 %v13638_v60  ;;  %v11883_v19 = vld [vmem:[#allocation2 + $0x2d4] sm:$0xf0] }
 0x218   :  { %v1489_v49 = vpop.f32.mrf.mxu1  ;;  %2750 = vmatpush.bf16.msrb.mxu1 %v13587_v40  ;;  %v13653_v40 = vld [vmem:[%s14874_s22 + $0x18] sm:$0xff] }
 0x21b   :  { %v1408_v52 = vpop.f32.mrf.mxu0  ;;  %1877 = vmatmul.bf16.gmra.mxu1 %v9362_v48  ;;  %2697 = vmatpush.bf16.msrb.mxu0 %v13645_v3 }
 0x21c   :  { %v13648_v57 = vadd.f32 %v1484_v45, %v1408_v52  ;;  %v11873_v45 = vld [vmem:[#allocation2 + $0x28c] sm:$0xf] }
 0x21d   :  { %v9394_v62 = vor.u32 %v11873_v45, %v9391_v28  ;;  %v11877_v52 = vld [vmem:[#allocation2 + $0x2ac] sm:$0xf]  ;;  %v1917_v28 = vld [vmem:[#allocation4 + $0x4] sm:$0x3] }
 0x21e   :  { %1823 = vmatmul.bf16.gmra.mxu0 %v9342_v22  ;;  %v9410_v23 = vor.u32 %v11877_v52, %v9407_v21  ;;  %v1943_v10 = vsel %vm1390_vm0, %v1917_v28, 0 }
 0x21f   :  { %2698 = vmatpush.bf16.msrb.mxu0 %v13653_v40  ;;  %1952 = vmatpush.bf16.msrb.mxu2 %v1943_v10 }
 0x220   :  { %v1491_v55 = vpop.f32.mrf.mxu1 }
 0x223   :  { %v1410_v58 = vpop.f32.mrf.mxu0  ;;  %2699 = vmatpush.bf16.msrb.mxu0 %v13659_v27  ;;  %1794 = vmatmul.bf16.gmra.mxu3 %v9402_v33 }
 0x224   :  { %v13662_v31 = vadd.f32 %v1486_v53, %v1410_v58  ;;  %v11882_v53 = vld [vmem:[#allocation2 + $0x2cc] sm:$0xf0]  ;;  %v9429_v58 = vld [vmem:[#allocation2 + $0x2e0] sm:$0xf]  ;;  %2350 = vmatpush.bf16.msra.mxu2 %v13698_v5 }
 0x225   :  { %v9414_v12 = vor.u32 %v11882_v53, %v9413_v6  ;;  %v9430_v56 = vor.u32 %v11886_v8, %v9429_v58  ;;  %v9439_v6 = vld [vmem:[#allocation2 + $0x2f8] sm:$0xf0]  ;;  %v9421_v53 = vld [vmem:[#allocation2 + $0x2c8] sm:$0xf] }
 0x226   :  { %v9422_v21 = vor.u32 %v11883_v19, %v9421_v53 }
 0x227   :  { %2700 = vmatpush.bf16.msrb.mxu0 %v13667_v16  ;;  %1750 = vmatmul.bf16.gmra.mxu2 %v9414_v12 }
 0x228   :  { %v1494_v63 = vpop.f32.mrf.mxu1 }
 0x22b   :  { %v1413_v34 = vpop.f32.mrf.mxu0  ;;  %1882 = vmatmul.bf16.gmra.mxu1 %v9378_v61  ;;  %2701 = vmatpush.bf16.msrb.mxu0 %v13673_v7  ;;  %v9431_v61 = vld [vmem:[#allocation2 + $0x2f0] sm:$0xf0] }
 0x22c   :  { %v13676_v41 = vadd.f32 %v1489_v49, %v1413_v34 }
 0x22e   :  { %1828 = vmatmul.bf16.gmra.mxu0 %v9358_v29 }
 0x230   :  { %v1496_v2 = vpop.f32.mrf.mxu1 }
 0x233   :  { %v1415_v1 = vpop.f32.mrf.mxu0  ;;  %1799 = vmatmul.bf16.gmra.mxu3 %v9418_v39 }
 0x234   :  { %v13678_v43 = vadd.f32 %v1491_v55, %v1415_v1 }
 0x237   :  { %1755 = vmatmul.bf16.gmra.mxu2 %v9430_v56  ;;  %v9437_v56 = vld [vmem:[#allocation2 + $0x2e8] sm:$0xf] }
 0x238   :  { %v1499_v9 = vpop.f32.mrf.mxu1 }
 0x23b   :  { %v1418_v18 = vpop.f32.mrf.mxu0  ;;  %1887 = vmatmul.bf16.gmra.mxu1 %v9394_v62 }
 0x23c   :  { %v13680_v4 = vadd.f32 %v1494_v63, %v1418_v18  ;;  %v9434_v63 = vor.u32 %v11884_v36, %v9431_v61  ;;  %v11885_v18 = vld [vmem:[#allocation2 + $0x2ec] sm:$0xf]  ;;  %v13738_v36 = vld [vmem:[%s14874_s22 + $0xd0] sm:$0xff]  ;;  %v11887_v61 = vld [vmem:[#allocation2 + $0x2f4] sm:$0xf0] }
 0x23d   :  { %v9442_v12 = vor.u32 %v11885_v18, %v9439_v6  ;;  %v9438_v35 = vor.u32 %v11887_v61, %v9437_v56 }
 0x23e   :  { %1833 = vmatmul.bf16.gmra.mxu0 %v9374_v46  ;;  %v13708_v46 = vld [vmem:[%s14874_s22 + $0xf0] sm:$0xff] }
 0x23f   :  { %2351 = vmatpush.bf16.msra.mxu2 %v13708_v46 }
 0x240   :  { %v13682_v48 = vpop.f32.mrf.mxu1 }
 0x241   :  { %14875 = vst [vmem:[#allocation37_spill] sm:$0xff] %v13682_v48 }
 0x243   :  { %v1420_v49 = vpop.f32.mrf.mxu0  ;;  %1804 = vmatmul.bf16.gmra.mxu3 %v9434_v63  ;;  %2352 = vmatpush.bf16.msra.mxu2 %v13714_v38  ;;  %v13744_v63 = vld [vmem:[%s14874_s22 + $0xc8] sm:$0xff] }
 0x244   :  { %v13684_v22 = vadd.f32 %v1496_v2, %v1420_v49  ;;  %v9406_v2 = vor.u32 %v11879_v42, %v9405_v50  ;;  %v1721_v49 = vpop.f32.mrf.mxu2  ;;  %v13750_v42 = vld [vmem:[%s14874_s22 + $0xc0] sm:$0xff] }
 0x247   :  { %2353 = vmatpush.bf16.msra.mxu2 %v13720_v54 }
 0x248   :  { %v1504_v59 = vpop.f32.mrf.mxu1 }
 0x24b   :  { %v1423_v55 = vpop.f32.mrf.mxu0  ;;  %1892 = vmatmul.bf16.gmra.mxu1 %v9410_v23 }
 0x24c   :  { %v13686_v24 = vadd.f32 %v1499_v9, %v1423_v55  ;;  %v1723_v55 = vpop.f32.mrf.mxu2 }
 0x24e   :  { %1838 = vmatmul.bf16.gmra.mxu0 %v9390_v44 }
 0x250   :  { %v13688_v29 = vpop.f32.mrf.mxu1 }
 0x251   :  { %14876 = vst [vmem:[#allocation38_spill] sm:$0xff] %v13688_v29  ;;  %v1770_v52 = vpop.f32.mrf.mxu3 }
 0x252   :  { %v1771_v19 = vadd.f32 %v1770_v52, %v1721_v49 }
 0x253   :  { %v13690_v34 = vpop.f32.mrf.mxu0 }
 0x254   :  { %14877 = vst [vmem:[#allocation39_spill] sm:$0xff] %v13690_v34 }
 0x258   :  { %v1509_v33 = vpop.f32.mrf.mxu1 }
 0x259   :  { %v1772_v8 = vpop.f32.mrf.mxu3 }
 0x25a   :  { %v1773_v56 = vadd.f32 %v1772_v8, %v1723_v55 }
 0x25b   :  { %v1428_v1 = vpop.f32.mrf.mxu0  ;;  %1897 = vmatmul.bf16.gmra.mxu1 %v9426_v0 }
 0x25c   :  { %v13692_v45 = vadd.f32 %v1504_v59, %v1428_v1  ;;  %v13728_v59 = vld [vmem:[%s14874_s22 + $0xd8] sm:$0xff] }
 0x25d   :  { %2354 = vmatpush.bf16.msra.mxu2 %v13728_v59 }
 0x25e   :  { %1843 = vmatmul.bf16.gmra.mxu0 %v9406_v2 }
 0x260   :  { %v13701_v62 = vpop.f32.mrf.mxu1 }
 0x261   :  { %14878 = vst [vmem:[#allocation40_spill] sm:$0xff] %v13701_v62  ;;  %2355 = vmatpush.bf16.msra.mxu2 %v13738_v36  ;;  %v1775_v2 = vpop.f32.mrf.mxu3 }
 0x263   :  { %v13703_v9 = vpop.f32.mrf.mxu0 }
 0x264   :  { %14879 = vst [vmem:[#allocation41_spill] sm:$0xff] %v13703_v9 }
 0x265   :  { %2356 = vmatpush.bf16.msra.mxu2 %v13744_v63 }
 0x268   :  { %v1514_v39 = vpop.f32.mrf.mxu1 }
 0x269   :  { %2357 = vmatpush.bf16.msra.mxu2 %v13750_v42  ;;  %v1777_v18 = vpop.f32.mrf.mxu3 }
 0x26b   :  { %v1433_v25 = vpop.f32.mrf.mxu0  ;;  %1902 = vmatmul.bf16.gmra.mxu1 %v9442_v12 }
 0x26c   :  { %v13723_v23 = vadd.f32 %v1509_v33, %v1433_v25  ;;  %v1726_v33 = vpop.f32.mrf.mxu2 }
 0x26d   :  { %v1776_v62 = vadd.f32 %v1775_v2, %v1726_v33 }
 0x26e   :  { %1848 = vmatmul.bf16.gmra.mxu0 %v9422_v21 }
 0x270   :  { %v13731_v44 = vpop.f32.mrf.mxu1 }
 0x271   :  { %14880 = vst [vmem:[#allocation42_spill] sm:$0xff] %v13731_v44  ;;  %v1780_v25 = vpop.f32.mrf.mxu3 }
 0x273   :  { %v13733_v58 = vpop.f32.mrf.mxu0 }
 0x274   :  { %14881 = vst [vmem:[#allocation43_spill] sm:$0xff] %v13733_v58  ;;  %v1728_v10 = vpop.f32.mrf.mxu2 }
 0x275   :  { %v1778_v52 = vadd.f32 %v1777_v18, %v1728_v10 }
 0x278   :  { %v1868_v20 = vpop.f32.mrf.mxu1 }
 0x279   :  { %v1782_v9 = vpop.f32.mrf.mxu3 }
 0x27b   :  { %v1438_v50 = vpop.f32.mrf.mxu0 }
 0x27c   :  { %v13753_v0 = vadd.f32 %v1514_v39, %v1438_v50  ;;  %v1731_v21 = vpop.f32.mrf.mxu2 }
 0x27e   :  { %1853 = vmatmul.bf16.gmra.mxu0 %v9438_v35 }
 0x280   :  { %v1870_v1 = vpop.f32.mrf.mxu1 }
 0x283   :  { %v13755_v28 = vpop.f32.mrf.mxu0 }
 0x284   :  { %14882 = vst [vmem:[#allocation44_spill] sm:$0xff] %v13755_v28  ;;  %v1733_v35 = vpop.f32.mrf.mxu2 }
 0x288   :  { %v1873_v6 = vpop.f32.mrf.mxu1 }
 0x28b   :  { %v1819_v53 = vpop.f32.mrf.mxu0 }
 0x28c   :  { %v1820_v61 = vadd.f32 %v1819_v53, %v1771_v19 }
 0x28e   :  { %v1869_v39 = vadd.f32 %v1868_v20, %v1820_v61  ;;  %v1785_v20 = vpop.f32.mrf.mxu3 }
 0x290   :  { %v1875_v12 = vpop.f32.mrf.mxu1 }
 0x293   :  { %v1821_v48 = vpop.f32.mrf.mxu0 }
 0x294   :  { %v1822_v34 = vadd.f32 %v1821_v48, %v1773_v56  ;;  %v13784_v56 = vld [vmem:[%s14874_s22 + $0x80] sm:$0xff] }
 0x296   :  { %v1871_v50 = vadd.f32 %v1870_v1, %v1822_v34  ;;  %v1736_v34 = vpop.f32.mrf.mxu2  ;;  %v1787_v2 = vpop.f32.mrf.mxu3 }
 0x298   :  { %v1908_v44 = vpack.c.bf16 %v1871_v50, %v1869_v39  ;;  %v1878_v29 = vpop.f32.mrf.mxu1 }
 0x29a   :  { %9443 = vmatmul.msk.bf16.vlgmr.msrb.gmra.mxu2 %vm1365_vm1, %v1908_v44 }
 0x29b   :  { %v1824_v28 = vpop.f32.mrf.mxu0  ;;  %2792 = vmatpush.bf16.msrb.mxu2 %v13503_v32 }
 0x29c   :  { %v1825_v55 = vadd.f32 %v1824_v28, %v1776_v62  ;;  %v13772_v28 = vld [vmem:[%s14874_s22 + $0x90] sm:$0xff] }
 0x29e   :  { %v1874_v1 = vadd.f32 %v1873_v6, %v1825_v55  ;;  %v1738_v62 = vpop.f32.mrf.mxu2  ;;  %v13778_v6 = vld [vmem:[%s14874_s22 + $0x88] sm:$0xff]  ;;  %v1790_v39 = vpop.f32.mrf.mxu3 }
 0x29f   :  { %2793 = vmatpush.bf16.msrb.mxu2 %v13509_v37  ;;  %v13766_v37 = vld [vmem:[%s14874_s22 + $0x98] sm:$0xff]  ;;  %v1788_v55 = vadd.f32 %v1787_v2, %v1738_v62 }
 0x2a0   :  { %v1880_v49 = vpop.f32.mrf.mxu1 }
 0x2a3   :  { %v1826_v8 = vpop.f32.mrf.mxu0  ;;  %2794 = vmatpush.bf16.msrb.mxu2 %v13515_v17  ;;  %v1781_v17 = vadd.f32 %v1780_v25, %v1731_v21 }
 0x2a4   :  { %v1827_v48 = vadd.f32 %v1826_v8, %v1778_v52 }
 0x2a6   :  { %v1876_v53 = vadd.f32 %v1875_v12, %v1827_v48  ;;  %v1741_v61 = vpop.f32.mrf.mxu2 }
 0x2a7   :  { %2795 = vmatpush.bf16.msrb.mxu2 %v13521_v11  ;;  %v1783_v11 = vadd.f32 %v1782_v9, %v1733_v35  ;;  %v1786_v35 = vadd.f32 %v1785_v20, %v1736_v34 }
 0x2a8   :  { %v1909_v44 = vpack.c.bf16 %v1876_v53, %v1874_v1  ;;  %v1883_v33 = vpop.f32.mrf.mxu1 }
 0x2aa   :  { %9444 = vmatmul.msk.bf16.gmra.mxu2 %vm1365_vm1, %v1909_v44 }
 0x2ab   :  { %v1829_v32 = vpop.f32.mrf.mxu0  ;;  %2796 = vmatpush.bf16.msrb.mxu2 %v13766_v37 }
 0x2ac   :  { %v1830_v10 = vadd.f32 %v1829_v32, %v1781_v17 }
 0x2ae   :  { %v1879_v21 = vadd.f32 %v1878_v29, %v1830_v10  ;;  %v1743_v48 = vpop.f32.mrf.mxu2 }
 0x2af   :  { %2797 = vmatpush.bf16.msrb.mxu2 %v13772_v28 }
 0x2b0   :  { %v1885_v12 = vpop.f32.mrf.mxu1 }
 0x2b3   :  { %v1831_v18 = vpop.f32.mrf.mxu0  ;;  %2798 = vmatpush.bf16.msrb.mxu2 %v13778_v6 }
 0x2b4   :  { %v1832_v19 = vadd.f32 %v1831_v18, %v1783_v11 }
 0x2b6   :  { %v1881_v25 = vadd.f32 %v1880_v49, %v1832_v19  ;;  %v1792_v49 = vpop.f32.mrf.mxu3  ;;  %v1746_v10 = vpop.f32.mrf.mxu2  ;;  %v1791_v19 = vadd.f32 %v1790_v39, %v1741_v61 }
 0x2b7   :  { %2799 = vmatpush.bf16.msrb.mxu2 %v13784_v56 }
 0x2b8   :  { %v1910_v9 = vpack.c.bf16 %v1881_v25, %v1879_v21  ;;  %v1888_v52 = vpop.f32.mrf.mxu1  ;;  %v1793_v21 = vadd.f32 %v1792_v49, %v1743_v48 }
 0x2ba   :  { %9445 = vmatmul.msk.bf16.gmra.mxu2 %vm1365_vm1, %v1910_v9 }
 0x2bb   :  { %v1834_v50 = vpop.f32.mrf.mxu0 }
 0x2bc   :  { %v1835_v8 = vadd.f32 %v1834_v50, %v1786_v35 }
 0x2be   :  { %v1884_v53 = vadd.f32 %v1883_v33, %v1835_v8  ;;  %v1795_v18 = vpop.f32.mrf.mxu3  ;;  %v1748_v50 = vpop.f32.mrf.mxu2 }
 0x2bf   :  { %v1796_v8 = vadd.f32 %v1795_v18, %v1746_v10  ;;  %v9455_v10 = vld [vmem:[#allocation2 + $0x310] sm:$0xf0]  ;;  %v9461_v18 = vld [vmem:[#allocation2 + $0x308] sm:$0xf] }
 0x2c0   :  { %v1890_v17 = vpop.f32.mrf.mxu1 }
 0x2c3   :  { %v1836_v29 = vpop.f32.mrf.mxu0 }
 0x2c4   :  { %v1837_v1 = vadd.f32 %v1836_v29, %v1788_v55 }
 0x2c6   :  { %v1886_v44 = vadd.f32 %v1885_v12, %v1837_v1  ;;  %v1797_v35 = vpop.f32.mrf.mxu3  ;;  %v1751_v29 = vpop.f32.mrf.mxu2 }
 0x2c8   :  { %v1911_v32 = vpack.c.bf16 %v1886_v44, %v1884_v53  ;;  %v1893_v20 = vpop.f32.mrf.mxu1  ;;  %v1798_v53 = vadd.f32 %v1797_v35, %v1748_v50 }
 0x2ca   :  { %9446 = vmatmul.msk.bf16.gmra.mxu2 %vm1365_vm1, %v1911_v32 }
 0x2cb   :  { %v1839_v11 = vpop.f32.mrf.mxu0 }
 0x2cc   :  { %v1840_v25 = vadd.f32 %v1839_v11, %v1791_v19  ;;  %v11890_v19 = vld [vmem:[#allocation2 + $0x30c] sm:$0xf0] }
 0x2ce   :  { %v1889_v2 = vadd.f32 %v1888_v52, %v1840_v25  ;;  %v1800_v1 = vpop.f32.mrf.mxu3  ;;  %v1753_v52 = vpop.f32.mrf.mxu2 }
 0x2cf   :  { %v1801_v35 = vadd.f32 %v1800_v1, %v1751_v29 }
 0x2d0   :  { %v1895_v12 = vpop.f32.mrf.mxu1 }
 0x2d3   :  { %v1841_v34 = vpop.f32.mrf.mxu0 }
 0x2d4   :  { %v1842_v62 = vadd.f32 %v1841_v34, %v1793_v21  ;;  %v11888_v21 = vld [vmem:[#allocation2 + $0x304] sm:$0xf] }
 0x2d6   :  { %v1891_v9 = vadd.f32 %v1890_v17, %v1842_v62  ;;  %v9453_v17 = vld [vmem:[#allocation2 + $0x300] sm:$0xf]  ;;  %v1802_v25 = vpop.f32.mrf.mxu3 }
 0x2d7   :  { %v9454_v62 = vor.u32 %v11890_v19, %v9453_v17  ;;  %v9471_v17 = vld [vmem:[#allocation2 + $0x330] sm:$0xf0] }
 0x2d8   :  { %v1912_v55 = vpack.c.bf16 %v1891_v9, %v1889_v2  ;;  %v1898_v32 = vpop.f32.mrf.mxu1  ;;  %v11891_v2 = vld [vmem:[#allocation2 + $0x314] sm:$0xf0]  ;;  %v9458_v9 = vor.u32 %v11888_v21, %v9455_v10 }
 0x2d9   :  { %v9462_v50 = vor.u32 %v11891_v2, %v9461_v18  ;;  %2211 = vmatmul.bf16.vlgmr.msrb.gmra.mxu3 %v9454_v62  ;;  %v9477_v62 = vld [vmem:[#allocation2 + $0x328] sm:$0xf]  ;;  %v11895_v10 = vld [vmem:[#allocation2 + $0x334] sm:$0xf0] }
 0x2da   :  { %9447 = vmatmul.msk.bf16.gmra.mxu2 %vm1365_vm1, %v1912_v55  ;;  %2260 = vmatmul.bf16.vlgmr.msra.gmra.mxu0 %v9458_v9  ;;  %v1803_v55 = vadd.f32 %v1802_v25, %v1753_v52 }
 0x2db   :  { %v1844_v33 = vpop.f32.mrf.mxu0  ;;  %2309 = vmatmul.bf16.vlgmr.msra.gmra.mxu1 %v9462_v50 }
 0x2dc   :  { %v1845_v44 = vadd.f32 %v1844_v33, %v1796_v8  ;;  %3185 = vmatpush.bf16.msra.mxu1 %v13622_v51  ;;  %v11894_v51 = vld [vmem:[#allocation2 + $0x32c] sm:$0xf0] }
 0x2de   :  { %v1894_v48 = vadd.f32 %v1893_v20, %v1845_v44  ;;  %v1805_v44 = vpop.f32.mrf.mxu3 }
 0x2e0   :  { %v1900_v20 = vpop.f32.mrf.mxu1  ;;  %3186 = vmatpush.bf16.msra.mxu1 %v13629_v15  ;;  %v11892_v15 = vld [vmem:[#allocation2 + $0x324] sm:$0xf] }
 0x2e3   :  { %v1846_v61 = vpop.f32.mrf.mxu0 }
 0x2e4   :  { %v1847_v39 = vadd.f32 %v1846_v61, %v1798_v53  ;;  %v1756_v53 = vpop.f32.mrf.mxu2  ;;  %3187 = vmatpush.bf16.msra.mxu1 %v13638_v60 }
 0x2e5   :  { %v1806_v52 = vadd.f32 %v1805_v44, %v1756_v53  ;;  %v9463_v53 = vld [vmem:[#allocation2 + $0x318] sm:$0xf0]  ;;  %v9493_v44 = vld [vmem:[#allocation2 + $0x348] sm:$0xf] }
 0x2e6   :  { %v1896_v49 = vadd.f32 %v1895_v12, %v1847_v39  ;;  %v1807_v21 = vpop.f32.mrf.mxu3 }
 0x2e8   :  { %v1913_v11 = vpack.c.bf16 %v1896_v49, %v1894_v48  ;;  %v1903_v29 = vpop.f32.mrf.mxu1  ;;  %v9469_v49 = vld [vmem:[#allocation2 + $0x320] sm:$0xf]  ;;  %3188 = vmatpush.bf16.msra.mxu1 %v13645_v3  ;;  %v9478_v3 = vor.u32 %v11895_v10, %v9477_v62  ;;  %v11906_v10 = vld [vmem:[#allocation2 + $0x38c] sm:$0xf0] }
 0x2e9   :  { %v9517_v62 = vld [vmem:[#allocation2 + $0x380] sm:$0xf] }
 0x2ea   :  { %9448 = vmatmul.msk.bf16.gmra.mxu2 %vm1365_vm1, %v1913_v11  ;;  %v9470_v11 = vor.u32 %v11894_v51, %v9469_v49  ;;  %v11900_v51 = vld [vmem:[#allocation2 + $0x364] sm:$0xf] }
 0x2eb   :  { %v1849_v34 = vpop.f32.mrf.mxu0  ;;  %2314 = vmatmul.bf16.gmra.mxu1 %v9478_v3 }
 0x2ec   :  { %v1850_v33 = vadd.f32 %v1849_v34, %v1801_v35  ;;  %2216 = vmatmul.bf16.gmra.mxu3 %v9470_v11  ;;  %v1758_v19 = vpop.f32.mrf.mxu2  ;;  %3189 = vmatpush.bf16.msra.mxu1 %v13653_v40  ;;  %v9485_v40 = vld [vmem:[#allocation2 + $0x340] sm:$0xf]  ;;  %v9503_v11 = vld [vmem:[#allocation2 + $0x370] sm:$0xf0] }
 0x2ed   :  { %v1808_v60 = vadd.f32 %v1807_v21, %v1758_v19  ;;  %v9479_v19 = vld [vmem:[#allocation2 + $0x338] sm:$0xf0]  ;;  %v11903_v21 = vld [vmem:[#allocation2 + $0x374] sm:$0xf0] }
 0x2ee   :  { %v1899_v61 = vadd.f32 %v1898_v32, %v1850_v33  ;;  %v9474_v32 = vor.u32 %v11892_v15, %v9471_v17  ;;  %v11896_v33 = vld [vmem:[#allocation2 + $0x344] sm:$0xf]  ;;  %v13808_v15 = vld [vmem:[%s14874_s22 + $0x70] sm:$0xff]  ;;  %v11893_v17 = vld [vmem:[#allocation2 + $0x32c] sm:$0xf] }
 0x2f0   :  { %2265 = vmatmul.bf16.gmra.mxu0 %v9474_v32  ;;  %3190 = vmatpush.bf16.msra.mxu1 %v13659_v27  ;;  %v1905_v2 = vpop.f32.mrf.mxu1 }
 0x2f3   :  { %v1851_v12 = vpop.f32.mrf.mxu0 }
 0x2f4   :  { %v1852_v8 = vadd.f32 %v1851_v12, %v1803_v55  ;;  %3191 = vmatpush.bf16.msra.mxu1 %v13667_v16  ;;  %v9487_v12 = vld [vmem:[#allocation2 + $0x350] sm:$0xf0]  ;;  %v9501_v16 = vld [vmem:[#allocation2 + $0x360] sm:$0xf] }
 0x2f5   :  { %v9490_v27 = vor.u32 %v11896_v33, %v9487_v12 }
 0x2f6   :  { %v1901_v39 = vadd.f32 %v1900_v20, %v1852_v8  ;;  %v11898_v20 = vld [vmem:[#allocation2 + $0x34c] sm:$0xf0]  ;;  %v11889_v8 = vld [vmem:[#allocation2 + $0x30c] sm:$0xf] }
 0x2f7   :  { %v9486_v55 = vor.u32 %v11898_v20, %v9485_v40  ;;  %v9495_v40 = vld [vmem:[#allocation2 + $0x358] sm:$0xf0]  ;;  %v11907_v20 = vld [vmem:[#allocation2 + $0x394] sm:$0xf0] }
 0x2f8   :  { %v1914_v48 = vpack.c.bf16 %v1901_v39, %v1899_v61  ;;  %3192 = vmatpush.bf16.msra.mxu1 %v13673_v7  ;;  %v11899_v61 = vld [vmem:[#allocation2 + $0x354] sm:$0xf0] }
 0x2f9   :  { %v9494_v39 = vor.u32 %v11899_v61, %v9493_v44  ;;  %v11910_v44 = vld [vmem:[#allocation2 + $0x3ac] sm:$0xf0] }
 0x2fa   :  { %9449 = vmatmul.msk.bf16.gmra.mxu2 %vm1365_vm1, %v1914_v48  ;;  %v9466_v48 = vor.u32 %v11889_v8, %v9463_v53  ;;  %v13843_v8 = vld [vmem:[%s14874_s22 + $0x40] sm:$0xff] }
 0x2fb   :  { %v1854_v1 = vpop.f32.mrf.mxu0  ;;  %2319 = vmatmul.bf16.gmra.mxu1 %v9494_v39  ;;  %v9533_v53 = vld [vmem:[#allocation2 + $0x3a0] sm:$0xf] }
 0x2fc   :  { %v1855_v25 = vadd.f32 %v1854_v1, %v1806_v52  ;;  %2221 = vmatmul.bf16.gmra.mxu3 %v9486_v55  ;;  %v9506_v52 = vor.u32 %v11900_v51, %v9503_v11  ;;  %v9534_v61 = vor.u32 %v11910_v44, %v9533_v53  ;;  %v9541_v51 = vld [vmem:[#allocation2 + $0x3a8] sm:$0xf]  ;;  %v11911_v11 = vld [vmem:[#allocation2 + $0x3b4] sm:$0xf0]  ;;  %v11916_v53 = vld [vmem:[#allocation2 + $0x3e4] sm:$0xf] }
 0x2fd   :  { %v9567_v44 = vld [vmem:[#allocation2 + $0x3f0] sm:$0xf0] }
 0x2fe   :  { %v1904_v9 = vadd.f32 %v1903_v29, %v1855_v25  ;;  %v11902_v29 = vld [vmem:[#allocation2 + $0x36c] sm:$0xf0] }
 0x2ff   :  { %v9502_v1 = vor.u32 %v11902_v29, %v9501_v16  ;;  %v9535_v16 = vld [vmem:[#allocation2 + $0x3b0] sm:$0xf0] }
 0x300   :  { %2270 = vmatmul.bf16.gmra.mxu0 %v9490_v27 }
 0x303   :  { %v1856_v34 = vpop.f32.mrf.mxu0 }
 0x304   :  { %v1857_v18 = vadd.f32 %v1856_v34, %v1808_v60  ;;  %v9482_v34 = vor.u32 %v11893_v17, %v9479_v19 }
 0x306   :  { %v1906_v50 = vadd.f32 %v1905_v2, %v1857_v18  ;;  %v9518_v18 = vor.u32 %v11906_v10, %v9517_v62  ;;  %v11912_v62 = vld [vmem:[#allocation2 + $0x3c4] sm:$0xf]  ;;  %v9551_v10 = vld [vmem:[#allocation2 + $0x3d0] sm:$0xf0] }
 0x308   :  { %v1915_v35 = vpack.c.bf16 %v1906_v50, %v1904_v9  ;;  %v11904_v9 = vld [vmem:[#allocation2 + $0x384] sm:$0xf]  ;;  %v9519_v50 = vld [vmem:[#allocation2 + $0x390] sm:$0xf0] }
 0x30a   :  { %9450 = vmatmul.msk.bf16.gmra.mxu2 %vm1365_vm1, %v1915_v35  ;;  %v9522_v35 = vor.u32 %v11904_v9, %v9519_v50  ;;  %v9527_v9 = vld [vmem:[#allocation2 + $0x398] sm:$0xf0]  ;;  %v9557_v50 = vld [vmem:[#allocation2 + $0x3c8] sm:$0xf] }
 0x30c   :  { %2226 = vmatmul.bf16.gmra.mxu3 %v9502_v1  ;;  %v11901_v1 = vld [vmem:[#allocation2 + $0x36c] sm:$0xf] }
 0x310   :  { %2275 = vmatmul.bf16.gmra.mxu0 %v9506_v52  ;;  %v9542_v52 = vor.u32 %v11911_v11, %v9541_v51  ;;  %v2408_v51 = vld [vmem:[#allocation4 + $0x6] sm:$0x3] }
 0x311   :  { %v2434_v11 = vsel %vm1390_vm0, %v2408_v51, 0 }
 0x312   :  { %2443 = vmatpush.bf16.msra.mxu3 %v2434_v11 }
 0x316   :  { %2841 = vmatpush.bf16.msrb.mxu3 %v13698_v5 }
 0x31a   :  { %2358 = vmatmul.bf16.vlgmr.msra.gmra.mxu2 %v9466_v48  ;;  %2842 = vmatpush.bf16.msrb.mxu3 %v13708_v46 }
 0x31b   :  { %3234 = vmatpush.bf16.msra.mxu2 %v13533_v47  ;;  %v9509_v47 = vld [vmem:[#allocation2 + $0x368] sm:$0xf] }
 0x31c   :  { %v9510_v32 = vor.u32 %v11903_v21, %v9509_v47  ;;  %2231 = vmatmul.bf16.gmra.mxu3 %v9518_v18  ;;  %v9549_v21 = vld [vmem:[#allocation2 + $0x3c0] sm:$0xf]  ;;  %v9554_v18 = vor.u32 %v11912_v62, %v9551_v10 }
 0x31d   :  { %v1954_v7 = vpop.f32.mrf.mxu2 }
 0x31e   :  { %v13803_v49 = vadd.f32 %v1954_v7, %v13616_v13  ;;  %v13814_v13 = vld [vmem:[%s14874_s22 + $0x68] sm:$0xff]  ;;  %2324 = vmatmul.bf16.gmra.mxu1 %v9510_v32  ;;  %v9511_v7 = vld [vmem:[#allocation2 + $0x378] sm:$0xf0]  ;;  %2843 = vmatpush.bf16.msrb.mxu3 %v13714_v38 }
 0x31f   :  { %3235 = vmatpush.bf16.msra.mxu2 %v13808_v15  ;;  %v9514_v47 = vor.u32 %v11901_v1, %v9511_v7 }
 0x320   :  { %2280 = vmatmul.bf16.gmra.mxu0 %v9522_v35 }
 0x322   :  { %2844 = vmatpush.bf16.msrb.mxu3 %v13720_v54 }
 0x323   :  { %3236 = vmatpush.bf16.msra.mxu2 %v13814_v13 }
 0x325   :  { %v1956_v60 = vpop.f32.mrf.mxu2 }
 0x326   :  { %v13818_v25 = vadd.f32 %v1956_v60, %v13632_v14  ;;  %v13828_v14 = vld [vmem:[%s14874_s22 + $0x50] sm:$0xff]  ;;  %2845 = vmatpush.bf16.msrb.mxu3 %v13728_v59 }
 0x327   :  { %3237 = vmatpush.bf16.msra.mxu2 %v13558_v26  ;;  %v11897_v26 = vld [vmem:[#allocation2 + $0x34c] sm:$0xf] }
 0x328   :  { %v9498_v27 = vor.u32 %v11897_v26, %v9495_v40 }
 0x32a   :  { %2363 = vmatmul.bf16.gmra.mxu2 %v9482_v34  ;;  %2846 = vmatpush.bf16.msrb.mxu3 %v13738_v36 }
 0x32b   :  { %3238 = vmatpush.bf16.msra.mxu2 %v13565_v30  ;;  %v9525_v30 = vld [vmem:[#allocation2 + $0x388] sm:$0xf] }
 0x32c   :  { %v9526_v55 = vor.u32 %v11907_v20, %v9525_v30  ;;  %2236 = vmatmul.bf16.gmra.mxu3 %v9534_v61  ;;  %v9565_v20 = vld [vmem:[#allocation2 + $0x3e0] sm:$0xf]  ;;  %v9570_v61 = vor.u32 %v11916_v53, %v9567_v44 }
 0x32d   :  { %v1959_v3 = vpop.f32.mrf.mxu2 }
 0x32e   :  { %v13823_v2 = vadd.f32 %v1959_v3, %v13648_v57  ;;  %v13834_v57 = vld [vmem:[%s14874_s22 + $0x48] sm:$0xff]  ;;  %2329 = vmatmul.bf16.gmra.mxu1 %v9526_v55  ;;  %2847 = vmatpush.bf16.msrb.mxu3 %v13744_v63 }
 0x32f   :  { %3239 = vmatpush.bf16.msra.mxu2 %v13828_v14  ;;  %v11905_v3 = vld [vmem:[#allocation2 + $0x38c] sm:$0xf] }
 0x330   :  { %v9530_v30 = vor.u32 %v11905_v3, %v9527_v9  ;;  %v9575_v3 = vld [vmem:[#allocation2 + $0x3f8] sm:$0xf0] }
 0x332   :  { %2848 = vmatpush.bf16.msrb.mxu3 %v13750_v42 }
 0x333   :  { %3240 = vmatpush.bf16.msra.mxu2 %v13834_v57 }
 0x335   :  { %v1961_v33 = vpop.f32.mrf.mxu2 }
 0x336   :  { %v13838_v12 = vadd.f32 %v1961_v33, %v13662_v31  ;;  %v11908_v31 = vld [vmem:[#allocation2 + $0x3a4] sm:$0xf] }
 0x337   :  { %3241 = vmatpush.bf16.msra.mxu2 %v13843_v8  ;;  %v9538_v29 = vor.u32 %v11908_v31, %v9535_v16  ;;  %v9543_v31 = vld [vmem:[#allocation2 + $0x3b8] sm:$0xf0]  ;;  %v9573_v16 = vld [vmem:[#allocation2 + $0x3e8] sm:$0xf] }
 0x339   :  { %2285 = vmatmul.bf16.gmra.mxu0 %v9538_v29 }
 0x33a   :  { %2368 = vmatmul.bf16.gmra.mxu2 %v9498_v27 }
 0x33d   :  { %v1964_v39 = vpop.f32.mrf.mxu2 }
 0x33e   :  { %v13847_v48 = vadd.f32 %v1964_v39, %v13676_v41  ;;  %2334 = vmatmul.bf16.gmra.mxu1 %v9542_v52  ;;  %v11914_v41 = vld [vmem:[#allocation2 + $0x3cc] sm:$0xf0]  ;;  %v11909_v39 = vld [vmem:[#allocation2 + $0x3ac] sm:$0xf] }
 0x33f   :  { %v9550_v32 = vor.u32 %v11914_v41, %v9549_v21  ;;  %v9546_v7 = vor.u32 %v11909_v39, %v9543_v31 }
 0x341   :  { %2241 = vmatmul.bf16.gmra.mxu3 %v9550_v32 }
 0x345   :  { %v1966_v17 = vpop.f32.mrf.mxu2 }
 0x346   :  { %v13850_v19 = vadd.f32 %v1966_v17, %v13678_v43  ;;  %v11915_v43 = vld [vmem:[#allocation2 + $0x3d4] sm:$0xf0]  ;;  %v11913_v17 = vld [vmem:[#allocation2 + $0x3cc] sm:$0xf] }
 0x347   :  { %v9558_v35 = vor.u32 %v11915_v43, %v9557_v50 }
 0x349   :  { %2290 = vmatmul.bf16.gmra.mxu0 %v9554_v18  ;;  %v11917_v18 = vld [vmem:[#allocation2 + $0x3ec] sm:$0xf] }
 0x34a   :  { %2373 = vmatmul.bf16.gmra.mxu2 %v9514_v47  ;;  %v9559_v47 = vld [vmem:[#allocation2 + $0x3d8] sm:$0xf0]  ;;  %v9578_v54 = vor.u32 %v11917_v18, %v9575_v3 }
 0x34b   :  { %v9562_v41 = vor.u32 %v11913_v17, %v9559_v47  ;;  %v13897_v17 = vld [vmem:[%s14874_s22 + $0xb0] sm:$0xff] }
 0x34d   :  { %v1969_v60 = vpop.f32.mrf.mxu2 }
 0x34e   :  { %v13853_v34 = vadd.f32 %v1969_v60, %v13680_v4  ;;  %2339 = vmatmul.bf16.gmra.mxu1 %v9558_v35  ;;  %v11918_v4 = vld [vmem:[#allocation2 + $0x3ec] sm:$0xf0] }
 0x34f   :  { %v9566_v55 = vor.u32 %v11918_v4, %v9565_v20 }
 0x351   :  { %2246 = vmatmul.bf16.gmra.mxu3 %v9566_v55 }
 0x355   :  { %v1971_v26 = vpop.f32.mrf.mxu2 }
 0x356   :  { %v13856_v40 = vadd.f32 %v1971_v26, %v13684_v22  ;;  %v11919_v22 = vld [vmem:[#allocation2 + $0x3f4] sm:$0xf0] }
 0x357   :  { %v9574_v29 = vor.u32 %v11919_v22, %v9573_v16  ;;  %v2261_v32 = vpop.f32.mrf.mxu0 }
 0x358   :  { %v2310_v62 = vpop.f32.mrf.mxu1 }
 0x359   :  { %2295 = vmatmul.bf16.gmra.mxu0 %v9570_v61 }
 0x35a   :  { %2378 = vmatmul.bf16.gmra.mxu2 %v9530_v30 }
 0x35c   :  { %v2212_v60 = vpop.f32.mrf.mxu3 }
 0x35d   :  { %v1974_v33 = vpop.f32.mrf.mxu2  ;;  %v2262_v55 = vadd.f32 %v2261_v32, %v2212_v60 }
 0x35e   :  { %v13859_v27 = vadd.f32 %v1974_v33, %v13686_v24  ;;  %2344 = vmatmul.bf16.gmra.mxu1 %v9574_v29 }
 0x35f   :  { %v2263_v5 = vpop.f32.mrf.mxu0  ;;  %v2311_v44 = vadd.f32 %v2310_v62, %v2262_v55  ;;  %v13903_v62 = vld [vmem:[%s14874_s22 + $0xa8] sm:$0xff] }
 0x360   :  { %v2312_v9 = vpop.f32.mrf.mxu1 }
 0x364   :  { %v2214_v46 = vpop.f32.mrf.mxu3 }
 0x365   :  { %v13861_v1 = vpop.f32.mrf.mxu2  ;;  %v2264_v53 = vadd.f32 %v2263_v5, %v2214_v46 }
 0x366   :  { %14883 = vst [vmem:[#allocation45_spill] sm:$0xff] %v13861_v1 }
 0x367   :  { %v2313_v61 = vadd.f32 %v2312_v9, %v2264_v53  ;;  %v13909_v9 = vld [vmem:[%s14874_s22 + $0xa0] sm:$0xff] }
 0x368   :  { %v2315_v35 = vpop.f32.mrf.mxu1 }
 0x36a   :  { %2383 = vmatmul.bf16.gmra.mxu2 %v9546_v7  ;;  %v13891_v7 = vld [vmem:[%s14874_s22 + $0xb8] sm:$0xff] }
 0x36d   :  { %v1979_v24 = vpop.f32.mrf.mxu2  ;;  %v2266_v50 = vpop.f32.mrf.mxu0 }
 0x36e   :  { %v13866_v52 = vadd.f32 %v1979_v24, %v13692_v45 }
 0x36f   :  { %v2217_v59 = vpop.f32.mrf.mxu3 }
 0x370   :  { %v2317_v20 = vpop.f32.mrf.mxu1  ;;  %v2267_v24 = vadd.f32 %v2266_v50, %v2217_v59 }
 0x375   :  { %v13869_v21 = vpop.f32.mrf.mxu2  ;;  %v2268_v26 = vpop.f32.mrf.mxu0 }
 0x376   :  { %14884 = vst [vmem:[#allocation46_spill] sm:$0xff] %v13869_v21 }
 0x377   :  { %v2219_v30 = vpop.f32.mrf.mxu3 }
 0x378   :  { %v2320_v42 = vpop.f32.mrf.mxu1  ;;  %v2269_v47 = vadd.f32 %v2268_v26, %v2219_v30 }
 0x37a   :  { %2388 = vmatmul.bf16.gmra.mxu2 %v9562_v41  ;;  %v2316_v41 = vadd.f32 %v2315_v35, %v2267_v24 }
 0x37d   :  { %v1984_v10 = vpop.f32.mrf.mxu2  ;;  %v2271_v33 = vpop.f32.mrf.mxu0 }
 0x37e   :  { %v13875_v45 = vadd.f32 %v1984_v10, %v13723_v23  ;;  %v2318_v10 = vadd.f32 %v2317_v20, %v2269_v47 }
 0x37f   :  { %v2222_v63 = vpop.f32.mrf.mxu3 }
 0x380   :  { %v2322_v11 = vpop.f32.mrf.mxu1  ;;  %v2272_v35 = vadd.f32 %v2271_v33, %v2222_v63 }
 0x382   :  { %v2321_v20 = vadd.f32 %v2320_v42, %v2272_v35 }
 0x385   :  { %v13878_v38 = vpop.f32.mrf.mxu2 }
 0x386   :  { %14885 = vst [vmem:[#allocation47_spill] sm:$0xff] %v13878_v38 }
 0x387   :  { %v2224_v29 = vpop.f32.mrf.mxu3 }
 0x38a   :  { %2393 = vmatmul.bf16.gmra.mxu2 %v9578_v54 }
 0x38d   :  { %v1989_v43 = vpop.f32.mrf.mxu2 }
 0x38e   :  { %v13883_v23 = vadd.f32 %v1989_v43, %v13753_v0  ;;  %v2273_v0 = vpop.f32.mrf.mxu0 }
 0x38f   :  { %v2227_v60 = vpop.f32.mrf.mxu3  ;;  %v2274_v26 = vadd.f32 %v2273_v0, %v2224_v29 }
 0x395   :  { %v13885_v36 = vpop.f32.mrf.mxu2 }
 0x396   :  { %14886 = vst [vmem:[#allocation48_spill] sm:$0xff] %v13885_v36  ;;  %v2276_v32 = vpop.f32.mrf.mxu0 }
 0x397   :  { %v2229_v43 = vpop.f32.mrf.mxu3  ;;  %v2277_v63 = vadd.f32 %v2276_v32, %v2227_v60 }
 0x39b   :  { %v2325_v3 = vpop.f32.mrf.mxu1 }
 0x39c   :  { %v2326_v42 = vadd.f32 %v2325_v3, %v2277_v63 }
 0x39d   :  { %v2359_v4 = vpop.f32.mrf.mxu2 }
 0x39e   :  { %v2360_v31 = vadd.f32 %v2359_v4, %v2311_v44  ;;  %v2278_v50 = vpop.f32.mrf.mxu0  ;;  %v2323_v4 = vadd.f32 %v2322_v11, %v2274_v26 }
 0x3a3   :  { %v2327_v30 = vpop.f32.mrf.mxu1 }
 0x3a5   :  { %v2361_v39 = vpop.f32.mrf.mxu2 }
 0x3a6   :  { %v2362_v16 = vadd.f32 %v2361_v39, %v2313_v61  ;;  %v2281_v61 = vpop.f32.mrf.mxu0  ;;  %v2232_v39 = vpop.f32.mrf.mxu3 }
 0x3a8   :  { %v2399_v22 = vpack.c.bf16 %v2362_v16, %v2360_v31 }
 0x3aa   :  { %9579 = vmatmul.msk.bf16.vlgmr.msra.gmra.mxu3 %vm1365_vm1, %v2399_v22 }
 0x3ab   :  { %3283 = vmatpush.bf16.msra.mxu3 %v13891_v7  ;;  %v2330_v31 = vpop.f32.mrf.mxu1 }
 0x3ad   :  { %v2364_v51 = vpop.f32.mrf.mxu2 }
 0x3ae   :  { %v2365_v46 = vadd.f32 %v2364_v51, %v2316_v41  ;;  %v2283_v16 = vpop.f32.mrf.mxu0  ;;  %v2234_v22 = vpop.f32.mrf.mxu3 }
 0x3af   :  { %3284 = vmatpush.bf16.msra.mxu3 %v13897_v17 }
 0x3b3   :  { %3285 = vmatpush.bf16.msra.mxu3 %v13903_v62  ;;  %v2332_v29 = vpop.f32.mrf.mxu1 }
 0x3b5   :  { %v2366_v5 = vpop.f32.mrf.mxu2 }
 0x3b6   :  { %v2367_v18 = vadd.f32 %v2366_v5, %v2318_v10  ;;  %v2286_v47 = vpop.f32.mrf.mxu0  ;;  %v2282_v10 = vadd.f32 %v2281_v61, %v2232_v39 }
 0x3b7   :  { %3286 = vmatpush.bf16.msra.mxu3 %v13909_v9 }
 0x3b8   :  { %v2400_v54 = vpack.c.bf16 %v2367_v18, %v2365_v46  ;;  %v2284_v46 = vadd.f32 %v2283_v16, %v2234_v22  ;;  %v2331_v18 = vadd.f32 %v2330_v31, %v2282_v10  ;;  %v9597_v16 = vld [vmem:[#allocation2 + $0x408] sm:$0xf]  ;;  %v11923_v22 = vld [vmem:[#allocation2 + $0x414] sm:$0xf0] }
 0x3b9   :  { %v13924_v10 = vld [vmem:[%s14874_s22 + $0x38] sm:$0xff] }
 0x3ba   :  { %9580 = vmatmul.msk.bf16.gmra.mxu3 %vm1365_vm1, %v2400_v54  ;;  %v2333_v32 = vadd.f32 %v2332_v29, %v2284_v46  ;;  %v11920_v29 = vld [vmem:[#allocation2 + $0x404] sm:$0xf] }
 0x3bb   :  { %3287 = vmatpush.bf16.msra.mxu3 %v13766_v37  ;;  %v2335_v5 = vpop.f32.mrf.mxu1 }
 0x3bd   :  { %v2369_v59 = vpop.f32.mrf.mxu2 }
 0x3be   :  { %v2370_v53 = vadd.f32 %v2369_v59, %v2321_v20  ;;  %v2288_v60 = vpop.f32.mrf.mxu0 }
 0x3bf   :  { %3288 = vmatpush.bf16.msra.mxu3 %v13772_v28  ;;  %v2279_v28 = vadd.f32 %v2278_v50, %v2229_v43 }
 0x3c1   :  { %v2328_v0 = vadd.f32 %v2327_v30, %v2279_v28 }
 0x3c3   :  { %3289 = vmatpush.bf16.msra.mxu3 %v13778_v6  ;;  %v2337_v35 = vpop.f32.mrf.mxu1 }
 0x3c5   :  { %v2371_v55 = vpop.f32.mrf.mxu2 }
 0x3c6   :  { %v2372_v44 = vadd.f32 %v2371_v55, %v2323_v4  ;;  %v2291_v20 = vpop.f32.mrf.mxu0 }
 0x3c7   :  { %3290 = vmatpush.bf16.msra.mxu3 %v13784_v56  ;;  %v2237_v56 = vpop.f32.mrf.mxu3 }
 0x3c8   :  { %v2401_v37 = vpack.c.bf16 %v2372_v44, %v2370_v53  ;;  %v2287_v30 = vadd.f32 %v2286_v47, %v2237_v56 }
 0x3ca   :  { %9581 = vmatmul.msk.bf16.gmra.mxu3 %vm1365_vm1, %v2401_v37  ;;  %v2336_v53 = vadd.f32 %v2335_v5, %v2287_v30  ;;  %v13943_v30 = vld [vmem:[%s14874_s22 + $0x20] sm:$0xff] }
 0x3cb   :  { %v2340_v44 = vpop.f32.mrf.mxu1 }
 0x3cd   :  { %v2374_v33 = vpop.f32.mrf.mxu2 }
 0x3ce   :  { %v2375_v51 = vadd.f32 %v2374_v33, %v2326_v42  ;;  %v2293_v63 = vpop.f32.mrf.mxu0  ;;  %v9589_v42 = vld [vmem:[#allocation2 + $0x400] sm:$0xf] }
 0x3cf   :  { %v2239_v50 = vpop.f32.mrf.mxu3 }
 0x3d0   :  { %v2289_v55 = vadd.f32 %v2288_v60, %v2239_v50  ;;  %v13930_v60 = vld [vmem:[%s14874_s22 + $0x30] sm:$0xff] }
 0x3d2   :  { %v2338_v61 = vadd.f32 %v2337_v35, %v2289_v55  ;;  %v13936_v35 = vld [vmem:[%s14874_s22 + $0x28] sm:$0xff] }
 0x3d3   :  { %v2342_v47 = vpop.f32.mrf.mxu1 }
 0x3d5   :  { %v2376_v6 = vpop.f32.mrf.mxu2 }
 0x3d6   :  { %v2377_v11 = vadd.f32 %v2376_v6, %v2328_v0  ;;  %v9598_v0 = vor.u32 %v11923_v22, %v9597_v16  ;;  %v11922_v6 = vld [vmem:[#allocation2 + $0x40c] sm:$0xf0]  ;;  %v13949_v16 = vld [vmem:[%s14874_s22 + $0x18] sm:$0xff] }
 0x3d7   :  { %v2242_v4 = vpop.f32.mrf.mxu3 }
 0x3d8   :  { %v2402_v24 = vpack.c.bf16 %v2377_v11, %v2375_v51  ;;  %v9591_v51 = vld [vmem:[#allocation2 + $0x410] sm:$0xf0]  ;;  %v9590_v11 = vor.u32 %v11922_v6, %v9589_v42  ;;  %2800 = vmatmul.bf16.vlgmr.msrb.gmra.mxu2 %v9598_v0 }
 0x3d9   :  { %3676 = vmatpush.bf16.msrb.mxu2 %v13924_v10 }
 0x3da   :  { %9582 = vmatmul.msk.bf16.gmra.mxu3 %vm1365_vm1, %v2402_v24  ;;  %v9594_v24 = vor.u32 %v11920_v29, %v9591_v51  ;;  %2702 = vmatmul.bf16.vlgmr.msrb.gmra.mxu0 %v9590_v11  ;;  %v13955_v29 = vld [vmem:[%s14874_s22 + $0x10] sm:$0xff] }
 0x3dc   :  { %2751 = vmatmul.bf16.vlgmr.msrb.gmra.mxu1 %v9594_v24 }
 0x3dd   :  { %v2379_v41 = vpop.f32.mrf.mxu2  ;;  %3677 = vmatpush.bf16.msrb.mxu2 %v13930_v60 }
 0x3de   :  { %v2380_v3 = vadd.f32 %v2379_v41, %v2331_v18  ;;  %v2292_v41 = vadd.f32 %v2291_v20, %v2242_v4  ;;  %v2296_v18 = vpop.f32.mrf.mxu0 }
 0x3df   :  { %v2244_v28 = vpop.f32.mrf.mxu3 }
 0x3e0   :  { %v2294_v5 = vadd.f32 %v2293_v63, %v2244_v28  ;;  %v2341_v46 = vadd.f32 %v2340_v44, %v2292_v41  ;;  %v11927_v44 = vld [vmem:[#allocation2 + $0x434] sm:$0xf0]  ;;  %v9607_v28 = vld [vmem:[#allocation2 + $0x430] sm:$0xf0] }
 0x3e1   :  { %3678 = vmatpush.bf16.msrb.mxu2 %v13936_v35 }
 0x3e5   :  { %v2381_v54 = vpop.f32.mrf.mxu2  ;;  %3679 = vmatpush.bf16.msrb.mxu2 %v13943_v30 }
 0x3e6   :  { %v2382_v59 = vadd.f32 %v2381_v54, %v2333_v32  ;;  %v2343_v54 = vadd.f32 %v2342_v47, %v2294_v5  ;;  %v2298_v20 = vpop.f32.mrf.mxu0  ;;  %v13968_v5 = vld [vmem:[%s14874_s22] sm:$0xff] }
 0x3e7   :  { %v2247_v32 = vpop.f32.mrf.mxu3 }
 0x3e8   :  { %v2403_v43 = vpack.c.bf16 %v2382_v59, %v2380_v3 }
 0x3e9   :  { %3680 = vmatpush.bf16.msrb.mxu2 %v13949_v16 }
 0x3ea   :  { %9583 = vmatmul.msk.bf16.gmra.mxu3 %vm1365_vm1, %v2403_v43  ;;  %v2345_v43 = vpop.f32.mrf.mxu1 }
 0x3ed   :  { %v2384_v26 = vpop.f32.mrf.mxu2  ;;  %3681 = vmatpush.bf16.msrb.mxu2 %v13955_v29 }
 0x3ee   :  { %v2385_v37 = vadd.f32 %v2384_v26, %v2336_v53  ;;  %v9613_v53 = vld [vmem:[#allocation2 + $0x428] sm:$0xf] }
 0x3ef   :  { %v2249_v4 = vpop.f32.mrf.mxu3 }
 0x3f0   :  { %v2299_v22 = vadd.f32 %v2298_v20, %v2249_v4  ;;  %v11921_v20 = vld [vmem:[#allocation2 + $0x40c] sm:$0xf]  ;;  %v9599_v4 = vld [vmem:[#allocation2 + $0x418] sm:$0xf0] }
 0x3f2   :  { %v2347_v0 = vpop.f32.mrf.mxu1 }
 0x3f3   :  { %v2348_v51 = vadd.f32 %v2347_v0, %v2299_v22 }
 0x3f5   :  { %v2386_v39 = vpop.f32.mrf.mxu2 }
 0x3f6   :  { %v2387_v31 = vadd.f32 %v2386_v39, %v2338_v61  ;;  %v2297_v61 = vadd.f32 %v2296_v18, %v2247_v32  ;;  %v9614_v39 = vor.u32 %v11927_v44, %v9613_v53  ;;  %v11931_v18 = vld [vmem:[#allocation2 + $0x454] sm:$0xf0] }
 0x3f7   :  { %v13974_v53 = vld [vmem:[%s14874_s22 + $0x78] sm:$0xff] }
 0x3f8   :  { %v2404_v33 = vpack.c.bf16 %v2387_v31, %v2385_v37  ;;  %v9605_v37 = vld [vmem:[#allocation2 + $0x420] sm:$0xf]  ;;  %v11926_v31 = vld [vmem:[#allocation2 + $0x42c] sm:$0xf0]  ;;  %2805 = vmatmul.bf16.gmra.mxu2 %v9614_v39  ;;  %v2346_v6 = vadd.f32 %v2345_v43, %v2297_v61  ;;  %v9623_v43 = vld [vmem:[#allocation2 + $0x450] sm:$0xf0] }
 0x3f9   :  { %v9606_v63 = vor.u32 %v11926_v31, %v9605_v37  ;;  %v9645_v61 = vld [vmem:[#allocation2 + $0x468] sm:$0xf]  ;;  %v11935_v39 = vld [vmem:[#allocation2 + $0x474] sm:$0xf0] }
 0x3fa   :  { %9584 = vmatmul.msk.bf16.gmra.mxu3 %vm1365_vm1, %v2404_v33  ;;  %v11924_v33 = vld [vmem:[#allocation2 + $0x424] sm:$0xf]  ;;  %v9646_v31 = vor.u32 %v11935_v39, %v9645_v61  ;;  %v9677_v61 = vld [vmem:[#allocation2 + $0x4a8] sm:$0xf]  ;;  %v11943_v39 = vld [vmem:[#allocation2 + $0x4b4] sm:$0xf0] }
 0x3fb   :  { %v9610_v42 = vor.u32 %v11924_v33, %v9607_v28  ;;  %2707 = vmatmul.bf16.gmra.mxu0 %v9606_v63  ;;  %v9637_v33 = vld [vmem:[#allocation2 + $0x460] sm:$0xf]  ;;  %v11934_v63 = vld [vmem:[#allocation2 + $0x46c] sm:$0xf0]  ;;  %v11932_v28 = vld [vmem:[#allocation2 + $0x464] sm:$0xf] }
 0x3fc   :  { %v9638_v22 = vor.u32 %v11934_v63, %v9637_v33  ;;  %v9669_v33 = vld [vmem:[#allocation2 + $0x4a0] sm:$0xf]  ;;  %v11942_v63 = vld [vmem:[#allocation2 + $0x4ac] sm:$0xf0] }
 0x3fd   :  { %v2389_v56 = vpop.f32.mrf.mxu2  ;;  %2756 = vmatmul.bf16.gmra.mxu1 %v9610_v42  ;;  %v9639_v42 = vld [vmem:[#allocation2 + $0x470] sm:$0xf0] }
 0x3fe   :  { %v2390_v3 = vadd.f32 %v2389_v56, %v2341_v46  ;;  %v13961_v56 = vld [vmem:[%s14874_s22 + $0x8] sm:$0xff]  ;;  %v9642_v0 = vor.u32 %v11932_v28, %v9639_v42  ;;  %v11940_v28 = vld [vmem:[#allocation2 + $0x4a4] sm:$0xf] }
 0x3ff   :  { %3682 = vmatpush.bf16.msrb.mxu2 %v13961_v56  ;;  %v9629_v46 = vld [vmem:[#allocation2 + $0x448] sm:$0xf] }
 0x400   :  { %v9630_v32 = vor.u32 %v11931_v18, %v9629_v46 }
 0x403   :  { %3683 = vmatpush.bf16.msrb.mxu2 %v13968_v5 }
 0x405   :  { %v2391_v50 = vpop.f32.mrf.mxu2 }
 0x406   :  { %v2392_v59 = vadd.f32 %v2391_v50, %v2343_v54  ;;  %v9621_v54 = vld [vmem:[#allocation2 + $0x440] sm:$0xf]  ;;  %v11930_v50 = vld [vmem:[#allocation2 + $0x44c] sm:$0xf0] }
 0x408   :  { %v2405_v26 = vpack.c.bf16 %v2392_v59, %v2390_v3  ;;  %v11928_v3 = vld [vmem:[#allocation2 + $0x444] sm:$0xf]  ;;  %v9622_v59 = vor.u32 %v11930_v50, %v9621_v54  ;;  %2810 = vmatmul.bf16.gmra.mxu2 %v9630_v32  ;;  %v9653_v32 = vld [vmem:[#allocation2 + $0x480] sm:$0xf]  ;;  %v11938_v54 = vld [vmem:[#allocation2 + $0x48c] sm:$0xf0] }
 0x409   :  { %v11936_v50 = vld [vmem:[#allocation2 + $0x484] sm:$0xf] }
 0x40a   :  { %9585 = vmatmul.msk.bf16.gmra.mxu3 %vm1365_vm1, %v2405_v26  ;;  %v9626_v26 = vor.u32 %v11928_v3, %v9623_v43  ;;  %v9654_v3 = vor.u32 %v11938_v54, %v9653_v32  ;;  %v11944_v32 = vld [vmem:[#allocation2 + $0x4c4] sm:$0xf] }
 0x40b   :  { %2712 = vmatmul.bf16.gmra.mxu0 %v9622_v59  ;;  %v9655_v59 = vld [vmem:[#allocation2 + $0x490] sm:$0xf0] }
 0x40c   :  { %v9658_v43 = vor.u32 %v11936_v50, %v9655_v59  ;;  %v9687_v50 = vld [vmem:[#allocation2 + $0x4d0] sm:$0xf0]  ;;  %v9663_v59 = vld [vmem:[#allocation2 + $0x498] sm:$0xf0] }
 0x40d   :  { %v2394_v55 = vpop.f32.mrf.mxu2  ;;  %2761 = vmatmul.bf16.gmra.mxu1 %v9626_v26  ;;  %v11929_v26 = vld [vmem:[#allocation2 + $0x44c] sm:$0xf] }
 0x40e   :  { %v2395_v24 = vadd.f32 %v2394_v55, %v2346_v6  ;;  %v9602_v55 = vor.u32 %v11921_v20, %v9599_v4  ;;  %v11925_v6 = vld [vmem:[#allocation2 + $0x42c] sm:$0xf]  ;;  %v9631_v20 = vld [vmem:[#allocation2 + $0x458] sm:$0xf0] }
 0x415   :  { %v2396_v11 = vpop.f32.mrf.mxu2 }
 0x416   :  { %v2397_v47 = vadd.f32 %v2396_v11, %v2348_v51  ;;  %v9615_v51 = vld [vmem:[#allocation2 + $0x438] sm:$0xf0] }
 0x418   :  { %v2406_v41 = vpack.c.bf16 %v2397_v47, %v2395_v24  ;;  %2815 = vmatmul.bf16.gmra.mxu2 %v9646_v31  ;;  %v9618_v24 = vor.u32 %v11925_v6, %v9615_v51  ;;  %v13988_v47 = vld [vmem:[%s14874_s22 + $0x60] sm:$0xff]  ;;  %v9678_v31 = vor.u32 %v11943_v39, %v9677_v61 }
 0x419   :  { %v9701_v39 = vld [vmem:[#allocation2 + $0x4e0] sm:$0xf] }
 0x41a   :  { %9586 = vmatmul.msk.bf16.gmra.mxu3 %vm1365_vm1, %v2406_v41  ;;  %v9661_v41 = vld [vmem:[#allocation2 + $0x488] sm:$0xf] }
 0x41b   :  { %2717 = vmatmul.bf16.gmra.mxu0 %v9638_v22  ;;  %v9670_v22 = vor.u32 %v11942_v63, %v9669_v33  ;;  %v11948_v33 = vld [vmem:[#allocation2 + $0x4e4] sm:$0xf] }
 0x41d   :  { %2766 = vmatmul.bf16.gmra.mxu1 %v9642_v0  ;;  %v9647_v0 = vld [vmem:[#allocation2 + $0x478] sm:$0xf0] }
 0x42a   :  { %2849 = vmatmul.bf16.vlgmr.msrb.gmra.mxu3 %v9602_v55  ;;  %v9634_v55 = vor.u32 %v11929_v26, %v9631_v20 }
 0x42b   :  { %3725 = vmatpush.bf16.msrb.mxu3 %v13974_v53  ;;  %2722 = vmatmul.bf16.gmra.mxu0 %v9654_v3  ;;  %v9690_v3 = vor.u32 %v11944_v32, %v9687_v50  ;;  %v14050_v50 = vld [vmem:[%s14874_s22 + $0xe0] sm:$0xff] }
 0x42d   :  { %v2445_v44 = vpop.f32.mrf.mxu3  ;;  %2771 = vmatmul.bf16.gmra.mxu1 %v9658_v43 }
 0x42e   :  { %v13978_v37 = vadd.f32 %v2445_v44, %v13803_v49 }
 0x42f   :  { %3726 = vmatpush.bf16.msrb.mxu3 %v13808_v15  ;;  %v13994_v15 = vld [vmem:[%s14874_s22 + $0x58] sm:$0xff] }
 0x433   :  { %3727 = vmatpush.bf16.msrb.mxu3 %v13814_v13 }
 0x435   :  { %v2447_v11 = vpop.f32.mrf.mxu3 }
 0x436   :  { %v13983_v49 = vadd.f32 %v2447_v11, %v13818_v25  ;;  %v11939_v25 = vld [vmem:[#allocation2 + $0x494] sm:$0xf0]  ;;  %v9693_v11 = vld [vmem:[#allocation2 + $0x4c8] sm:$0xf] }
 0x437   :  { %3728 = vmatpush.bf16.msrb.mxu3 %v13988_v47  ;;  %v9662_v18 = vor.u32 %v11939_v25, %v9661_v41  ;;  %v9685_v25 = vld [vmem:[#allocation2 + $0x4c0] sm:$0xf] }
 0x439   :  { %2820 = vmatmul.bf16.gmra.mxu2 %v9662_v18  ;;  %v11946_v18 = vld [vmem:[#allocation2 + $0x4cc] sm:$0xf0] }
 0x43a   :  { %2854 = vmatmul.bf16.gmra.mxu3 %v9618_v24  ;;  %v11947_v24 = vld [vmem:[#allocation2 + $0x4d4] sm:$0xf0]  ;;  %v9686_v54 = vor.u32 %v11946_v18, %v9685_v25  ;;  %v14044_v18 = vld [vmem:[%s14874_s22 + $0xe8] sm:$0xff] }
 0x43b   :  { %3729 = vmatpush.bf16.msrb.mxu3 %v13994_v15  ;;  %2727 = vmatmul.bf16.gmra.mxu0 %v9670_v22  ;;  %v9694_v41 = vor.u32 %v11947_v24, %v9693_v11  ;;  %v14036_v11 = vld [vmem:[%s14874_s22 + $0xf0] sm:$0xff]  ;;  %v11945_v24 = vld [vmem:[#allocation2 + $0x4cc] sm:$0xf] }
 0x43d   :  { %v2450_v13 = vpop.f32.mrf.mxu3 }
 0x43e   :  { %v13998_v46 = vadd.f32 %v2450_v13, %v13823_v2 }
 0x43f   :  { %3730 = vmatpush.bf16.msrb.mxu3 %v13828_v14 }
 0x443   :  { %3731 = vmatpush.bf16.msrb.mxu3 %v13834_v57  ;;  %v9671_v57 = vld [vmem:[#allocation2 + $0x4b0] sm:$0xf0] }
 0x444   :  { %v9674_v42 = vor.u32 %v11940_v28, %v9671_v57  ;;  %v9703_v28 = vld [vmem:[#allocation2 + $0x4f0] sm:$0xf0]  ;;  %v9679_v57 = vld [vmem:[#allocation2 + $0x4b8] sm:$0xf0] }
 0x445   :  { %v2452_v4 = vpop.f32.mrf.mxu3  ;;  %v9706_v22 = vor.u32 %v11948_v33, %v9703_v28  ;;  %v14073_v33 = vld [vmem:[%s14874_s22 + $0xc8] sm:$0xff] }
 0x446   :  { %v14003_v2 = vadd.f32 %v2452_v4, %v13838_v12  ;;  %2776 = vmatmul.bf16.gmra.mxu1 %v9674_v42  ;;  %v11933_v12 = vld [vmem:[#allocation2 + $0x46c] sm:$0xf]  ;;  %v9709_v4 = vld [vmem:[#allocation2 + $0x4e8] sm:$0xf] }
 0x447   :  { %3732 = vmatpush.bf16.msrb.mxu3 %v13843_v8  ;;  %v9650_v51 = vor.u32 %v11933_v12, %v9647_v0  ;;  %v2899_v0 = vld [vmem:[#allocation4 + $0x8] sm:$0x3] }
 0x449   :  { %2825 = vmatmul.bf16.gmra.mxu2 %v9678_v31  ;;  %v11950_v31 = vld [vmem:[#allocation2 + $0x4ec] sm:$0xf0] }
 0x44a   :  { %2859 = vmatmul.bf16.gmra.mxu3 %v9634_v55  ;;  %v11951_v55 = vld [vmem:[#allocation2 + $0x4f4] sm:$0xf0]  ;;  %v9702_v63 = vor.u32 %v11950_v31, %v9701_v39 }
 0x44b   :  { %2732 = vmatmul.bf16.gmra.mxu0 %v9686_v54  ;;  %v9710_v61 = vor.u32 %v11951_v55, %v9709_v4  ;;  %v14065_v4 = vld [vmem:[%s14874_s22 + $0xd0] sm:$0xff]  ;;  %v11949_v55 = vld [vmem:[#allocation2 + $0x4ec] sm:$0xf] }
 0x44d   :  { %v2455_v44 = vpop.f32.mrf.mxu3 }
 0x44e   :  { %v14007_v14 = vadd.f32 %v2455_v44, %v13847_v48 }
 0x455   :  { %v2457_v8 = vpop.f32.mrf.mxu3 }
 0x456   :  { %v14010_v6 = vadd.f32 %v2457_v8, %v13850_v19  ;;  %2781 = vmatmul.bf16.gmra.mxu1 %v9690_v3  ;;  %v11937_v19 = vld [vmem:[#allocation2 + $0x48c] sm:$0xf] }
 0x457   :  { %v9666_v20 = vor.u32 %v11937_v19, %v9663_v59  ;;  %v2703_v32 = vpop.f32.mrf.mxu0  ;;  %v14056_v59 = vld [vmem:[%s14874_s22 + $0xd8] sm:$0xff] }
 0x459   :  { %2830 = vmatmul.bf16.gmra.mxu2 %v9694_v41  ;;  %v9695_v41 = vld [vmem:[#allocation2 + $0x4d8] sm:$0xf0]  ;;  %v2752_v54 = vpop.f32.mrf.mxu1 }
 0x45a   :  { %2864 = vmatmul.bf16.gmra.mxu3 %v9650_v51  ;;  %v14027_v51 = vld [vmem:[%s14874_s22 + $0xf8] sm:$0xff] }
 0x45b   :  { %2737 = vmatmul.bf16.gmra.mxu0 %v9702_v63  ;;  %v2801_v3 = vpop.f32.mrf.mxu2  ;;  %v14079_v63 = vld [vmem:[%s14874_s22 + $0xc0] sm:$0xff] }
 0x45d   :  { %v2460_v48 = vpop.f32.mrf.mxu3 }
 0x45e   :  { %v14013_v13 = vadd.f32 %v2460_v48, %v13853_v34 }
 0x463   :  { %v2803_v31 = vpop.f32.mrf.mxu2 }
 0x465   :  { %v2462_v43 = vpop.f32.mrf.mxu3 }
 0x466   :  { %v14016_v26 = vadd.f32 %v2462_v43, %v13856_v40  ;;  %2786 = vmatmul.bf16.gmra.mxu1 %v9706_v22  ;;  %v11941_v40 = vld [vmem:[#allocation2 + $0x4ac] sm:$0xf] }
 0x467   :  { %v9682_v12 = vor.u32 %v11941_v40, %v9679_v57 }
 0x469   :  { %2835 = vmatmul.bf16.gmra.mxu2 %v9710_v61  ;;  %v9711_v61 = vld [vmem:[#allocation2 + $0x4f8] sm:$0xf0] }
 0x46a   :  { %2869 = vmatmul.bf16.gmra.mxu3 %v9666_v20  ;;  %v2705_v20 = vpop.f32.mrf.mxu0 }
 0x46d   :  { %v2465_v34 = vpop.f32.mrf.mxu3 }
 0x46e   :  { %v14019_v44 = vadd.f32 %v2465_v34, %v13859_v27  ;;  %v2925_v27 = vsel %vm1390_vm0, %v2899_v0, 0  ;;  %v2754_v34 = vpop.f32.mrf.mxu1 }
 0x46f   :  { %2934 = vmatpush.bf16.msra.mxu0 %v2925_v27 }
 0x473   :  { %3332 = vmatpush.bf16.msrb.mxu0 %v14027_v51 }
 0x475   :  { %v14021_v42 = vpop.f32.mrf.mxu3 }
 0x476   :  { %14887 = vst [vmem:[#allocation49_spill] sm:$0xff] %v14021_v42 }
 0x477   :  { %3333 = vmatpush.bf16.msrb.mxu0 %v14036_v11 }
 0x478   :  { %v2708_v28 = vpop.f32.mrf.mxu0 }
 0x47a   :  { %2874 = vmatmul.bf16.gmra.mxu3 %v9682_v12  ;;  %v2757_v22 = vpop.f32.mrf.mxu1 }
 0x47b   :  { %3334 = vmatpush.bf16.msrb.mxu0 %v14044_v18  ;;  %v2806_v12 = vpop.f32.mrf.mxu2  ;;  %v2758_v58 = vadd.f32 %v2757_v22, %v2708_v28  ;;  %v14102_v28 = vld [vmem:[%s14874_s22 + $0x90] sm:$0xff] }
 0x47d   :  { %v2470_v8 = vpop.f32.mrf.mxu3 }
 0x47e   :  { %v14031_v48 = vadd.f32 %v2470_v8, %v13866_v52  ;;  %v9698_v52 = vor.u32 %v11945_v24, %v9695_v41 }
 0x47f   :  { %3335 = vmatpush.bf16.msrb.mxu0 %v14050_v50 }
 0x480   :  { %v2710_v0 = vpop.f32.mrf.mxu0 }
 0x482   :  { %v2759_v8 = vpop.f32.mrf.mxu1 }
 0x483   :  { %3336 = vmatpush.bf16.msrb.mxu0 %v14056_v59  ;;  %v2808_v24 = vpop.f32.mrf.mxu2 }
 0x485   :  { %v14039_v25 = vpop.f32.mrf.mxu3 }
 0x486   :  { %14888 = vst [vmem:[#allocation50_spill] sm:$0xff] %v14039_v25 }
 0x487   :  { %3337 = vmatpush.bf16.msrb.mxu0 %v14065_v4 }
 0x48a   :  { %2879 = vmatmul.bf16.gmra.mxu3 %v9698_v52  ;;  %v2753_v52 = vadd.f32 %v2752_v54, %v2703_v32  ;;  %v2760_v32 = vadd.f32 %v2759_v8, %v2710_v0  ;;  %v2807_v54 = vadd.f32 %v2806_v12, %v2758_v58  ;;  %v14108_v0 = vld [vmem:[%s14874_s22 + $0x88] sm:$0xff] }
 0x48b   :  { %3338 = vmatpush.bf16.msrb.mxu0 %v14073_v33  ;;  %v2811_v1 = vpop.f32.mrf.mxu2 }
 0x48c   :  { %v2802_v42 = vadd.f32 %v2801_v3, %v2753_v52 }
 0x48d   :  { %v2475_v19 = vpop.f32.mrf.mxu3 }
 0x48e   :  { %v14060_v43 = vadd.f32 %v2475_v19, %v13875_v45  ;;  %v9714_v45 = vor.u32 %v11949_v55, %v9711_v61  ;;  %v2713_v19 = vpop.f32.mrf.mxu0  ;;  %v2762_v55 = vpop.f32.mrf.mxu1  ;;  %v2755_v61 = vadd.f32 %v2754_v34, %v2705_v20 }
 0x48f   :  { %3339 = vmatpush.bf16.msrb.mxu0 %v14079_v63 }
 0x493   :  { %v2813_v38 = vpop.f32.mrf.mxu2 }
 0x495   :  { %v14068_v39 = vpop.f32.mrf.mxu3 }
 0x496   :  { %14889 = vst [vmem:[#allocation51_spill] sm:$0xff] %v14068_v39 }
 0x49a   :  { %2884 = vmatmul.bf16.gmra.mxu3 %v9714_v45  ;;  %v2804_v45 = vadd.f32 %v2803_v31, %v2755_v61  ;;  %v2763_v31 = vadd.f32 %v2762_v55, %v2713_v19  ;;  %v14114_v55 = vld [vmem:[%s14874_s22 + $0x80] sm:$0xff] }
 0x49b   :  { %v2816_v34 = vpop.f32.mrf.mxu2 }
 0x49c   :  { %v2812_v12 = vadd.f32 %v2811_v1, %v2763_v31 }
 0x49d   :  { %v2480_v40 = vpop.f32.mrf.mxu3 }
 0x49e   :  { %v14083_v57 = vadd.f32 %v2480_v40, %v13883_v23  ;;  %v2715_v23 = vpop.f32.mrf.mxu0  ;;  %v2764_v40 = vpop.f32.mrf.mxu1 }
 0x4a3   :  { %v2818_v22 = vpop.f32.mrf.mxu2 }
 0x4a5   :  { %v14085_v27 = vpop.f32.mrf.mxu3 }
 0x4a6   :  { %14890 = vst [vmem:[#allocation52_spill] sm:$0xff] %v14085_v27  ;;  %v2718_v3 = vpop.f32.mrf.mxu0  ;;  %v2767_v20 = vpop.f32.mrf.mxu1 }
 0x4ad   :  { %v2850_v41 = vpop.f32.mrf.mxu3 }
 0x4ae   :  { %v2851_v36 = vadd.f32 %v2850_v41, %v2802_v42  ;;  %v2809_v42 = vadd.f32 %v2808_v24, %v2760_v32  ;;  %v2720_v58 = vpop.f32.mrf.mxu0 }
 0x4b5   :  { %v2852_v25 = vpop.f32.mrf.mxu3 }
 0x4b6   :  { %v2853_v21 = vadd.f32 %v2852_v25, %v2804_v45  ;;  %v2723_v52 = vpop.f32.mrf.mxu0 }
 0x4b8   :  { %v2890_v39 = vpack.c.bf16 %v2853_v21, %v2851_v36 }
 0x4ba   :  { %9715 = vmatmul.msk.bf16.vlgmr.msra.gmra.mxu0 %vm1365_vm1, %v2890_v39 }
 0x4bb   :  { %3774 = vmatpush.bf16.msra.mxu0 %v13891_v7  ;;  %v14096_v7 = vld [vmem:[%s14874_s22 + $0x98] sm:$0xff] }
 0x4bc   :  { %v2821_v61 = vpop.f32.mrf.mxu2 }
 0x4bd   :  { %v2855_v27 = vpop.f32.mrf.mxu3 }
 0x4be   :  { %v2856_v21 = vadd.f32 %v2855_v27, %v2807_v54 }
 0x4bf   :  { %3775 = vmatpush.bf16.msra.mxu0 %v13897_v17 }
 0x4c3   :  { %3776 = vmatpush.bf16.msra.mxu0 %v13903_v62  ;;  %v2769_v62 = vpop.f32.mrf.mxu1 }
 0x4c5   :  { %v2857_v25 = vpop.f32.mrf.mxu3 }
 0x4c6   :  { %v2858_v36 = vadd.f32 %v2857_v25, %v2809_v42 }
 0x4c7   :  { %3777 = vmatpush.bf16.msra.mxu0 %v13909_v9  ;;  %v2765_v9 = vadd.f32 %v2764_v40, %v2715_v23  ;;  %v2768_v23 = vadd.f32 %v2767_v20, %v2718_v3  ;;  %v2770_v40 = vadd.f32 %v2769_v62, %v2720_v58 }
 0x4c8   :  { %v2891_v39 = vpack.c.bf16 %v2858_v36, %v2856_v21  ;;  %v2823_v21 = vpop.f32.mrf.mxu2 }
 0x4c9   :  { %v2814_v27 = vadd.f32 %v2813_v38, %v2765_v9  ;;  %v2725_v38 = vpop.f32.mrf.mxu0  ;;  %v2817_v54 = vadd.f32 %v2816_v34, %v2768_v23  ;;  %v2819_v42 = vadd.f32 %v2818_v22, %v2770_v40 }
 0x4ca   :  { %9716 = vmatmul.msk.bf16.gmra.mxu0 %vm1365_vm1, %v2891_v39 }
 0x4cb   :  { %3778 = vmatpush.bf16.msra.mxu0 %v14096_v7  ;;  %v2772_v19 = vpop.f32.mrf.mxu1 }
 0x4cd   :  { %v2860_v17 = vpop.f32.mrf.mxu3 }
 0x4ce   :  { %v2861_v24 = vadd.f32 %v2860_v17, %v2812_v12 }
 0x4cf   :  { %3779 = vmatpush.bf16.msra.mxu0 %v14102_v28 }
 0x4d1   :  { %v2728_v31 = vpop.f32.mrf.mxu0 }
 0x4d3   :  { %3780 = vmatpush.bf16.msra.mxu0 %v14108_v0  ;;  %v2774_v32 = vpop.f32.mrf.mxu1 }
 0x4d5   :  { %v2862_v8 = vpop.f32.mrf.mxu3 }
 0x4d6   :  { %v2863_v41 = vadd.f32 %v2862_v8, %v2814_v27  ;;  %v2773_v27 = vadd.f32 %v2772_v19, %v2723_v52  ;;  %v2826_v8 = vpop.f32.mrf.mxu2 }
 0x4d7   :  { %3781 = vmatpush.bf16.msra.mxu0 %v14114_v55 }
 0x4d8   :  { %v2892_v1 = vpack.c.bf16 %v2863_v41, %v2861_v24  ;;  %v2775_v24 = vadd.f32 %v2774_v32, %v2725_v38  ;;  %v2822_v41 = vadd.f32 %v2821_v61, %v2773_v27  ;;  %v11952_v61 = vld [vmem:[#allocation2 + $0x504] sm:$0xf]  ;;  %v9727_v32 = vld [vmem:[#allocation2 + $0x510] sm:$0xf0]  ;;  %v11955_v27 = vld [vmem:[#allocation2 + $0x514] sm:$0xf0] }
 0x4d9   :  { %v2730_v20 = vpop.f32.mrf.mxu0 }
 0x4da   :  { %9717 = vmatmul.msk.bf16.gmra.mxu0 %vm1365_vm1, %v2892_v1  ;;  %v2824_v3 = vadd.f32 %v2823_v21, %v2775_v24 }
 0x4db   :  { %v2777_v9 = vpop.f32.mrf.mxu1 }
 0x4dc   :  { %v2778_v40 = vadd.f32 %v2777_v9, %v2728_v31  ;;  %v9725_v31 = vld [vmem:[#allocation2 + $0x500] sm:$0xf]  ;;  %v11954_v9 = vld [vmem:[#allocation2 + $0x50c] sm:$0xf0] }
 0x4dd   :  { %v2865_v45 = vpop.f32.mrf.mxu3 }
 0x4de   :  { %v2866_v36 = vadd.f32 %v2865_v45, %v2817_v54  ;;  %v2828_v23 = vpop.f32.mrf.mxu2 }
 0x4e1   :  { %v2733_v54 = vpop.f32.mrf.mxu0 }
 0x4e3   :  { %v2779_v62 = vpop.f32.mrf.mxu1 }
 0x4e5   :  { %v2867_v25 = vpop.f32.mrf.mxu3 }
 0x4e6   :  { %v2868_v39 = vadd.f32 %v2867_v25, %v2819_v42  ;;  %v2780_v25 = vadd.f32 %v2779_v62, %v2730_v20  ;;  %v2831_v52 = vpop.f32.mrf.mxu2 }
 0x4e8   :  { %v2893_v17 = vpack.c.bf16 %v2868_v39, %v2866_v36  ;;  %v2827_v36 = vadd.f32 %v2826_v8, %v2778_v40  ;;  %v2829_v19 = vadd.f32 %v2828_v23, %v2780_v25  ;;  %v9726_v8 = vor.u32 %v11954_v9, %v9725_v31  ;;  %v11960_v9 = vld [vmem:[#allocation2 + $0x544] sm:$0xf] }
 0x4ea   :  { %9718 = vmatmul.msk.bf16.gmra.mxu0 %vm1365_vm1, %v2893_v17  ;;  %v9730_v17 = vor.u32 %v11952_v61, %v9727_v32  ;;  %3193 = vmatmul.bf16.vlgmr.msra.gmra.mxu1 %v9726_v8  ;;  %v9759_v8 = vld [vmem:[#allocation2 + $0x550] sm:$0xf0] }
 0x4eb   :  { %v2782_v42 = vpop.f32.mrf.mxu1 }
 0x4ec   :  { %3242 = vmatmul.bf16.vlgmr.msra.gmra.mxu2 %v9730_v17 }
 0x4ed   :  { %v2870_v12 = vpop.f32.mrf.mxu3 }
 0x4ee   :  { %v2871_v34 = vadd.f32 %v2870_v12, %v2822_v41  ;;  %v9733_v12 = vld [vmem:[#allocation2 + $0x508] sm:$0xf]  ;;  %v2735_v41 = vpop.f32.mrf.mxu0  ;;  %v2833_v20 = vpop.f32.mrf.mxu2 }
 0x4f5   :  { %v2872_v58 = vpop.f32.mrf.mxu3 }
 0x4f6   :  { %v2873_v22 = vadd.f32 %v2872_v58, %v2824_v3  ;;  %v9734_v3 = vor.u32 %v11955_v27, %v9733_v12  ;;  %v2784_v58 = vpop.f32.mrf.mxu1  ;;  %v2738_v23 = vpop.f32.mrf.mxu0 }
 0x4f8   :  { %v2894_v1 = vpack.c.bf16 %v2873_v22, %v2871_v34  ;;  %3291 = vmatmul.bf16.vlgmr.msra.gmra.mxu3 %v9734_v3  ;;  %v2783_v34 = vadd.f32 %v2782_v42, %v2733_v54  ;;  %v2785_v22 = vadd.f32 %v2784_v58, %v2735_v41  ;;  %v9741_v42 = vld [vmem:[#allocation2 + $0x520] sm:$0xf] }
 0x4f9   :  { %4167 = vmatpush.bf16.msra.mxu3 %v13924_v10  ;;  %v2836_v10 = vpop.f32.mrf.mxu2 }
 0x4fa   :  { %9719 = vmatmul.msk.bf16.gmra.mxu0 %vm1365_vm1, %v2894_v1  ;;  %v2832_v1 = vadd.f32 %v2831_v52, %v2783_v34  ;;  %v2834_v40 = vadd.f32 %v2833_v20, %v2785_v22  ;;  %v9762_v34 = vor.u32 %v11960_v9, %v9759_v8  ;;  %v11963_v22 = vld [vmem:[#allocation2 + $0x554] sm:$0xf0]  ;;  %v9789_v8 = vld [vmem:[#allocation2 + $0x580] sm:$0xf] }
 0x4fd   :  { %v2875_v45 = vpop.f32.mrf.mxu3  ;;  %4168 = vmatpush.bf16.msra.mxu3 %v13930_v60 }
 0x4fe   :  { %v2876_v21 = vadd.f32 %v2875_v45, %v2827_v36  ;;  %v2787_v45 = vpop.f32.mrf.mxu1  ;;  %v11956_v36 = vld [vmem:[#allocation2 + $0x524] sm:$0xf]  ;;  %v2740_v17 = vpop.f32.mrf.mxu0 }
 0x501   :  { %4169 = vmatpush.bf16.msra.mxu3 %v13936_v35  ;;  %v11958_v35 = vld [vmem:[#allocation2 + $0x52c] sm:$0xf0] }
 0x502   :  { %v9742_v52 = vor.u32 %v11958_v35, %v9741_v42 }
 0x504   :  { %3198 = vmatmul.bf16.gmra.mxu1 %v9742_v52  ;;  %v14138_v52 = vld [vmem:[%s14874_s22 + $0x70] sm:$0xff] }
 0x505   :  { %v2877_v38 = vpop.f32.mrf.mxu3  ;;  %4170 = vmatpush.bf16.msra.mxu3 %v13943_v30  ;;  %v2838_v30 = vpop.f32.mrf.mxu2 }
 0x506   :  { %v2878_v39 = vadd.f32 %v2877_v38, %v2829_v19  ;;  %v9743_v19 = vld [vmem:[#allocation2 + $0x530] sm:$0xf0]  ;;  %v2789_v12 = vpop.f32.mrf.mxu1 }
 0x507   :  { %v9746_v32 = vor.u32 %v11956_v36, %v9743_v19  ;;  %v2790_v41 = vadd.f32 %v2789_v12, %v2740_v17  ;;  %v11964_v36 = vld [vmem:[#allocation2 + $0x564] sm:$0xf]  ;;  %v9775_v19 = vld [vmem:[#allocation2 + $0x570] sm:$0xf0]  ;;  %v11957_v17 = vld [vmem:[#allocation2 + $0x52c] sm:$0xf] }
 0x508   :  { %v2895_v24 = vpack.c.bf16 %v2878_v39, %v2876_v21  ;;  %v9749_v21 = vld [vmem:[#allocation2 + $0x528] sm:$0xf]  ;;  %v11959_v39 = vld [vmem:[#allocation2 + $0x534] sm:$0xf0]  ;;  %v9751_v12 = vld [vmem:[#allocation2 + $0x538] sm:$0xf0] }
 0x509   :  { %3247 = vmatmul.bf16.gmra.mxu2 %v9746_v32  ;;  %v9750_v60 = vor.u32 %v11959_v39, %v9749_v21  ;;  %4171 = vmatpush.bf16.msra.mxu3 %v13949_v16  ;;  %v2839_v58 = vadd.f32 %v2838_v30, %v2790_v41  ;;  %v9765_v16 = vld [vmem:[#allocation2 + $0x548] sm:$0xf]  ;;  %v11967_v21 = vld [vmem:[#allocation2 + $0x574] sm:$0xf0]  ;;  %v9754_v41 = vor.u32 %v11957_v17, %v9751_v12 }
 0x50a   :  { %9720 = vmatmul.msk.bf16.gmra.mxu0 %vm1365_vm1, %v2895_v24  ;;  %v2788_v24 = vadd.f32 %v2787_v45, %v2738_v23  ;;  %v9766_v23 = vor.u32 %v11963_v22, %v9765_v16  ;;  %v11962_v45 = vld [vmem:[#allocation2 + $0x54c] sm:$0xf0]  ;;  %v9767_v22 = vld [vmem:[#allocation2 + $0x558] sm:$0xf0]  ;;  %v9829_v12 = vld [vmem:[#allocation2 + $0x5c8] sm:$0xf] }
 0x50b   :  { %3296 = vmatmul.bf16.gmra.mxu3 %v9750_v60  ;;  %v11966_v60 = vld [vmem:[#allocation2 + $0x56c] sm:$0xf0] }
 0x50c   :  { %v2837_v3 = vadd.f32 %v2836_v10, %v2788_v24  ;;  %v9781_v10 = vld [vmem:[#allocation2 + $0x568] sm:$0xf]  ;;  %v9791_v24 = vld [vmem:[#allocation2 + $0x590] sm:$0xf0] }
 0x50d   :  { %v2880_v62 = vpop.f32.mrf.mxu3  ;;  %4172 = vmatpush.bf16.msra.mxu3 %v13955_v29  ;;  %v9757_v29 = vld [vmem:[#allocation2 + $0x540] sm:$0xf]  ;;  %v9782_v39 = vor.u32 %v11967_v21, %v9781_v10  ;;  %v14158_v16 = vld [vmem:[%s14874_s22 + $0x50] sm:$0xff] }
 0x50e   :  { %v2881_v38 = vadd.f32 %v2880_v62, %v2832_v1 }
 0x511   :  { %4173 = vmatpush.bf16.msra.mxu3 %v13961_v56  ;;  %v9758_v56 = vor.u32 %v11962_v45, %v9757_v29 }
 0x514   :  { %3203 = vmatmul.bf16.gmra.mxu1 %v9758_v56 }
 0x515   :  { %v2882_v25 = vpop.f32.mrf.mxu3  ;;  %4174 = vmatpush.bf16.msra.mxu3 %v13968_v5 }
 0x516   :  { %v2883_v61 = vadd.f32 %v2882_v25, %v2834_v40  ;;  %v11953_v40 = vld [vmem:[#allocation2 + $0x50c] sm:$0xf]  ;;  %v9735_v25 = vld [vmem:[#allocation2 + $0x518] sm:$0xf0] }
 0x518   :  { %v2896_v54 = vpack.c.bf16 %v2883_v61, %v2881_v38  ;;  %v9738_v38 = vor.u32 %v11953_v40, %v9735_v25  ;;  %v9778_v61 = vor.u32 %v11964_v36, %v9775_v19  ;;  %v9813_v40 = vld [vmem:[#allocation2 + $0x5a8] sm:$0xf]  ;;  %v11975_v25 = vld [vmem:[#allocation2 + $0x5b4] sm:$0xf0] }
 0x519   :  { %3252 = vmatmul.bf16.gmra.mxu2 %v9762_v34  ;;  %v9814_v19 = vor.u32 %v11975_v25, %v9813_v40  ;;  %v3390_v25 = vld [vmem:[#allocation4 + $0xa] sm:$0x3] }
 0x51a   :  { %9721 = vmatmul.msk.bf16.gmra.mxu0 %vm1365_vm1, %v2896_v54  ;;  %v9773_v54 = vld [vmem:[#allocation2 + $0x560] sm:$0xf] }
 0x51b   :  { %3301 = vmatmul.bf16.gmra.mxu3 %v9766_v23  ;;  %v9774_v42 = vor.u32 %v11966_v60, %v9773_v54  ;;  %v9807_v23 = vld [vmem:[#allocation2 + $0x5b0] sm:$0xf0]  ;;  %v9783_v54 = vld [vmem:[#allocation2 + $0x578] sm:$0xf0]  ;;  %v11976_v60 = vld [vmem:[#allocation2 + $0x5c4] sm:$0xf] }
 0x51d   :  { %v2885_v27 = vpop.f32.mrf.mxu3 }
 0x51e   :  { %v2886_v20 = vadd.f32 %v2885_v27, %v2837_v3  ;;  %v14147_v27 = vld [vmem:[%s14874_s22 + $0x68] sm:$0xff] }
 0x524   :  { %3208 = vmatmul.bf16.gmra.mxu1 %v9774_v42  ;;  %v9823_v42 = vld [vmem:[#allocation2 + $0x5d0] sm:$0xf0] }
 0x525   :  { %v2887_v31 = vpop.f32.mrf.mxu3  ;;  %v9826_v17 = vor.u32 %v11976_v60, %v9823_v42  ;;  %v11977_v42 = vld [vmem:[#allocation2 + $0x5cc] sm:$0xf] }
 0x526   :  { %v2888_v62 = vadd.f32 %v2887_v31, %v2839_v58  ;;  %v9797_v58 = vld [vmem:[#allocation2 + $0x588] sm:$0xf]  ;;  %v11971_v31 = vld [vmem:[#allocation2 + $0x594] sm:$0xf0] }
 0x527   :  { %v9798_v9 = vor.u32 %v11971_v31, %v9797_v58 }
 0x528   :  { %v2897_v1 = vpack.c.bf16 %v2888_v62, %v2886_v20  ;;  %v11970_v20 = vld [vmem:[#allocation2 + $0x58c] sm:$0xf0] }
 0x529   :  { %3257 = vmatmul.bf16.gmra.mxu2 %v9778_v61  ;;  %v9790_v62 = vor.u32 %v11970_v20, %v9789_v8  ;;  %v11974_v61 = vld [vmem:[#allocation2 + $0x5ac] sm:$0xf0]  ;;  %v9799_v8 = vld [vmem:[#allocation2 + $0x598] sm:$0xf0]  ;;  %v11980_v20 = vld [vmem:[#allocation2 + $0x5e4] sm:$0xf] }
 0x52a   :  { %9722 = vmatmul.msk.bf16.gmra.mxu0 %vm1365_vm1, %v2897_v1  ;;  %v14167_v1 = vld [vmem:[%s14874_s22 + $0x48] sm:$0xff] }
 0x52b   :  { %3306 = vmatmul.bf16.gmra.mxu3 %v9782_v39  ;;  %v11965_v39 = vld [vmem:[#allocation2 + $0x56c] sm:$0xf] }
 0x534   :  { %3213 = vmatmul.bf16.gmra.mxu1 %v9790_v62  ;;  %v9839_v62 = vld [vmem:[#allocation2 + $0x5f0] sm:$0xf0] }
 0x537   :  { %v2936_v32 = vpop.f32.mrf.mxu0 }
 0x538   :  { %v14132_v5 = vadd.f32 %v2936_v32, %v13978_v37 }
 0x53a   :  { %3340 = vmatmul.bf16.vlgmr.msrb.gmra.mxu0 %v9738_v38  ;;  %v9805_v38 = vld [vmem:[#allocation2 + $0x5a0] sm:$0xf] }
 0x53b   :  { %4216 = vmatpush.bf16.msrb.mxu0 %v13974_v53  ;;  %v11968_v53 = vld [vmem:[#allocation2 + $0x584] sm:$0xf]  ;;  %3311 = vmatmul.bf16.gmra.mxu3 %v9798_v9  ;;  %v9806_v32 = vor.u32 %v11974_v61, %v9805_v38  ;;  %v11969_v9 = vld [vmem:[#allocation2 + $0x58c] sm:$0xf]  ;;  %v9815_v61 = vld [vmem:[#allocation2 + $0x5b8] sm:$0xf0] }
 0x53c   :  { %v9794_v30 = vor.u32 %v11968_v53, %v9791_v24  ;;  %v11979_v53 = vld [vmem:[#allocation2 + $0x5d4] sm:$0xf0]  ;;  %v11973_v38 = vld [vmem:[#allocation2 + $0x5ac] sm:$0xf] }
 0x53e   :  { %3262 = vmatmul.bf16.gmra.mxu2 %v9794_v30  ;;  %v9821_v30 = vld [vmem:[#allocation2 + $0x5c0] sm:$0xf] }
 0x53f   :  { %v2938_v35 = vpop.f32.mrf.mxu0  ;;  %4217 = vmatpush.bf16.msrb.mxu0 %v14138_v52 }
 0x540   :  { %v14142_v37 = vadd.f32 %v2938_v35, %v13983_v49  ;;  %v9786_v35 = vor.u32 %v11965_v39, %v9783_v54 }
 0x543   :  { %4218 = vmatpush.bf16.msrb.mxu0 %v14147_v27 }
 0x544   :  { %3218 = vmatmul.bf16.gmra.mxu1 %v9806_v32 }
 0x547   :  { %v2941_v3 = vpop.f32.mrf.mxu0  ;;  %4219 = vmatpush.bf16.msrb.mxu0 %v13988_v47 }
 0x548   :  { %v14152_v49 = vadd.f32 %v2941_v3, %v13998_v46  ;;  %v11961_v46 = vld [vmem:[#allocation2 + $0x54c] sm:$0xf]  ;;  %v11978_v3 = vld [vmem:[#allocation2 + $0x5cc] sm:$0xf0] }
 0x549   :  { %v9770_v29 = vor.u32 %v11961_v46, %v9767_v22  ;;  %v9842_v46 = vor.u32 %v11980_v20, %v9839_v62  ;;  %v9845_v22 = vld [vmem:[#allocation2 + $0x5e8] sm:$0xf] }
 0x54a   :  { %3345 = vmatmul.bf16.gmra.mxu0 %v9754_v41  ;;  %v9830_v41 = vor.u32 %v11979_v53, %v9829_v12  ;;  %v11981_v53 = vld [vmem:[#allocation2 + $0x5ec] sm:$0xf] }
 0x54b   :  { %4220 = vmatpush.bf16.msrb.mxu0 %v13994_v15  ;;  %v11972_v15 = vld [vmem:[#allocation2 + $0x5a4] sm:$0xf]  ;;  %3316 = vmatmul.bf16.gmra.mxu3 %v9814_v19  ;;  %v3416_v19 = vsel %vm1390_vm0, %v3390_v25, 0 }
 0x54c   :  { %v9810_v45 = vor.u32 %v11972_v15, %v9807_v23  ;;  %v11983_v15 = vld [vmem:[#allocation2 + $0x5f4] sm:$0xf0]  ;;  %3425 = vmatpush.bf16.msrb.mxu1 %v3416_v19 }
 0x54d   :  { %v14221_v19 = vld [vmem:[%s14874_s22 + $0xb8] sm:$0xff] }
 0x54e   :  { %3267 = vmatmul.bf16.gmra.mxu2 %v9810_v45  ;;  %v9837_v45 = vld [vmem:[#allocation2 + $0x5e0] sm:$0xf] }
 0x54f   :  { %v2943_v34 = vpop.f32.mrf.mxu0  ;;  %4221 = vmatpush.bf16.msrb.mxu0 %v14158_v16 }
 0x550   :  { %v14162_v47 = vadd.f32 %v2943_v34, %v14003_v2  ;;  %v14173_v2 = vld [vmem:[%s14874_s22 + $0x40] sm:$0xff]  ;;  %v9802_v34 = vor.u32 %v11969_v9, %v9799_v8  ;;  %3823 = vmatpush.bf16.msra.mxu1 %v14027_v51 }
 0x553   :  { %4222 = vmatpush.bf16.msrb.mxu0 %v14167_v1 }
 0x554   :  { %3824 = vmatpush.bf16.msra.mxu1 %v14036_v11 }
 0x557   :  { %v2946_v56 = vpop.f32.mrf.mxu0  ;;  %4223 = vmatpush.bf16.msrb.mxu0 %v14173_v2 }
 0x558   :  { %v14177_v36 = vadd.f32 %v2946_v56, %v14007_v14  ;;  %v11982_v56 = vld [vmem:[#allocation2 + $0x5ec] sm:$0xf0]  ;;  %3825 = vmatpush.bf16.msra.mxu1 %v14044_v18 }
 0x55a   :  { %3350 = vmatmul.bf16.gmra.mxu0 %v9770_v29  ;;  %v9846_v29 = vor.u32 %v11983_v15, %v9845_v22 }
 0x55b   :  { %3321 = vmatmul.bf16.gmra.mxu3 %v9830_v41 }
 0x55c   :  { %3826 = vmatpush.bf16.msra.mxu1 %v14050_v50 }
 0x55e   :  { %3272 = vmatmul.bf16.gmra.mxu2 %v9826_v17 }
 0x55f   :  { %v2948_v10 = vpop.f32.mrf.mxu0 }
 0x560   :  { %v14180_v21 = vadd.f32 %v2948_v10, %v14010_v6  ;;  %v9822_v6 = vor.u32 %v11978_v3, %v9821_v30  ;;  %3827 = vmatpush.bf16.msra.mxu1 %v14056_v59  ;;  %v9847_v59 = vld [vmem:[#allocation2 + $0x5f8] sm:$0xf0] }
 0x561   :  { %v9850_v3 = vor.u32 %v11981_v53, %v9847_v59  ;;  %v14239_v53 = vld [vmem:[%s14874_s22 + $0xa0] sm:$0xff] }
 0x562   :  { %3223 = vmatmul.bf16.gmra.mxu1 %v9822_v6 }
 0x564   :  { %3828 = vmatpush.bf16.msra.mxu1 %v14065_v4 }
 0x567   :  { %v2951_v14 = vpop.f32.mrf.mxu0  ;;  %v3194_v54 = vpop.f32.mrf.mxu1 }
 0x568   :  { %v14183_v24 = vadd.f32 %v2951_v14, %v14013_v13  ;;  %3829 = vmatpush.bf16.msra.mxu1 %v14073_v33 }
 0x56a   :  { %3355 = vmatmul.bf16.gmra.mxu0 %v9786_v35  ;;  %v9831_v35 = vld [vmem:[#allocation2 + $0x5d8] sm:$0xf0] }
 0x56b   :  { %3326 = vmatmul.bf16.gmra.mxu3 %v9846_v29  ;;  %v9834_v17 = vor.u32 %v11977_v42, %v9831_v35 }
 0x56c   :  { %3830 = vmatpush.bf16.msra.mxu1 %v14079_v63 }
 0x56e   :  { %3277 = vmatmul.bf16.gmra.mxu2 %v9842_v46 }
 0x56f   :  { %v2953_v58 = vpop.f32.mrf.mxu0  ;;  %v3243_v60 = vpop.f32.mrf.mxu2 }
 0x570   :  { %v14186_v31 = vadd.f32 %v2953_v58, %v14016_v26  ;;  %v9838_v26 = vor.u32 %v11982_v56, %v9837_v45  ;;  %v3196_v11 = vpop.f32.mrf.mxu1  ;;  %v3244_v62 = vadd.f32 %v3243_v60, %v3194_v54 }
 0x572   :  { %3228 = vmatmul.bf16.gmra.mxu1 %v9838_v26 }
 0x577   :  { %v2956_v13 = vpop.f32.mrf.mxu0  ;;  %v3245_v18 = vpop.f32.mrf.mxu2 }
 0x578   :  { %v14189_v23 = vadd.f32 %v2956_v13, %v14019_v44  ;;  %v9818_v44 = vor.u32 %v11973_v38, %v9815_v61  ;;  %v3246_v46 = vadd.f32 %v3245_v18, %v3196_v11 }
 0x57a   :  { %3360 = vmatmul.bf16.gmra.mxu0 %v9802_v34 }
 0x57b   :  { %v3292_v51 = vpop.f32.mrf.mxu3 }
 0x57c   :  { %v3293_v13 = vadd.f32 %v3292_v51, %v3244_v62  ;;  %v14233_v51 = vld [vmem:[%s14874_s22 + $0xa8] sm:$0xff] }
 0x57f   :  { %v14191_v40 = vpop.f32.mrf.mxu0 }
 0x581   :  { %v3199_v41 = vpop.f32.mrf.mxu1 }
 0x583   :  { %v3294_v12 = vpop.f32.mrf.mxu3 }
 0x584   :  { %v3295_v15 = vadd.f32 %v3294_v12, %v3246_v46 }
 0x587   :  { %v2961_v32 = vpop.f32.mrf.mxu0 }
 0x588   :  { %v14197_v10 = vadd.f32 %v2961_v32, %v14031_v48  ;;  %v14227_v32 = vld [vmem:[%s14874_s22 + $0xb0] sm:$0xff] }
 0x589   :  { %v3201_v58 = vpop.f32.mrf.mxu1 }
 0x58a   :  { %3365 = vmatmul.bf16.gmra.mxu0 %v9818_v44 }
 0x58c   :  { %v3248_v30 = vpop.f32.mrf.mxu2 }
 0x58d   :  { %v3249_v44 = vadd.f32 %v3248_v30, %v3199_v41 }
 0x58f   :  { %v14200_v39 = vpop.f32.mrf.mxu0 }
 0x591   :  { %v3204_v34 = vpop.f32.mrf.mxu1 }
 0x594   :  { %v3250_v33 = vpop.f32.mrf.mxu2 }
 0x595   :  { %v3251_v54 = vadd.f32 %v3250_v33, %v3201_v58 }
 0x597   :  { %v2966_v14 = vpop.f32.mrf.mxu0 }
 0x598   :  { %v14206_v48 = vadd.f32 %v2966_v14, %v14060_v43  ;;  %v3297_v43 = vpop.f32.mrf.mxu3 }
 0x599   :  { %v3206_v26 = vpop.f32.mrf.mxu1  ;;  %v3298_v60 = vadd.f32 %v3297_v43, %v3249_v44 }
 0x59a   :  { %3370 = vmatmul.bf16.gmra.mxu0 %v9834_v17 }
 0x59c   :  { %v3253_v63 = vpop.f32.mrf.mxu2 }
 0x59f   :  { %v14209_v50 = vpop.f32.mrf.mxu0 }
 0x5a0   :  { %v3299_v8 = vpop.f32.mrf.mxu3 }
 0x5a1   :  { %v3209_v42 = vpop.f32.mrf.mxu1  ;;  %v3300_v17 = vadd.f32 %v3299_v8, %v3251_v54 }
 0x5a4   :  { %v3255_v25 = vpop.f32.mrf.mxu2 }
 0x5a5   :  { %v3256_v43 = vadd.f32 %v3255_v25, %v3206_v26 }
 0x5a7   :  { %v2971_v6 = vpop.f32.mrf.mxu0 }
 0x5a8   :  { %v14213_v4 = vadd.f32 %v2971_v6, %v14083_v57  ;;  %v3302_v22 = vpop.f32.mrf.mxu3  ;;  %v3254_v6 = vadd.f32 %v3253_v63, %v3204_v34 }
 0x5a9   :  { %v3211_v41 = vpop.f32.mrf.mxu1 }
 0x5aa   :  { %3375 = vmatmul.bf16.gmra.mxu0 %v9850_v3  ;;  %v3303_v33 = vadd.f32 %v3302_v22, %v3254_v6 }
 0x5ac   :  { %v3258_v35 = vpop.f32.mrf.mxu2 }
 0x5ad   :  { %v3259_v63 = vadd.f32 %v3258_v35, %v3209_v42 }
 0x5af   :  { %v14215_v9 = vpop.f32.mrf.mxu0 }
 0x5b0   :  { %v3304_v61 = vpop.f32.mrf.mxu3 }
 0x5b1   :  { %v3305_v8 = vadd.f32 %v3304_v61, %v3256_v43 }
 0x5b4   :  { %v3260_v3 = vpop.f32.mrf.mxu2 }
 0x5b7   :  { %v3341_v20 = vpop.f32.mrf.mxu0 }
 0x5b8   :  { %v3342_v45 = vadd.f32 %v3341_v20, %v3293_v13  ;;  %v3307_v12 = vpop.f32.mrf.mxu3  ;;  %v3214_v13 = vpop.f32.mrf.mxu1 }
 0x5b9   :  { %v3308_v22 = vadd.f32 %v3307_v12, %v3259_v63 }
 0x5bf   :  { %v3343_v29 = vpop.f32.mrf.mxu0 }
 0x5c0   :  { %v3344_v56 = vadd.f32 %v3343_v29, %v3295_v15  ;;  %v3309_v58 = vpop.f32.mrf.mxu3 }
 0x5c1   :  { %v3263_v15 = vpop.f32.mrf.mxu2 }
 0x5c2   :  { %v3381_v57 = vpack.c.bf16 %v3344_v56, %v3342_v45  ;;  %v3216_v45 = vpop.f32.mrf.mxu1 }
 0x5c4   :  { %9851 = vmatmul.msk.bf16.vlgmr.msrb.gmra.mxu1 %vm1365_vm1, %v3381_v57 }
 0x5c5   :  { %4265 = vmatpush.bf16.msrb.mxu1 %v14221_v19 }
 0x5c7   :  { %v3346_v38 = vpop.f32.mrf.mxu0 }
 0x5c8   :  { %v3347_v11 = vadd.f32 %v3346_v38, %v3298_v60  ;;  %v3312_v29 = vpop.f32.mrf.mxu3  ;;  %v3264_v60 = vadd.f32 %v3263_v15, %v3214_v13  ;;  %v9861_v15 = vld [vmem:[#allocation2 + $0x600] sm:$0xf] }
 0x5c9   :  { %4266 = vmatpush.bf16.msrb.mxu1 %v14227_v32  ;;  %v3265_v56 = vpop.f32.mrf.mxu2 }
 0x5ca   :  { %v3219_v44 = vpop.f32.mrf.mxu1 }
 0x5cd   :  { %4267 = vmatpush.bf16.msrb.mxu1 %v14233_v51 }
 0x5cf   :  { %v3348_v14 = vpop.f32.mrf.mxu0 }
 0x5d0   :  { %v3349_v18 = vadd.f32 %v3348_v14, %v3300_v17  ;;  %v3314_v26 = vpop.f32.mrf.mxu3  ;;  %v3266_v14 = vadd.f32 %v3265_v56, %v3216_v45  ;;  %v9863_v45 = vld [vmem:[#allocation2 + $0x610] sm:$0xf0] }
 0x5d1   :  { %4268 = vmatpush.bf16.msrb.mxu1 %v14239_v53 }
 0x5d2   :  { %v3382_v59 = vpack.c.bf16 %v3349_v18, %v3347_v11  ;;  %v3313_v11 = vadd.f32 %v3312_v29, %v3264_v60  ;;  %v3315_v42 = vadd.f32 %v3314_v26, %v3266_v14  ;;  %v3221_v35 = vpop.f32.mrf.mxu1  ;;  %v11984_v29 = vld [vmem:[#allocation2 + $0x604] sm:$0xf]  ;;  %v9869_v26 = vld [vmem:[#allocation2 + $0x608] sm:$0xf] }
 0x5d3   :  { %v9866_v56 = vor.u32 %v11984_v29, %v9863_v45  ;;  %v11991_v29 = vld [vmem:[#allocation2 + $0x634] sm:$0xf0] }
 0x5d4   :  { %9852 = vmatmul.msk.bf16.gmra.mxu1 %vm1365_vm1, %v3382_v59 }
 0x5d5   :  { %4269 = vmatpush.bf16.msrb.mxu1 %v14096_v7  ;;  %3733 = vmatmul.bf16.vlgmr.msrb.gmra.mxu3 %v9866_v56 }
 0x5d7   :  { %v3351_v30 = vpop.f32.mrf.mxu0 }
 0x5d8   :  { %v3352_v62 = vadd.f32 %v3351_v30, %v3303_v33  ;;  %v3317_v17 = vpop.f32.mrf.mxu3 }
 0x5d9   :  { %4270 = vmatpush.bf16.msrb.mxu1 %v14102_v28  ;;  %v3261_v28 = vadd.f32 %v3260_v3, %v3211_v41 }
 0x5db   :  { %v3310_v57 = vadd.f32 %v3309_v58, %v3261_v28 }
 0x5dd   :  { %4271 = vmatpush.bf16.msrb.mxu1 %v14108_v0 }
 0x5df   :  { %v3353_v20 = vpop.f32.mrf.mxu0  ;;  %v3224_v58 = vpop.f32.mrf.mxu1 }
 0x5e0   :  { %v3354_v46 = vadd.f32 %v3353_v20, %v3305_v8  ;;  %v3319_v3 = vpop.f32.mrf.mxu3 }
 0x5e1   :  { %4272 = vmatpush.bf16.msrb.mxu1 %v14114_v55  ;;  %v3268_v55 = vpop.f32.mrf.mxu2 }
 0x5e2   :  { %v3383_v7 = vpack.c.bf16 %v3354_v46, %v3352_v62  ;;  %v3269_v43 = vadd.f32 %v3268_v55, %v3219_v44 }
 0x5e4   :  { %9853 = vmatmul.msk.bf16.gmra.mxu1 %vm1365_vm1, %v3383_v7  ;;  %v3318_v20 = vadd.f32 %v3317_v17, %v3269_v43  ;;  %v11986_v7 = vld [vmem:[#allocation2 + $0x60c] sm:$0xf0]  ;;  %v9879_v43 = vld [vmem:[#allocation2 + $0x630] sm:$0xf0] }
 0x5e5   :  { %v9862_v28 = vor.u32 %v11986_v7, %v9861_v15  ;;  %v9885_v7 = vld [vmem:[#allocation2 + $0x628] sm:$0xf] }
 0x5e7   :  { %v3356_v34 = vpop.f32.mrf.mxu0  ;;  %3684 = vmatmul.bf16.vlgmr.msrb.gmra.mxu2 %v9862_v28  ;;  %v12546_v28 = vld [vmem:[%s14874_s22 + $0x18] sm:$0xff] }
 0x5e8   :  { %v3357_v25 = vadd.f32 %v3356_v34, %v3308_v22  ;;  %v3322_v62 = vpop.f32.mrf.mxu3 }
 0x5e9   :  { %v3270_v59 = vpop.f32.mrf.mxu2 }
 0x5ea   :  { %v3271_v8 = vadd.f32 %v3270_v59, %v3221_v35  ;;  %v9877_v59 = vld [vmem:[#allocation2 + $0x620] sm:$0xf] }
 0x5ec   :  { %v3320_v46 = vadd.f32 %v3319_v3, %v3271_v8 }
 0x5ef   :  { %v3358_v0 = vpop.f32.mrf.mxu0 }
 0x5f0   :  { %v3359_v38 = vadd.f32 %v3358_v0, %v3310_v57  ;;  %v3226_v57 = vpop.f32.mrf.mxu1 }
 0x5f1   :  { %v3273_v33 = vpop.f32.mrf.mxu2 }
 0x5f2   :  { %v3384_v61 = vpack.c.bf16 %v3359_v38, %v3357_v25  ;;  %v11987_v25 = vld [vmem:[#allocation2 + $0x614] sm:$0xf0]  ;;  %v3274_v55 = vadd.f32 %v3273_v33, %v3224_v58  ;;  %v12544_v58 = vld [vmem:[%s14874_s22 + $0x28] sm:$0xff] }
 0x5f3   :  { %v9870_v38 = vor.u32 %v11987_v25, %v9869_v26  ;;  %v9893_v25 = vld [vmem:[#allocation2 + $0x640] sm:$0xf] }
 0x5f4   :  { %9854 = vmatmul.msk.bf16.gmra.mxu1 %vm1365_vm1, %v3384_v61  ;;  %v3324_v61 = vpop.f32.mrf.mxu3  ;;  %v3323_v17 = vadd.f32 %v3322_v62, %v3274_v55  ;;  %v12545_v62 = vld [vmem:[%s14874_s22 + $0x20] sm:$0xff] }
 0x5f5   :  { %3782 = vmatmul.bf16.vlgmr.msra.gmra.mxu0 %v9870_v38  ;;  %v11994_v38 = vld [vmem:[#allocation2 + $0x64c] sm:$0xf0] }
 0x5f7   :  { %v3361_v54 = vpop.f32.mrf.mxu0 }
 0x5f8   :  { %v3362_v12 = vadd.f32 %v3361_v54, %v3313_v11  ;;  %v12542_v54 = vld [vmem:[%s14874_s22 + $0x38] sm:$0xff]  ;;  %v3229_v14 = vpop.f32.mrf.mxu1  ;;  %v12543_v11 = vld [vmem:[%s14874_s22 + $0x30] sm:$0xff] }
 0x5f9   :  { %v3275_v0 = vpop.f32.mrf.mxu2  ;;  %4658 = vmatpush.bf16.msra.mxu0 %v12542_v54  ;;  %v9894_v54 = vor.u32 %v11994_v38, %v9893_v25  ;;  %v9933_v38 = vld [vmem:[#allocation2 + $0x688] sm:$0xf] }
 0x5fa   :  { %v3276_v60 = vadd.f32 %v3275_v0, %v3226_v57  ;;  %v12547_v57 = vld [vmem:[%s14874_s22 + $0x10] sm:$0xff] }
 0x5fc   :  { %v3325_v35 = vadd.f32 %v3324_v61, %v3276_v60  ;;  %v3327_v33 = vpop.f32.mrf.mxu3  ;;  %v11992_v61 = vld [vmem:[#allocation2 + $0x644] sm:$0xf]  ;;  %v9895_v60 = vld [vmem:[#allocation2 + $0x650] sm:$0xf0] }
 0x5fd   :  { %4659 = vmatpush.bf16.msra.mxu0 %v12543_v11 }
 0x5ff   :  { %v3363_v18 = vpop.f32.mrf.mxu0 }
 0x600   :  { %v3364_v41 = vadd.f32 %v3363_v18, %v3315_v42 }
 0x601   :  { %v3278_v42 = vpop.f32.mrf.mxu2  ;;  %4660 = vmatpush.bf16.msra.mxu0 %v12544_v58 }
 0x602   :  { %v3385_v30 = vpack.c.bf16 %v3364_v41, %v3362_v12  ;;  %v11990_v12 = vld [vmem:[#allocation2 + $0x62c] sm:$0xf0]  ;;  %v11988_v41 = vld [vmem:[#allocation2 + $0x624] sm:$0xf] }
 0x603   :  { %v9882_v8 = vor.u32 %v11988_v41, %v9879_v43  ;;  %v9871_v41 = vld [vmem:[#allocation2 + $0x618] sm:$0xf0] }
 0x604   :  { %9855 = vmatmul.msk.bf16.gmra.mxu1 %vm1365_vm1, %v3385_v30  ;;  %v3329_v56 = vpop.f32.mrf.mxu3 }
 0x605   :  { %3738 = vmatmul.bf16.gmra.mxu3 %v9882_v8  ;;  %4661 = vmatpush.bf16.msra.mxu0 %v12545_v62 }
 0x607   :  { %v3366_v6 = vpop.f32.mrf.mxu0 }
 0x608   :  { %v3367_v34 = vadd.f32 %v3366_v6, %v3318_v20  ;;  %v9878_v6 = vor.u32 %v11990_v12, %v9877_v59  ;;  %v11985_v12 = vld [vmem:[#allocation2 + $0x60c] sm:$0xf] }
 0x609   :  { %4662 = vmatpush.bf16.msra.mxu0 %v12546_v28  ;;  %v9874_v43 = vor.u32 %v11985_v12, %v9871_v41  ;;  %v9925_v28 = vld [vmem:[#allocation2 + $0x680] sm:$0xf]  ;;  %v12007_v41 = vld [vmem:[#allocation2 + $0x6b4] sm:$0xf0] }
 0x60a   :  { %3689 = vmatmul.bf16.gmra.mxu2 %v9878_v6  ;;  %v11996_v6 = vld [vmem:[#allocation2 + $0x664] sm:$0xf] }
 0x60d   :  { %4663 = vmatpush.bf16.msra.mxu0 %v12547_v57 }
 0x60f   :  { %v3368_v13 = vpop.f32.mrf.mxu0 }
 0x610   :  { %v3369_v63 = vadd.f32 %v3368_v13, %v3320_v46  ;;  %v3231_v46 = vpop.f32.mrf.mxu1  ;;  %v3280_v13 = vpop.f32.mrf.mxu2 }
 0x611   :  { %v3281_v45 = vadd.f32 %v3280_v13, %v3231_v46  ;;  %v12550_v46 = vld [vmem:[%s14874_s22 + $0x78] sm:$0xff]  ;;  %v9917_v13 = vld [vmem:[#allocation2 + $0x668] sm:$0xf] }
 0x612   :  { %v3386_v22 = vpack.c.bf16 %v3369_v63, %v3367_v34  ;;  %v3279_v34 = vadd.f32 %v3278_v42, %v3229_v14  ;;  %v9886_v63 = vor.u32 %v11991_v29, %v9885_v7  ;;  %v9898_v14 = vor.u32 %v11992_v61, %v9895_v60  ;;  %v12549_v42 = vld [vmem:[%s14874_s22] sm:$0xff]  ;;  %v12003_v61 = vld [vmem:[#allocation2 + $0x694] sm:$0xf0]  ;;  %v9903_v60 = vld [vmem:[#allocation2 + $0x658] sm:$0xf0] }
 0x613   :  { %v3330_v0 = vadd.f32 %v3329_v56, %v3281_v45  ;;  %v12002_v45 = vld [vmem:[#allocation2 + $0x68c] sm:$0xf0]  ;;  %v12000_v56 = vld [vmem:[#allocation2 + $0x684] sm:$0xf] }
 0x614   :  { %9856 = vmatmul.msk.bf16.gmra.mxu1 %vm1365_vm1, %v3386_v22  ;;  %3787 = vmatmul.bf16.gmra.mxu0 %v9886_v63  ;;  %v3328_v22 = vadd.f32 %v3327_v33, %v3279_v34  ;;  %v9911_v33 = vld [vmem:[#allocation2 + $0x670] sm:$0xf0]  ;;  %v9887_v63 = vld [vmem:[#allocation2 + $0x638] sm:$0xf0]  ;;  %v9926_v57 = vor.u32 %v12002_v45, %v9925_v28  ;;  %v12001_v28 = vld [vmem:[#allocation2 + $0x68c] sm:$0xf] }
 0x615   :  { %3743 = vmatmul.bf16.gmra.mxu3 %v9898_v14  ;;  %v12006_v14 = vld [vmem:[#allocation2 + $0x6ac] sm:$0xf0]  ;;  %v9935_v45 = vld [vmem:[#allocation2 + $0x698] sm:$0xf0] }
 0x617   :  { %v3371_v44 = vpop.f32.mrf.mxu0 }
 0x618   :  { %v3372_v30 = vadd.f32 %v3371_v44, %v3323_v17  ;;  %v12548_v17 = vld [vmem:[%s14874_s22 + $0x8] sm:$0xff] }
 0x619   :  { %4664 = vmatpush.bf16.msra.mxu0 %v12548_v17  ;;  %v9941_v17 = vld [vmem:[#allocation2 + $0x6a0] sm:$0xf] }
 0x61a   :  { %3694 = vmatmul.bf16.gmra.mxu2 %v9894_v54 }
 0x61d   :  { %4665 = vmatpush.bf16.msra.mxu0 %v12549_v42 }
 0x61f   :  { %v3373_v18 = vpop.f32.mrf.mxu0 }
 0x620   :  { %v3374_v3 = vadd.f32 %v3373_v18, %v3325_v35  ;;  %v9901_v35 = vld [vmem:[#allocation2 + $0x648] sm:$0xf]  ;;  %v11995_v18 = vld [vmem:[#allocation2 + $0x654] sm:$0xf0] }
 0x621   :  { %v9902_v59 = vor.u32 %v11995_v18, %v9901_v35  ;;  %v9942_v35 = vor.u32 %v12006_v14, %v9941_v17  ;;  %v9943_v18 = vld [vmem:[#allocation2 + $0x6b0] sm:$0xf0]  ;;  %v9951_v17 = vld [vmem:[#allocation2 + $0x6b8] sm:$0xf0] }
 0x622   :  { %v3387_v20 = vpack.c.bf16 %v3374_v3, %v3372_v30  ;;  %v9909_v30 = vld [vmem:[#allocation2 + $0x660] sm:$0xf]  ;;  %v11998_v3 = vld [vmem:[#allocation2 + $0x66c] sm:$0xf0] }
 0x623   :  { %v9910_v58 = vor.u32 %v11998_v3, %v9909_v30 }
 0x624   :  { %9857 = vmatmul.msk.bf16.gmra.mxu1 %vm1365_vm1, %v3387_v20  ;;  %3792 = vmatmul.bf16.gmra.mxu0 %v9902_v59  ;;  %v9914_v20 = vor.u32 %v11996_v6, %v9911_v33  ;;  %v11997_v6 = vld [vmem:[#allocation2 + $0x66c] sm:$0xf]  ;;  %v12010_v33 = vld [vmem:[#allocation2 + $0x6cc] sm:$0xf0] }
 0x626   :  { %3748 = vmatmul.bf16.gmra.mxu3 %v9914_v20 }
 0x627   :  { %v3376_v15 = vpop.f32.mrf.mxu0 }
 0x628   :  { %v3377_v44 = vadd.f32 %v3376_v15, %v3328_v22  ;;  %v11999_v15 = vld [vmem:[#allocation2 + $0x674] sm:$0xf0] }
 0x629   :  { %v9918_v7 = vor.u32 %v11999_v15, %v9917_v13 }
 0x62a   :  { %3699 = vmatmul.bf16.gmra.mxu2 %v9910_v58  ;;  %v9957_v58 = vld [vmem:[#allocation2 + $0x6c0] sm:$0xf] }
 0x62b   :  { %v9958_v20 = vor.u32 %v12010_v33, %v9957_v58  ;;  %v14359_v33 = vld [vmem:[%s14874_s22 + $0xd0] sm:$0xff] }
 0x62f   :  { %v3378_v26 = vpop.f32.mrf.mxu0 }
 0x630   :  { %v3379_v55 = vadd.f32 %v3378_v26, %v3330_v0  ;;  %v9927_v0 = vld [vmem:[#allocation2 + $0x690] sm:$0xf0] }
 0x631   :  { %v9930_v25 = vor.u32 %v12000_v56, %v9927_v0  ;;  %v9973_v56 = vld [vmem:[#allocation2 + $0x6e0] sm:$0xf]  ;;  %v9938_v0 = vor.u32 %v12001_v28, %v9935_v45 }
 0x632   :  { %v3388_v11 = vpack.c.bf16 %v3379_v55, %v3377_v44  ;;  %v9934_v44 = vor.u32 %v12003_v61, %v9933_v38  ;;  %v9981_v38 = vld [vmem:[#allocation2 + $0x6e8] sm:$0xf] }
 0x634   :  { %9858 = vmatmul.msk.bf16.gmra.mxu1 %vm1365_vm1, %v3388_v11  ;;  %3797 = vmatmul.bf16.gmra.mxu0 %v9918_v7  ;;  %v12004_v11 = vld [vmem:[#allocation2 + $0x6a4] sm:$0xf]  ;;  %v9965_v7 = vld [vmem:[#allocation2 + $0x6c8] sm:$0xf] }
 0x635   :  { %v9946_v12 = vor.u32 %v12004_v11, %v9943_v18  ;;  %v14339_v18 = vld [vmem:[%s14874_s22 + $0xe8] sm:$0xff] }
 0x636   :  { %3753 = vmatmul.bf16.gmra.mxu3 %v9930_v25 }
 0x63a   :  { %3704 = vmatmul.bf16.gmra.mxu2 %v9926_v57  ;;  %v12012_v57 = vld [vmem:[#allocation2 + $0x6e4] sm:$0xf] }
 0x641   :  { %v3427_v8 = vpop.f32.mrf.mxu1 }
 0x642   :  { %v14278_v62 = vadd.f32 %v3427_v8, %v14132_v5  ;;  %v11989_v5 = vld [vmem:[#allocation2 + $0x62c] sm:$0xf]  ;;  %v12008_v8 = vld [vmem:[#allocation2 + $0x6c4] sm:$0xf] }
 0x643   :  { %v9890_v22 = vor.u32 %v11989_v5, %v9887_v63 }
 0x644   :  { %3831 = vmatmul.bf16.vlgmr.msra.gmra.mxu1 %v9874_v43  ;;  %3802 = vmatmul.bf16.gmra.mxu0 %v9934_v44  ;;  %v9919_v43 = vld [vmem:[#allocation2 + $0x678] sm:$0xf0] }
 0x645   :  { %4707 = vmatpush.bf16.msra.mxu1 %v12550_v46 }
 0x646   :  { %3758 = vmatmul.bf16.gmra.mxu3 %v9946_v12  ;;  %v14347_v12 = vld [vmem:[%s14874_s22 + $0xe0] sm:$0xff] }
 0x649   :  { %v3429_v29 = vpop.f32.mrf.mxu1  ;;  %4708 = vmatpush.bf16.msra.mxu1 %v14138_v52  ;;  %v12551_v52 = vld [vmem:[%s14874_s22 + $0x60] sm:$0xff] }
 0x64a   :  { %v14285_v34 = vadd.f32 %v3429_v29, %v14142_v37  ;;  %3709 = vmatmul.bf16.gmra.mxu2 %v9942_v35 }
 0x64d   :  { %4709 = vmatpush.bf16.msra.mxu1 %v14147_v27  ;;  %v12552_v27 = vld [vmem:[%s14874_s22 + $0x58] sm:$0xff] }
 0x651   :  { %v3432_v26 = vpop.f32.mrf.mxu1  ;;  %4710 = vmatpush.bf16.msra.mxu1 %v12551_v52 }
 0x652   :  { %v14292_v37 = vadd.f32 %v3432_v26, %v14152_v49  ;;  %v11993_v49 = vld [vmem:[#allocation2 + $0x64c] sm:$0xf] }
 0x653   :  { %v9906_v42 = vor.u32 %v11993_v49, %v9903_v60  ;;  %v12005_v60 = vld [vmem:[#allocation2 + $0x6ac] sm:$0xf] }
 0x654   :  { %3836 = vmatmul.bf16.gmra.mxu1 %v9890_v22  ;;  %v12014_v22 = vld [vmem:[#allocation2 + $0x6ec] sm:$0xf0]  ;;  %v9954_v14 = vor.u32 %v12005_v60, %v9951_v17 }
 0x655   :  { %4711 = vmatpush.bf16.msra.mxu1 %v12552_v27  ;;  %v9974_v26 = vor.u32 %v12014_v22, %v9973_v56 }
 0x659   :  { %v3434_v55 = vpop.f32.mrf.mxu1  ;;  %4712 = vmatpush.bf16.msra.mxu1 %v14158_v16 }
 0x65a   :  { %v14299_v54 = vadd.f32 %v3434_v55, %v14162_v47  ;;  %v9949_v47 = vld [vmem:[#allocation2 + $0x6a8] sm:$0xf]  ;;  %3714 = vmatmul.bf16.gmra.mxu2 %v9958_v20  ;;  %v3881_v55 = vld [vmem:[#allocation4 + $0xc] sm:$0x3] }
 0x65b   :  { %v9950_v30 = vor.u32 %v12007_v41, %v9949_v47  ;;  %v3907_v49 = vsel %vm1390_vm0, %v3881_v55, 0  ;;  %v12009_v41 = vld [vmem:[#allocation2 + $0x6cc] sm:$0xf] }
 0x65c   :  { %3916 = vmatpush.bf16.msra.mxu2 %v3907_v49 }
 0x65d   :  { %4713 = vmatpush.bf16.msra.mxu1 %v14167_v1  ;;  %3807 = vmatmul.bf16.gmra.mxu0 %v9950_v30  ;;  %v9967_v30 = vld [vmem:[#allocation2 + $0x6d8] sm:$0xf0] }
 0x661   :  { %v3437_v59 = vpop.f32.mrf.mxu1  ;;  %4714 = vmatpush.bf16.msra.mxu1 %v14173_v2  ;;  %v9922_v2 = vor.u32 %v11997_v6, %v9919_v43  ;;  %v9970_v43 = vor.u32 %v12009_v41, %v9967_v30 }
 0x662   :  { %v14304_v16 = vadd.f32 %v3437_v59, %v14177_v36  ;;  %v9959_v36 = vld [vmem:[#allocation2 + $0x6d0] sm:$0xf0] }
 0x663   :  { %v9962_v13 = vor.u32 %v12008_v8, %v9959_v36  ;;  %v14368_v36 = vld [vmem:[%s14874_s22 + $0xc8] sm:$0xff] }
 0x664   :  { %3841 = vmatmul.bf16.gmra.mxu1 %v9906_v42  ;;  %v14330_v42 = vld [vmem:[%s14874_s22 + $0xf0] sm:$0xff] }
 0x665   :  { %3763 = vmatmul.bf16.gmra.mxu3 %v9962_v13 }
 0x669   :  { %v3439_v1 = vpop.f32.mrf.mxu1 }
 0x66a   :  { %v14307_v3 = vadd.f32 %v3439_v1, %v14180_v21  ;;  %v12011_v21 = vld [vmem:[#allocation2 + $0x6d4] sm:$0xf0]  ;;  %3719 = vmatmul.bf16.gmra.mxu2 %v9974_v26  ;;  %v3685_v47 = vpop.f32.mrf.mxu2 }
 0x66b   :  { %v9966_v29 = vor.u32 %v12011_v21, %v9965_v7  ;;  %v14353_v1 = vld [vmem:[%s14874_s22 + $0xd8] sm:$0xff]  ;;  %v14376_v7 = vld [vmem:[%s14874_s22 + $0xc0] sm:$0xff] }
 0x66c   :  { %v9983_v21 = vld [vmem:[#allocation2 + $0x6f8] sm:$0xf0] }
 0x66d   :  { %3812 = vmatmul.bf16.gmra.mxu0 %v9966_v29 }
 0x671   :  { %v3442_v46 = vpop.f32.mrf.mxu1 }
 0x672   :  { %v14310_v15 = vadd.f32 %v3442_v46, %v14183_v24  ;;  %v9975_v24 = vld [vmem:[#allocation2 + $0x6f0] sm:$0xf0]  ;;  %v3783_v6 = vpop.f32.mrf.mxu0 }
 0x673   :  { %v9978_v52 = vor.u32 %v12012_v57, %v9975_v24 }
 0x674   :  { %3846 = vmatmul.bf16.gmra.mxu1 %v9922_v2  ;;  %v3687_v2 = vpop.f32.mrf.mxu2 }
 0x675   :  { %3768 = vmatmul.bf16.gmra.mxu3 %v9978_v52 }
 0x679   :  { %v3444_v5 = vpop.f32.mrf.mxu1 }
 0x67a   :  { %v14313_v63 = vadd.f32 %v3444_v5, %v14186_v31  ;;  %v12015_v31 = vld [vmem:[#allocation2 + $0x6f4] sm:$0xf0]  ;;  %v3785_v13 = vpop.f32.mrf.mxu0 }
 0x67b   :  { %v9982_v61 = vor.u32 %v12015_v31, %v9981_v38 }
 0x67d   :  { %3817 = vmatmul.bf16.gmra.mxu0 %v9982_v61 }
 0x681   :  { %v3447_v25 = vpop.f32.mrf.mxu1 }
 0x682   :  { %v14316_v27 = vadd.f32 %v3447_v25, %v14189_v23  ;;  %v14324_v23 = vld [vmem:[%s14874_s22 + $0xf8] sm:$0xff] }
 0x683   :  { %4314 = vmatpush.bf16.msrb.mxu2 %v14324_v23 }
 0x684   :  { %3851 = vmatmul.bf16.gmra.mxu1 %v9938_v0 }
 0x687   :  { %4315 = vmatpush.bf16.msrb.mxu2 %v14330_v42 }
 0x689   :  { %v14318_v44 = vpop.f32.mrf.mxu1 }
 0x68b   :  { %4316 = vmatpush.bf16.msrb.mxu2 %v14339_v18 }
 0x68d   :  { %v3690_v29 = vpop.f32.mrf.mxu2 }
 0x68f   :  { %4317 = vmatpush.bf16.msrb.mxu2 %v14347_v12 }
 0x691   :  { %v3452_v11 = vpop.f32.mrf.mxu1  ;;  %v3788_v22 = vpop.f32.mrf.mxu0 }
 0x692   :  { %v14334_v35 = vadd.f32 %v3452_v11, %v14197_v10  ;;  %v3734_v10 = vpop.f32.mrf.mxu3 }
 0x693   :  { %4318 = vmatpush.bf16.msrb.mxu2 %v14353_v1  ;;  %v3735_v52 = vadd.f32 %v3734_v10, %v3685_v47 }
 0x694   :  { %3856 = vmatmul.bf16.gmra.mxu1 %v9954_v14 }
 0x695   :  { %v3692_v57 = vpop.f32.mrf.mxu2  ;;  %v3784_v55 = vadd.f32 %v3783_v6, %v3735_v52 }
 0x697   :  { %4319 = vmatpush.bf16.msrb.mxu2 %v14359_v33 }
 0x699   :  { %v14342_v59 = vpop.f32.mrf.mxu1  ;;  %v3790_v24 = vpop.f32.mrf.mxu0 }
 0x69a   :  { %v3736_v20 = vpop.f32.mrf.mxu3 }
 0x69b   :  { %4320 = vmatpush.bf16.msrb.mxu2 %v14368_v36  ;;  %v3737_v61 = vadd.f32 %v3736_v20, %v3687_v2 }
 0x69d   :  { %v3695_v38 = vpop.f32.mrf.mxu2  ;;  %v3786_v60 = vadd.f32 %v3785_v13, %v3737_v61 }
 0x69f   :  { %4321 = vmatpush.bf16.msrb.mxu2 %v14376_v7 }
 0x6a1   :  { %v3457_v58 = vpop.f32.mrf.mxu1  ;;  %v3793_v49 = vpop.f32.mrf.mxu0 }
 0x6a2   :  { %v14363_v8 = vadd.f32 %v3457_v58, %v14206_v48  ;;  %v12013_v48 = vld [vmem:[#allocation2 + $0x6ec] sm:$0xf]  ;;  %v3739_v5 = vpop.f32.mrf.mxu3 }
 0x6a3   :  { %v9986_v28 = vor.u32 %v12013_v48, %v9983_v21  ;;  %v3740_v48 = vadd.f32 %v3739_v5, %v3690_v29 }
 0x6a4   :  { %3861 = vmatmul.bf16.gmra.mxu1 %v9970_v43 }
 0x6a5   :  { %v3697_v41 = vpop.f32.mrf.mxu2  ;;  %v3789_v10 = vadd.f32 %v3788_v22, %v3740_v48 }
 0x6a9   :  { %v14371_v46 = vpop.f32.mrf.mxu1  ;;  %v3795_v58 = vpop.f32.mrf.mxu0 }
 0x6aa   :  { %v3741_v26 = vpop.f32.mrf.mxu3 }
 0x6ab   :  { %v3742_v47 = vadd.f32 %v3741_v26, %v3692_v57 }
 0x6ad   :  { %v3700_v6 = vpop.f32.mrf.mxu2  ;;  %v3791_v20 = vadd.f32 %v3790_v24, %v3742_v47  ;;  %v12563_v24 = vld [vmem:[%s14874_s22 + $0x88] sm:$0xff] }
 0x6b1   :  { %v3462_v45 = vpop.f32.mrf.mxu1 }
 0x6b2   :  { %v14380_v56 = vadd.f32 %v3462_v45, %v14213_v4  ;;  %v3744_v31 = vpop.f32.mrf.mxu3  ;;  %v3798_v45 = vpop.f32.mrf.mxu0 }
 0x6b3   :  { %v3745_v22 = vadd.f32 %v3744_v31, %v3695_v38  ;;  %v12564_v38 = vld [vmem:[%s14874_s22 + $0x80] sm:$0xff] }
 0x6b4   :  { %3866 = vmatmul.bf16.gmra.mxu1 %v9986_v28 }
 0x6b9   :  { %v14382_v0 = vpop.f32.mrf.mxu1 }
 0x6ba   :  { %v3746_v30 = vpop.f32.mrf.mxu3  ;;  %v3800_v26 = vpop.f32.mrf.mxu0 }
 0x6bb   :  { %v3747_v57 = vadd.f32 %v3746_v30, %v3697_v41 }
 0x6bd   :  { %v3796_v52 = vadd.f32 %v3795_v58, %v3747_v57 }
 0x6c1   :  { %v3832_v25 = vpop.f32.mrf.mxu1 }
 0x6c2   :  { %v3833_v14 = vadd.f32 %v3832_v25, %v3784_v55  ;;  %v3749_v2 = vpop.f32.mrf.mxu3 }
 0x6c9   :  { %v3834_v17 = vpop.f32.mrf.mxu1 }
 0x6ca   :  { %v3835_v11 = vadd.f32 %v3834_v17, %v3786_v60  ;;  %v3751_v5 = vpop.f32.mrf.mxu3 }
 0x6cc   :  { %v3872_v4 = vpack.c.bf16 %v3835_v11, %v3833_v14 }
 0x6ce   :  { %9987 = vmatmul.msk.bf16.vlgmr.msra.gmra.mxu2 %vm1365_vm1, %v3872_v4  ;;  %v3750_v4 = vadd.f32 %v3749_v2, %v3700_v6 }
 0x6cf   :  { %4756 = vmatpush.bf16.msra.mxu2 %v14221_v19  ;;  %v12561_v19 = vld [vmem:[%s14874_s22 + $0x98] sm:$0xff] }
 0x6d0   :  { %v3799_v58 = vadd.f32 %v3798_v45, %v3750_v4 }
 0x6d1   :  { %v3837_v43 = vpop.f32.mrf.mxu1 }
 0x6d2   :  { %v3838_v21 = vadd.f32 %v3837_v43, %v3789_v10  ;;  %v3754_v14 = vpop.f32.mrf.mxu3 }
 0x6d3   :  { %4757 = vmatpush.bf16.msra.mxu2 %v14227_v32  ;;  %v3702_v32 = vpop.f32.mrf.mxu2 }
 0x6d4   :  { %v3752_v41 = vadd.f32 %v3751_v5, %v3702_v32 }
 0x6d6   :  { %v3801_v48 = vadd.f32 %v3800_v26, %v3752_v41 }
 0x6d7   :  { %4758 = vmatpush.bf16.msra.mxu2 %v14233_v51  ;;  %v12562_v51 = vld [vmem:[%s14874_s22 + $0x90] sm:$0xff] }
 0x6d9   :  { %v3839_v13 = vpop.f32.mrf.mxu1 }
 0x6da   :  { %v3840_v28 = vadd.f32 %v3839_v13, %v3791_v20  ;;  %v3756_v43 = vpop.f32.mrf.mxu3 }
 0x6db   :  { %4759 = vmatpush.bf16.msra.mxu2 %v14239_v53  ;;  %v3794_v53 = vadd.f32 %v3793_v49, %v3745_v22  ;;  %v3705_v17 = vpop.f32.mrf.mxu2  ;;  %v3803_v49 = vpop.f32.mrf.mxu0 }
 0x6dc   :  { %v3873_v25 = vpack.c.bf16 %v3840_v28, %v3838_v21 }
 0x6de   :  { %9988 = vmatmul.msk.bf16.gmra.mxu2 %vm1365_vm1, %v3873_v25 }
 0x6df   :  { %4760 = vmatpush.bf16.msra.mxu2 %v12561_v19 }
 0x6e1   :  { %v3842_v29 = vpop.f32.mrf.mxu1 }
 0x6e2   :  { %v3843_v55 = vadd.f32 %v3842_v29, %v3794_v53  ;;  %v3759_v25 = vpop.f32.mrf.mxu3  ;;  %v3755_v29 = vadd.f32 %v3754_v14, %v3705_v17 }
 0x6e3   :  { %4761 = vmatpush.bf16.msra.mxu2 %v12562_v51  ;;  %v3707_v30 = vpop.f32.mrf.mxu2  ;;  %v3805_v10 = vpop.f32.mrf.mxu0 }
 0x6e4   :  { %v3757_v51 = vadd.f32 %v3756_v43, %v3707_v30  ;;  %v3804_v57 = vadd.f32 %v3803_v49, %v3755_v29 }
 0x6e6   :  { %v3806_v6 = vadd.f32 %v3805_v10, %v3757_v51 }
 0x6e7   :  { %4762 = vmatpush.bf16.msra.mxu2 %v12563_v24 }
 0x6e9   :  { %v3844_v61 = vpop.f32.mrf.mxu1 }
 0x6ea   :  { %v3845_v60 = vadd.f32 %v3844_v61, %v3796_v52  ;;  %v3761_v5 = vpop.f32.mrf.mxu3 }
 0x6eb   :  { %4763 = vmatpush.bf16.msra.mxu2 %v12564_v38  ;;  %v3710_v28 = vpop.f32.mrf.mxu2  ;;  %v3808_v22 = vpop.f32.mrf.mxu0 }
 0x6ec   :  { %v3874_v31 = vpack.c.bf16 %v3845_v60, %v3843_v55  ;;  %v3760_v61 = vadd.f32 %v3759_v25, %v3710_v28 }
 0x6ee   :  { %9989 = vmatmul.msk.bf16.gmra.mxu2 %vm1365_vm1, %v3874_v31  ;;  %v3809_v31 = vadd.f32 %v3808_v22, %v3760_v61  ;;  %v12022_v61 = vld [vmem:[#allocation2 + $0x72c] sm:$0xf0] }
 0x6f1   :  { %v3847_v11 = vpop.f32.mrf.mxu1 }
 0x6f2   :  { %v3848_v20 = vadd.f32 %v3847_v11, %v3799_v58  ;;  %v3764_v60 = vpop.f32.mrf.mxu3  ;;  %v9997_v58 = vld [vmem:[#allocation2 + $0x700] sm:$0xf] }
 0x6f3   :  { %v3712_v2 = vpop.f32.mrf.mxu2  ;;  %v3810_v24 = vpop.f32.mrf.mxu0 }
 0x6f4   :  { %v3762_v38 = vadd.f32 %v3761_v5, %v3712_v2 }
 0x6f6   :  { %v3811_v14 = vadd.f32 %v3810_v24, %v3762_v38 }
 0x6f9   :  { %v3849_v47 = vpop.f32.mrf.mxu1 }
 0x6fa   :  { %v3850_v13 = vadd.f32 %v3849_v47, %v3801_v48  ;;  %v3766_v43 = vpop.f32.mrf.mxu3  ;;  %v12018_v48 = vld [vmem:[#allocation2 + $0x70c] sm:$0xf0]  ;;  %v12016_v47 = vld [vmem:[#allocation2 + $0x704] sm:$0xf] }
 0x6fb   :  { %v3715_v55 = vpop.f32.mrf.mxu2  ;;  %v3813_v17 = vpop.f32.mrf.mxu0  ;;  %v9998_v10 = vor.u32 %v12018_v48, %v9997_v58  ;;  %v12023_v58 = vld [vmem:[#allocation2 + $0x734] sm:$0xf0] }
 0x6fc   :  { %v3875_v21 = vpack.c.bf16 %v3850_v13, %v3848_v20  ;;  %v9999_v20 = vld [vmem:[#allocation2 + $0x710] sm:$0xf0]  ;;  %v10005_v13 = vld [vmem:[#allocation2 + $0x708] sm:$0xf]  ;;  %v3765_v22 = vadd.f32 %v3764_v60, %v3715_v55 }
 0x6fd   :  { %v10002_v28 = vor.u32 %v12016_v47, %v9999_v20  ;;  %4175 = vmatmul.bf16.vlgmr.msra.gmra.mxu3 %v9998_v10 }
 0x6fe   :  { %9990 = vmatmul.msk.bf16.gmra.mxu2 %vm1365_vm1, %v3875_v21  ;;  %v12019_v21 = vld [vmem:[#allocation2 + $0x714] sm:$0xf0] }
 0x6ff   :  { %v10006_v25 = vor.u32 %v12019_v21, %v10005_v13  ;;  %4224 = vmatmul.bf16.vlgmr.msrb.gmra.mxu0 %v10002_v28  ;;  %v10029_v28 = vld [vmem:[#allocation2 + $0x740] sm:$0xf] }
 0x701   :  { %v3852_v19 = vpop.f32.mrf.mxu1  ;;  %4273 = vmatmul.bf16.vlgmr.msrb.gmra.mxu1 %v10006_v25  ;;  %v12026_v25 = vld [vmem:[#allocation2 + $0x74c] sm:$0xf0] }
 0x702   :  { %v3853_v45 = vadd.f32 %v3852_v19, %v3804_v57  ;;  %v3814_v57 = vadd.f32 %v3813_v17, %v3765_v22  ;;  %v3769_v2 = vpop.f32.mrf.mxu3  ;;  %v10015_v17 = vld [vmem:[#allocation2 + $0x730] sm:$0xf0] }
 0x703   :  { %v3717_v30 = vpop.f32.mrf.mxu2  ;;  %v3815_v19 = vpop.f32.mrf.mxu0  ;;  %v10031_v22 = vld [vmem:[#allocation2 + $0x750] sm:$0xf0] }
 0x704   :  { %v3767_v51 = vadd.f32 %v3766_v43, %v3717_v30  ;;  %v10021_v43 = vld [vmem:[#allocation2 + $0x728] sm:$0xf] }
 0x705   :  { %v10022_v47 = vor.u32 %v12023_v58, %v10021_v43  ;;  %v10061_v43 = vld [vmem:[#allocation2 + $0x780] sm:$0xf] }
 0x709   :  { %v3854_v32 = vpop.f32.mrf.mxu1 }
 0x70a   :  { %v3855_v26 = vadd.f32 %v3854_v32, %v3806_v6  ;;  %v3816_v32 = vadd.f32 %v3815_v19, %v3767_v51  ;;  %v10030_v19 = vor.u32 %v12026_v25, %v10029_v28  ;;  %v10039_v28 = vld [vmem:[#allocation2 + $0x758] sm:$0xf0]  ;;  %v10069_v25 = vld [vmem:[#allocation2 + $0x788] sm:$0xf] }
 0x70b   :  { %v3720_v6 = vpop.f32.mrf.mxu2 }
 0x70c   :  { %v3876_v53 = vpack.c.bf16 %v3855_v26, %v3853_v45  ;;  %v3770_v60 = vadd.f32 %v3769_v2, %v3720_v6  ;;  %v10007_v6 = vld [vmem:[#allocation2 + $0x718] sm:$0xf0]  ;;  %v10037_v2 = vld [vmem:[#allocation2 + $0x748] sm:$0xf] }
 0x70e   :  { %9991 = vmatmul.msk.bf16.gmra.mxu2 %vm1365_vm1, %v3876_v53  ;;  %v3818_v53 = vpop.f32.mrf.mxu0 }
 0x70f   :  { %v3819_v30 = vadd.f32 %v3818_v53, %v3770_v60  ;;  %v12030_v53 = vld [vmem:[#allocation2 + $0x76c] sm:$0xf0]  ;;  %v10023_v60 = vld [vmem:[#allocation2 + $0x738] sm:$0xf0] }
 0x711   :  { %v3857_v52 = vpop.f32.mrf.mxu1  ;;  %4278 = vmatmul.bf16.gmra.mxu1 %v10022_v47 }
 0x712   :  { %v3858_v49 = vadd.f32 %v3857_v52, %v3809_v31  ;;  %v10013_v52 = vld [vmem:[#allocation2 + $0x720] sm:$0xf] }
 0x713   :  { %v3722_v38 = vpop.f32.mrf.mxu2  ;;  %v10014_v31 = vor.u32 %v12022_v61, %v10013_v52 }
 0x715   :  { %4180 = vmatmul.bf16.gmra.mxu3 %v10014_v31  ;;  %v10047_v31 = vld [vmem:[#allocation2 + $0x770] sm:$0xf0] }
 0x719   :  { %v3859_v11 = vpop.f32.mrf.mxu1 }
 0x71a   :  { %v3860_v4 = vadd.f32 %v3859_v11, %v3811_v14  ;;  %v3771_v14 = vpop.f32.mrf.mxu3  ;;  %v12020_v11 = vld [vmem:[#allocation2 + $0x724] sm:$0xf] }
 0x71c   :  { %v3877_v41 = vpack.c.bf16 %v3860_v4, %v3858_v49  ;;  %v10018_v49 = vor.u32 %v12020_v11, %v10015_v17  ;;  %v3772_v4 = vadd.f32 %v3771_v14, %v3722_v38  ;;  %v12028_v38 = vld [vmem:[#allocation2 + $0x764] sm:$0xf]  ;;  %v10053_v11 = vld [vmem:[#allocation2 + $0x768] sm:$0xf]  ;;  %v12031_v17 = vld [vmem:[#allocation2 + $0x774] sm:$0xf0] }
 0x71d   :  { %v10050_v14 = vor.u32 %v12028_v38, %v10047_v31 }
 0x71e   :  { %9992 = vmatmul.msk.bf16.gmra.mxu2 %vm1365_vm1, %v3877_v41  ;;  %v3820_v41 = vpop.f32.mrf.mxu0  ;;  %4229 = vmatmul.bf16.gmra.mxu0 %v10018_v49  ;;  %v10054_v49 = vor.u32 %v12031_v17, %v10053_v11 }
 0x71f   :  { %v3821_v48 = vadd.f32 %v3820_v41, %v3772_v4 }
 0x721   :  { %v3862_v29 = vpop.f32.mrf.mxu1 }
 0x722   :  { %v3863_v45 = vadd.f32 %v3862_v29, %v3814_v57  ;;  %v12024_v29 = vld [vmem:[#allocation2 + $0x744] sm:$0xf]  ;;  %v12017_v57 = vld [vmem:[#allocation2 + $0x70c] sm:$0xf] }
 0x723   :  { %v10034_v51 = vor.u32 %v12024_v29, %v10031_v22 }
 0x725   :  { %4185 = vmatmul.bf16.gmra.mxu3 %v10030_v19 }
 0x729   :  { %v3864_v5 = vpop.f32.mrf.mxu1 }
 0x72a   :  { %v3865_v26 = vadd.f32 %v3864_v5, %v3816_v32  ;;  %v12027_v32 = vld [vmem:[#allocation2 + $0x754] sm:$0xf0] }
 0x72b   :  { %v10038_v5 = vor.u32 %v12027_v32, %v10037_v2 }
 0x72c   :  { %v3878_v24 = vpack.c.bf16 %v3865_v26, %v3863_v45  ;;  %v10010_v45 = vor.u32 %v12017_v57, %v10007_v6  ;;  %v10045_v26 = vld [vmem:[#allocation2 + $0x760] sm:$0xf] }
 0x72d   :  { %4283 = vmatmul.bf16.gmra.mxu1 %v10038_v5  ;;  %v10077_v57 = vld [vmem:[#allocation2 + $0x7a0] sm:$0xf]  ;;  %v12036_v5 = vld [vmem:[#allocation2 + $0x7a4] sm:$0xf] }
 0x72e   :  { %9993 = vmatmul.msk.bf16.gmra.mxu2 %vm1365_vm1, %v3878_v24  ;;  %4234 = vmatmul.bf16.gmra.mxu0 %v10034_v51  ;;  %v10046_v24 = vor.u32 %v12030_v53, %v10045_v26  ;;  %v12029_v53 = vld [vmem:[#allocation2 + $0x76c] sm:$0xf] }
 0x731   :  { %v3867_v55 = vpop.f32.mrf.mxu1 }
 0x732   :  { %v3868_v20 = vadd.f32 %v3867_v55, %v3819_v30  ;;  %v12021_v55 = vld [vmem:[#allocation2 + $0x72c] sm:$0xf] }
 0x733   :  { %v10026_v30 = vor.u32 %v12021_v55, %v10023_v60  ;;  %v10093_v60 = vld [vmem:[#allocation2 + $0x7c0] sm:$0xf] }
 0x735   :  { %4190 = vmatmul.bf16.gmra.mxu3 %v10046_v24  ;;  %v10055_v24 = vld [vmem:[#allocation2 + $0x778] sm:$0xf0] }
 0x736   :  { %v10058_v55 = vor.u32 %v12029_v53, %v10055_v24  ;;  %v4372_v53 = vld [vmem:[#allocation4 + $0xe] sm:$0x3] }
 0x737   :  { %v4398_v24 = vsel %vm1390_vm0, %v4372_v53, 0 }
 0x738   :  { %4407 = vmatpush.bf16.msrb.mxu3 %v4398_v24 }
 0x739   :  { %v3869_v10 = vpop.f32.mrf.mxu1 }
 0x73a   :  { %v3870_v13 = vadd.f32 %v3869_v10, %v3821_v48  ;;  %v12032_v10 = vld [vmem:[#allocation2 + $0x784] sm:$0xf] }
 0x73c   :  { %v3879_v21 = vpack.c.bf16 %v3870_v13, %v3868_v20  ;;  %v10063_v20 = vld [vmem:[#allocation2 + $0x790] sm:$0xf0]  ;;  %4805 = vmatpush.bf16.msra.mxu3 %v14324_v23 }
 0x73d   :  { %4288 = vmatmul.bf16.gmra.mxu1 %v10054_v49  ;;  %v10066_v13 = vor.u32 %v12032_v10, %v10063_v20 }
 0x73e   :  { %9994 = vmatmul.msk.bf16.gmra.mxu2 %vm1365_vm1, %v3879_v21  ;;  %4239 = vmatmul.bf16.gmra.mxu0 %v10050_v14  ;;  %v12025_v21 = vld [vmem:[#allocation2 + $0x74c] sm:$0xf] }
 0x73f   :  { %v10042_v51 = vor.u32 %v12025_v21, %v10039_v28  ;;  %v10109_v28 = vld [vmem:[#allocation2 + $0x7e0] sm:$0xf] }
 0x740   :  { %4806 = vmatpush.bf16.msra.mxu3 %v14330_v42 }
 0x744   :  { %4807 = vmatpush.bf16.msra.mxu3 %v14339_v18 }
 0x748   :  { %4808 = vmatpush.bf16.msra.mxu3 %v14347_v12 }
 0x74c   :  { %4809 = vmatpush.bf16.msra.mxu3 %v14353_v1 }
 0x74e   :  { %4322 = vmatmul.bf16.vlgmr.msrb.gmra.mxu2 %v10010_v45  ;;  %4244 = vmatmul.bf16.gmra.mxu0 %v10066_v13  ;;  %v10079_v45 = vld [vmem:[#allocation2 + $0x7b0] sm:$0xf0] }
 0x74f   :  { %v10082_v26 = vor.u32 %v12036_v5, %v10079_v45 }
 0x750   :  { %4810 = vmatpush.bf16.msra.mxu3 %v14359_v33 }
 0x751   :  { %v3918_v52 = vpop.f32.mrf.mxu2 }
 0x752   :  { %v14409_v61 = vadd.f32 %v3918_v52, %v14278_v62  ;;  %v12034_v62 = vld [vmem:[#allocation2 + $0x78c] sm:$0xf0]  ;;  %v10085_v52 = vld [vmem:[#allocation2 + $0x7a8] sm:$0xf] }
 0x753   :  { %v10062_v58 = vor.u32 %v12034_v62, %v10061_v43  ;;  %v12033_v62 = vld [vmem:[#allocation2 + $0x78c] sm:$0xf] }
 0x754   :  { %4811 = vmatpush.bf16.msra.mxu3 %v14368_v36 }
 0x755   :  { %4195 = vmatmul.bf16.gmra.mxu3 %v10062_v58  ;;  %v10071_v58 = vld [vmem:[#allocation2 + $0x798] sm:$0xf0] }
 0x756   :  { %v10074_v21 = vor.u32 %v12033_v62, %v10071_v58 }
 0x758   :  { %4812 = vmatpush.bf16.msra.mxu3 %v14376_v7 }
 0x759   :  { %v3920_v4 = vpop.f32.mrf.mxu2 }
 0x75a   :  { %v14412_v41 = vadd.f32 %v3920_v4, %v14285_v34  ;;  %v12035_v34 = vld [vmem:[#allocation2 + $0x794] sm:$0xf0]  ;;  %v12040_v4 = vld [vmem:[#allocation2 + $0x7c4] sm:$0xf] }
 0x75b   :  { %v10070_v19 = vor.u32 %v12035_v34, %v10069_v25 }
 0x75d   :  { %4293 = vmatmul.bf16.gmra.mxu1 %v10070_v19 }
 0x75e   :  { %4327 = vmatmul.bf16.gmra.mxu2 %v10026_v30  ;;  %4249 = vmatmul.bf16.gmra.mxu0 %v10082_v26  ;;  %v10095_v30 = vld [vmem:[#allocation2 + $0x7d0] sm:$0xf0] }
 0x75f   :  { %v10098_v43 = vor.u32 %v12040_v4, %v10095_v30  ;;  %v12045_v4 = vld [vmem:[#allocation2 + $0x7ec] sm:$0xf]  ;;  %v10119_v30 = vld [vmem:[#allocation2 + $0x7f8] sm:$0xf0] }
 0x760   :  { %v10122_v12 = vor.u32 %v12045_v4, %v10119_v30 }
 0x761   :  { %v3923_v48 = vpop.f32.mrf.mxu2 }
 0x762   :  { %v14415_v47 = vadd.f32 %v3923_v48, %v14292_v37  ;;  %v12038_v37 = vld [vmem:[#allocation2 + $0x7ac] sm:$0xf0]  ;;  %v10101_v48 = vld [vmem:[#allocation2 + $0x7c8] sm:$0xf] }
 0x763   :  { %v10078_v6 = vor.u32 %v12038_v37, %v10077_v57  ;;  %v12037_v37 = vld [vmem:[#allocation2 + $0x7ac] sm:$0xf] }
 0x765   :  { %4200 = vmatmul.bf16.gmra.mxu3 %v10078_v6  ;;  %v10087_v6 = vld [vmem:[#allocation2 + $0x7b8] sm:$0xf0] }
 0x766   :  { %v10090_v26 = vor.u32 %v12037_v37, %v10087_v6 }
 0x769   :  { %v3925_v29 = vpop.f32.mrf.mxu2 }
 0x76a   :  { %v14418_v22 = vadd.f32 %v3925_v29, %v14299_v54  ;;  %v12039_v54 = vld [vmem:[#allocation2 + $0x7b4] sm:$0xf0]  ;;  %v12044_v29 = vld [vmem:[#allocation2 + $0x7e4] sm:$0xf] }
 0x76b   :  { %v10086_v38 = vor.u32 %v12039_v54, %v10085_v52  ;;  %v12041_v54 = vld [vmem:[#allocation2 + $0x7cc] sm:$0xf] }
 0x76d   :  { %4298 = vmatmul.bf16.gmra.mxu1 %v10086_v38  ;;  %v10103_v38 = vld [vmem:[#allocation2 + $0x7d8] sm:$0xf0] }
 0x76e   :  { %4332 = vmatmul.bf16.gmra.mxu2 %v10042_v51  ;;  %4254 = vmatmul.bf16.gmra.mxu0 %v10098_v43  ;;  %v10111_v51 = vld [vmem:[#allocation2 + $0x7f0] sm:$0xf0] }
 0x76f   :  { %v10114_v57 = vor.u32 %v12044_v29, %v10111_v51 }
 0x771   :  { %v3928_v2 = vpop.f32.mrf.mxu2 }
 0x772   :  { %v14421_v32 = vadd.f32 %v3928_v2, %v14304_v16  ;;  %v12042_v16 = vld [vmem:[#allocation2 + $0x7cc] sm:$0xf0]  ;;  %v10117_v2 = vld [vmem:[#allocation2 + $0x7e8] sm:$0xf] }
 0x773   :  { %v10094_v11 = vor.u32 %v12042_v16, %v10093_v60 }
 0x775   :  { %4205 = vmatmul.bf16.gmra.mxu3 %v10094_v11 }
 0x779   :  { %v3930_v31 = vpop.f32.mrf.mxu2 }
 0x77a   :  { %v14424_v14 = vadd.f32 %v3930_v31, %v14307_v3  ;;  %v12043_v3 = vld [vmem:[#allocation2 + $0x7d4] sm:$0xf0] }
 0x77b   :  { %v10102_v10 = vor.u32 %v12043_v3, %v10101_v48 }
 0x77c   :  { %v4225_v60 = vpop.f32.mrf.mxu0 }
 0x77d   :  { %4303 = vmatmul.bf16.gmra.mxu1 %v10102_v10 }
 0x77e   :  { %4337 = vmatmul.bf16.gmra.mxu2 %v10058_v55  ;;  %4259 = vmatmul.bf16.gmra.mxu0 %v10114_v57  ;;  %v10106_v55 = vor.u32 %v12041_v54, %v10103_v38  ;;  %v4274_v11 = vpop.f32.mrf.mxu1 }
 0x780   :  { %v4176_v16 = vpop.f32.mrf.mxu3 }
 0x781   :  { %v3933_v17 = vpop.f32.mrf.mxu2 }
 0x782   :  { %v14427_v49 = vadd.f32 %v3933_v17, %v14310_v15  ;;  %v12046_v15 = vld [vmem:[#allocation2 + $0x7ec] sm:$0xf0] }
 0x783   :  { %v10110_v25 = vor.u32 %v12046_v15, %v10109_v28  ;;  %v4226_v28 = vadd.f32 %v4225_v60, %v4176_v16 }
 0x784   :  { %v4227_v42 = vpop.f32.mrf.mxu0 }
 0x785   :  { %4210 = vmatmul.bf16.gmra.mxu3 %v10110_v25 }
 0x786   :  { %v4276_v43 = vpop.f32.mrf.mxu1 }
 0x789   :  { %v3935_v20 = vpop.f32.mrf.mxu2 }
 0x78a   :  { %v14430_v13 = vadd.f32 %v3935_v20, %v14313_v63  ;;  %v12047_v63 = vld [vmem:[#allocation2 + $0x7f4] sm:$0xf0] }
 0x78b   :  { %v10118_v5 = vor.u32 %v12047_v63, %v10117_v2 }
 0x78d   :  { %4308 = vmatmul.bf16.gmra.mxu1 %v10118_v5 }
 0x78e   :  { %4342 = vmatmul.bf16.gmra.mxu2 %v10074_v21  ;;  %v4279_v48 = vpop.f32.mrf.mxu1 }
 0x791   :  { %v3938_v34 = vpop.f32.mrf.mxu2 }
 0x792   :  { %v14433_v19 = vadd.f32 %v3938_v34, %v14316_v27  ;;  %v4275_v34 = vadd.f32 %v4274_v11, %v4226_v28 }
 0x796   :  { %v4281_v20 = vpop.f32.mrf.mxu1 }
 0x799   :  { %v14435_v45 = vpop.f32.mrf.mxu2 }
 0x79b   :  { %v4230_v62 = vpop.f32.mrf.mxu0 }
 0x79e   :  { %4347 = vmatmul.bf16.gmra.mxu2 %v10090_v26 }
 0x7a1   :  { %v3943_v27 = vpop.f32.mrf.mxu2 }
 0x7a2   :  { %v14440_v52 = vadd.f32 %v3943_v27, %v14334_v35  ;;  %v4178_v35 = vpop.f32.mrf.mxu3 }
 0x7a3   :  { %v4232_v3 = vpop.f32.mrf.mxu0  ;;  %v4228_v25 = vadd.f32 %v4227_v42, %v4178_v35 }
 0x7a5   :  { %v4277_v29 = vadd.f32 %v4276_v43, %v4228_v25 }
 0x7a9   :  { %v14443_v31 = vpop.f32.mrf.mxu2 }
 0x7aa   :  { %v4181_v1 = vpop.f32.mrf.mxu3  ;;  %v4284_v7 = vpop.f32.mrf.mxu1 }
 0x7ab   :  { %v4235_v15 = vpop.f32.mrf.mxu0  ;;  %v4231_v26 = vadd.f32 %v4230_v62, %v4181_v1 }
 0x7ad   :  { %v4280_v24 = vadd.f32 %v4279_v48, %v4231_v26 }
 0x7ae   :  { %4352 = vmatmul.bf16.gmra.mxu2 %v10106_v55 }
 0x7b1   :  { %v3948_v17 = vpop.f32.mrf.mxu2 }
 0x7b2   :  { %v14449_v23 = vadd.f32 %v3948_v17, %v14363_v8  ;;  %v4183_v10 = vpop.f32.mrf.mxu3  ;;  %v4286_v5 = vpop.f32.mrf.mxu1 }
 0x7b3   :  { %v4233_v53 = vadd.f32 %v4232_v3, %v4183_v10 }
 0x7b5   :  { %v4282_v38 = vadd.f32 %v4281_v20, %v4233_v53 }
 0x7b9   :  { %v14452_v18 = vpop.f32.mrf.mxu2 }
 0x7ba   :  { %v4186_v36 = vpop.f32.mrf.mxu3  ;;  %v4289_v11 = vpop.f32.mrf.mxu1 }
 0x7bb   :  { %v4236_v30 = vadd.f32 %v4235_v15, %v4186_v36 }
 0x7be   :  { %4357 = vmatmul.bf16.gmra.mxu2 %v10122_v12 }
 0x7c1   :  { %v3953_v58 = vpop.f32.mrf.mxu2 }
 0x7c2   :  { %v14457_v8 = vadd.f32 %v3953_v58, %v14380_v56  ;;  %v4237_v56 = vpop.f32.mrf.mxu0  ;;  %v4188_v2 = vpop.f32.mrf.mxu3  ;;  %v4285_v58 = vadd.f32 %v4284_v7, %v4236_v30 }
 0x7c3   :  { %v4238_v43 = vadd.f32 %v4237_v56, %v4188_v2  ;;  %v4291_v12 = vpop.f32.mrf.mxu1 }
 0x7c5   :  { %v4287_v62 = vadd.f32 %v4286_v5, %v4238_v43 }
 0x7c9   :  { %v14459_v33 = vpop.f32.mrf.mxu2 }
 0x7ca   :  { %v4240_v27 = vpop.f32.mrf.mxu0  ;;  %v4191_v54 = vpop.f32.mrf.mxu3 }
 0x7d1   :  { %v4323_v21 = vpop.f32.mrf.mxu2 }
 0x7d2   :  { %v4324_v57 = vadd.f32 %v4323_v21, %v4275_v34  ;;  %v4242_v42 = vpop.f32.mrf.mxu0  ;;  %v4193_v4 = vpop.f32.mrf.mxu3  ;;  %v4241_v34 = vadd.f32 %v4240_v27, %v4191_v54 }
 0x7d9   :  { %v4325_v51 = vpop.f32.mrf.mxu2 }
 0x7da   :  { %v4326_v37 = vadd.f32 %v4325_v51, %v4277_v29  ;;  %v4245_v10 = vpop.f32.mrf.mxu0  ;;  %v4196_v20 = vpop.f32.mrf.mxu3  ;;  %v4243_v29 = vadd.f32 %v4242_v42, %v4193_v4 }
 0x7db   :  { %v4294_v28 = vpop.f32.mrf.mxu1  ;;  %v4246_v53 = vadd.f32 %v4245_v10, %v4196_v20 }
 0x7dc   :  { %v4363_v6 = vpack.c.bf16 %v4326_v37, %v4324_v57  ;;  %v4290_v37 = vadd.f32 %v4289_v11, %v4241_v34  ;;  %v4292_v15 = vadd.f32 %v4291_v12, %v4243_v29  ;;  %v10141_v34 = vld [vmem:[#allocation2 + $0x808] sm:$0xf]  ;;  %v12051_v29 = vld [vmem:[#allocation2 + $0x814] sm:$0xf0] }
 0x7de   :  { %10123 = vmatmul.msk.bf16.vlgmr.msrb.gmra.mxu3 %vm1365_vm1, %v4363_v6 }
 0x7e1   :  { %v4328_v63 = vpop.f32.mrf.mxu2 }
 0x7e2   :  { %v4329_v60 = vadd.f32 %v4328_v63, %v4280_v24  ;;  %v4247_v51 = vpop.f32.mrf.mxu0  ;;  %v4198_v57 = vpop.f32.mrf.mxu3 }
 0x7e3   :  { %v4296_v6 = vpop.f32.mrf.mxu1 }
 0x7e9   :  { %v4330_v55 = vpop.f32.mrf.mxu2 }
 0x7ea   :  { %v4331_v16 = vadd.f32 %v4330_v55, %v4282_v38  ;;  %v4250_v63 = vpop.f32.mrf.mxu0  ;;  %v4201_v5 = vpop.f32.mrf.mxu3  ;;  %v4248_v38 = vadd.f32 %v4247_v51, %v4198_v57  ;;  %v4295_v55 = vadd.f32 %v4294_v28, %v4246_v53  ;;  %v10133_v51 = vld [vmem:[#allocation2 + $0x800] sm:$0xf]  ;;  %v10142_v57 = vor.u32 %v12051_v29, %v10141_v34 }
 0x7eb   :  { %v4299_v24 = vpop.f32.mrf.mxu1  ;;  %v4251_v30 = vadd.f32 %v4250_v63, %v4201_v5 }
 0x7ec   :  { %v4364_v17 = vpack.c.bf16 %v4331_v16, %v4329_v60  ;;  %v4297_v27 = vadd.f32 %v4296_v6, %v4248_v38  ;;  %4764 = vmatmul.bf16.vlgmr.msra.gmra.mxu2 %v10142_v57  ;;  %v10173_v57 = vld [vmem:[#allocation2 + $0x848] sm:$0xf] }
 0x7ee   :  { %10124 = vmatmul.msk.bf16.gmra.mxu3 %vm1365_vm1, %v4364_v17 }
 0x7f1   :  { %v4333_v35 = vpop.f32.mrf.mxu2 }
 0x7f2   :  { %v4334_v48 = vadd.f32 %v4333_v35, %v4285_v58  ;;  %v4252_v54 = vpop.f32.mrf.mxu0  ;;  %v4203_v16 = vpop.f32.mrf.mxu3 }
 0x7f3   :  { %v4301_v35 = vpop.f32.mrf.mxu1  ;;  %v4253_v58 = vadd.f32 %v4252_v54, %v4203_v16 }
 0x7f9   :  { %v4335_v1 = vpop.f32.mrf.mxu2 }
 0x7fa   :  { %v4336_v3 = vadd.f32 %v4335_v1, %v4287_v62  ;;  %v4255_v43 = vpop.f32.mrf.mxu0  ;;  %v4206_v12 = vpop.f32.mrf.mxu3  ;;  %v4300_v62 = vadd.f32 %v4299_v24, %v4251_v30 }
 0x7fb   :  { %v4304_v1 = vpop.f32.mrf.mxu1  ;;  %v4256_v63 = vadd.f32 %v4255_v43, %v4206_v12  ;;  %v10149_v12 = vld [vmem:[#allocation2 + $0x820] sm:$0xf] }
 0x7fc   :  { %v4365_v21 = vpack.c.bf16 %v4336_v3, %v4334_v48  ;;  %v4302_v48 = vadd.f32 %v4301_v35, %v4253_v58  ;;  %v10157_v35 = vld [vmem:[#allocation2 + $0x828] sm:$0xf]  ;;  %v12054_v58 = vld [vmem:[#allocation2 + $0x82c] sm:$0xf0] }
 0x7fe   :  { %10125 = vmatmul.msk.bf16.gmra.mxu3 %vm1365_vm1, %v4365_v21 }
 0x801   :  { %v4338_v25 = vpop.f32.mrf.mxu2 }
 0x802   :  { %v4339_v7 = vadd.f32 %v4338_v25, %v4290_v37  ;;  %v4257_v28 = vpop.f32.mrf.mxu0  ;;  %v4208_v25 = vpop.f32.mrf.mxu3  ;;  %v12050_v37 = vld [vmem:[#allocation2 + $0x80c] sm:$0xf0] }
 0x803   :  { %v10134_v6 = vor.u32 %v12050_v37, %v10133_v51  ;;  %v4258_v5 = vadd.f32 %v4257_v28, %v4208_v25  ;;  %v12059_v37 = vld [vmem:[#allocation2 + $0x854] sm:$0xf0] }
 0x805   :  { %4666 = vmatmul.bf16.vlgmr.msra.gmra.mxu0 %v10134_v6  ;;  %v12058_v6 = vld [vmem:[#allocation2 + $0x84c] sm:$0xf0] }
 0x809   :  { %v4340_v36 = vpop.f32.mrf.mxu2 }
 0x80a   :  { %v4341_v56 = vadd.f32 %v4340_v36, %v4292_v15  ;;  %v12048_v15 = vld [vmem:[#allocation2 + $0x804] sm:$0xf]  ;;  %v10135_v36 = vld [vmem:[#allocation2 + $0x810] sm:$0xf0]  ;;  %v4260_v53 = vpop.f32.mrf.mxu0  ;;  %v4211_v24 = vpop.f32.mrf.mxu3 }
 0x80b   :  { %v4261_v30 = vadd.f32 %v4260_v53, %v4211_v24 }
 0x80c   :  { %v4366_v2 = vpack.c.bf16 %v4341_v56, %v4339_v7  ;;  %v10138_v7 = vor.u32 %v12048_v15, %v10135_v36  ;;  %v4306_v56 = vpop.f32.mrf.mxu1  ;;  %v10174_v15 = vor.u32 %v12059_v37, %v10173_v57  ;;  %v10165_v36 = vld [vmem:[#allocation2 + $0x840] sm:$0xf] }
 0x80d   :  { %v4307_v38 = vadd.f32 %v4306_v56, %v4258_v5  ;;  %v10166_v56 = vor.u32 %v12058_v6, %v10165_v36  ;;  %v12049_v5 = vld [vmem:[#allocation2 + $0x80c] sm:$0xf]  ;;  %v12071_v36 = vld [vmem:[#allocation2 + $0x8b4] sm:$0xf0] }
 0x80e   :  { %10126 = vmatmul.msk.bf16.gmra.mxu3 %vm1365_vm1, %v4366_v2  ;;  %4715 = vmatmul.bf16.vlgmr.msra.gmra.mxu1 %v10138_v7  ;;  %v12056_v7 = vld [vmem:[#allocation2 + $0x844] sm:$0xf] }
 0x811   :  { %v4343_v26 = vpop.f32.mrf.mxu2 }
 0x812   :  { %v4344_v11 = vadd.f32 %v4343_v26, %v4295_v55  ;;  %v4305_v26 = vadd.f32 %v4304_v1, %v4256_v63  ;;  %v10150_v1 = vor.u32 %v12054_v58, %v10149_v12 }
 0x815   :  { %4671 = vmatmul.bf16.gmra.mxu0 %v10150_v1  ;;  %v12067_v1 = vld [vmem:[#allocation2 + $0x894] sm:$0xf0] }
 0x819   :  { %v4345_v60 = vpop.f32.mrf.mxu2 }
 0x81a   :  { %v4346_v17 = vadd.f32 %v4345_v60, %v4297_v27  ;;  %v4309_v60 = vpop.f32.mrf.mxu1 }
 0x81c   :  { %v4367_v42 = vpack.c.bf16 %v4346_v17, %v4344_v11  ;;  %v4262_v11 = vpop.f32.mrf.mxu0  ;;  %v4213_v17 = vpop.f32.mrf.mxu3 }
 0x81e   :  { %10127 = vmatmul.msk.bf16.gmra.mxu3 %vm1365_vm1, %v4367_v42 }
 0x821   :  { %v4348_v4 = vpop.f32.mrf.mxu2 }
 0x822   :  { %v4349_v10 = vadd.f32 %v4348_v4, %v4300_v62  ;;  %v12055_v4 = vld [vmem:[#allocation2 + $0x834] sm:$0xf0]  ;;  %v12052_v62 = vld [vmem:[#allocation2 + $0x824] sm:$0xf] }
 0x823   :  { %v10158_v43 = vor.u32 %v12055_v4, %v10157_v35  ;;  %v12053_v4 = vld [vmem:[#allocation2 + $0x82c] sm:$0xf] }
 0x825   :  { %4769 = vmatmul.bf16.gmra.mxu2 %v10158_v43  ;;  %4676 = vmatmul.bf16.gmra.mxu0 %v10166_v56  ;;  %v10213_v56 = vld [vmem:[#allocation2 + $0x8a0] sm:$0xf] }
 0x829   :  { %v4350_v3 = vpop.f32.mrf.mxu2 }
 0x82a   :  { %v4351_v20 = vadd.f32 %v4350_v3, %v4302_v48  ;;  %v10151_v48 = vld [vmem:[#allocation2 + $0x830] sm:$0xf0]  ;;  %v4263_v3 = vadd.f32 %v4262_v11, %v4213_v17  ;;  %v12060_v11 = vld [vmem:[#allocation2 + $0x864] sm:$0xf] }
 0x82c   :  { %v4368_v21 = vpack.c.bf16 %v4351_v20, %v4349_v10  ;;  %v10154_v10 = vor.u32 %v12052_v62, %v10151_v48  ;;  %v4311_v20 = vpop.f32.mrf.mxu1  ;;  %v10205_v62 = vld [vmem:[#allocation2 + $0x888] sm:$0xf] }
 0x82d   :  { %v4312_v28 = vadd.f32 %v4311_v20, %v4263_v3  ;;  %v10206_v3 = vor.u32 %v12067_v1, %v10205_v62  ;;  %v12066_v20 = vld [vmem:[#allocation2 + $0x88c] sm:$0xf0] }
 0x82e   :  { %10128 = vmatmul.msk.bf16.gmra.mxu3 %vm1365_vm1, %v4368_v21  ;;  %v4310_v21 = vadd.f32 %v4309_v60, %v4261_v30  ;;  %4720 = vmatmul.bf16.gmra.mxu1 %v10154_v10  ;;  %v10181_v60 = vld [vmem:[#allocation2 + $0x860] sm:$0xf]  ;;  %v10159_v30 = vld [vmem:[#allocation2 + $0x838] sm:$0xf0] }
 0x82f   :  { %v10162_v58 = vor.u32 %v12053_v4, %v10159_v30  ;;  %v10197_v10 = vld [vmem:[#allocation2 + $0x880] sm:$0xf]  ;;  %v12072_v4 = vld [vmem:[#allocation2 + $0x8c4] sm:$0xf] }
 0x831   :  { %v4353_v2 = vpop.f32.mrf.mxu2 }
 0x832   :  { %v4354_v27 = vadd.f32 %v4353_v2, %v4305_v26  ;;  %v10167_v2 = vld [vmem:[#allocation2 + $0x850] sm:$0xf0]  ;;  %v10143_v26 = vld [vmem:[#allocation2 + $0x818] sm:$0xf0] }
 0x833   :  { %v10170_v63 = vor.u32 %v12056_v7, %v10167_v2  ;;  %v10146_v53 = vor.u32 %v12049_v5, %v10143_v26  ;;  %v12070_v2 = vld [vmem:[#allocation2 + $0x8ac] sm:$0xf0]  ;;  %v10215_v26 = vld [vmem:[#allocation2 + $0x8b0] sm:$0xf0] }
 0x834   :  { %v10214_v5 = vor.u32 %v12070_v2, %v10213_v56 }
 0x835   :  { %4774 = vmatmul.bf16.gmra.mxu2 %v10174_v15  ;;  %v10221_v15 = vld [vmem:[#allocation2 + $0x8a8] sm:$0xf] }
 0x836   :  { %v10222_v7 = vor.u32 %v12071_v36, %v10221_v15 }
 0x839   :  { %v4355_v55 = vpop.f32.mrf.mxu2 }
 0x83a   :  { %v4356_v54 = vadd.f32 %v4355_v55, %v4307_v38  ;;  %v10189_v38 = vld [vmem:[#allocation2 + $0x868] sm:$0xf]  ;;  %v12063_v55 = vld [vmem:[#allocation2 + $0x874] sm:$0xf0] }
 0x83c   :  { %v4369_v16 = vpack.c.bf16 %v4356_v54, %v4354_v27  ;;  %v10190_v54 = vor.u32 %v12063_v55, %v10189_v38 }
 0x83e   :  { %10129 = vmatmul.msk.bf16.gmra.mxu3 %vm1365_vm1, %v4369_v16  ;;  %4725 = vmatmul.bf16.gmra.mxu1 %v10170_v63  ;;  %v12062_v16 = vld [vmem:[#allocation2 + $0x86c] sm:$0xf0]  ;;  %v12068_v63 = vld [vmem:[#allocation2 + $0x8a4] sm:$0xf] }
 0x83f   :  { %v10182_v17 = vor.u32 %v12062_v16, %v10181_v60  ;;  %v10237_v60 = vld [vmem:[#allocation2 + $0x8c8] sm:$0xf]  ;;  %v12075_v16 = vld [vmem:[#allocation2 + $0x8d4] sm:$0xf0] }
 0x841   :  { %v4358_v42 = vpop.f32.mrf.mxu2  ;;  %4681 = vmatmul.bf16.gmra.mxu0 %v10182_v17  ;;  %v10238_v17 = vor.u32 %v12075_v16, %v10237_v60 }
 0x842   :  { %v4359_v34 = vadd.f32 %v4358_v42, %v4310_v21  ;;  %v10183_v42 = vld [vmem:[#allocation2 + $0x870] sm:$0xf0]  ;;  %v12064_v21 = vld [vmem:[#allocation2 + $0x884] sm:$0xf] }
 0x843   :  { %v10186_v35 = vor.u32 %v12060_v11, %v10183_v42  ;;  %v10229_v42 = vld [vmem:[#allocation2 + $0x8c0] sm:$0xf] }
 0x845   :  { %4779 = vmatmul.bf16.gmra.mxu2 %v10190_v54 }
 0x849   :  { %v4360_v25 = vpop.f32.mrf.mxu2 }
 0x84a   :  { %v4361_v29 = vadd.f32 %v4360_v25, %v4312_v28  ;;  %v10198_v28 = vor.u32 %v12066_v20, %v10197_v10  ;;  %v10199_v25 = vld [vmem:[#allocation2 + $0x890] sm:$0xf0]  ;;  %v10253_v10 = vld [vmem:[#allocation2 + $0x8e8] sm:$0xf]  ;;  %v12079_v20 = vld [vmem:[#allocation2 + $0x8f4] sm:$0xf0] }
 0x84c   :  { %v4370_v51 = vpack.c.bf16 %v4361_v29, %v4359_v34  ;;  %v10202_v34 = vor.u32 %v12064_v21, %v10199_v25  ;;  %v10175_v29 = vld [vmem:[#allocation2 + $0x858] sm:$0xf0]  ;;  %v10245_v25 = vld [vmem:[#allocation2 + $0x8e0] sm:$0xf] }
 0x84e   :  { %10130 = vmatmul.msk.bf16.gmra.mxu3 %vm1365_vm1, %v4370_v51  ;;  %4730 = vmatmul.bf16.gmra.mxu1 %v10186_v35  ;;  %v12074_v35 = vld [vmem:[#allocation2 + $0x8cc] sm:$0xf0] }
 0x84f   :  { %v10230_v30 = vor.u32 %v12074_v35, %v10229_v42  ;;  %v10255_v42 = vld [vmem:[#allocation2 + $0x8f8] sm:$0xf0] }
 0x851   :  { %4686 = vmatmul.bf16.gmra.mxu0 %v10198_v28  ;;  %v10254_v28 = vor.u32 %v12079_v20, %v10253_v10 }
 0x855   :  { %4784 = vmatmul.bf16.gmra.mxu2 %v10206_v3 }
 0x85e   :  { %4813 = vmatmul.bf16.vlgmr.msra.gmra.mxu3 %v10146_v53  ;;  %4735 = vmatmul.bf16.gmra.mxu1 %v10202_v34  ;;  %v10218_v53 = vor.u32 %v12068_v63, %v10215_v26  ;;  %v12078_v34 = vld [vmem:[#allocation2 + $0x8ec] sm:$0xf0]  ;;  %v12073_v63 = vld [vmem:[#allocation2 + $0x8cc] sm:$0xf] }
 0x861   :  { %v4409_v24 = vpop.f32.mrf.mxu3  ;;  %4691 = vmatmul.bf16.gmra.mxu0 %v10214_v5  ;;  %v10239_v5 = vld [vmem:[#allocation2 + $0x8d8] sm:$0xf0] }
 0x862   :  { %v14470_v27 = vadd.f32 %v4409_v24, %v14409_v61  ;;  %v10191_v24 = vld [vmem:[#allocation2 + $0x878] sm:$0xf0] }
 0x865   :  { %4789 = vmatmul.bf16.gmra.mxu2 %v10222_v7  ;;  %v4863_v7 = vld [vmem:[#allocation4 + $0x10] sm:$0x3] }
 0x869   :  { %v4411_v43 = vpop.f32.mrf.mxu3 }
 0x86a   :  { %v14473_v12 = vadd.f32 %v4411_v43, %v14412_v41  ;;  %v12057_v41 = vld [vmem:[#allocation2 + $0x84c] sm:$0xf]  ;;  %v10231_v43 = vld [vmem:[#allocation2 + $0x8d0] sm:$0xf0] }
 0x86b   :  { %v10178_v37 = vor.u32 %v12057_v41, %v10175_v29  ;;  %v12076_v41 = vld [vmem:[#allocation2 + $0x8e4] sm:$0xf]  ;;  %v10246_v29 = vor.u32 %v12078_v34, %v10245_v25 }
 0x86e   :  { %4818 = vmatmul.bf16.gmra.mxu3 %v10162_v58  ;;  %4740 = vmatmul.bf16.gmra.mxu1 %v10218_v53  ;;  %v10234_v58 = vor.u32 %v12072_v4, %v10231_v43  ;;  %v10242_v53 = vor.u32 %v12073_v63, %v10239_v5 }
 0x871   :  { %v4414_v61 = vpop.f32.mrf.mxu3  ;;  %4696 = vmatmul.bf16.gmra.mxu0 %v10230_v30 }
 0x872   :  { %v14476_v48 = vadd.f32 %v4414_v61, %v14415_v47  ;;  %v10207_v61 = vld [vmem:[#allocation2 + $0x898] sm:$0xf0] }
 0x875   :  { %4794 = vmatmul.bf16.gmra.mxu2 %v10238_v17  ;;  %v12077_v17 = vld [vmem:[#allocation2 + $0x8ec] sm:$0xf] }
 0x876   :  { %v10258_v4 = vor.u32 %v12077_v17, %v10255_v42 }
 0x879   :  { %v4416_v51 = vpop.f32.mrf.mxu3 }
 0x87a   :  { %v14479_v57 = vadd.f32 %v4416_v51, %v14418_v22  ;;  %v12061_v22 = vld [vmem:[#allocation2 + $0x86c] sm:$0xf]  ;;  %v10247_v51 = vld [vmem:[#allocation2 + $0x8f0] sm:$0xf0] }
 0x87b   :  { %v10194_v54 = vor.u32 %v12061_v22, %v10191_v24 }
 0x87e   :  { %4823 = vmatmul.bf16.gmra.mxu3 %v10178_v37  ;;  %4745 = vmatmul.bf16.gmra.mxu1 %v10234_v58  ;;  %v10250_v37 = vor.u32 %v12076_v41, %v10247_v51 }
 0x881   :  { %v4419_v47 = vpop.f32.mrf.mxu3  ;;  %4701 = vmatmul.bf16.gmra.mxu0 %v10246_v29 }
 0x882   :  { %v14482_v6 = vadd.f32 %v4419_v47, %v14421_v32  ;;  %v10223_v47 = vld [vmem:[#allocation2 + $0x8b8] sm:$0xf0]  ;;  %v4667_v22 = vpop.f32.mrf.mxu0 }
 0x885   :  { %4799 = vmatmul.bf16.gmra.mxu2 %v10254_v28 }
 0x889   :  { %v4421_v38 = vpop.f32.mrf.mxu3 }
 0x88a   :  { %v14485_v55 = vadd.f32 %v4421_v38, %v14424_v14  ;;  %v12065_v14 = vld [vmem:[#allocation2 + $0x88c] sm:$0xf]  ;;  %v4765_v38 = vpop.f32.mrf.mxu2  ;;  %v4669_v60 = vpop.f32.mrf.mxu0 }
 0x88b   :  { %v10210_v3 = vor.u32 %v12065_v14, %v10207_v61  ;;  %v4716_v24 = vpop.f32.mrf.mxu1 }
 0x88c   :  { %v4717_v20 = vadd.f32 %v4716_v24, %v4667_v22 }
 0x88e   :  { %4828 = vmatmul.bf16.gmra.mxu3 %v10194_v54  ;;  %4750 = vmatmul.bf16.gmra.mxu1 %v10250_v37  ;;  %v4766_v41 = vadd.f32 %v4765_v38, %v4717_v20 }
 0x891   :  { %v4424_v32 = vpop.f32.mrf.mxu3 }
 0x892   :  { %v14488_v11 = vadd.f32 %v4424_v32, %v14427_v49  ;;  %v4672_v30 = vpop.f32.mrf.mxu0 }
 0x893   :  { %v4718_v16 = vpop.f32.mrf.mxu1 }
 0x894   :  { %v4719_v34 = vadd.f32 %v4718_v16, %v4669_v60 }
 0x899   :  { %v4426_v62 = vpop.f32.mrf.mxu3 }
 0x89a   :  { %v14491_v1 = vadd.f32 %v4426_v62, %v14430_v13  ;;  %v12069_v13 = vld [vmem:[#allocation2 + $0x8ac] sm:$0xf]  ;;  %v4674_v62 = vpop.f32.mrf.mxu0 }
 0x89b   :  { %v10226_v36 = vor.u32 %v12069_v13, %v10223_v47 }
 0x89e   :  { %4833 = vmatmul.bf16.gmra.mxu3 %v10210_v3 }
 0x8a1   :  { %v4429_v49 = vpop.f32.mrf.mxu3 }
 0x8a2   :  { %v14494_v21 = vadd.f32 %v4429_v49, %v14433_v19  ;;  %v4889_v19 = vsel %vm1390_vm0, %v4863_v7, 0  ;;  %v4677_v28 = vpop.f32.mrf.mxu0 }
 0x8a3   :  { %4898 = vmatpush.bf16.msrb.mxu0 %v4889_v19 }
 0x8a9   :  { %v14496_v15 = vpop.f32.mrf.mxu3 }
 0x8ab   :  { %v4721_v43 = vpop.f32.mrf.mxu1 }
 0x8ac   :  { %v4722_v63 = vadd.f32 %v4721_v43, %v4672_v30 }
 0x8ae   :  { %4838 = vmatmul.bf16.gmra.mxu3 %v10226_v36 }
 0x8b1   :  { %v4434_v56 = vpop.f32.mrf.mxu3 }
 0x8b2   :  { %v14500_v2 = vadd.f32 %v4434_v56, %v14440_v52  ;;  %v4767_v52 = vpop.f32.mrf.mxu2 }
 0x8b3   :  { %v4768_v51 = vadd.f32 %v4767_v52, %v4719_v34 }
 0x8b9   :  { %v14502_v26 = vpop.f32.mrf.mxu3 }
 0x8ba   :  { %v4770_v61 = vpop.f32.mrf.mxu2 }
 0x8be   :  { %4843 = vmatmul.bf16.gmra.mxu3 %v10242_v53  ;;  %v4771_v53 = vadd.f32 %v4770_v61, %v4722_v63 }
 0x8c1   :  { %v4439_v54 = vpop.f32.mrf.mxu3 }
 0x8c2   :  { %v14505_v32 = vadd.f32 %v4439_v54, %v14449_v23  ;;  %v4723_v23 = vpop.f32.mrf.mxu1  ;;  %v4772_v49 = vpop.f32.mrf.mxu2 }
 0x8c3   :  { %v4724_v5 = vadd.f32 %v4723_v23, %v4674_v62 }
 0x8c5   :  { %v4773_v54 = vadd.f32 %v4772_v49, %v4724_v5 }
 0x8c9   :  { %v14507_v35 = vpop.f32.mrf.mxu3 }
 0x8ca   :  { %v4726_v25 = vpop.f32.mrf.mxu1  ;;  %v4775_v29 = vpop.f32.mrf.mxu2 }
 0x8ce   :  { %4848 = vmatmul.bf16.gmra.mxu3 %v10258_v4 }
 0x8d1   :  { %v4444_v58 = vpop.f32.mrf.mxu3 }
 0x8d2   :  { %v14510_v14 = vadd.f32 %v4444_v58, %v14457_v8  ;;  %v4679_v8 = vpop.f32.mrf.mxu0  ;;  %v4728_v7 = vpop.f32.mrf.mxu1 }
 0x8d3   :  { %v4777_v56 = vpop.f32.mrf.mxu2  ;;  %v4729_v20 = vadd.f32 %v4728_v7, %v4679_v8 }
 0x8d5   :  { %v4778_v30 = vadd.f32 %v4777_v56, %v4729_v20 }
 0x8d9   :  { %v14512_v3 = vpop.f32.mrf.mxu3 }
 0x8da   :  { %v4682_v22 = vpop.f32.mrf.mxu0  ;;  %v4731_v24 = vpop.f32.mrf.mxu1 }
 0x8db   :  { %v4780_v17 = vpop.f32.mrf.mxu2 }
 0x8e1   :  { %v4814_v10 = vpop.f32.mrf.mxu3 }
 0x8e2   :  { %v4815_v13 = vadd.f32 %v4814_v10, %v4766_v41  ;;  %v4684_v52 = vpop.f32.mrf.mxu0  ;;  %v4733_v58 = vpop.f32.mrf.mxu1  ;;  %v4727_v10 = vadd.f32 %v4726_v25, %v4677_v28 }
 0x8e3   :  { %v4782_v34 = vpop.f32.mrf.mxu2 }
 0x8e4   :  { %v4776_v41 = vadd.f32 %v4775_v29, %v4727_v10 }
 0x8e9   :  { %v4816_v37 = vpop.f32.mrf.mxu3 }
 0x8ea   :  { %v4817_v47 = vadd.f32 %v4816_v37, %v4768_v51  ;;  %v4687_v23 = vpop.f32.mrf.mxu0  ;;  %v4736_v49 = vpop.f32.mrf.mxu1 }
 0x8eb   :  { %v4785_v37 = vpop.f32.mrf.mxu2 }
 0x8ec   :  { %v4854_v36 = vpack.c.bf16 %v4817_v47, %v4815_v13  ;;  %v4732_v47 = vadd.f32 %v4731_v24, %v4682_v22 }
 0x8ee   :  { %10259 = vmatmul.msk.bf16.vlgmr.msrb.gmra.mxu0 %vm1365_vm1, %v4854_v36  ;;  %v4734_v36 = vadd.f32 %v4733_v58, %v4684_v52  ;;  %v4781_v5 = vadd.f32 %v4780_v17, %v4732_v47 }
 0x8f0   :  { %v4783_v28 = vadd.f32 %v4782_v34, %v4734_v36 }
 0x8f1   :  { %v4819_v19 = vpop.f32.mrf.mxu3 }
 0x8f2   :  { %v4820_v38 = vadd.f32 %v4819_v19, %v4771_v53  ;;  %v4689_v19 = vpop.f32.mrf.mxu0  ;;  %v4738_v63 = vpop.f32.mrf.mxu1 }
 0x8f3   :  { %v4787_v8 = vpop.f32.mrf.mxu2 }
 0x8f9   :  { %v4821_v60 = vpop.f32.mrf.mxu3 }
 0x8fa   :  { %v4822_v16 = vadd.f32 %v4821_v60, %v4773_v54  ;;  %v4692_v53 = vpop.f32.mrf.mxu0  ;;  %v4741_v54 = vpop.f32.mrf.mxu1 }
 0x8fc   :  { %v4855_v42 = vpack.c.bf16 %v4822_v16, %v4820_v38  ;;  %v4737_v38 = vadd.f32 %v4736_v49, %v4687_v23  ;;  %v4790_v16 = vpop.f32.mrf.mxu2 }
 0x8fe   :  { %10260 = vmatmul.msk.bf16.gmra.mxu0 %vm1365_vm1, %v4855_v42  ;;  %v4739_v42 = vadd.f32 %v4738_v63, %v4689_v19 }
 0x900   :  { %v4788_v22 = vadd.f32 %v4787_v8, %v4739_v42 }
 0x901   :  { %v4824_v4 = vpop.f32.mrf.mxu3 }
 0x902   :  { %v4825_v61 = vadd.f32 %v4824_v4, %v4776_v41  ;;  %v4786_v4 = vadd.f32 %v4785_v37, %v4737_v38  ;;  %v4694_v24 = vpop.f32.mrf.mxu0  ;;  %v4743_v58 = vpop.f32.mrf.mxu1 }
 0x904   :  { %v4792_v34 = vpop.f32.mrf.mxu2 }
 0x909   :  { %v4826_v43 = vpop.f32.mrf.mxu3 }
 0x90a   :  { %v4827_v62 = vadd.f32 %v4826_v43, %v4778_v30  ;;  %v4742_v30 = vadd.f32 %v4741_v54, %v4692_v53  ;;  %v4697_v43 = vpop.f32.mrf.mxu0 }
 0x90c   :  { %v4856_v51 = vpack.c.bf16 %v4827_v62, %v4825_v61  ;;  %v4746_v61 = vpop.f32.mrf.mxu1  ;;  %v4744_v62 = vadd.f32 %v4743_v58, %v4694_v24  ;;  %v4795_v23 = vpop.f32.mrf.mxu2 }
 0x90e   :  { %10261 = vmatmul.msk.bf16.gmra.mxu0 %vm1365_vm1, %v4856_v51  ;;  %v4791_v51 = vadd.f32 %v4790_v16, %v4742_v30  ;;  %v4793_v49 = vadd.f32 %v4792_v34, %v4744_v62 }
 0x911   :  { %v4829_v13 = vpop.f32.mrf.mxu3 }
 0x912   :  { %v4830_v29 = vadd.f32 %v4829_v13, %v4781_v5  ;;  %v4699_v19 = vpop.f32.mrf.mxu0 }
 0x914   :  { %v4748_v63 = vpop.f32.mrf.mxu1  ;;  %v4797_v5 = vpop.f32.mrf.mxu2 }
 0x915   :  { %v4749_v8 = vadd.f32 %v4748_v63, %v4699_v19 }
 0x917   :  { %v4798_v53 = vadd.f32 %v4797_v5, %v4749_v8 }
 0x919   :  { %v4831_v25 = vpop.f32.mrf.mxu3 }
 0x91a   :  { %v4832_v7 = vadd.f32 %v4831_v25, %v4783_v28  ;;  %v4747_v25 = vadd.f32 %v4746_v61, %v4697_v43 }
 0x91c   :  { %v4857_v56 = vpack.c.bf16 %v4832_v7, %v4830_v29  ;;  %v4796_v29 = vadd.f32 %v4795_v23, %v4747_v25  ;;  %v4702_v7 = vpop.f32.mrf.mxu0  ;;  %v4800_v16 = vpop.f32.mrf.mxu2 }
 0x91e   :  { %10262 = vmatmul.msk.bf16.gmra.mxu0 %vm1365_vm1, %v4857_v56  ;;  %v4751_v56 = vpop.f32.mrf.mxu1 }
 0x921   :  { %v4834_v60 = vpop.f32.mrf.mxu3 }
 0x922   :  { %v4835_v17 = vadd.f32 %v4834_v60, %v4786_v4 }
 0x924   :  { %v4704_v4 = vpop.f32.mrf.mxu0 }
 0x929   :  { %v4836_v52 = vpop.f32.mrf.mxu3 }
 0x92a   :  { %v4837_v10 = vadd.f32 %v4836_v52, %v4788_v22  ;;  %v4753_v22 = vpop.f32.mrf.mxu1  ;;  %v4752_v52 = vadd.f32 %v4751_v56, %v4702_v7 }
 0x92b   :  { %v4754_v58 = vadd.f32 %v4753_v22, %v4704_v4 }
 0x92c   :  { %v4858_v20 = vpack.c.bf16 %v4837_v10, %v4835_v17  ;;  %v4802_v17 = vpop.f32.mrf.mxu2  ;;  %v4801_v10 = vadd.f32 %v4800_v16, %v4752_v52 }
 0x92e   :  { %10263 = vmatmul.msk.bf16.gmra.mxu0 %vm1365_vm1, %v4858_v20  ;;  %v4803_v20 = vadd.f32 %v4802_v17, %v4754_v58 }
 0x931   :  { %v4839_v41 = vpop.f32.mrf.mxu3 }
 0x932   :  { %v4840_v37 = vadd.f32 %v4839_v41, %v4791_v51  ;;  %v14523_v51 = vld [vmem:[#allocation6] ss:$0 sm:$0xff] }
 0x939   :  { %v4841_v13 = vpop.f32.mrf.mxu3 }
 0x93a   :  { %v4842_v47 = vadd.f32 %v4841_v13, %v4793_v49 }
 0x93c   :  { %v4859_v36 = vpack.c.bf16 %v4842_v47, %v4840_v37 }
 0x93e   :  { %10264 = vmatmul.msk.bf16.gmra.mxu0 %vm1365_vm1, %v4859_v36 }
 0x941   :  { %v4844_v28 = vpop.f32.mrf.mxu3 }
 0x942   :  { %v4845_v60 = vadd.f32 %v4844_v28, %v4796_v29 }
 0x949   :  { %v4846_v54 = vpop.f32.mrf.mxu3 }
 0x94a   :  { %v4847_v38 = vadd.f32 %v4846_v54, %v4798_v53 }
 0x94c   :  { %v4860_v42 = vpack.c.bf16 %v4847_v38, %v4845_v60 }
 0x94e   :  { %10265 = vmatmul.msk.bf16.gmra.mxu0 %vm1365_vm1, %v4860_v42 }
 0x951   :  { %v4849_v24 = vpop.f32.mrf.mxu3 }
 0x952   :  { %v4850_v41 = vadd.f32 %v4849_v24, %v4801_v10 }
 0x959   :  { %v4851_v34 = vpop.f32.mrf.mxu3 }
 0x95a   :  { %v4852_v30 = vadd.f32 %v4851_v34, %v4803_v20 }
 0x95c   :  { %v4861_v43 = vpack.c.bf16 %v4852_v30, %v4850_v41 }
 0x95e   :  { %10266 = vmatmul.msk.bf16.gmra.mxu0 %vm1365_vm1, %v4861_v43 }
 0x96b   :  { %v4900_v61 = vpop.f32.mrf.mxu0 }
 0x96c   :  { %v4940_v62 = vadd.f32 %v4900_v61, %v14470_v27 }
 0x96e   :  { %v4960_v23 = vadd.f32 %v14523_v51, %v4940_v62 }
 0x970   :  { %v4992_v37 = vmul.f32 0.01, %v4960_v23  ;;  %vm4976_vm2 = vcmp.gt.f32.partialorder %v4960_v23, 0.0 }
 0x972   :  { %v5008_v19 = vsel %vm4976_vm2, %v4960_v23, %v4992_v37  ;;  %vm5128_vm2 = vcmask 261120  }
 0x973   :  { %v4902_v49 = vpop.f32.mrf.mxu0 }
 0x974   :  { %v4941_v13 = vadd.f32 %v4902_v49, %v14473_v12 }
 0x976   :  { %v4961_v47 = vadd.f32 %v14523_v51, %v4941_v13 }
 0x978   :  { %vm4977_vm3 = vcmp.gt.f32.partialorder %v4961_v47, 0.0  ;;  %v4993_v36 = vmul.f32 0.01, %v4961_v47 }
 0x97a   :  { %v5009_v63 = vsel %vm4977_vm3, %v4961_v47, %v4993_v36 }
 0x97b   :  { %v14528_v5 = vpack.c.bf16 %v5009_v63, %v5008_v19  ;;  %v4905_v28 = vpop.f32.mrf.mxu0  ;;  %v14891_v19 = vld [vmem:[#allocation43_spill] sm:$0xff] }
 0x97c   :  { %v4942_v27 = vadd.f32 %v4905_v28, %v14476_v48 }
 0x97e   :  { %v4962_v25 = vadd.f32 %v14523_v51, %v4942_v27  ;;  %v14893_v27 = vld [vmem:[#allocation47_spill] sm:$0xff] }
 0x980   :  { %v4994_v7 = vmul.f32 0.01, %v4962_v25  ;;  %vm4978_vm4 = vcmp.gt.f32.partialorder %v4962_v25, 0.0 }
 0x982   :  { %v5010_v53 = vsel %vm4978_vm4, %v4962_v25, %v4994_v7 }
 0x983   :  { %v4907_v8 = vpop.f32.mrf.mxu0 }
 0x984   :  { %v4943_v29 = vadd.f32 %v4907_v8, %v14479_v57  ;;  %v14894_v8 = vld [vmem:[#allocation41_spill] sm:$0xff] }
 0x986   :  { %v4963_v12 = vadd.f32 %v14523_v51, %v4943_v29  ;;  %v14895_v29 = vld [vmem:[#allocation38_spill] sm:$0xff] }
 0x987   :  { %v1507_v7 = vadd.f32 %v14895_v29, %v14894_v8 }
 0x988   :  { %vm4979_vm5 = vcmp.gt.f32.partialorder %v4963_v12, 0.0  ;;  %v4995_v56 = vmul.f32 0.01, %v4963_v12 }
 0x98a   :  { %v5011_v54 = vsel %vm4979_vm5, %v4963_v12, %v4995_v56  ;;  %v14896_v12 = vld [vmem:[#allocation44_spill] sm:$0xff]  ;;  %v14897_v56 = vld [vmem:[#allocation42_spill] sm:$0xff] }
 0x98b   :  { %v14534_v60 = vpack.c.bf16 %v5011_v54, %v5010_v53  ;;  %v4910_v38 = vpop.f32.mrf.mxu0  ;;  %v1517_v53 = vadd.f32 %v14897_v56, %v14896_v12  ;;  %v14898_v54 = vld [vmem:[#allocation51_spill] sm:$0xff] }
 0x98c   :  { %v4944_v16 = vadd.f32 %v4910_v38, %v14482_v6 }
 0x98e   :  { %v4964_v48 = vadd.f32 %v14523_v51, %v4944_v16 }
 0x990   :  { %v4996_v22 = vmul.f32 0.01, %v4964_v48  ;;  %vm4980_vm6 = vcmp.gt.f32.partialorder %v4964_v48, 0.0 }
 0x992   :  { %v5012_v52 = vsel %vm4980_vm6, %v4964_v48, %v4996_v22  ;;  %v14900_v48 = vld [vmem:[#allocation48_spill] sm:$0xff]  ;;  %v14901_v22 = vld [vmem:[#allocation39_spill] sm:$0xff] }
 0x993   :  { %v4912_v42 = vpop.f32.mrf.mxu0 }
 0x994   :  { %v4945_v4 = vadd.f32 %v4912_v42, %v14485_v55  ;;  %v2009_v42 = vadd.f32 %v14900_v48, %v1517_v53 }
 0x996   :  { %v4965_v57 = vadd.f32 %v14523_v51, %v4945_v4 }
 0x998   :  { %vm4981_vm7 = vcmp.gt.f32.partialorder %v4965_v57, 0.0  ;;  %v4997_v24 = vmul.f32 0.01, %v4965_v57 }
 0x99a   :  { %v5013_v58 = vsel %vm4981_vm7, %v4965_v57, %v4997_v24  ;;  %v14902_v57 = vld [vmem:[#allocation37_spill] sm:$0xff]  ;;  %vm5879_vm7 = vcmask 523264  }
 0x99b   :  { %v14540_v17 = vpack.c.bf16 %v5013_v58, %v5012_v52  ;;  %v4915_v10 = vpop.f32.mrf.mxu0  ;;  %v1502_v24 = vadd.f32 %v14902_v57, %v14901_v22  ;;  %v14903_v52 = vld [vmem:[#allocation50_spill] sm:$0xff] }
 0x99c   :  { %v4946_v20 = vadd.f32 %v4915_v10, %v14488_v11  ;;  %v14904_v10 = vld [vmem:[#allocation52_spill] sm:$0xff] }
 0x99e   :  { %v4966_v6 = vadd.f32 %v14523_v51, %v4946_v20  ;;  %v2500_v20 = vadd.f32 %v14904_v10, %v2009_v42  ;;  %v12084_v10 = vld [vmem:[#allocation7 + $0x10] sm:$0xff] }
 0x9a0   :  { %v4998_v30 = vmul.f32 0.01, %v4966_v6  ;;  %vm4982_vm8 = vcmp.gt.f32.partialorder %v4966_v6, 0.0 }
 0x9a2   :  { %v5014_v61 = vsel %vm4982_vm8, %v4966_v6, %v4998_v30 }
 0x9a3   :  { %v4917_v34 = vpop.f32.mrf.mxu0 }
 0x9a4   :  { %v4947_v41 = vadd.f32 %v4917_v34, %v14491_v1  ;;  %v14892_v1 = vld [vmem:[#allocation40_spill] sm:$0xff]  ;;  %v14905_v34 = vld [vmem:[#allocation45_spill] sm:$0xff] }
 0x9a5   :  { %v1512_v63 = vadd.f32 %v14892_v1, %v14891_v19 }
 0x9a6   :  { %v4967_v55 = vadd.f32 %v14523_v51, %v4947_v41  ;;  %v2003_v41 = vadd.f32 %v14905_v34, %v1502_v24  ;;  %v12081_v34 = vld [vmem:[#allocation7 + $0x8] sm:$0xff] }
 0x9a7   :  { %v2007_v25 = vadd.f32 %v14893_v27, %v1512_v63 }
 0x9a8   :  { %vm4983_vm9 = vcmp.gt.f32.partialorder %v4967_v55, 0.0  ;;  %v4999_v43 = vmul.f32 0.01, %v4967_v55 }
 0x9a9   :  { %v2498_v38 = vadd.f32 %v14898_v54, %v2007_v25 }
 0x9aa   :  { %v5015_v62 = vsel %vm4983_vm9, %v4967_v55, %v4999_v43  ;;  %v2991_v43 = vadd.f32 %v14215_v9, %v2500_v20  ;;  %v12082_v20 = vld [vmem:[#allocation9] sm:$0xff]  ;;  %vm6433_vm9 = vcmask 1043456  }
 0x9ab   :  { %v14546_v23 = vpack.c.bf16 %v5015_v62, %v5014_v61  ;;  %v4920_v49 = vpop.f32.mrf.mxu0  ;;  %v2989_v4 = vadd.f32 %v14209_v50, %v2498_v38  ;;  %v14906_v62 = vld [vmem:[#allocation49_spill] sm:$0xff] }
 0x9ac   :  { %v14549_v13 = vadd.f32 %v4920_v49, %v14494_v21  ;;  %v14899_v21 = vld [vmem:[#allocation46_spill] sm:$0xff]  ;;  %v2494_v50 = vadd.f32 %v14906_v62, %v2003_v41  ;;  %v3482_v19 = vadd.f32 %v14382_v0, %v2991_v43  ;;  %v12095_v41 = vld [vmem:[#allocation9 + $0x38] sm:$0xff] }
 0x9ad   :  { %v2005_v16 = vadd.f32 %v14899_v21, %v1507_v7  ;;  %v3480_v6 = vadd.f32 %v14371_v46, %v2989_v4  ;;  %v12089_v43 = vld [vmem:[#allocation7 + $0x28] sm:$0xff]  ;;  %v12086_v62 = vld [vmem:[#allocation9 + $0x10] sm:$0xff] }
 0x9ae   :  { %v2985_v46 = vadd.f32 %v14191_v40, %v2494_v50  ;;  %v12091_v50 = vld [vmem:[#allocation9 + $0x28] sm:$0xff] }
 0x9af   :  { %v2496_v58 = vadd.f32 %v14903_v52, %v2005_v16  ;;  %v3971_v61 = vadd.f32 %v14452_v18, %v3480_v6  ;;  %v12083_v52 = vld [vmem:[#allocation9 + $0x8] sm:$0xff] }
 0x9b0   :  { %v3476_v9 = vadd.f32 %v14318_v44, %v2985_v46  ;;  %v12085_v6 = vld [vmem:[#allocation7 + $0x18] sm:$0xff] }
 0x9b1   :  { %v2987_v55 = vadd.f32 %v14200_v39, %v2496_v58  ;;  %v4462_v1 = vadd.f32 %v14507_v35, %v3971_v61  ;;  %v3973_v39 = vadd.f32 %v14459_v33, %v3482_v19  ;;  %v12080_v58 = vld [vmem:[#allocation7] sm:$0xff]  ;;  %v12087_v61 = vld [vmem:[#allocation9 + $0x18] sm:$0xff] }
 0x9b2   :  { %v3967_v35 = vadd.f32 %v14435_v45, %v3476_v9  ;;  %5141 = vmatpush.bf16.msrb.mxu3 %v12087_v61 }
 0x9b3   :  { %v4922_v11 = vpop.f32.mrf.mxu0  ;;  %v3478_v49 = vadd.f32 %v14342_v59, %v2987_v55  ;;  %v4464_v8 = vadd.f32 %v14512_v3, %v3973_v39  ;;  %v12088_v55 = vld [vmem:[#allocation7 + $0x20] sm:$0xff] }
 0x9b4   :  { %v4458_v33 = vadd.f32 %v14496_v15, %v3967_v35 }
 0x9b5   :  { %v3969_v27 = vadd.f32 %v14443_v31, %v3478_v49  ;;  %v12090_v49 = vld [vmem:[#allocation9 + $0x20] sm:$0xff] }
 0x9b6   :  { %v4949_v7 = vadd.f32 %v4922_v11, %v4458_v33  ;;  %v4968_v11 = vadd.f32 %v14523_v51, %v14549_v13  ;;  %5142 = vmatpush.bf16.msrb.mxu3 %v12086_v62  ;;  %v12093_v33 = vld [vmem:[#allocation7 + $0x38] sm:$0xff] }
 0x9b7   :  { %v4460_v18 = vadd.f32 %v14502_v26, %v3969_v27  ;;  %v12107_v62 = vld [vmem:[#allocation9 + $0x68] sm:$0xff] }
 0x9b8   :  { %v5000_v4 = vmul.f32 0.01, %v4968_v11  ;;  %vm4984_vm1 = vcmp.gt.f32.partialorder %v4968_v11, 0.0 }
 0x9ba   :  { %v5016_v57 = vsel %vm4984_vm1, %v4968_v11, %v5000_v4  ;;  %5258 = vmatpush.bf16.msra.mxu3 %v12091_v50  ;;  %v12106_v50 = vld [vmem:[#allocation9 + $0x60] sm:$0xff] }
 0x9bb   :  { %v4925_v37 = vpop.f32.mrf.mxu0 }
 0x9be   :  { %5259 = vmatpush.bf16.msra.mxu3 %v12090_v49 }
 0x9c3   :  { %v4927_v47 = vpop.f32.mrf.mxu0 }
 0x9c4   :  { %v4951_v29 = vadd.f32 %v4927_v47, %v4460_v18 }
 0x9cb   :  { %v4930_v36 = vpop.f32.mrf.mxu0 }
 0x9cc   :  { %v4952_v59 = vadd.f32 %v4930_v36, %v14505_v32  ;;  %v4971_v32 = vadd.f32 %v14523_v51, %v4951_v29 }
 0x9ce   :  { %v4972_v44 = vadd.f32 %v14523_v51, %v4952_v59  ;;  %v5003_v53 = vmul.f32 0.01, %v4971_v32  ;;  %vm4987_vm14 = vcmp.gt.f32.partialorder %v4971_v32, 0.0 }
 0x9d0   :  { %v5004_v12 = vmul.f32 0.01, %v4972_v44  ;;  %vm4988_vm13 = vcmp.gt.f32.partialorder %v4972_v44, 0.0  ;;  %v5019_v42 = vsel %vm4987_vm14, %v4971_v32, %v5003_v53 }
 0x9d2   :  { %v5020_v21 = vsel %vm4988_vm13, %v4972_v44, %v5004_v12 }
 0x9d3   :  { %v4932_v28 = vpop.f32.mrf.mxu0 }
 0x9d4   :  { %v4953_v25 = vadd.f32 %v4932_v28, %v4462_v1  ;;  %v4950_v28 = vadd.f32 %v4925_v37, %v14500_v2  ;;  %v4969_v37 = vadd.f32 %v14523_v51, %v4949_v7 }
 0x9d6   :  { %v4973_v40 = vadd.f32 %v14523_v51, %v4953_v25  ;;  %v4970_v47 = vadd.f32 %v14523_v51, %v4950_v28  ;;  %v5001_v48 = vmul.f32 0.01, %v4969_v37  ;;  %vm4985_vm0 = vcmp.gt.f32.partialorder %v4969_v37, 0.0 }
 0x9d8   :  { %v5005_v36 = vmul.f32 0.01, %v4973_v40  ;;  %vm4989_vm12 = vcmp.gt.f32.partialorder %v4973_v40, 0.0  ;;  %v5002_v38 = vmul.f32 0.01, %v4970_v47  ;;  %vm4986_vm15 = vcmp.gt.f32.partialorder %v4970_v47, 0.0 }
 0x9d9   :  { %v5017_v13 = vsel %vm4985_vm0, %v4969_v37, %v5001_v48 }
 0x9da   :  { %v5021_v54 = vsel %vm4989_vm12, %v4973_v40, %v5005_v36  ;;  %v5018_v22 = vsel %vm4986_vm15, %v4970_v47, %v5002_v38  ;;  %v14610_v24 = vpack.c.bf16 %v5017_v13, %v5016_v57  ;;  %v12104_v38 = vld [vmem:[#allocation7 + $0x60] sm:$0xff]  ;;  %v12098_v13 = vld [vmem:[#allocation9 + $0x40] sm:$0xff] }
 0x9db   :  { %v4935_v30 = vpop.f32.mrf.mxu0  ;;  %v14600_v16 = vpack.c.bf16 %v5021_v54, %v5020_v21 }
 0x9dc   :  { %v4954_v63 = vadd.f32 %v4935_v30, %v14510_v14  ;;  %v12094_v30 = vld [vmem:[#allocation9 + $0x30] sm:$0xff] }
 0x9de   :  { %v4974_v0 = vadd.f32 %v14523_v51, %v4954_v63 }
 0x9e0   :  { %v5006_v26 = vmul.f32 0.01, %v4974_v0  ;;  %vm4990_vm10 = vcmp.gt.f32.partialorder %v4974_v0, 0.0 }
 0x9e2   :  { %v5022_v56 = vsel %vm4990_vm10, %v4974_v0, %v5006_v26  ;;  %v12096_v26 = vld [vmem:[#allocation7 + $0x40] sm:$0xff]  ;;  %vm6429_vm10 = vcmask 64512  }
 0x9e3   :  { %v4937_v14 = vpop.f32.mrf.mxu0 }
 0x9e4   :  { %v4955_v31 = vadd.f32 %v4937_v14, %v4464_v8  ;;  %v12092_v14 = vld [vmem:[#allocation7 + $0x30] sm:$0xff] }
 0x9e6   :  { %v4975_v3 = vadd.f32 %v14523_v51, %v4955_v31  ;;  %v14605_v51 = vpack.c.bf16 %v5019_v42, %v5018_v22  ;;  %v12099_v42 = vld [vmem:[#allocation9 + $0x48] sm:$0xff] }
 0x9e8   :  { %vm4991_vm11 = vcmp.gt.f32.partialorder %v4975_v3, 0.0  ;;  %v5007_v45 = vmul.f32 0.01, %v4975_v3 }
 0x9ea   :  { %v5023_v15 = vsel %vm4991_vm11, %v4975_v3, %v5007_v45  ;;  %v12097_v3 = vld [vmem:[#allocation7 + $0x48] sm:$0xff] }
 0x9eb   :  { %v14592_v2 = vpack.c.bf16 %v5023_v15, %v5022_v56 }
 0x9ed   :  { %5048 = vmatpush.bf16.msrb.mxu1 %v14592_v2  ;;  %5090 = vmatpush.bf16.msrb.mxu2 %v14592_v2 }
 0x9ee   :  { %5544 = vmatpush.bf16.msra.mxu0 %v14592_v2 }
 0x9f1   :  { %5049 = vmatpush.bf16.msrb.mxu1 %v14600_v16  ;;  %5091 = vmatpush.bf16.msrb.mxu2 %v14600_v16 }
 0x9f2   :  { %5545 = vmatpush.bf16.msra.mxu0 %v14600_v16 }
 0x9f5   :  { %5050 = vmatpush.bf16.msrb.mxu1 %v14605_v51  ;;  %5092 = vmatpush.bf16.msrb.mxu2 %v14605_v51 }
 0x9f6   :  { %5546 = vmatpush.bf16.msra.mxu0 %v14605_v51 }
 0x9f9   :  { %5051 = vmatpush.bf16.msrb.mxu1 %v14610_v24  ;;  %5093 = vmatpush.bf16.msrb.mxu2 %v14610_v24 }
 0x9fa   :  { %5547 = vmatpush.bf16.msra.mxu0 %v14610_v24 }
 0x9fd   :  { %5052 = vmatpush.bf16.msrb.mxu1 %v14546_v23  ;;  %5094 = vmatpush.bf16.msrb.mxu2 %v14546_v23 }
 0x9fe   :  { %5548 = vmatpush.bf16.msra.mxu0 %v14546_v23 }
 0xa01   :  { %5053 = vmatpush.bf16.msrb.mxu1 %v14540_v17  ;;  %5095 = vmatpush.bf16.msrb.mxu2 %v14540_v17 }
 0xa02   :  { %5549 = vmatpush.bf16.msra.mxu0 %v14540_v17 }
 0xa05   :  { %5054 = vmatpush.bf16.msrb.mxu1 %v14534_v60  ;;  %5096 = vmatpush.bf16.msrb.mxu2 %v14534_v60 }
 0xa06   :  { %5550 = vmatpush.bf16.msra.mxu0 %v14534_v60 }
 0xa09   :  { %5055 = vmatpush.bf16.msrb.mxu1 %v14528_v5  ;;  %5097 = vmatpush.bf16.msrb.mxu2 %v14528_v5 }
 0xa0a   :  { %5551 = vmatpush.bf16.msra.mxu0 %v14528_v5 }
 0xa0c   :  { %5056 = vmatmul.bf16.vlgmr.msrb.gmra.mxu1 %v12080_v58  ;;  %5098 = vmatmul.bf16.vlgmr.msrb.gmra.mxu2 %v12084_v10  ;;  %v12105_v58 = vld [vmem:[#allocation7 + $0x68] sm:$0xff] }
 0xa0d   :  { %5178 = vmatpush.bf16.msra.mxu1 %v12083_v52  ;;  %5208 = vmatpush.bf16.msra.mxu2 %v14592_v2 }
 0xa0e   :  { %5712 = vmatpush.bf16.msrb.mxu0 %v14592_v2 }
 0xa0f   :  { %5552 = vmatmul.bf16.vlgmr.msra.gmra.mxu0 %v12104_v38 }
 0xa11   :  { %5179 = vmatpush.bf16.msra.mxu1 %v12082_v20  ;;  %5209 = vmatpush.bf16.msra.mxu2 %v14600_v16 }
 0xa12   :  { %5713 = vmatpush.bf16.msrb.mxu0 %v14600_v16 }
 0xa15   :  { %5292 = vmatpush.bf16.msrb.mxu1 %v14592_v2  ;;  %5210 = vmatpush.bf16.msra.mxu2 %v14605_v51 }
 0xa16   :  { %5714 = vmatpush.bf16.msrb.mxu0 %v14605_v51 }
 0xa19   :  { %5293 = vmatpush.bf16.msrb.mxu1 %v14600_v16  ;;  %5211 = vmatpush.bf16.msra.mxu2 %v14610_v24 }
 0xa1a   :  { %5715 = vmatpush.bf16.msrb.mxu0 %v14610_v24 }
 0xa1c   :  { %5103 = vmatmul.bf16.gmra.mxu2 %v12085_v6  ;;  %5061 = vmatmul.bf16.gmra.mxu1 %v12081_v34 }
 0xa1d   :  { %5294 = vmatpush.bf16.msrb.mxu1 %v14605_v51  ;;  %5212 = vmatpush.bf16.msra.mxu2 %v14546_v23 }
 0xa1e   :  { %5716 = vmatpush.bf16.msrb.mxu0 %v14546_v23 }
 0xa1f   :  { %5557 = vmatmul.bf16.gmra.mxu0 %v12105_v58 }
 0xa21   :  { %5295 = vmatpush.bf16.msrb.mxu1 %v14610_v24  ;;  %5213 = vmatpush.bf16.msra.mxu2 %v14540_v17 }
 0xa22   :  { %5717 = vmatpush.bf16.msrb.mxu0 %v14540_v17 }
 0xa25   :  { %5296 = vmatpush.bf16.msrb.mxu1 %v14546_v23  ;;  %5214 = vmatpush.bf16.msra.mxu2 %v14534_v60 }
 0xa26   :  { %5718 = vmatpush.bf16.msrb.mxu0 %v14534_v60 }
 0xa29   :  { %5297 = vmatpush.bf16.msrb.mxu1 %v14540_v17  ;;  %5215 = vmatpush.bf16.msra.mxu2 %v14528_v5 }
 0xa2a   :  { %5719 = vmatpush.bf16.msrb.mxu0 %v14528_v5 }
 0xa2c   :  { %5216 = vmatmul.bf16.vlgmr.msra.gmra.mxu2 %v12088_v55 }
 0xa2d   :  { %5298 = vmatpush.bf16.msrb.mxu1 %v14534_v60  ;;  %5342 = vmatpush.bf16.msrb.mxu2 %v12095_v41 }
 0xa31   :  { %5299 = vmatpush.bf16.msrb.mxu1 %v14528_v5  ;;  %5343 = vmatpush.bf16.msrb.mxu2 %v12094_v30  ;;  %v12113_v30 = vld [vmem:[#allocation7 + $0x88] sm:$0xff] }
 0xa35   :  { %5460 = vmatpush.bf16.msra.mxu2 %v14592_v2 }
 0xa39   :  { %5461 = vmatpush.bf16.msra.mxu2 %v14600_v16 }
 0xa3c   :  { %5221 = vmatmul.bf16.gmra.mxu2 %v12089_v43  ;;  %v12108_v43 = vld [vmem:[#allocation7 + $0x70] sm:$0xff] }
 0xa3d   :  { %5462 = vmatpush.bf16.msra.mxu2 %v14605_v51 }
 0xa41   :  { %5463 = vmatpush.bf16.msra.mxu2 %v14610_v24 }
 0xa45   :  { %5464 = vmatpush.bf16.msra.mxu2 %v14546_v23 }
 0xa49   :  { %5465 = vmatpush.bf16.msra.mxu2 %v14540_v17 }
 0xa4d   :  { %5466 = vmatpush.bf16.msra.mxu2 %v14534_v60 }
 0xa51   :  { %5467 = vmatpush.bf16.msra.mxu2 %v14528_v5 }
 0xa89   :  { %v5057_v19 = vpop.f32.mrf.mxu1 }
 0xa8c   :  { %v5553_v61 = vpop.f32.mrf.mxu0 }
 0xa8f   :  { %v5099_v1 = vpop.f32.mrf.mxu2 }
 0xa91   :  { %v5059_v63 = vpop.f32.mrf.mxu1 }
 0xa92   :  { %v5067_v46 = vpack.c.bf16 %v5059_v63, %v5057_v19  ;;  %v12103_v19 = vld [vmem:[#allocation9 + $0x58] sm:$0xff] }
 0xa94   :  { %10301 = vmatmul.msk.bf16.vlgmr.msra.gmra.mxu1 %vm5128_vm2, %v5067_v46  ;;  %v5555_v63 = vpop.f32.mrf.mxu0 }
 0xa95   :  { %5426 = vmatpush.bf16.msra.mxu1 %v12099_v42  ;;  %v5563_v46 = vpack.c.bf16 %v5555_v63, %v5553_v61 }
 0xa97   :  { %v5101_v27 = vpop.f32.mrf.mxu2 }
 0xa98   :  { %v5109_v39 = vpack.c.bf16 %v5101_v27, %v5099_v1  ;;  %v12102_v27 = vld [vmem:[#allocation9 + $0x50] sm:$0xff] }
 0xa99   :  { %v5062_v25 = vpop.f32.mrf.mxu1  ;;  %5427 = vmatpush.bf16.msra.mxu1 %v12098_v13 }
 0xa9a   :  { %10291 = vmatmul.msk.bf16.vlgmr.msrb.gmra.mxu3 %vm5128_vm2, %v5109_v39 }
 0xa9b   :  { %5376 = vmatpush.bf16.msrb.mxu3 %v14592_v2 }
 0xa9f   :  { %5377 = vmatpush.bf16.msrb.mxu3 %v14600_v16  ;;  %v5104_v9 = vpop.f32.mrf.mxu2 }
 0xaa1   :  { %v5064_v18 = vpop.f32.mrf.mxu1 }
 0xaa2   :  { %v5068_v8 = vpack.c.bf16 %v5064_v18, %v5062_v25  ;;  %v5558_v25 = vpop.f32.mrf.mxu0 }
 0xaa3   :  { %5378 = vmatpush.bf16.msrb.mxu3 %v14605_v51 }
 0xaa4   :  { %10302 = vmatmul.msk.bf16.gmra.mxu1 %vm5128_vm2, %v5068_v8 }
 0xaa7   :  { %5379 = vmatpush.bf16.msrb.mxu3 %v14610_v24  ;;  %v5106_v59 = vpop.f32.mrf.mxu2 }
 0xaa8   :  { %v5110_v0 = vpack.c.bf16 %v5106_v59, %v5104_v9 }
 0xaaa   :  { %10292 = vmatmul.msk.bf16.gmra.mxu3 %vm5128_vm2, %v5110_v0  ;;  %v5560_v8 = vpop.f32.mrf.mxu0 }
 0xaab   :  { %5380 = vmatpush.bf16.msrb.mxu3 %v14546_v23  ;;  %v5564_v59 = vpack.c.bf16 %v5560_v8, %v5558_v25 }
 0xaaf   :  { %5381 = vmatpush.bf16.msrb.mxu3 %v14540_v17  ;;  %v5217_v35 = vpop.f32.mrf.mxu2 }
 0xab3   :  { %5382 = vmatpush.bf16.msrb.mxu3 %v14534_v60 }
 0xab4   :  { %5300 = vmatmul.bf16.vlgmr.msrb.gmra.mxu1 %v12092_v14  ;;  %v12115_v14 = vld [vmem:[#allocation9 + $0x88] sm:$0xff] }
 0xab5   :  { %5594 = vmatpush.bf16.msrb.mxu1 %v12107_v62 }
 0xab7   :  { %5383 = vmatpush.bf16.msrb.mxu3 %v14528_v5  ;;  %v5219_v29 = vpop.f32.mrf.mxu2 }
 0xab8   :  { %v5227_v40 = vpack.c.bf16 %v5219_v29, %v5217_v35  ;;  %v12114_v29 = vld [vmem:[#allocation9 + $0x80] sm:$0xff] }
 0xab9   :  { %5595 = vmatpush.bf16.msrb.mxu1 %v12106_v50 }
 0xaba   :  { %10319 = vmatmul.msk.bf16.vlgmr.msra.gmra.mxu3 %vm5128_vm2, %v5227_v40 }
 0xabb   :  { %5510 = vmatpush.bf16.msra.mxu3 %v12103_v19 }
 0xabf   :  { %v5222_v31 = vpop.f32.mrf.mxu2  ;;  %5511 = vmatpush.bf16.msra.mxu3 %v12102_v27 }
 0xac4   :  { %5305 = vmatmul.bf16.gmra.mxu1 %v12093_v33 }
 0xac7   :  { %v5224_v28 = vpop.f32.mrf.mxu2 }
 0xac8   :  { %v5228_v44 = vpack.c.bf16 %v5224_v28, %v5222_v31  ;;  %v12111_v31 = vld [vmem:[#allocation9 + $0x78] sm:$0xff] }
 0xaca   :  { %10320 = vmatmul.msk.bf16.gmra.mxu3 %vm5128_vm2, %v5228_v44 }
 0xada   :  { %5384 = vmatmul.bf16.vlgmr.msrb.gmra.mxu3 %v12096_v26 }
 0xadb   :  { %5678 = vmatpush.bf16.msrb.mxu3 %v12111_v31 }
 0xaea   :  { %5389 = vmatmul.bf16.gmra.mxu3 %v12097_v3  ;;  %v12110_v3 = vld [vmem:[#allocation9 + $0x70] sm:$0xff] }
 0xaeb   :  { %5679 = vmatpush.bf16.msrb.mxu3 %v12110_v3 }
 0xb11   :  { %v5181_v7 = vpop.f32.mrf.mxu1 }
 0xb19   :  { %v14673_v32 = vpop.f32.mrf.mxu1 }
 0xb1d   :  { %v5144_v36 = vpop.f32.mrf.mxu3 }
 0xb1e   :  { %v5182_v45 = vadd.f32 %v5181_v7, %v5144_v36 }
 0xb21   :  { %v5186_v47 = vpop.f32.mrf.mxu1 }
 0xb25   :  { %v14675_v12 = vpop.f32.mrf.mxu3 }
 0xb29   :  { %v14677_v56 = vpop.f32.mrf.mxu1 }
 0xb2d   :  { %v5149_v15 = vpop.f32.mrf.mxu3 }
 0xb2e   :  { %v5187_v37 = vadd.f32 %v5186_v47, %v5149_v15 }
 0xb31   :  { %v5301_v53 = vpop.f32.mrf.mxu1 }
 0xb35   :  { %v14679_v54 = vpop.f32.mrf.mxu3 }
 0xb36   :  { %v5189_v62 = vadd.f32 %v14677_v56, %v14679_v54  ;;  %v12466_v56 = vld [vmem:[#allocation10] ss:$0 sm:$0xff] }
 0xb39   :  { %v5303_v11 = vpop.f32.mrf.mxu1 }
 0xb3a   :  { %v5311_v21 = vpack.c.bf16 %v5303_v11, %v5301_v53 }
 0xb3c   :  { %10337 = vmatmul.msk.bf16.vlgmr.msrb.gmra.mxu2 %vm5128_vm2, %v5311_v21 }
 0xb3d   :  { %5628 = vmatpush.bf16.msrb.mxu2 %v14592_v2  ;;  %v5261_v48 = vpop.f32.mrf.mxu3 }
 0xb3e   :  { %v5271_v4 = vadd.f32 %v5261_v48, %v5182_v45 }
 0xb41   :  { %5629 = vmatpush.bf16.msrb.mxu2 %v14600_v16  ;;  %v5306_v22 = vpop.f32.mrf.mxu1 }
 0xb45   :  { %5630 = vmatpush.bf16.msrb.mxu2 %v14605_v51  ;;  %v14685_v57 = vpop.f32.mrf.mxu3  ;;  %v12100_v51 = vld [vmem:[#allocation7 + $0x50] sm:$0xff] }
 0xb49   :  { %5631 = vmatpush.bf16.msrb.mxu2 %v14610_v24  ;;  %v5308_v52 = vpop.f32.mrf.mxu1  ;;  %v12112_v24 = vld [vmem:[#allocation7 + $0x80] sm:$0xff] }
 0xb4a   :  { %v5312_v10 = vpack.c.bf16 %v5308_v52, %v5306_v22  ;;  %5720 = vmatmul.bf16.vlgmr.msrb.gmra.mxu0 %v12112_v24 }
 0xb4c   :  { %10338 = vmatmul.msk.bf16.gmra.mxu2 %vm5128_vm2, %v5312_v10 }
 0xb4d   :  { %5632 = vmatpush.bf16.msrb.mxu2 %v14546_v23  ;;  %v5266_v2 = vpop.f32.mrf.mxu3  ;;  %v12101_v23 = vld [vmem:[#allocation7 + $0x58] sm:$0xff] }
 0xb4e   :  { %v5273_v20 = vadd.f32 %v5266_v2, %v5187_v37 }
 0xb51   :  { %5633 = vmatpush.bf16.msrb.mxu2 %v14540_v17 }
 0xb55   :  { %5634 = vmatpush.bf16.msrb.mxu2 %v14534_v60  ;;  %v14692_v16 = vpop.f32.mrf.mxu3 }
 0xb56   :  { %v5274_v19 = vadd.f32 %v14692_v16, %v5189_v62 }
 0xb59   :  { %5635 = vmatpush.bf16.msrb.mxu2 %v14528_v5  ;;  %v12109_v5 = vld [vmem:[#allocation7 + $0x78] sm:$0xff] }
 0xb5a   :  { %5725 = vmatmul.bf16.gmra.mxu0 %v12113_v30 }
 0xb5c   :  { %5468 = vmatmul.bf16.vlgmr.msra.gmra.mxu2 %v12100_v51 }
 0xb5d   :  { %v5385_v6 = vpop.f32.mrf.mxu3 }
 0xb65   :  { %v5387_v34 = vpop.f32.mrf.mxu3 }
 0xb66   :  { %v5395_v41 = vpack.c.bf16 %v5387_v34, %v5385_v6 }
 0xb68   :  { %10355 = vmatmul.msk.bf16.vlgmr.msra.gmra.mxu1 %vm5128_vm2, %v5395_v41 }
 0xb69   :  { %5762 = vmatpush.bf16.msra.mxu1 %v12115_v14 }
 0xb6c   :  { %5473 = vmatmul.bf16.gmra.mxu2 %v12101_v23 }
 0xb6d   :  { %v5390_v17 = vpop.f32.mrf.mxu3  ;;  %5763 = vmatpush.bf16.msra.mxu1 %v12114_v29 }
 0xb75   :  { %v5392_v55 = vpop.f32.mrf.mxu3 }
 0xb76   :  { %v5396_v60 = vpack.c.bf16 %v5392_v55, %v5390_v17  ;;  %v5184_v55 = vadd.f32 %v14673_v32, %v14675_v12 }
 0xb78   :  { %10356 = vmatmul.msk.bf16.gmra.mxu1 %vm5128_vm2, %v5396_v60 }
 0xb7c   :  { %5636 = vmatmul.bf16.vlgmr.msrb.gmra.mxu2 %v12108_v43  ;;  %v5272_v43 = vadd.f32 %v14685_v57, %v5184_v55 }
 0xb88   :  { %10391 = vmatmul.msk.bf16.vlgmr.msrb.gmra.mxu1 %vm5128_vm2, %v5563_v46 }
 0xb8c   :  { %5641 = vmatmul.bf16.gmra.mxu2 %v12109_v5 }
 0xb98   :  { %10392 = vmatmul.msk.bf16.gmra.mxu1 %vm5128_vm2, %v5564_v59 }
 0xbbf   :  { %v5345_v49 = vpop.f32.mrf.mxu2 }
 0xbc0   :  { %v5355_v1 = vadd.f32 %v5345_v49, %v5271_v4 }
 0xbc7   :  { %v5347_v39 = vpop.f32.mrf.mxu2  ;;  %v5721_v35 = vpop.f32.mrf.mxu0 }
 0xbc8   :  { %v5356_v61 = vadd.f32 %v5347_v39, %v5272_v43 }
 0xbcf   :  { %v5350_v9 = vpop.f32.mrf.mxu2  ;;  %v5723_v33 = vpop.f32.mrf.mxu0 }
 0xbd0   :  { %v5357_v18 = vadd.f32 %v5350_v9, %v5273_v20  ;;  %v5731_v28 = vpack.c.bf16 %v5723_v33, %v5721_v35 }
 0xbd2   :  { %10427 = vmatmul.msk.bf16.vlgmr.msra.gmra.mxu1 %vm5128_vm2, %v5731_v28 }
 0xbd7   :  { %v5352_v0 = vpop.f32.mrf.mxu2  ;;  %v5726_v45 = vpop.f32.mrf.mxu0 }
 0xbd8   :  { %v5358_v63 = vadd.f32 %v5352_v0, %v5274_v19  ;;  %v6351_v19 = vld [vmem:[#allocation12 + $0x20] sm:$0xf] }
 0xbdf   :  { %v5469_v40 = vpop.f32.mrf.mxu2  ;;  %v5728_v37 = vpop.f32.mrf.mxu0 }
 0xbe0   :  { %v5732_v53 = vpack.c.bf16 %v5728_v37, %v5726_v45 }
 0xbe2   :  { %10428 = vmatmul.msk.bf16.gmra.mxu1 %vm5128_vm2, %v5732_v53 }
 0xbe5   :  { %v5429_v44 = vpop.f32.mrf.mxu1 }
 0xbe6   :  { %v5439_v26 = vadd.f32 %v5429_v44, %v5355_v1 }
 0xbe7   :  { %v5471_v7 = vpop.f32.mrf.mxu2 }
 0xbe8   :  { %v5479_v36 = vpack.c.bf16 %v5471_v7, %v5469_v40 }
 0xbea   :  { %10373 = vmatmul.msk.bf16.vlgmr.msra.gmra.mxu3 %vm5128_vm2, %v5479_v36 }
 0xbed   :  { %v5431_v47 = vpop.f32.mrf.mxu1 }
 0xbee   :  { %v5440_v50 = vadd.f32 %v5431_v47, %v5356_v61 }
 0xbef   :  { %v5474_v15 = vpop.f32.mrf.mxu2 }
 0xbf5   :  { %v5434_v11 = vpop.f32.mrf.mxu1 }
 0xbf6   :  { %v5441_v38 = vadd.f32 %v5434_v11, %v5357_v18 }
 0xbf7   :  { %v5476_v21 = vpop.f32.mrf.mxu2 }
 0xbf8   :  { %v5480_v48 = vpack.c.bf16 %v5476_v21, %v5474_v15 }
 0xbfa   :  { %10374 = vmatmul.msk.bf16.gmra.mxu3 %vm5128_vm2, %v5480_v48  ;;  %v5828_v48 = vld [vmem:[#allocation12 + $0x4] sm:$0xf] }
 0xbfd   :  { %v5436_v10 = vpop.f32.mrf.mxu1 }
 0xbfe   :  { %v5442_v18 = vadd.f32 %v5436_v10, %v5358_v63  ;;  %v12119_v10 = vld [vmem:[#allocation13 + $0x18] sm:$0xff] }
 0xbff   :  { %v5637_v42 = vpop.f32.mrf.mxu2  ;;  %v6282_v63 = vld [vmem:[#allocation12 + $0x1c] sm:$0xf] }
 0xc05   :  { %v5597_v2 = vpop.f32.mrf.mxu1 }
 0xc07   :  { %v5639_v4 = vpop.f32.mrf.mxu2 }
 0xc08   :  { %v5647_v22 = vpack.c.bf16 %v5639_v4, %v5637_v42  ;;  %v5801_v42 = vld [vmem:[#allocation12] sm:$0xf]  ;;  %v5937_v4 = vld [vmem:[#allocation12 + $0x8] sm:$0xf] }
 0xc0a   :  { %10409 = vmatmul.msk.bf16.vlgmr.msrb.gmra.mxu3 %vm5128_vm2, %v5647_v22  ;;  %v12122_v22 = vld [vmem:[#allocation13 + $0x30] sm:$0xff] }
 0xc0d   :  { %v5599_v20 = vpop.f32.mrf.mxu1 }
 0xc0f   :  { %v5642_v13 = vpop.f32.mrf.mxu2 }
 0xc15   :  { %v5602_v6 = vpop.f32.mrf.mxu1 }
 0xc17   :  { %v5644_v52 = vpop.f32.mrf.mxu2 }
 0xc18   :  { %v5648_v58 = vpack.c.bf16 %v5644_v52, %v5642_v13  ;;  %v12121_v13 = vld [vmem:[#allocation13 + $0x28] sm:$0xff]  ;;  %v12120_v52 = vld [vmem:[#allocation13 + $0x20] sm:$0xff] }
 0xc1a   :  { %10410 = vmatmul.msk.bf16.gmra.mxu3 %vm5128_vm2, %v5648_v58  ;;  %v6075_v58 = vld [vmem:[#allocation12 + $0x10] sm:$0xf] }
 0xc1d   :  { %v5604_v41 = vpop.f32.mrf.mxu1 }
 0xc4f   :  { %v5765_v30 = vpop.f32.mrf.mxu1 }
 0xc57   :  { %v5767_v60 = vpop.f32.mrf.mxu1 }
 0xc5f   :  { %v5770_v9 = vpop.f32.mrf.mxu1 }
 0xc67   :  { %v5772_v0 = vpop.f32.mrf.mxu1 }
 0xc6d   :  { %v5513_v51 = vpop.f32.mrf.mxu3 }
 0xc6e   :  { %v5523_v46 = vadd.f32 %v5513_v51, %v5439_v26  ;;  %v12127_v51 = vld [vmem:[#allocation13 + $0x58] sm:$0xff] }
 0xc6f   :  { %5995 = vmatpush.bf16.msrb.mxu1 %v12127_v51 }
 0xc70   :  { %v5607_v8 = vadd.f32 %v5597_v2, %v5523_v46  ;;  %v12118_v2 = vld [vmem:[#allocation13 + $0x10] sm:$0xff]  ;;  %v12131_v46 = vld [vmem:[#allocation13 + $0x78] sm:$0xff] }
 0xc75   :  { %v5515_v24 = vpop.f32.mrf.mxu3 }
 0xc76   :  { %v5524_v1 = vadd.f32 %v5515_v24, %v5440_v50  ;;  %v12116_v24 = vld [vmem:[#allocation13] sm:$0xff] }
 0xc78   :  { %v5608_v32 = vadd.f32 %v5599_v20, %v5524_v1  ;;  %v12117_v20 = vld [vmem:[#allocation13 + $0x8] sm:$0xff]  ;;  %v6144_v1 = vld [vmem:[#allocation12 + $0x14] sm:$0xf] }
 0xc7d   :  { %v5518_v34 = vpop.f32.mrf.mxu3 }
 0xc7e   :  { %v5525_v49 = vadd.f32 %v5518_v34, %v5441_v38  ;;  %v12123_v38 = vld [vmem:[#allocation13 + $0x38] sm:$0xff]  ;;  %v12125_v34 = vld [vmem:[#allocation13 + $0x48] sm:$0xff] }
 0xc80   :  { %v5609_v27 = vadd.f32 %v5602_v6, %v5525_v49  ;;  %v12126_v6 = vld [vmem:[#allocation13 + $0x50] sm:$0xff]  ;;  %v6006_v49 = vld [vmem:[#allocation12 + $0xc] sm:$0xf] }
 0xc81   :  { %5996 = vmatpush.bf16.msrb.mxu1 %v12126_v6 }
 0xc85   :  { %v5520_v23 = vpop.f32.mrf.mxu3  ;;  %5997 = vmatpush.bf16.msrb.mxu1 %v12125_v34 }
 0xc86   :  { %v5526_v57 = vadd.f32 %v5520_v23, %v5442_v18  ;;  %v12129_v18 = vld [vmem:[#allocation13 + $0x68] sm:$0xff] }
 0xc88   :  { %v5610_v14 = vadd.f32 %v5604_v41, %v5526_v57  ;;  %v12124_v41 = vld [vmem:[#allocation13 + $0x40] sm:$0xff] }
 0xc89   :  { %5998 = vmatpush.bf16.msrb.mxu1 %v12124_v41 }
 0xc8d   :  { %v5681_v17 = vpop.f32.mrf.mxu3 }
 0xc8e   :  { %v5691_v39 = vadd.f32 %v5681_v17, %v5607_v8  ;;  %v12132_v8 = vld [vmem:[#allocation13 + $0x80] sm:$0xff] }
 0xc90   :  { %v5775_v40 = vadd.f32 %v5765_v30, %v5691_v39 }
 0xc92   :  { %v5783_v44 = vadd.f32 %v12466_v56, %v5775_v40 }
 0xc94   :  { %v5791_v45 = vmul.f32 0.01, %v5783_v44  ;;  %vm5787_vm6 = vcmp.gt.f32.partialorder %v5783_v44, 0.0 }
 0xc95   :  { %v5683_v5 = vpop.f32.mrf.mxu3 }
 0xc96   :  { %v5692_v59 = vadd.f32 %v5683_v5, %v5608_v32  ;;  %v5795_v11 = vsel %vm5787_vm6, %v5783_v44, %v5791_v45  ;;  %v6213_v5 = vld [vmem:[#allocation12 + $0x18] sm:$0xf]  ;;  %v12133_v32 = vld [vmem:[#allocation13 + $0x88] sm:$0xff]  ;;  %v12151_v45 = vld [vmem:[#allocation13 + $0x118] sm:$0xff] }
 0xc98   :  { %v5776_v54 = vadd.f32 %v5767_v60, %v5692_v59  ;;  %v12139_v59 = vld [vmem:[#allocation13 + $0xb8] sm:$0xff] }
 0xc9a   :  { %v5784_v33 = vadd.f32 %v12466_v56, %v5776_v54  ;;  %v12142_v54 = vld [vmem:[#allocation13 + $0xd0] sm:$0xff] }
 0xc9c   :  { %v5792_v7 = vmul.f32 0.01, %v5784_v33  ;;  %vm5788_vm5 = vcmp.gt.f32.partialorder %v5784_v33, 0.0 }
 0xc9d   :  { %v5686_v25 = vpop.f32.mrf.mxu3 }
 0xc9e   :  { %v5693_v12 = vadd.f32 %v5686_v25, %v5609_v27  ;;  %v5796_v53 = vsel %vm5788_vm5, %v5784_v33, %v5792_v7  ;;  %v12135_v27 = vld [vmem:[#allocation13 + $0x98] sm:$0xff]  ;;  %v12130_v25 = vld [vmem:[#allocation13 + $0x70] sm:$0xff]  ;;  %v12136_v33 = vld [vmem:[#allocation13 + $0xa0] sm:$0xff] }
 0xc9f   :  { %v14716_v21 = vpack.c.bf16 %v5796_v53, %v5795_v11  ;;  %6133 = vmatpush.bf16.msra.mxu1 %v12135_v27  ;;  %v12149_v11 = vld [vmem:[#allocation13 + $0x108] sm:$0xff] }
 0xca0   :  { %v5777_v35 = vadd.f32 %v5770_v9, %v5693_v12  ;;  %v12134_v9 = vld [vmem:[#allocation13 + $0x90] sm:$0xff]  ;;  %v12128_v12 = vld [vmem:[#allocation13 + $0x60] sm:$0xff] }
 0xca2   :  { %v5785_v16 = vadd.f32 %v12466_v56, %v5777_v35  ;;  %v12143_v35 = vld [vmem:[#allocation13 + $0xd8] sm:$0xff] }
 0xca3   :  { %6134 = vmatpush.bf16.msra.mxu1 %v12134_v9  ;;  %v10620_v9 = vld [vmem:[#allocation16 + $0xb0] sm:$0xf] }
 0xca4   :  { %v5793_v26 = vmul.f32 0.01, %v5785_v16  ;;  %vm5789_vm3 = vcmp.gt.f32.partialorder %v5785_v16, 0.0 }
 0xca5   :  { %v5688_v29 = vpop.f32.mrf.mxu3 }
 0xca6   :  { %v5694_v31 = vadd.f32 %v5688_v29, %v5610_v14  ;;  %v5797_v47 = vsel %vm5789_vm3, %v5785_v16, %v5793_v26  ;;  %v12137_v29 = vld [vmem:[#allocation13 + $0xa8] sm:$0xff] }
 0xca7   :  { %6135 = vmatpush.bf16.msra.mxu1 %v12133_v32  ;;  %v12141_v16 = vld [vmem:[#allocation13 + $0xc8] sm:$0xff] }
 0xca8   :  { %v5778_v28 = vadd.f32 %v5772_v0, %v5694_v31 }
 0xcaa   :  { %v5786_v3 = vadd.f32 %v12466_v56, %v5778_v28  ;;  %v12138_v56 = vld [vmem:[#allocation13 + $0xb0] sm:$0xff]  ;;  %v12140_v28 = vld [vmem:[#allocation13 + $0xc0] sm:$0xff] }
 0xcab   :  { %6136 = vmatpush.bf16.msra.mxu1 %v12132_v8  ;;  %v10612_v8 = vld [vmem:[#allocation16 + $0xa0] sm:$0xf] }
 0xcac   :  { %vm5790_vm4 = vcmp.gt.f32.partialorder %v5786_v3, 0.0  ;;  %v5794_v36 = vmul.f32 0.01, %v5786_v3 }
 0xcae   :  { %v5798_v15 = vsel %vm5790_vm4, %v5786_v3, %v5794_v36 }
 0xcaf   :  { %v14711_v37 = vpack.c.bf16 %v5798_v15, %v5797_v47  ;;  %v12150_v15 = vld [vmem:[#allocation13 + $0x110] sm:$0xff] }
 0xcb1   :  { %5811 = vmatpush.bf16.msra.mxu2 %v14711_v37  ;;  %5838 = vmatpush.bf16.msra.mxu3 %v14711_v37 }
 0xcb2   :  { %5947 = vmatpush.bf16.msra.mxu0 %v14711_v37 }
 0xcb5   :  { %5812 = vmatpush.bf16.msra.mxu2 %v14716_v21  ;;  %5839 = vmatpush.bf16.msra.mxu3 %v14716_v21 }
 0xcb6   :  { %5948 = vmatpush.bf16.msra.mxu0 %v14716_v21 }
 0xcb8   :  { %10430 = vmatmul.msk.bf16.vlgmr.msra.gmra.mxu3 %vm5128_vm2, %v5828_v48  ;;  %10429 = vmatmul.msk.bf16.vlgmr.msra.gmra.mxu2 %vm5128_vm2, %v5801_v42  ;;  %v12148_v48 = vld [vmem:[#allocation13 + $0x100] sm:$0xff] }
 0xcb9   :  { %5887 = vmatpush.bf16.msrb.mxu2 %v12123_v38  ;;  %10465 = vmatmul.msk.bf16.vlgmr.msra.gmra.mxu0 %vm5128_vm2, %v5937_v4 }
 0xcba   :  { %6085 = vmatpush.bf16.msrb.mxu0 %v14711_v37  ;;  %5927 = vmatpush.bf16.msrb.mxu3 %v12119_v10 }
 0xcbd   :  { %5888 = vmatpush.bf16.msrb.mxu2 %v12122_v22 }
 0xcbe   :  { %6086 = vmatpush.bf16.msrb.mxu0 %v14716_v21  ;;  %5928 = vmatpush.bf16.msrb.mxu3 %v12118_v2  ;;  %v12144_v2 = vld [vmem:[#allocation13 + $0xe0] sm:$0xff] }
 0xcc1   :  { %5889 = vmatpush.bf16.msrb.mxu2 %v12121_v13  ;;  %v12146_v13 = vld [vmem:[#allocation13 + $0xf0] sm:$0xff] }
 0xcc2   :  { %6223 = vmatpush.bf16.msra.mxu0 %v14711_v37  ;;  %5929 = vmatpush.bf16.msrb.mxu3 %v12117_v20 }
 0xcc5   :  { %5890 = vmatpush.bf16.msrb.mxu2 %v12120_v52 }
 0xcc6   :  { %6224 = vmatpush.bf16.msra.mxu0 %v14716_v21  ;;  %5930 = vmatpush.bf16.msrb.mxu3 %v12116_v24 }
 0xcc9   :  { %6016 = vmatpush.bf16.msra.mxu2 %v14711_v37  ;;  %10501 = vmatmul.msk.bf16.vlgmr.msrb.gmra.mxu0 %vm5128_vm2, %v6075_v58  ;;  %v12145_v58 = vld [vmem:[#allocation13 + $0xe8] sm:$0xff] }
 0xcca   :  { %6361 = vmatpush.bf16.msrb.mxu0 %v14711_v37  ;;  %6064 = vmatpush.bf16.msra.mxu3 %v12131_v46  ;;  %v12177_v46 = vld [vmem:[#allocation16 + $0xc4] sm:$0xf0] }
 0xccd   :  { %6017 = vmatpush.bf16.msra.mxu2 %v14716_v21 }
 0xcce   :  { %6362 = vmatpush.bf16.msrb.mxu0 %v14716_v21  ;;  %6065 = vmatpush.bf16.msra.mxu3 %v12130_v25 }
 0xcd2   :  { %6066 = vmatpush.bf16.msra.mxu3 %v12129_v18  ;;  %v12175_v18 = vld [vmem:[#allocation16 + $0xb4] sm:$0xf0] }
 0xcd6   :  { %6067 = vmatpush.bf16.msra.mxu3 %v12128_v12  ;;  %v10621_v12 = vor.u32 %v12175_v18, %v10620_v9  ;;  %v12172_v18 = vld [vmem:[#allocation16 + $0xa4] sm:$0xf] }
 0xcd9   :  { %10537 = vmatmul.msk.bf16.vlgmr.msra.gmra.mxu0 %vm5128_vm2, %v6213_v5  ;;  %v10644_v5 = vld [vmem:[#allocation16 + $0xe0] sm:$0xf] }
 0xce9   :  { %10573 = vmatmul.msk.bf16.vlgmr.msrb.gmra.mxu0 %vm5128_vm2, %v6351_v19  ;;  %v12179_v19 = vld [vmem:[#allocation16 + $0xd4] sm:$0xf0] }
 0xd36   :  { %v5950_v23 = vpop.f32.mrf.mxu0 }
 0xd37   :  { %v5954_v30 = vpack.c.bf16 %v5950_v23, %v5950_v23 }
 0xd39   :  { %10482 = vmatmul.msk.bf16.vlgmr.msrb.gmra.mxu1 %vm5879_vm7, %v5954_v30 }
 0xd3a   :  { %6271 = vmatpush.bf16.msrb.mxu1 %v12143_v35  ;;  %v10604_v35 = vld [vmem:[#allocation16 + $0x90] sm:$0xf] }
 0xd3b   :  { %v5841_v17 = vpop.f32.mrf.mxu3  ;;  %v5814_v55 = vpop.f32.mrf.mxu2 }
 0xd3c   :  { %v5845_v60 = vpack.c.bf16 %v5841_v17, %v5841_v17  ;;  %v5818_v43 = vpack.c.bf16 %v5814_v55, %v5814_v55  ;;  %v10652_v55 = vld [vmem:[#allocation16 + $0xf0] sm:$0xf] }
 0xd3e   :  { %10447 = vmatmul.msk.bf16.vlgmr.msrb.gmra.mxu2 %vm5879_vm7, %v5845_v60  ;;  %10464 = vmatmul.msk.bf16.vlgmr.msrb.gmra.mxu3 %vm5879_vm7, %v5818_v43  ;;  %v5952_v61 = vpop.f32.mrf.mxu0  ;;  %v12183_v60 = vld [vmem:[#allocation16 + $0xf4] sm:$0xf0] }
 0xd3f   :  { %6154 = vmatpush.bf16.msrb.mxu2 %v14711_v37  ;;  %6202 = vmatpush.bf16.msrb.mxu3 %v12139_v59  ;;  %v10653_v43 = vor.u32 %v12183_v60, %v10652_v55  ;;  %v12181_v61 = vld [vmem:[#allocation16 + $0xe4] sm:$0xf0]  ;;  %v12160_v55 = vld [vmem:[#allocation16 + $0x44] sm:$0xf]  ;;  %v10694_v60 = vld [vmem:[#allocation16 + $0x48] sm:$0xf0] }
 0xd40   :  { %6272 = vmatpush.bf16.msrb.mxu1 %v12142_v54 }
 0xd41   :  { %6583 = vmatpush.bf16.msra.mxu0 %v10653_v43 }
 0xd43   :  { %6155 = vmatpush.bf16.msrb.mxu2 %v14716_v21  ;;  %v5843_v62 = vpop.f32.mrf.mxu3  ;;  %v5816_v50 = vpop.f32.mrf.mxu2  ;;  %6203 = vmatpush.bf16.msrb.mxu3 %v12138_v56 }
 0xd44   :  { %6273 = vmatpush.bf16.msrb.mxu1 %v12141_v16  ;;  %v10645_v62 = vor.u32 %v12181_v61, %v10644_v5  ;;  %v12176_v5 = vld [vmem:[#allocation16 + $0xc4] sm:$0xf]  ;;  %v10630_v61 = vld [vmem:[#allocation16 + $0xc8] sm:$0xf0] }
 0xd46   :  { %v6088_v57 = vpop.f32.mrf.mxu0  ;;  %6584 = vmatpush.bf16.msra.mxu0 %v10645_v62  ;;  %v10697_v62 = vor.u32 %v12160_v55, %v10694_v60  ;;  %v10684_v60 = vld [vmem:[#allocation16 + $0x30] sm:$0xf] }
 0xd47   :  { %v6092_v39 = vpack.c.bf16 %v6088_v57, %v6088_v57  ;;  %6204 = vmatpush.bf16.msrb.mxu3 %v12137_v29  ;;  %v12173_v57 = vld [vmem:[#allocation16 + $0xa4] sm:$0xf0]  ;;  %v10596_v29 = vld [vmem:[#allocation16 + $0x80] sm:$0xf] }
 0xd48   :  { %6274 = vmatpush.bf16.msrb.mxu1 %v12140_v28  ;;  %v10613_v59 = vor.u32 %v12173_v57, %v10612_v8  ;;  %v12154_v8 = vld [vmem:[#allocation16 + $0x14] sm:$0xf]  ;;  %v10670_v57 = vld [vmem:[#allocation16 + $0x18] sm:$0xf0] }
 0xd49   :  { %10518 = vmatmul.msk.bf16.vlgmr.msra.gmra.mxu1 %vm5879_vm7, %v6092_v39 }
 0xd4b   :  { %6205 = vmatpush.bf16.msrb.mxu3 %v12136_v33 }
 0xd4c   :  { %6409 = vmatpush.bf16.msra.mxu1 %v12151_v45  ;;  %v12467_v45 = vld [vmem:[#allocation15] ss:$0 sm:$0xff] }
 0xd4e   :  { %10483 = vmatmul.msk.bf16.vlgmr.msra.gmra.mxu2 %vm5128_vm2, %v6006_v49  ;;  %v6090_v40 = vpop.f32.mrf.mxu0  ;;  %v10636_v49 = vld [vmem:[#allocation16 + $0xd0] sm:$0xf] }
 0xd4f   :  { %6292 = vmatpush.bf16.msra.mxu2 %v14711_v37  ;;  %v12169_v40 = vld [vmem:[#allocation16 + $0x84] sm:$0xf0] }
 0xd50   :  { %6410 = vmatpush.bf16.msra.mxu1 %v12150_v15  ;;  %v10597_v16 = vor.u32 %v12169_v40, %v10596_v29  ;;  %v12168_v40 = vld [vmem:[#allocation16 + $0x84] sm:$0xf] }
 0xd53   :  { %6293 = vmatpush.bf16.msra.mxu2 %v14716_v21  ;;  %v12147_v21 = vld [vmem:[#allocation13 + $0xf8] sm:$0xff] }
 0xd54   :  { %6411 = vmatpush.bf16.msra.mxu1 %v12149_v11  ;;  %v10718_v11 = vld [vmem:[#allocation16 + $0x78] sm:$0xf0] }
 0xd56   :  { %v6226_v3 = vpop.f32.mrf.mxu0 }
 0xd57   :  { %v6230_v7 = vpack.c.bf16 %v6226_v3, %v6226_v3 }
 0xd58   :  { %6412 = vmatpush.bf16.msra.mxu1 %v12148_v48 }
 0xd59   :  { %10554 = vmatmul.msk.bf16.vlgmr.msrb.gmra.mxu1 %vm5879_vm7, %v6230_v7 }
 0xd5e   :  { %10519 = vmatmul.msk.bf16.vlgmr.msrb.gmra.mxu2 %vm5128_vm2, %v6144_v1  ;;  %v6228_v53 = vpop.f32.mrf.mxu0  ;;  %v10637_v1 = vor.u32 %v12179_v19, %v10636_v49  ;;  %v10686_v49 = vld [vmem:[#allocation16 + $0x38] sm:$0xf0]  ;;  %v10633_v19 = vor.u32 %v12176_v5, %v10630_v61  ;;  %v10676_v61 = vld [vmem:[#allocation16 + $0x20] sm:$0xf] }
 0xd60   :  { %6585 = vmatpush.bf16.msra.mxu0 %v10637_v1  ;;  %v12174_v1 = vld [vmem:[#allocation16 + $0xb4] sm:$0xf] }
 0xd66   :  { %v6364_v4 = vpop.f32.mrf.mxu0 }
 0xd67   :  { %v6368_v22 = vpack.c.bf16 %v6364_v4, %v6364_v4  ;;  %v12164_v4 = vld [vmem:[#allocation16 + $0x64] sm:$0xf] }
 0xd69   :  { %10590 = vmatmul.msk.bf16.vlgmr.msra.gmra.mxu1 %vm5879_vm7, %v6368_v22  ;;  %v12182_v22 = vld [vmem:[#allocation16 + $0xf4] sm:$0xf] }
 0xd6e   :  { %10555 = vmatmul.msk.bf16.vlgmr.msra.gmra.mxu2 %vm5128_vm2, %v6282_v63  ;;  %v6366_v10 = vpop.f32.mrf.mxu0  ;;  %v10628_v63 = vld [vmem:[#allocation16 + $0xc0] sm:$0xf] }
 0xd6f   :  { %v10629_v27 = vor.u32 %v12177_v46, %v10628_v63  ;;  %v12180_v10 = vld [vmem:[#allocation16 + $0xe4] sm:$0xf]  ;;  %v10622_v63 = vld [vmem:[#allocation16 + $0xb8] sm:$0xf0] }
 0xd70   :  { %v10625_v9 = vor.u32 %v12174_v1, %v10622_v63  ;;  %v10660_v63 = vld [vmem:[#allocation16] sm:$0xf] }
 0xd71   :  { %6586 = vmatpush.bf16.msra.mxu0 %v10629_v27  ;;  %v12156_v27 = vld [vmem:[#allocation16 + $0x24] sm:$0xf] }
 0xd75   :  { %6587 = vmatpush.bf16.msra.mxu0 %v10621_v12 }
 0xd79   :  { %6588 = vmatpush.bf16.msra.mxu0 %v10613_v59 }
 0xdb6   :  { %v6000_v14 = vpop.f32.mrf.mxu1 }
 0xdbe   :  { %v6002_v31 = vpop.f32.mrf.mxu1 }
 0xdc1   :  { %v5892_v0 = vpop.f32.mrf.mxu2  ;;  %v5932_v44 = vpop.f32.mrf.mxu3 }
 0xdc2   :  { %v5933_v26 = vadd.f32 %v5932_v44, %v5892_v0 }
 0xdc4   :  { %v14746_v36 = vadd.f32 %v6000_v14, %v5933_v26  ;;  %v12171_v14 = vld [vmem:[#allocation16 + $0x94] sm:$0xf0] }
 0xdc5   :  { %v10605_v54 = vor.u32 %v12171_v14, %v10604_v35  ;;  %v10606_v35 = vld [vmem:[#allocation16 + $0x98] sm:$0xf0]  ;;  %v10673_v14 = vor.u32 %v12154_v8, %v10670_v57  ;;  %v12196_v8 = vld [vmem:[#allocation16 + $0x164] sm:$0xf] }
 0xdc6   :  { %v6138_v23 = vpop.f32.mrf.mxu1 }
 0xdc7   :  { %6589 = vmatpush.bf16.msra.mxu0 %v10605_v54  ;;  %v10662_v54 = vld [vmem:[#allocation16 + $0x8] sm:$0xf0] }
 0xdc9   :  { %v5894_v47 = vpop.f32.mrf.mxu2  ;;  %v5934_v37 = vpop.f32.mrf.mxu3 }
 0xdca   :  { %v12166_v37 = vld [vmem:[#allocation16 + $0x74] sm:$0xf] }
 0xdcb   :  { %6590 = vmatpush.bf16.msra.mxu0 %v10597_v16  ;;  %v10598_v16 = vld [vmem:[#allocation16 + $0x88] sm:$0xf0] }
 0xdce   :  { %v6140_v30 = vpop.f32.mrf.mxu1 }
 0xdcf   :  { %v10638_v30 = vld [vmem:[#allocation16 + $0xd8] sm:$0xf0] }
 0xdd1   :  { %v6019_v38 = vpop.f32.mrf.mxu2 }
 0xdd2   :  { %v6023_v42 = vpack.c.bf16 %v6019_v38, %v6019_v38 }
 0xdd4   :  { %10500 = vmatmul.msk.bf16.vlgmr.msra.gmra.mxu3 %vm5879_vm7, %v6023_v42  ;;  %v10721_v42 = vor.u32 %v12166_v37, %v10718_v11  ;;  %v10758_v37 = vld [vmem:[#allocation16 + $0x140] sm:$0xf] }
 0xdd5   :  { %6340 = vmatpush.bf16.msra.mxu3 %v12147_v21 }
 0xdd6   :  { %v6276_v17 = vpop.f32.mrf.mxu1 }
 0xdd9   :  { %v6021_v52 = vpop.f32.mrf.mxu2  ;;  %6341 = vmatpush.bf16.msra.mxu3 %v12146_v13  ;;  %v10654_v13 = vld [vmem:[#allocation16 + $0xf8] sm:$0xf0] }
 0xddd   :  { %6342 = vmatpush.bf16.msra.mxu3 %v12145_v58  ;;  %v10657_v58 = vor.u32 %v12182_v22, %v10654_v13  ;;  %v10734_v22 = vld [vmem:[#allocation16 + $0x110] sm:$0xf]  ;;  %v12187_v13 = vld [vmem:[#allocation16 + $0x114] sm:$0xf0] }
 0xdde   :  { %v6278_v50 = vpop.f32.mrf.mxu1 }
 0xddf   :  { %6596 = vmatpush.bf16.msrb.mxu1 %v10657_v58  ;;  %v12158_v50 = vld [vmem:[#allocation16 + $0x34] sm:$0xf]  ;;  %v10735_v58 = vor.u32 %v12187_v13, %v10734_v22  ;;  %v12188_v22 = vld [vmem:[#allocation16 + $0x124] sm:$0xf]  ;;  %v10744_v13 = vld [vmem:[#allocation16 + $0x128] sm:$0xf0] }
 0xde0   :  { %v10689_v46 = vor.u32 %v12158_v50, %v10686_v49  ;;  %v10668_v49 = vld [vmem:[#allocation16 + $0x10] sm:$0xf] }
 0xde1   :  { %v6157_v20 = vpop.f32.mrf.mxu2  ;;  %6343 = vmatpush.bf16.msra.mxu3 %v12144_v2  ;;  %v10646_v2 = vld [vmem:[#allocation16 + $0xe8] sm:$0xf0] }
 0xde2   :  { %v6161_v51 = vpack.c.bf16 %v6157_v20, %v6157_v20  ;;  %v6428_v20 = vld [vmem:[%s14856_s10] sm:$0x1] }
 0xde4   :  { %10536 = vmatmul.msk.bf16.vlgmr.msrb.gmra.mxu3 %vm5879_vm7, %v6161_v51  ;;  %v10592_v51 = vld [vmem:[%s14856_s10 + $0x1] sm:$0x1] }
 0xde6   :  { %v6414_v25 = vpop.f32.mrf.mxu1 }
 0xde9   :  { %v6159_v24 = vpop.f32.mrf.mxu2 }
 0xdee   :  { %v6416_v39 = vpop.f32.mrf.mxu1 }
 0xdef   :  { %v12170_v39 = vld [vmem:[#allocation16 + $0x94] sm:$0xf] }
 0xdf0   :  { %v10609_v29 = vor.u32 %v12170_v39, %v10606_v35  ;;  %v12194_v35 = vld [vmem:[#allocation16 + $0x154] sm:$0xf] }
 0xdf1   :  { %v6295_v6 = vpop.f32.mrf.mxu2 }
 0xdf2   :  { %v6299_v34 = vpack.c.bf16 %v6295_v6, %v6295_v6  ;;  %v12162_v6 = vld [vmem:[#allocation16 + $0x54] sm:$0xf] }
 0xdf4   :  { %10572 = vmatmul.msk.bf16.vlgmr.msra.gmra.mxu3 %vm5879_vm7, %v6299_v34  ;;  %v10702_v34 = vld [vmem:[#allocation16 + $0x58] sm:$0xf0] }
 0xdf9   :  { %v6297_v41 = vpop.f32.mrf.mxu2 }
 0xdfa   :  { %v10649_v41 = vor.u32 %v12180_v10, %v10646_v2  ;;  %v10716_v10 = vld [vmem:[#allocation16 + $0x70] sm:$0xf]  ;;  %v12167_v2 = vld [vmem:[#allocation16 + $0x74] sm:$0xf0] }
 0xdfc   :  { %6597 = vmatpush.bf16.msrb.mxu1 %v10649_v41  ;;  %v12163_v41 = vld [vmem:[#allocation16 + $0x54] sm:$0xf0] }
 0xe57   :  { %v6069_v32 = vpop.f32.mrf.mxu3 }
 0xe58   :  { %v6073_v0 = vadd.f32 %v6069_v32, %v14746_v36  ;;  %v10710_v36 = vld [vmem:[#allocation16 + $0x68] sm:$0xf0] }
 0xe59   :  { %v10713_v24 = vor.u32 %v12164_v4, %v10710_v36  ;;  %v10614_v32 = vld [vmem:[#allocation16 + $0xa8] sm:$0xf0]  ;;  %v12189_v4 = vld [vmem:[#allocation16 + $0x124] sm:$0xf0] }
 0xe5a   :  { %v6142_v28 = vadd.f32 %v6138_v23, %v6073_v0  ;;  %v12178_v23 = vld [vmem:[#allocation16 + $0xd4] sm:$0xf]  ;;  %v10617_v59 = vor.u32 %v12172_v18, %v10614_v32  ;;  %v12199_v0 = vld [vmem:[#allocation16 + $0x174] sm:$0xf0] }
 0xe5b   :  { %v10641_v43 = vor.u32 %v12178_v23, %v10638_v30  ;;  %v10692_v30 = vld [vmem:[#allocation16 + $0x40] sm:$0xf]  ;;  %v12198_v32 = vld [vmem:[#allocation16 + $0x174] sm:$0xf] }
 0xe5d   :  { %6598 = vmatpush.bf16.msrb.mxu1 %v10641_v43  ;;  %v12159_v43 = vld [vmem:[#allocation16 + $0x34] sm:$0xf0] }
 0xe5e   :  { %v10685_v5 = vor.u32 %v12159_v43, %v10684_v60  ;;  %v10728_v60 = vld [vmem:[#allocation16 + $0x108] sm:$0xf0]  ;;  %v10722_v43 = vld [vmem:[%s14856_s10 + $0x2] sm:$0x1] }
 0xe5f   :  { %v6071_v56 = vpop.f32.mrf.mxu3 }
 0xe60   :  { %v12152_v56 = vld [vmem:[#allocation16 + $0x4] sm:$0xf] }
 0xe61   :  { %6599 = vmatpush.bf16.msrb.mxu1 %v10633_v19  ;;  %v12155_v19 = vld [vmem:[#allocation16 + $0x14] sm:$0xf0] }
 0xe62   :  { %v10669_v1 = vor.u32 %v12155_v19, %v10668_v49  ;;  %v12204_v49 = vld [vmem:[#allocation16 + $0x1a4] sm:$0xf]  ;;  %v10810_v19 = vld [vmem:[#allocation16 + $0x1a8] sm:$0xf0] }
 0xe65   :  { %6600 = vmatpush.bf16.msrb.mxu1 %v10625_v9  ;;  %v12185_v9 = vld [vmem:[#allocation16 + $0x104] sm:$0xf0] }
 0xe67   :  { %v6207_v31 = vpop.f32.mrf.mxu3 }
 0xe68   :  { %v6211_v44 = vadd.f32 %v6207_v31, %v6142_v28  ;;  %v10782_v31 = vld [vmem:[#allocation16 + $0x170] sm:$0xf]  ;;  %v10601_v28 = vor.u32 %v12168_v40, %v10598_v16  ;;  %v12192_v40 = vld [vmem:[#allocation16 + $0x144] sm:$0xf]  ;;  %v10760_v16 = vld [vmem:[#allocation16 + $0x148] sm:$0xf0] }
 0xe69   :  { %6601 = vmatpush.bf16.msrb.mxu1 %v10617_v59  ;;  %v10776_v59 = vld [vmem:[#allocation16 + $0x168] sm:$0xf0] }
 0xe6a   :  { %v6280_v26 = vadd.f32 %v6276_v17, %v6211_v44  ;;  %v10705_v17 = vor.u32 %v12162_v6, %v10702_v34  ;;  %v10783_v44 = vor.u32 %v12199_v0, %v10782_v31  ;;  %v10700_v34 = vld [vmem:[#allocation16 + $0x50] sm:$0xf]  ;;  %v10779_v39 = vor.u32 %v12196_v8, %v10776_v59  ;;  %v12215_v0 = vld [vmem:[#allocation16 + $0x1f4] sm:$0xf0]  ;;  %v12200_v59 = vld [vmem:[#allocation16 + $0x184] sm:$0xf] }
 0xe6b   :  { %v10701_v23 = vor.u32 %v12163_v41, %v10700_v34  ;;  %v10848_v31 = vld [vmem:[#allocation16 + $0x1f0] sm:$0xf]  ;;  %v10736_v34 = vld [vmem:[#allocation16 + $0x118] sm:$0xf0]  ;;  %v12227_v8 = vld [vmem:[#allocation16 + $0x254] sm:$0xf0] }
 0xe6d   :  { %6602 = vmatpush.bf16.msrb.mxu1 %v10609_v29  ;;  %v10850_v29 = vld [vmem:[#allocation16 + $0x1f8] sm:$0xf0] }
 0xe6f   :  { %v6209_v33 = vpop.f32.mrf.mxu3 }
 0xe70   :  { %v10665_v33 = vor.u32 %v12152_v56, %v10662_v54  ;;  %v12214_v54 = vld [vmem:[#allocation16 + $0x1f4] sm:$0xf] }
 0xe71   :  { %6603 = vmatpush.bf16.msrb.mxu1 %v10601_v28 }
 0xe75   :  { %6831 = vmatpush.bf16.msra.mxu1 %v10783_v44 }
 0xe77   :  { %v6345_v3 = vpop.f32.mrf.mxu3 }
 0xe78   :  { %v6349_v7 = vadd.f32 %v6345_v3, %v6280_v26  ;;  %v10774_v26 = vld [vmem:[#allocation16 + $0x160] sm:$0xf]  ;;  %v12197_v3 = vld [vmem:[#allocation16 + $0x164] sm:$0xf0] }
 0xe7a   :  { %v6418_v47 = vadd.f32 %v6414_v25, %v6349_v7  ;;  %v10678_v25 = vld [vmem:[#allocation16 + $0x28] sm:$0xf0]  ;;  %v10775_v7 = vor.u32 %v12197_v3, %v10774_v26  ;;  %v10853_v3 = vor.u32 %v12214_v54, %v10850_v29 }
 0xe7b   :  { %v10681_v12 = vor.u32 %v12156_v27, %v10678_v25  ;;  %v10726_v25 = vld [vmem:[#allocation16 + $0x100] sm:$0xf] }
 0xe7c   :  { %v6423_v15 = vadd.f32 %v12467_v45, %v6418_v47  ;;  %v10766_v45 = vld [vmem:[#allocation16 + $0x150] sm:$0xf]  ;;  %v12195_v47 = vld [vmem:[#allocation16 + $0x154] sm:$0xf0]  ;;  %6832 = vmatpush.bf16.msra.mxu1 %v10775_v7  ;;  %v10727_v18 = vor.u32 %v12185_v9, %v10726_v25  ;;  %v12212_v7 = vld [vmem:[#allocation16 + $0x1e4] sm:$0xf]  ;;  %v10813_v25 = vor.u32 %v12204_v49, %v10810_v19 }
 0xe7d   :  { %v12202_v9 = vld [vmem:[#allocation16 + $0x194] sm:$0xf]  ;;  %v12217_v49 = vld [vmem:[#allocation16 + $0x204] sm:$0xf0] }
 0xe7e   :  { %vm6424_vm8 = vcmp.gt.f32.partialorder %v6423_v15, 0.0  ;;  %v6425_v53 = vmul.f32 0.01, %v6423_v15 }
 0xe7f   :  { %v6347_v38 = vpop.f32.mrf.mxu3 }
 0xe80   :  { %v6426_v21 = vsel %vm6424_vm8, %v6423_v15, %v6425_v53  ;;  %v10767_v15 = vor.u32 %v12195_v47, %v10766_v45  ;;  %v12193_v53 = vld [vmem:[#allocation16 + $0x144] sm:$0xf0]  ;;  %v10750_v38 = vld [vmem:[#allocation16 + $0x130] sm:$0xf]  ;;  %v10842_v45 = vld [vmem:[#allocation16 + $0x1e8] sm:$0xf0]  ;;  %v10763_v47 = vor.u32 %v12192_v40, %v10760_v16 }
 0xe81   :  { %v6427_v48 = vpack.c.bf16 %v6426_v21, %v6426_v21  ;;  %v10759_v11 = vor.u32 %v12193_v53, %v10758_v37  ;;  %v12191_v21 = vld [vmem:[#allocation16 + $0x134] sm:$0xf0]  ;;  %v10849_v37 = vor.u32 %v12215_v0, %v10848_v31  ;;  %v10752_v53 = vld [vmem:[#allocation16 + $0x138] sm:$0xf0]  ;;  %v10972_v40 = vld [vmem:[#allocation16 + $0x2e0] sm:$0xf] }
 0xe82   :  { %6833 = vmatpush.bf16.msra.mxu1 %v10767_v15  ;;  %v12190_v15 = vld [vmem:[#allocation16 + $0x134] sm:$0xf]  ;;  %v12245_v16 = vld [vmem:[#allocation16 + $0x2e4] sm:$0xf0]  ;;  %v10832_v0 = vld [vmem:[#allocation16 + $0x1d0] sm:$0xf] }
 0xe83   :  { %v14754_v52 = vsel %vm6433_vm9, %v6427_v48, 0  ;;  %v10751_v48 = vor.u32 %v12191_v21, %v10750_v38  ;;  %v12213_v38 = vld [vmem:[#allocation16 + $0x1e4] sm:$0xf0]  ;;  %v10845_v21 = vor.u32 %v12212_v7, %v10842_v45  ;;  %v10973_v31 = vor.u32 %v12245_v16, %v10972_v40  ;;  %v12243_v7 = vld [vmem:[#allocation16 + $0x2d4] sm:$0xf0] }
 0xe84   :  { %6444 = vmatpush.bf16.msrb.mxu2 %v14754_v52  ;;  %6479 = vmatpush.bf16.msrb.mxu3 %v14754_v52 }
 0xe85   :  { %6727 = vmatpush.bf16.msrb.mxu0 %v14754_v52 }
 0xe86   :  { %6834 = vmatpush.bf16.msra.mxu1 %v10759_v11  ;;  %v10840_v11 = vld [vmem:[#allocation16 + $0x1e0] sm:$0xf] }
 0xe87   :  { %10591 = vmatmul.msk.bf16.vlgmr.msrb.gmra.mxu2 %vm6429_vm10, %v6428_v20  ;;  %10593 = vmatmul.msk.bf16.vlgmr.msrb.gmra.mxu3 %vm6429_vm10, %v10592_v51  ;;  %v10717_v20 = vor.u32 %v12167_v2, %v10716_v10  ;;  %v10708_v51 = vld [vmem:[#allocation16 + $0x60] sm:$0xf] }
 0xe88   :  { %6702 = vmatpush.bf16.msra.mxu3 %v10721_v42  ;;  %v10742_v42 = vld [vmem:[#allocation16 + $0x120] sm:$0xf] }
 0xe89   :  { %v10743_v36 = vor.u32 %v12189_v4, %v10742_v42  ;;  %6689 = vmatpush.bf16.msra.mxu2 %v10717_v20  ;;  %v10834_v42 = vld [vmem:[#allocation16 + $0x1d8] sm:$0xf0]  ;;  %v10755_v4 = vor.u32 %v12190_v15, %v10752_v53  ;;  %v12208_v20 = vld [vmem:[#allocation16 + $0x1c4] sm:$0xf]  ;;  %v10824_v15 = vld [vmem:[#allocation16 + $0x1c0] sm:$0xf] }
 0xe8a   :  { %6835 = vmatpush.bf16.msra.mxu1 %v10751_v48  ;;  %v12210_v48 = vld [vmem:[#allocation16 + $0x1d4] sm:$0xf]  ;;  %v10882_v53 = vld [vmem:[#allocation16 + $0x230] sm:$0xf] }
 0xe8b   :  { %v10837_v2 = vor.u32 %v12210_v48, %v10834_v42  ;;  %v10956_v48 = vld [vmem:[#allocation16 + $0x2c0] sm:$0xf]  ;;  %v12241_v42 = vld [vmem:[#allocation16 + $0x2c4] sm:$0xf0] }
 0xe8c   :  { %6703 = vmatpush.bf16.msra.mxu3 %v10713_v24  ;;  %v12165_v24 = vld [vmem:[#allocation16 + $0x64] sm:$0xf0] }
 0xe8d   :  { %v10709_v6 = vor.u32 %v12165_v24, %v10708_v51  ;;  %v10826_v51 = vld [vmem:[#allocation16 + $0x1c8] sm:$0xf0]  ;;  %v10747_v24 = vor.u32 %v12188_v22, %v10744_v13  ;;  %v12207_v22 = vld [vmem:[#allocation16 + $0x1b4] sm:$0xf0]  ;;  %v10874_v13 = vld [vmem:[#allocation16 + $0x220] sm:$0xf] }
 0xe8e   :  { %6836 = vmatpush.bf16.msra.mxu1 %v10743_v36  ;;  %v10841_v36 = vor.u32 %v12213_v38, %v10840_v11  ;;  %v10829_v41 = vor.u32 %v12208_v20, %v10826_v51  ;;  %v12223_v38 = vld [vmem:[#allocation16 + $0x234] sm:$0xf0] }
 0xe8f   :  { %6690 = vmatpush.bf16.msra.mxu2 %v10709_v6  ;;  %v12186_v6 = vld [vmem:[#allocation16 + $0x114] sm:$0xf]  ;;  %v12239_v20 = vld [vmem:[#allocation16 + $0x2b4] sm:$0xf0] }
 0xe90   :  { %6704 = vmatpush.bf16.msra.mxu3 %v10705_v17  ;;  %v12161_v17 = vld [vmem:[#allocation16 + $0x44] sm:$0xf0] }
 0xe91   :  { %v10693_v55 = vor.u32 %v12161_v17, %v10692_v30  ;;  %v10818_v30 = vld [vmem:[#allocation16 + $0x1b8] sm:$0xf0]  ;;  %v10739_v17 = vor.u32 %v12186_v6, %v10736_v34  ;;  %v10808_v6 = vld [vmem:[#allocation16 + $0x1a0] sm:$0xf]  ;;  %v12205_v34 = vld [vmem:[#allocation16 + $0x1a4] sm:$0xf0] }
 0xe92   :  { %6837 = vmatpush.bf16.msra.mxu1 %v10735_v58 }
 0xe93   :  { %6691 = vmatpush.bf16.msra.mxu2 %v10701_v23  ;;  %v12206_v23 = vld [vmem:[#allocation16 + $0x1b4] sm:$0xf] }
 0xe94   :  { %6705 = vmatpush.bf16.msra.mxu3 %v10697_v62  ;;  %v12157_v62 = vld [vmem:[#allocation16 + $0x24] sm:$0xf0] }
 0xe95   :  { %v10677_v50 = vor.u32 %v12157_v62, %v10676_v61  ;;  %v12231_v61 = vld [vmem:[#allocation16 + $0x274] sm:$0xf0]  ;;  %v10788_v62 = vld [vmem:[%s14856_s10 + $0x3] sm:$0x1] }
 0xe96   :  { %6838 = vmatpush.bf16.msra.mxu1 %v10727_v18  ;;  %v10802_v18 = vld [vmem:[#allocation16 + $0x198] sm:$0xf0] }
 0xe97   :  { %6692 = vmatpush.bf16.msra.mxu2 %v10693_v55  ;;  %v12184_v55 = vld [vmem:[#allocation16 + $0x104] sm:$0xf] }
 0xe98   :  { %6706 = vmatpush.bf16.msra.mxu3 %v10689_v46  ;;  %v12153_v46 = vld [vmem:[#allocation16 + $0x4] sm:$0xf0] }
 0xe99   :  { %v10661_v27 = vor.u32 %v12153_v46, %v10660_v63  ;;  %v10906_v46 = vld [vmem:[#allocation16 + $0x260] sm:$0xf] }
 0xe9b   :  { %6693 = vmatpush.bf16.msra.mxu2 %v10685_v5  ;;  %v10914_v5 = vld [vmem:[#allocation16 + $0x270] sm:$0xf] }
 0xe9c   :  { %6707 = vmatpush.bf16.msra.mxu3 %v10681_v12  ;;  %v10784_v12 = vld [vmem:[#allocation16 + $0x178] sm:$0xf0]  ;;  %v10915_v63 = vor.u32 %v12231_v61, %v10914_v5  ;;  %v10800_v5 = vld [vmem:[#allocation16 + $0x190] sm:$0xf]  ;;  %v12203_v61 = vld [vmem:[#allocation16 + $0x194] sm:$0xf0] }
 0xe9d   :  { %v10787_v57 = vor.u32 %v12198_v32, %v10784_v12  ;;  %v10898_v12 = vld [vmem:[#allocation16 + $0x250] sm:$0xf] }
 0xe9f   :  { %6694 = vmatpush.bf16.msra.mxu2 %v10677_v50  ;;  %v10821_v50 = vor.u32 %v12206_v23, %v10818_v30  ;;  %v10809_v23 = vor.u32 %v12205_v34, %v10808_v6  ;;  %v12219_v30 = vld [vmem:[#allocation16 + $0x214] sm:$0xf0]  ;;  %v10860_v6 = vld [vmem:[#allocation16 + $0x208] sm:$0xf0]  ;;  %v11046_v34 = vld [vmem:[#allocation16 + $0x370] sm:$0xf] }
 0xea0   :  { %6708 = vmatpush.bf16.msra.mxu3 %v10673_v14  ;;  %v10768_v14 = vld [vmem:[#allocation16 + $0x158] sm:$0xf0] }
 0xea1   :  { %v10771_v56 = vor.u32 %v12194_v35, %v10768_v14  ;;  %v10980_v35 = vld [vmem:[#allocation16 + $0x2f0] sm:$0xf]  ;;  %v12247_v14 = vld [vmem:[#allocation16 + $0x2f4] sm:$0xf0] }
 0xea2   :  { %v10981_v29 = vor.u32 %v12247_v14, %v10980_v35 }
 0xea3   :  { %6695 = vmatpush.bf16.msra.mxu2 %v10669_v1  ;;  %v10731_v1 = vor.u32 %v12184_v55, %v10728_v60  ;;  %v10940_v55 = vld [vmem:[#allocation16 + $0x2a0] sm:$0xf]  ;;  %v12237_v60 = vld [vmem:[#allocation16 + $0x2a4] sm:$0xf0] }
 0xea4   :  { %6709 = vmatpush.bf16.msra.mxu3 %v10665_v33 }
 0xea7   :  { %6696 = vmatpush.bf16.msra.mxu2 %v10661_v27  ;;  %v12229_v27 = vld [vmem:[#allocation16 + $0x264] sm:$0xf0] }
 0xea8   :  { %6871 = vmatpush.bf16.msrb.mxu3 %v14754_v52  ;;  %v10907_v32 = vor.u32 %v12229_v27, %v10906_v46  ;;  %v10792_v27 = vld [vmem:[#allocation16 + $0x180] sm:$0xf] }
 0xeab   :  { %6844 = vmatpush.bf16.msrb.mxu2 %v10787_v57  ;;  %v10805_v57 = vor.u32 %v12202_v9, %v10802_v18  ;;  %v10924_v18 = vld [vmem:[#allocation16 + $0x280] sm:$0xf] }
 0xeaf   :  { %6845 = vmatpush.bf16.msrb.mxu2 %v10779_v39  ;;  %v10794_v39 = vld [vmem:[#allocation16 + $0x188] sm:$0xf0] }
 0xeb0   :  { %v10797_v54 = vor.u32 %v12200_v59, %v10794_v39 }
 0xeb3   :  { %6846 = vmatpush.bf16.msrb.mxu2 %v10771_v56  ;;  %v10899_v56 = vor.u32 %v12227_v8, %v10898_v12 }
 0xeb7   :  { %6847 = vmatpush.bf16.msrb.mxu2 %v10763_v47 }
 0xebb   :  { %6848 = vmatpush.bf16.msrb.mxu2 %v10755_v4  ;;  %v10957_v4 = vor.u32 %v12241_v42, %v10956_v48  ;;  %v10854_v42 = vld [vmem:[%s14856_s10 + $0x4] sm:$0x1] }
 0xebf   :  { %6849 = vmatpush.bf16.msrb.mxu2 %v10747_v24 }
 0xec3   :  { %6850 = vmatpush.bf16.msrb.mxu2 %v10739_v17 }
 0xec7   :  { %6851 = vmatpush.bf16.msrb.mxu2 %v10731_v1  ;;  %v10932_v1 = vld [vmem:[#allocation16 + $0x290] sm:$0xf] }
 0xf0a   :  { %v6446_v33 = vpop.f32.mrf.mxu2  ;;  %v6481_v28 = vpop.f32.mrf.mxu3 }
 0xf0b   :  { %v6450_v44 = vpack.c.bf16 %v6446_v33, %v6446_v33  ;;  %v6485_v26 = vpack.c.bf16 %v6481_v28, %v6481_v28  ;;  %v12211_v33 = vld [vmem:[#allocation16 + $0x1d4] sm:$0xf0]  ;;  %v10890_v28 = vld [vmem:[#allocation16 + $0x240] sm:$0xf] }
 0xf0d   :  { %6591 = vmatmul.bf16.vlgmr.msra.gmra.mxu0 %v6485_v26  ;;  %6604 = vmatmul.bf16.vlgmr.msrb.gmra.mxu1 %v6485_v26  ;;  %v12225_v26 = vld [vmem:[#allocation16 + $0x244] sm:$0xf0] }
 0xf0e   :  { %6710 = vmatmul.bf16.vlgmr.msra.gmra.mxu3 %v6450_v44  ;;  %7015 = vmatpush.bf16.msrb.mxu1 %v14754_v52  ;;  %v10891_v45 = vor.u32 %v12225_v26, %v10890_v28  ;;  %v10908_v26 = vld [vmem:[#allocation16 + $0x268] sm:$0xf0] }
 0xf0f   :  { %6697 = vmatmul.bf16.vlgmr.msra.gmra.mxu2 %v6450_v44  ;;  %6988 = vmatpush.bf16.msra.mxu3 %v10853_v3  ;;  %v10833_v44 = vor.u32 %v12211_v33, %v10832_v0  ;;  %v10964_v3 = vld [vmem:[#allocation16 + $0x2d0] sm:$0xf]  ;;  %v12230_v0 = vld [vmem:[#allocation16 + $0x274] sm:$0xf]  ;;  %v10916_v33 = vld [vmem:[#allocation16 + $0x278] sm:$0xf0] }
 0xf10   :  { %6975 = vmatpush.bf16.msra.mxu0 %v10849_v37  ;;  %7119 = vmatpush.bf16.msra.mxu2 %v10915_v63  ;;  %v10965_v47 = vor.u32 %v12243_v7, %v10964_v3  ;;  %v12209_v37 = vld [vmem:[#allocation16 + $0x1c4] sm:$0xf0]  ;;  %v12235_v63 = vld [vmem:[#allocation16 + $0x294] sm:$0xf0]  ;;  %v10919_v28 = vor.u32 %v12230_v0, %v10916_v33  ;;  %v10958_v0 = vld [vmem:[#allocation16 + $0x2c8] sm:$0xf0] }
 0xf11   :  { %v10825_v11 = vor.u32 %v12209_v37, %v10824_v15  ;;  %v10933_v46 = vor.u32 %v12235_v63, %v10932_v1  ;;  %v12226_v15 = vld [vmem:[#allocation16 + $0x254] sm:$0xf]  ;;  %v10900_v37 = vld [vmem:[#allocation16 + $0x258] sm:$0xf0] }
 0xf12   :  { %v6483_v58 = vpop.f32.mrf.mxu3  ;;  %v6448_v10 = vpop.f32.mrf.mxu2  ;;  %v10982_v63 = vld [vmem:[#allocation16 + $0x2f8] sm:$0xf0] }
 0xf13   :  { %6989 = vmatpush.bf16.msra.mxu3 %v10845_v21  ;;  %v10883_v21 = vor.u32 %v12223_v38, %v10882_v53  ;;  %v12221_v10 = vld [vmem:[#allocation16 + $0x224] sm:$0xf0]  ;;  %v10903_v53 = vor.u32 %v12226_v15, %v10900_v37  ;;  %v10892_v38 = vld [vmem:[#allocation16 + $0x248] sm:$0xf0]  ;;  %v12234_v37 = vld [vmem:[#allocation16 + $0x294] sm:$0xf] }
 0xf14   :  { %6976 = vmatpush.bf16.msra.mxu0 %v10841_v36  ;;  %7120 = vmatpush.bf16.msra.mxu2 %v10907_v32  ;;  %v10816_v36 = vld [vmem:[#allocation16 + $0x1b0] sm:$0xf]  ;;  %v10875_v51 = vor.u32 %v12221_v10, %v10874_v13  ;;  %v12233_v32 = vld [vmem:[#allocation16 + $0x284] sm:$0xf0]  ;;  %v12220_v13 = vld [vmem:[#allocation16 + $0x224] sm:$0xf] }
 0xf15   :  { %v10817_v58 = vor.u32 %v12207_v22, %v10816_v36  ;;  %v10925_v12 = vor.u32 %v12233_v32, %v10924_v18  ;;  %v10884_v36 = vld [vmem:[#allocation16 + $0x238] sm:$0xf0]  ;;  %v12244_v18 = vld [vmem:[#allocation16 + $0x2e4] sm:$0xf]  ;;  %v10974_v32 = vld [vmem:[#allocation16 + $0x2e8] sm:$0xf0] }
 0xf16   :  { %v10942_v15 = vld [vmem:[#allocation16 + $0x2a8] sm:$0xf0] }
 0xf17   :  { %6990 = vmatpush.bf16.msra.mxu3 %v10837_v2  ;;  %v10948_v2 = vld [vmem:[#allocation16 + $0x2b0] sm:$0xf] }
 0xf18   :  { %7121 = vmatpush.bf16.msra.mxu2 %v10899_v56  ;;  %6977 = vmatpush.bf16.msra.mxu0 %v10833_v44  ;;  %v10949_v24 = vor.u32 %v12239_v20, %v10948_v2  ;;  %v12228_v44 = vld [vmem:[#allocation16 + $0x264] sm:$0xf]  ;;  %v12218_v2 = vld [vmem:[#allocation16 + $0x214] sm:$0xf]  ;;  %v10868_v20 = vld [vmem:[#allocation16 + $0x218] sm:$0xf0] }
 0xf19   :  { %v10911_v7 = vor.u32 %v12228_v44, %v10908_v26  ;;  %v12249_v44 = vld [vmem:[#allocation16 + $0x304] sm:$0xf0] }
 0xf1b   :  { %6991 = vmatpush.bf16.msra.mxu3 %v10829_v41  ;;  %v10866_v41 = vld [vmem:[#allocation16 + $0x210] sm:$0xf] }
 0xf1c   :  { %7122 = vmatpush.bf16.msra.mxu2 %v10891_v45  ;;  %6978 = vmatpush.bf16.msra.mxu0 %v10825_v11  ;;  %v10867_v17 = vor.u32 %v12219_v30, %v10866_v41  ;;  %v12224_v11 = vld [vmem:[#allocation16 + $0x244] sm:$0xf]  ;;  %v12263_v41 = vld [vmem:[#allocation16 + $0x374] sm:$0xf0]  ;;  %v10920_v30 = vld [vmem:[%s14856_s10 + $0x5] sm:$0x1] }
 0xf1d   :  { %10723 = vmatmul.msk.bf16.vlgmr.msrb.gmra.mxu0 %vm6429_vm10, %v10722_v43  ;;  %v10941_v43 = vor.u32 %v12237_v60, %v10940_v55  ;;  %v11038_v55 = vld [vmem:[#allocation16 + $0x360] sm:$0xf]  ;;  %v12261_v60 = vld [vmem:[#allocation16 + $0x364] sm:$0xf0] }
 0xf1e   :  { %10789 = vmatmul.msk.bf16.vlgmr.msrb.gmra.mxu3 %vm6429_vm10, %v10788_v62  ;;  %v10858_v62 = vld [vmem:[#allocation16 + $0x200] sm:$0xf] }
 0xf1f   :  { %6992 = vmatpush.bf16.msra.mxu3 %v10821_v50  ;;  %v10801_v50 = vor.u32 %v12203_v61, %v10800_v5  ;;  %v10859_v19 = vor.u32 %v12217_v49, %v10858_v62  ;;  %v11030_v5 = vld [vmem:[#allocation16 + $0x350] sm:$0xf]  ;;  %v12259_v61 = vld [vmem:[#allocation16 + $0x354] sm:$0xf0]  ;;  %v12257_v49 = vld [vmem:[#allocation16 + $0x344] sm:$0xf0] }
 0xf20   :  { %7123 = vmatpush.bf16.msra.mxu2 %v10883_v21  ;;  %6979 = vmatpush.bf16.msra.mxu0 %v10817_v58  ;;  %v10895_v21 = vor.u32 %v12224_v11, %v10892_v38  ;;  %v10876_v58 = vld [vmem:[#allocation16 + $0x228] sm:$0xf0]  ;;  %v11031_v62 = vor.u32 %v12259_v61, %v11030_v5  ;;  %v10934_v11 = vld [vmem:[#allocation16 + $0x298] sm:$0xf0] }
 0xf21   :  { %v10879_v10 = vor.u32 %v12220_v13, %v10876_v58  ;;  %v10937_v38 = vor.u32 %v12234_v37, %v10934_v11  ;;  %v12248_v11 = vld [vmem:[#allocation16 + $0x304] sm:$0xf] }
 0xf23   :  { %6993 = vmatpush.bf16.msra.mxu3 %v10813_v25  ;;  %v12201_v25 = vld [vmem:[#allocation16 + $0x184] sm:$0xf0] }
 0xf24   :  { %7124 = vmatpush.bf16.msra.mxu2 %v10875_v51  ;;  %6980 = vmatpush.bf16.msra.mxu0 %v10809_v23  ;;  %v10793_v9 = vor.u32 %v12201_v25, %v10792_v27  ;;  %v10871_v51 = vor.u32 %v12218_v2, %v10868_v20  ;;  %v11014_v27 = vld [vmem:[#allocation16 + $0x330] sm:$0xf]  ;;  %v12255_v25 = vld [vmem:[#allocation16 + $0x334] sm:$0xf0] }
 0xf27   :  { %6994 = vmatpush.bf16.msra.mxu3 %v10805_v57 }
 0xf28   :  { %7125 = vmatpush.bf16.msra.mxu2 %v10867_v17  ;;  %6981 = vmatpush.bf16.msra.mxu0 %v10801_v50  ;;  %v11047_v17 = vor.u32 %v12263_v41, %v11046_v34  ;;  %v11022_v50 = vld [vmem:[#allocation16 + $0x340] sm:$0xf] }
 0xf29   :  { %v11023_v1 = vor.u32 %v12257_v49, %v11022_v50  ;;  %v12258_v49 = vld [vmem:[#allocation16 + $0x354] sm:$0xf] }
 0xf2b   :  { %6995 = vmatpush.bf16.msra.mxu3 %v10797_v54 }
 0xf2c   :  { %7126 = vmatpush.bf16.msra.mxu2 %v10859_v19  ;;  %6982 = vmatpush.bf16.msra.mxu0 %v10793_v9  ;;  %v12246_v19 = vld [vmem:[#allocation16 + $0x2f4] sm:$0xf]  ;;  %v11015_v9 = vor.u32 %v12255_v25, %v11014_v27 }
 0xf2d   :  { %v12254_v25 = vld [vmem:[#allocation16 + $0x334] sm:$0xf] }
 0xf2f   :  { %7263 = vmatpush.bf16.msrb.mxu3 %v10981_v29 }
 0xf30   :  { %7132 = vmatpush.bf16.msrb.mxu0 %v10919_v28  ;;  %v10990_v28 = vld [vmem:[#allocation16 + $0x300] sm:$0xf] }
 0xf31   :  { %v10991_v26 = vor.u32 %v12249_v44, %v10990_v28  ;;  %v12250_v44 = vld [vmem:[#allocation16 + $0x314] sm:$0xf] }
 0xf33   :  { %7264 = vmatpush.bf16.msrb.mxu3 %v10973_v31 }
 0xf34   :  { %7133 = vmatpush.bf16.msrb.mxu0 %v10911_v7  ;;  %v10950_v7 = vld [vmem:[#allocation16 + $0x2b8] sm:$0xf0] }
 0xf37   :  { %7265 = vmatpush.bf16.msrb.mxu3 %v10965_v47 }
 0xf38   :  { %7134 = vmatpush.bf16.msrb.mxu0 %v10903_v53 }
 0xf3b   :  { %7266 = vmatpush.bf16.msrb.mxu3 %v10957_v4  ;;  %v12222_v4 = vld [vmem:[#allocation16 + $0x234] sm:$0xf] }
 0xf3c   :  { %7135 = vmatpush.bf16.msrb.mxu0 %v10895_v21  ;;  %v10887_v22 = vor.u32 %v12222_v4, %v10884_v36 }
 0xf3f   :  { %7267 = vmatpush.bf16.msrb.mxu3 %v10949_v24  ;;  %v12216_v24 = vld [vmem:[#allocation16 + $0x204] sm:$0xf] }
 0xf40   :  { %7136 = vmatpush.bf16.msrb.mxu0 %v10887_v22  ;;  %v10863_v23 = vor.u32 %v12216_v24, %v10860_v6 }
 0xf43   :  { %7268 = vmatpush.bf16.msrb.mxu3 %v10941_v43  ;;  %v11039_v43 = vor.u32 %v12261_v60, %v11038_v55 }
 0xf44   :  { %7137 = vmatpush.bf16.msrb.mxu0 %v10879_v10 }
 0xf47   :  { %7269 = vmatpush.bf16.msrb.mxu3 %v10933_v46  ;;  %v10985_v46 = vor.u32 %v12246_v19, %v10982_v63  ;;  %v11032_v19 = vld [vmem:[#allocation16 + $0x358] sm:$0xf0]  ;;  %v12256_v63 = vld [vmem:[#allocation16 + $0x344] sm:$0xf] }
 0xf48   :  { %7138 = vmatpush.bf16.msrb.mxu0 %v10871_v51 }
 0xf4b   :  { %7270 = vmatpush.bf16.msrb.mxu3 %v10925_v12  ;;  %v11006_v12 = vld [vmem:[#allocation16 + $0x320] sm:$0xf] }
 0xf4c   :  { %7139 = vmatpush.bf16.msrb.mxu0 %v10863_v23  ;;  %v12262_v23 = vld [vmem:[#allocation16 + $0x374] sm:$0xf] }
 0xf8a   :  { %v6592_v8 = vpop.f32.mrf.mxu0  ;;  %v6605_v57 = vpop.f32.mrf.mxu1 }
 0xf91   :  { %v6711_v59 = vpop.f32.mrf.mxu3 }
 0xf92   :  { %v6594_v39 = vpop.f32.mrf.mxu0  ;;  %v14777_v35 = vadd.f32 %v6711_v59, %v6605_v57  ;;  %v6607_v14 = vpop.f32.mrf.mxu1  ;;  %v12253_v57 = vld [vmem:[#allocation16 + $0x324] sm:$0xf0] }
 0xf93   :  { %v6698_v56 = vpop.f32.mrf.mxu2  ;;  %v11007_v59 = vor.u32 %v12253_v57, %v11006_v12  ;;  %v12242_v39 = vld [vmem:[#allocation16 + $0x2d4] sm:$0xf]  ;;  %v10966_v14 = vld [vmem:[#allocation16 + $0x2d8] sm:$0xf0] }
 0xf94   :  { %v14779_v54 = vadd.f32 %v6698_v56, %v6592_v8  ;;  %v10977_v8 = vor.u32 %v12244_v18, %v10974_v32  ;;  %v10969_v56 = vor.u32 %v12242_v39, %v10966_v14  ;;  %v11112_v18 = vld [vmem:[#allocation16 + $0x3f0] sm:$0xf]  ;;  %v12279_v32 = vld [vmem:[#allocation16 + $0x3f4] sm:$0xf0]  ;;  %v12278_v12 = vld [vmem:[#allocation16 + $0x3f4] sm:$0xf] }
 0xf95   :  { %v12252_v14 = vld [vmem:[#allocation16 + $0x324] sm:$0xf] }
 0xf99   :  { %v6713_v29 = vpop.f32.mrf.mxu3 }
 0xf9a   :  { %v6729_v40 = vpop.f32.mrf.mxu0  ;;  %v10998_v29 = vld [vmem:[#allocation16 + $0x310] sm:$0xf] }
 0xf9b   :  { %v6733_v16 = vpack.c.bf16 %v6729_v40, %v6729_v40  ;;  %v6700_v31 = vpop.f32.mrf.mxu2  ;;  %v12251_v40 = vld [vmem:[#allocation16 + $0x314] sm:$0xf0] }
 0xf9c   :  { %v12240_v31 = vld [vmem:[#allocation16 + $0x2c4] sm:$0xf] }
 0xf9d   :  { %6839 = vmatmul.bf16.vlgmr.msra.gmra.mxu1 %v6733_v16  ;;  %6852 = vmatmul.bf16.vlgmr.msrb.gmra.mxu2 %v6733_v16  ;;  %v10999_v16 = vor.u32 %v12251_v40, %v10998_v29  ;;  %v10961_v33 = vor.u32 %v12240_v31, %v10958_v0  ;;  %v11104_v29 = vld [vmem:[#allocation16 + $0x3e0] sm:$0xf]  ;;  %v12276_v31 = vld [vmem:[#allocation16 + $0x3e4] sm:$0xf]  ;;  %v11106_v0 = vld [vmem:[#allocation16 + $0x3e8] sm:$0xf0] }
 0xf9e   :  { %7159 = vmatpush.bf16.msra.mxu1 %v14754_v52  ;;  %7303 = vmatpush.bf16.msrb.mxu2 %v14754_v52  ;;  %v11109_v28 = vor.u32 %v12276_v31, %v11106_v0  ;;  %v11180_v31 = vld [vmem:[#allocation16 + $0x478] sm:$0xf0] }
 0xfa1   :  { %v6873_v3 = vpop.f32.mrf.mxu3 }
 0xfa2   :  { %v6877_v45 = vpack.c.bf16 %v6873_v3, %v6873_v3  ;;  %v6731_v47 = vpop.f32.mrf.mxu0  ;;  %v12238_v3 = vld [vmem:[#allocation16 + $0x2b4] sm:$0xf] }
 0xfa3   :  { %v12236_v47 = vld [vmem:[#allocation16 + $0x2a4] sm:$0xf] }
 0xfa4   :  { %6983 = vmatmul.bf16.vlgmr.msra.gmra.mxu0 %v6877_v45  ;;  %6996 = vmatmul.bf16.vlgmr.msra.gmra.mxu3 %v6877_v45  ;;  %v10953_v45 = vor.u32 %v12238_v3, %v10950_v7  ;;  %v10945_v53 = vor.u32 %v12236_v47, %v10942_v15  ;;  %v11096_v3 = vld [vmem:[#allocation16 + $0x3d0] sm:$0xf]  ;;  %v12274_v47 = vld [vmem:[#allocation16 + $0x3d4] sm:$0xf]  ;;  %v11098_v15 = vld [vmem:[#allocation16 + $0x3d8] sm:$0xf0] }
 0xfa5   :  { %7447 = vmatpush.bf16.msra.mxu3 %v14754_v52  ;;  %7407 = vmatpush.bf16.msra.mxu0 %v11047_v17 }
 0xfa9   :  { %v6875_v48 = vpop.f32.mrf.mxu3  ;;  %7408 = vmatpush.bf16.msra.mxu0 %v11039_v43 }
 0xfaa   :  { %v12232_v48 = vld [vmem:[#allocation16 + $0x284] sm:$0xf] }
 0xfad   :  { %10855 = vmatmul.msk.bf16.vlgmr.msrb.gmra.mxu1 %vm6429_vm10, %v10854_v42  ;;  %7409 = vmatpush.bf16.msra.mxu0 %v11031_v62  ;;  %v10926_v42 = vld [vmem:[#allocation16 + $0x288] sm:$0xf0]  ;;  %v10986_v62 = vld [vmem:[%s14856_s10 + $0x6] sm:$0x1] }
 0xfae   :  { %7276 = vmatpush.bf16.msrb.mxu1 %v10985_v46  ;;  %v10929_v36 = vor.u32 %v12232_v48, %v10926_v42  ;;  %v11024_v46 = vld [vmem:[#allocation16 + $0x348] sm:$0xf0]  ;;  %v12273_v42 = vld [vmem:[#allocation16 + $0x3c4] sm:$0xf0] }
 0xfaf   :  { %v11027_v27 = vor.u32 %v12256_v63, %v11024_v46  ;;  %v12264_v63 = vld [vmem:[#allocation16 + $0x384] sm:$0xf] }
 0xfb1   :  { %7410 = vmatpush.bf16.msra.mxu0 %v11023_v1  ;;  %v11035_v1 = vor.u32 %v12258_v49, %v11032_v19  ;;  %v11056_v19 = vld [vmem:[#allocation16 + $0x380] sm:$0xf] }
 0xfb2   :  { %7277 = vmatpush.bf16.msrb.mxu1 %v10977_v8  ;;  %v11114_v8 = vld [vmem:[#allocation16 + $0x3f8] sm:$0xf0] }
 0xfb3   :  { %v11117_v39 = vor.u32 %v12278_v12, %v11114_v8  ;;  %v11170_v8 = vld [vmem:[#allocation16 + $0x460] sm:$0xf] }
 0xfb5   :  { %7411 = vmatpush.bf16.msra.mxu0 %v11015_v9  ;;  %v11016_v9 = vld [vmem:[#allocation16 + $0x338] sm:$0xf0] }
 0xfb6   :  { %7278 = vmatpush.bf16.msrb.mxu1 %v10969_v56  ;;  %v11019_v57 = vor.u32 %v12254_v25, %v11016_v9  ;;  %v11008_v56 = vld [vmem:[#allocation16 + $0x328] sm:$0xf0] }
 0xfb7   :  { %v11011_v40 = vor.u32 %v12252_v14, %v11008_v56  ;;  %v11058_v25 = vld [vmem:[#allocation16 + $0x388] sm:$0xf0]  ;;  %v11162_v14 = vld [vmem:[#allocation16 + $0x450] sm:$0xf]  ;;  %v12291_v56 = vld [vmem:[#allocation16 + $0x454] sm:$0xf0] }
 0xfb8   :  { %v11061_v9 = vor.u32 %v12264_v63, %v11058_v25  ;;  %v12280_v63 = vld [vmem:[#allocation16 + $0x404] sm:$0xf] }
 0xfb9   :  { %7412 = vmatpush.bf16.msra.mxu0 %v11007_v59  ;;  %v11113_v59 = vor.u32 %v12279_v32, %v11112_v18  ;;  %v11178_v32 = vld [vmem:[#allocation16 + $0x470] sm:$0xf] }
 0xfba   :  { %7279 = vmatpush.bf16.msrb.mxu1 %v10961_v33 }
 0xfbd   :  { %10921 = vmatmul.msk.bf16.vlgmr.msra.gmra.mxu1 %vm6429_vm10, %v10920_v30  ;;  %7413 = vmatpush.bf16.msra.mxu0 %v10999_v16  ;;  %v12260_v30 = vld [vmem:[#allocation16 + $0x364] sm:$0xf]  ;;  %v12277_v16 = vld [vmem:[#allocation16 + $0x3e4] sm:$0xf0] }
 0xfbe   :  { %7280 = vmatpush.bf16.msrb.mxu1 %v10953_v45  ;;  %v11105_v33 = vor.u32 %v12277_v16, %v11104_v29  ;;  %v12275_v45 = vld [vmem:[#allocation16 + $0x3d4] sm:$0xf0]  ;;  %v12294_v16 = vld [vmem:[#allocation16 + $0x474] sm:$0xf] }
 0xfbf   :  { %v11097_v37 = vor.u32 %v12275_v45, %v11096_v3  ;;  %v12292_v3 = vld [vmem:[#allocation16 + $0x464] sm:$0xf] }
 0xfc1   :  { %7414 = vmatpush.bf16.msra.mxu0 %v10991_v26  ;;  %v11000_v26 = vld [vmem:[#allocation16 + $0x318] sm:$0xf0] }
 0xfc2   :  { %7281 = vmatpush.bf16.msrb.mxu1 %v10945_v53  ;;  %v11003_v7 = vor.u32 %v12250_v44, %v11000_v26  ;;  %v11101_v53 = vor.u32 %v12274_v47, %v11098_v15  ;;  %v11183_v44 = vor.u32 %v12294_v16, %v11180_v31  ;;  %v12290_v15 = vld [vmem:[#allocation16 + $0x454] sm:$0xf] }
 0xfc6   :  { %7282 = vmatpush.bf16.msrb.mxu1 %v10937_v38  ;;  %v10992_v38 = vld [vmem:[#allocation16 + $0x308] sm:$0xf0] }
 0xfc7   :  { %v10995_v48 = vor.u32 %v12248_v11, %v10992_v38 }
 0xfca   :  { %7283 = vmatpush.bf16.msrb.mxu1 %v10929_v36  ;;  %v11090_v36 = vld [vmem:[#allocation16 + $0x3c8] sm:$0xf0] }
 0xfce   :  { %7551 = vmatpush.bf16.msra.mxu1 %v11113_v59 }
 0xfd2   :  { %7552 = vmatpush.bf16.msra.mxu1 %v11105_v33 }
 0xfd6   :  { %7553 = vmatpush.bf16.msra.mxu1 %v11097_v37  ;;  %v11164_v37 = vld [vmem:[#allocation16 + $0x458] sm:$0xf0] }
 0xfd7   :  { %v11167_v38 = vor.u32 %v12290_v15, %v11164_v37  ;;  %v12322_v15 = vld [vmem:[#allocation19 + $0xcc] sm:$0xf0]  ;;  %v12320_v37 = vld [vmem:[#allocation19 + $0xc4] sm:$0xf] }
0x101a   :  { %v6840_v21 = vpop.f32.mrf.mxu1 }
0x101b   :  { %v6857_v4 = vadd.f32 %v6840_v21, %v14779_v54  ;;  %v11048_v54 = vld [vmem:[#allocation16 + $0x378] sm:$0xf0]  ;;  %v11088_v21 = vld [vmem:[#allocation16 + $0x3c0] sm:$0xf] }
0x101c   :  { %v11051_v17 = vor.u32 %v12262_v23, %v11048_v54  ;;  %v12269_v23 = vld [vmem:[#allocation16 + $0x3a4] sm:$0xf0]  ;;  %v12268_v54 = vld [vmem:[#allocation16 + $0x3a4] sm:$0xf] }
0x1020   :  { %v6853_v22 = vpop.f32.mrf.mxu2 }
0x1021   :  { %v6858_v13 = vadd.f32 %v6853_v22, %v14777_v35  ;;  %v6984_v58 = vpop.f32.mrf.mxu0  ;;  %v11040_v35 = vld [vmem:[#allocation16 + $0x368] sm:$0xf0]  ;;  %v11089_v22 = vor.u32 %v12273_v42, %v11088_v21 }
0x1022   :  { %v14794_v10 = vadd.f32 %v6984_v58, %v6857_v4  ;;  %v6842_v2 = vpop.f32.mrf.mxu1  ;;  %v11043_v60 = vor.u32 %v12260_v30, %v11040_v35  ;;  %v12272_v4 = vld [vmem:[#allocation16 + $0x3c4] sm:$0xf]  ;;  %v11080_v58 = vld [vmem:[#allocation16 + $0x3b0] sm:$0xf]  ;;  %v11118_v42 = vld [vmem:[%s14856_s10 + $0x8] sm:$0x1] }
0x1023   :  { %7554 = vmatpush.bf16.msra.mxu1 %v11089_v22  ;;  %v12271_v2 = vld [vmem:[#allocation16 + $0x3b4] sm:$0xf0]  ;;  %v11064_v35 = vld [vmem:[#allocation16 + $0x390] sm:$0xf]  ;;  %v12289_v22 = vld [vmem:[#allocation16 + $0x444] sm:$0xf0] }
0x1027   :  { %v6997_v20 = vpop.f32.mrf.mxu3 }
0x1028   :  { %v14796_v51 = vadd.f32 %v6997_v20, %v6858_v13  ;;  %v6855_v24 = vpop.f32.mrf.mxu2  ;;  %v11093_v13 = vor.u32 %v12272_v4, %v11090_v36  ;;  %v12270_v20 = vld [vmem:[#allocation16 + $0x3b4] sm:$0xf]  ;;  %v11154_v36 = vld [vmem:[#allocation16 + $0x440] sm:$0xf] }
0x1029   :  { %v6986_v6 = vpop.f32.mrf.mxu0  ;;  %v11081_v24 = vor.u32 %v12271_v2, %v11080_v58  ;;  %v11155_v58 = vor.u32 %v12289_v22, %v11154_v36  ;;  %v11156_v2 = vld [vmem:[#allocation16 + $0x448] sm:$0xf0]  ;;  %v12344_v36 = vld [vmem:[#allocation19 + $0x184] sm:$0xf]  ;;  %v11380_v22 = vld [vmem:[#allocation19 + $0x190] sm:$0xf0] }
0x102a   :  { %v7017_v34 = vpop.f32.mrf.mxu1  ;;  %v11082_v6 = vld [vmem:[#allocation16 + $0x3b8] sm:$0xf0] }
0x102b   :  { %v7021_v41 = vpack.c.bf16 %v7017_v34, %v7017_v34  ;;  %v11085_v34 = vor.u32 %v12270_v20, %v11082_v6  ;;  %7555 = vmatpush.bf16.msra.mxu1 %v11081_v24  ;;  %v11146_v24 = vld [vmem:[#allocation16 + $0x430] sm:$0xf]  ;;  %v12287_v6 = vld [vmem:[#allocation16 + $0x434] sm:$0xf0] }
0x102d   :  { %7127 = vmatmul.bf16.vlgmr.msra.gmra.mxu2 %v7021_v41  ;;  %7140 = vmatmul.bf16.vlgmr.msrb.gmra.mxu0 %v7021_v41  ;;  %v11072_v41 = vld [vmem:[#allocation16 + $0x3a0] sm:$0xf] }
0x102e   :  { %7591 = vmatpush.bf16.msrb.mxu0 %v14754_v52  ;;  %7420 = vmatpush.bf16.msra.mxu2 %v11051_v17  ;;  %v11052_v52 = vld [vmem:[%s14856_s10 + $0x7] sm:$0x1]  ;;  %v11073_v30 = vor.u32 %v12269_v23, %v11072_v41  ;;  %v11074_v17 = vld [vmem:[#allocation16 + $0x3a8] sm:$0xf0]  ;;  %v11147_v41 = vor.u32 %v12287_v6, %v11146_v24  ;;  %v11148_v23 = vld [vmem:[#allocation16 + $0x438] sm:$0xf0] }
0x102f   :  { %v6999_v55 = vpop.f32.mrf.mxu3 }
0x1030   :  { %v12267_v55 = vld [vmem:[#allocation16 + $0x394] sm:$0xf0]  ;;  %7556 = vmatpush.bf16.msra.mxu1 %v11073_v30  ;;  %v11138_v30 = vld [vmem:[#allocation16 + $0x420] sm:$0xf] }
0x1032   :  { %v7019_v43 = vpop.f32.mrf.mxu1  ;;  %7421 = vmatpush.bf16.msra.mxu2 %v11043_v60 }
0x1033   :  { %v11077_v43 = vor.u32 %v12268_v54, %v11074_v17  ;;  %v12285_v17 = vld [vmem:[#allocation16 + $0x424] sm:$0xf0] }
0x1036   :  { %7422 = vmatpush.bf16.msra.mxu2 %v11035_v1  ;;  %v12265_v1 = vld [vmem:[#allocation16 + $0x384] sm:$0xf0] }
0x103a   :  { %v7161_v5 = vpop.f32.mrf.mxu1  ;;  %7423 = vmatpush.bf16.msra.mxu2 %v11027_v27  ;;  %v11057_v27 = vor.u32 %v12265_v1, %v11056_v19  ;;  %v11122_v19 = vld [vmem:[#allocation16 + $0x400] sm:$0xf]  ;;  %v12281_v1 = vld [vmem:[#allocation16 + $0x404] sm:$0xf0] }
0x103b   :  { %v7165_v61 = vpack.c.bf16 %v7161_v5, %v7161_v5  ;;  %v12266_v5 = vld [vmem:[#allocation16 + $0x394] sm:$0xf] }
0x103d   :  { %7271 = vmatmul.bf16.vlgmr.msrb.gmra.mxu3 %v7165_v61  ;;  %7284 = vmatmul.bf16.vlgmr.msrb.gmra.mxu1 %v7165_v61  ;;  %v11066_v61 = vld [vmem:[#allocation16 + $0x398] sm:$0xf0] }
0x103e   :  { %10987 = vmatmul.msk.bf16.vlgmr.msrb.gmra.mxu2 %vm6429_vm10, %v10986_v62  ;;  %7564 = vmatpush.bf16.msrb.mxu3 %v11117_v39 }
0x103f   :  { %7424 = vmatpush.bf16.msra.mxu2 %v11019_v57  ;;  %v12293_v57 = vld [vmem:[#allocation16 + $0x464] sm:$0xf0] }
0x1040   :  { %v11171_v59 = vor.u32 %v12293_v57, %v11170_v8  ;;  %v11410_v57 = vld [vmem:[#allocation19 + $0x1c0] sm:$0xf] }
0x1042   :  { %v7163_v50 = vpop.f32.mrf.mxu1  ;;  %7565 = vmatpush.bf16.msrb.mxu3 %v11109_v28 }
0x1043   :  { %7425 = vmatpush.bf16.msra.mxu2 %v11011_v40  ;;  %v11065_v50 = vor.u32 %v12267_v55, %v11064_v35  ;;  %v12284_v35 = vld [vmem:[#allocation16 + $0x424] sm:$0xf]  ;;  %v11139_v55 = vor.u32 %v12285_v17, %v11138_v30  ;;  %v12314_v17 = vld [vmem:[#allocation19 + $0x8c] sm:$0xf0] }
0x1044   :  { %v11250_v30 = vld [vmem:[#allocation19 + $0x80] sm:$0xf] }
0x1045   :  { %7557 = vmatpush.bf16.msra.mxu1 %v11065_v50  ;;  %v11132_v50 = vld [vmem:[#allocation16 + $0x418] sm:$0xf0] }
0x1046   :  { %7566 = vmatpush.bf16.msrb.mxu3 %v11101_v53 }
0x1047   :  { %7426 = vmatpush.bf16.msra.mxu2 %v11003_v7  ;;  %v11172_v7 = vld [vmem:[#allocation16 + $0x468] sm:$0xf0] }
0x1048   :  { %v11175_v47 = vor.u32 %v12292_v3, %v11172_v7  ;;  %v12350_v3 = vld [vmem:[#allocation19 + $0x1ac] sm:$0xf0]  ;;  %v12348_v7 = vld [vmem:[#allocation19 + $0x1a4] sm:$0xf] }
0x1049   :  { %7558 = vmatpush.bf16.msra.mxu1 %v11057_v27  ;;  %v11124_v27 = vld [vmem:[#allocation16 + $0x408] sm:$0xf0] }
0x104a   :  { %7567 = vmatpush.bf16.msrb.mxu3 %v11093_v13  ;;  %v12288_v13 = vld [vmem:[#allocation16 + $0x444] sm:$0xf]  ;;  %v11127_v25 = vor.u32 %v12280_v63, %v11124_v27 }
0x104b   :  { %7427 = vmatpush.bf16.msra.mxu2 %v10995_v48  ;;  %v11159_v20 = vor.u32 %v12288_v13, %v11156_v2  ;;  %v11266_v13 = vld [vmem:[#allocation19 + $0xa0] sm:$0xf]  ;;  %v12316_v2 = vld [vmem:[#allocation19 + $0xa4] sm:$0xf] }
0x104c   :  { %v12308_v27 = vld [vmem:[#allocation19 + $0x64] sm:$0xf] }
0x104d   :  { %11053 = vmatmul.msk.bf16.vlgmr.msra.gmra.mxu3 %vm6429_vm10, %v11052_v52  ;;  %v11069_v52 = vor.u32 %v12266_v5, %v11066_v61  ;;  %v12283_v5 = vld [vmem:[#allocation16 + $0x414] sm:$0xf0] }
0x104e   :  { %7568 = vmatpush.bf16.msrb.mxu3 %v11085_v34  ;;  %v12286_v34 = vld [vmem:[#allocation16 + $0x434] sm:$0xf] }
0x104f   :  { %v11151_v54 = vor.u32 %v12286_v34, %v11148_v23 }
0x1052   :  { %7569 = vmatpush.bf16.msrb.mxu3 %v11077_v43  ;;  %v11130_v43 = vld [vmem:[#allocation16 + $0x410] sm:$0xf] }
0x1056   :  { %7570 = vmatpush.bf16.msrb.mxu3 %v11069_v52  ;;  %v11131_v52 = vor.u32 %v12283_v5, %v11130_v43  ;;  %v11252_v43 = vld [vmem:[#allocation19 + $0x90] sm:$0xf0]  ;;  %v12340_v5 = vld [vmem:[#allocation19 + $0x164] sm:$0xf] }
0x105a   :  { %7571 = vmatpush.bf16.msrb.mxu3 %v11061_v9  ;;  %v11426_v9 = vld [vmem:[#allocation19 + $0x1e0] sm:$0xf] }
0x10aa   :  { %v7141_v60 = vpop.f32.mrf.mxu0 }
0x10ab   :  { %v7146_v62 = vadd.f32 %v7141_v60, %v14796_v51  ;;  %v12295_v51 = vld [vmem:[#allocation16 + $0x474] sm:$0xf0]  ;;  %v11140_v60 = vld [vmem:[#allocation16 + $0x428] sm:$0xf0] }
0x10ac   :  { %v11179_v12 = vor.u32 %v12295_v51, %v11178_v32  ;;  %v11143_v61 = vor.u32 %v12284_v35, %v11140_v60  ;;  %v12356_v32 = vld [vmem:[#allocation19 + $0x1e4] sm:$0xf]  ;;  %v11383_v35 = vor.u32 %v12344_v36, %v11380_v22  ;;  %v12357_v22 = vld [vmem:[#allocation19 + $0x1ec] sm:$0xf] }
0x10ad   :  { %v12312_v60 = vld [vmem:[#allocation19 + $0x84] sm:$0xf] }
0x10ae   :  { %7695 = vmatpush.bf16.msrb.mxu2 %v11179_v12  ;;  %v11428_v12 = vld [vmem:[#allocation19 + $0x1f0] sm:$0xf0] }
0x10af   :  { %v11431_v8 = vor.u32 %v12356_v32, %v11428_v12  ;;  %v11348_v32 = vld [vmem:[#allocation19 + $0x150] sm:$0xf0] }
0x10b0   :  { %v7128_v49 = vpop.f32.mrf.mxu2 }
0x10b1   :  { %v7145_v46 = vadd.f32 %v7128_v49, %v14794_v10  ;;  %v11163_v10 = vor.u32 %v12291_v56, %v11162_v14  ;;  %v11412_v56 = vld [vmem:[#allocation19 + $0x1d0] sm:$0xf0] }
0x10b2   :  { %v7143_v18 = vpop.f32.mrf.mxu0  ;;  %7696 = vmatpush.bf16.msrb.mxu2 %v11171_v59  ;;  %v12354_v59 = vld [vmem:[#allocation19 + $0x1cc] sm:$0xf0] }
0x10b3   :  { %v12358_v18 = vld [vmem:[#allocation19 + $0x1ec] sm:$0xf0]  ;;  %v11411_v14 = vor.u32 %v12354_v59, %v11410_v57  ;;  %v11330_v59 = vld [vmem:[#allocation19 + $0x120] sm:$0xf] }
0x10b4   :  { %v11427_v51 = vor.u32 %v12358_v18, %v11426_v9  ;;  %v12336_v18 = vld [vmem:[#allocation19 + $0x144] sm:$0xf] }
0x10b6   :  { %7697 = vmatpush.bf16.msrb.mxu2 %v11163_v10  ;;  %8146 = vmatpush.bf16.msra.mxu3 %v11427_v51  ;;  %v12326_v10 = vld [vmem:[#allocation19 + $0xec] sm:$0xf0] }
0x10b8   :  { %v7130_v39 = vpop.f32.mrf.mxu2 }
0x10b9   :  { %v12352_v39 = vld [vmem:[#allocation19 + $0x1c4] sm:$0xf] }
0x10ba   :  { %v7285_v29 = vpop.f32.mrf.mxu1  ;;  %7698 = vmatpush.bf16.msrb.mxu2 %v11155_v58  ;;  %v11415_v16 = vor.u32 %v12352_v39, %v11412_v56  ;;  %8147 = vmatpush.bf16.msra.mxu3 %v11411_v14  ;;  %v12318_v58 = vld [vmem:[#allocation19 + $0xac] sm:$0xf0]  ;;  %v11218_v39 = vld [vmem:[#allocation19 + $0x40] sm:$0xf]  ;;  %v11351_v56 = vor.u32 %v12336_v18, %v11348_v32  ;;  %v11402_v32 = vld [vmem:[#allocation19 + $0x1a8] sm:$0xf] }
0x10bb   :  { %v14809_v40 = vadd.f32 %v7285_v29, %v7146_v62  ;;  %v12282_v62 = vld [vmem:[#allocation16 + $0x414] sm:$0xf]  ;;  %v11298_v29 = vld [vmem:[#allocation19 + $0xe0] sm:$0xf]  ;;  %v11267_v6 = vor.u32 %v12318_v58, %v11266_v13  ;;  %v11436_v13 = vld [vmem:[#allocation19 + $0x1f8] sm:$0xf0] }
0x10bc   :  { %v11135_v49 = vor.u32 %v12282_v62, %v11132_v50  ;;  %v11299_v31 = vor.u32 %v12326_v10, %v11298_v29  ;;  %v11251_v62 = vor.u32 %v12314_v17, %v11250_v30  ;;  %v11255_v50 = vor.u32 %v12312_v60, %v11252_v43  ;;  %v12306_v14 = vld [vmem:[#allocation19 + $0x4c] sm:$0xf0]  ;;  %v12304_v10 = vld [vmem:[#allocation19 + $0x44] sm:$0xf]  ;;  %v12355_v30 = vld [vmem:[#allocation19 + $0x1d4] sm:$0xf0] }
0x10bd   :  { %v12334_v29 = vld [vmem:[#allocation19 + $0x12c] sm:$0xf0]  ;;  %v11420_v17 = vld [vmem:[#allocation19 + $0x1d8] sm:$0xf0] }
0x10be   :  { %7699 = vmatpush.bf16.msrb.mxu2 %v11147_v41  ;;  %8133 = vmatpush.bf16.msrb.mxu1 %v11299_v31  ;;  %v12332_v31 = vld [vmem:[#allocation19 + $0x124] sm:$0xf] }
0x10c0   :  { %v7272_v0 = vpop.f32.mrf.mxu3 }
0x10c1   :  { %v14811_v33 = vadd.f32 %v7272_v0, %v7145_v46  ;;  %v7305_v28 = vpop.f32.mrf.mxu2  ;;  %v11123_v46 = vor.u32 %v12281_v1, %v11122_v19  ;;  %v12324_v0 = vld [vmem:[#allocation19 + $0xe4] sm:$0xf]  ;;  %v12310_v19 = vld [vmem:[#allocation19 + $0x6c] sm:$0xf0] }
0x10c2   :  { %v7309_v26 = vpack.c.bf16 %v7305_v28, %v7305_v28  ;;  %v7287_v45 = vpop.f32.mrf.mxu1  ;;  %7700 = vmatpush.bf16.msrb.mxu2 %v11139_v55  ;;  %v11300_v28 = vld [vmem:[#allocation19 + $0xf0] sm:$0xf0]  ;;  %v12342_v55 = vld [vmem:[#allocation19 + $0x16c] sm:$0xf0] }
0x10c3   :  { %v11396_v45 = vld [vmem:[#allocation19 + $0x1b0] sm:$0xf0] }
0x10c4   :  { %7415 = vmatmul.bf16.vlgmr.msra.gmra.mxu0 %v7309_v26  ;;  %7428 = vmatmul.bf16.vlgmr.msra.gmra.mxu2 %v7309_v26  ;;  %v11303_v26 = vor.u32 %v12324_v0, %v11300_v28  ;;  %v11219_v0 = vor.u32 %v12306_v14, %v11218_v39  ;;  %v11314_v28 = vld [vmem:[#allocation19 + $0x100] sm:$0xf]  ;;  %v11290_v39 = vld [vmem:[#allocation19 + $0xc8] sm:$0xf]  ;;  %v12323_v14 = vld [vmem:[#allocation19 + $0xd4] sm:$0xf0] }
0x10c5   :  { %7708 = vmatpush.bf16.msra.mxu0 %v11183_v44  ;;  %v11394_v44 = vld [vmem:[#allocation19 + $0x1a0] sm:$0xf] }
0x10c6   :  { %7701 = vmatpush.bf16.msrb.mxu2 %v11131_v52  ;;  %v11346_v52 = vld [vmem:[#allocation19 + $0x140] sm:$0xf] }
0x10c8   :  { %v7274_v53 = vpop.f32.mrf.mxu3 }
0x10c9   :  { %v7307_v11 = vpop.f32.mrf.mxu2  ;;  %7709 = vmatpush.bf16.msra.mxu0 %v11175_v47  ;;  %v11282_v47 = vld [vmem:[#allocation19 + $0xc0] sm:$0xf]  ;;  %v11395_v53 = vor.u32 %v12350_v3, %v11394_v44  ;;  %v11331_v44 = vor.u32 %v12334_v29, %v11330_v59  ;;  %v12330_v3 = vld [vmem:[#allocation19 + $0x10c] sm:$0xf0]  ;;  %v11291_v29 = vor.u32 %v12323_v14, %v11290_v39  ;;  %v12301_v39 = vld [vmem:[#allocation19 + $0x2c] sm:$0xf] }
0x10ca   :  { %7702 = vmatpush.bf16.msrb.mxu2 %v11123_v46  ;;  %v11283_v11 = vor.u32 %v12322_v15, %v11282_v47  ;;  %v12338_v46 = vld [vmem:[#allocation19 + $0x14c] sm:$0xf0]  ;;  %v11212_v14 = vld [vmem:[#allocation19 + $0x38] sm:$0xf0] }
0x10cb   :  { %8148 = vmatpush.bf16.msra.mxu3 %v11395_v53  ;;  %v12300_v53 = vld [vmem:[#allocation19 + $0x24] sm:$0xf] }
0x10cc   :  { %8134 = vmatpush.bf16.msrb.mxu1 %v11283_v11  ;;  %v11204_v11 = vld [vmem:[#allocation19 + $0x30] sm:$0xf0] }
0x10cd   :  { %7710 = vmatpush.bf16.msra.mxu0 %v11167_v38  ;;  %v11284_v38 = vld [vmem:[#allocation19 + $0xd0] sm:$0xf0] }
0x10ce   :  { %8159 = vmatpush.bf16.msra.mxu2 %v11303_v26 }
0x10d0   :  { %v7449_v21 = vpop.f32.mrf.mxu3  ;;  %8135 = vmatpush.bf16.msrb.mxu1 %v11267_v6 }
0x10d1   :  { %v7453_v48 = vpack.c.bf16 %v7449_v21, %v7449_v21  ;;  %7711 = vmatpush.bf16.msra.mxu0 %v11159_v20  ;;  %v11378_v21 = vld [vmem:[#allocation19 + $0x180] sm:$0xf]  ;;  %v11268_v20 = vld [vmem:[#allocation19 + $0xb0] sm:$0xf0] }
0x10d2   :  { %v11271_v23 = vor.u32 %v12316_v2, %v11268_v20  ;;  %v11315_v20 = vor.u32 %v12330_v3, %v11314_v28  ;;  %v11274_v3 = vld [vmem:[#allocation19 + $0xa8] sm:$0xf] }
0x10d3   :  { %7559 = vmatmul.bf16.vlgmr.msra.gmra.mxu1 %v7453_v48  ;;  %7572 = vmatmul.bf16.vlgmr.msrb.gmra.mxu3 %v7453_v48  ;;  %v12346_v48 = vld [vmem:[#allocation19 + $0x18c] sm:$0xf0] }
0x10d4   :  { %11119 = vmatmul.msk.bf16.vlgmr.msrb.gmra.mxu0 %vm6429_vm10, %v11118_v42  ;;  %v11399_v42 = vor.u32 %v12348_v7, %v11396_v45  ;;  %v11379_v41 = vor.u32 %v12346_v48, %v11378_v21  ;;  %8136 = vmatpush.bf16.msrb.mxu1 %v11251_v62  ;;  %v11202_v7 = vld [vmem:[#allocation19 + $0x20] sm:$0xf]  ;;  %v12302_v45 = vld [vmem:[#allocation19 + $0x2c] sm:$0xf0]  ;;  %v11316_v21 = vld [vmem:[#allocation19 + $0x110] sm:$0xf0] }
0x10d5   :  { %7712 = vmatpush.bf16.msra.mxu0 %v11151_v54  ;;  %v11362_v54 = vld [vmem:[#allocation19 + $0x160] sm:$0xf]  ;;  %v11434_v48 = vld [vmem:[#allocation19 + $0x1e8] sm:$0xf]  ;;  %v11203_v58 = vor.u32 %v12302_v45, %v11202_v7  ;;  %v12319_v7 = vld [vmem:[#allocation19 + $0xb4] sm:$0xf0] }
0x10d6   :  { %8149 = vmatpush.bf16.msra.mxu3 %v11379_v41  ;;  %v11275_v45 = vor.u32 %v12319_v7, %v11274_v3 }
0x10d8   :  { %v7451_v4 = vpop.f32.mrf.mxu3 }
0x10d9   :  { %7713 = vmatpush.bf16.msra.mxu0 %v11143_v61  ;;  %v11287_v4 = vor.u32 %v12320_v37, %v11284_v38  ;;  %v11364_v61 = vld [vmem:[#allocation19 + $0x170] sm:$0xf0]  ;;  %v12328_v37 = vld [vmem:[#allocation19 + $0x104] sm:$0xf] }
0x10da   :  { %v11367_v63 = vor.u32 %v12340_v5, %v11364_v61  ;;  %v11319_v6 = vor.u32 %v12328_v37, %v11316_v21 }
0x10db   :  { %8160 = vmatpush.bf16.msra.mxu2 %v11287_v4 }
0x10dd   :  { %7714 = vmatpush.bf16.msra.mxu0 %v11135_v49  ;;  %v11234_v49 = vld [vmem:[#allocation19 + $0x60] sm:$0xf] }
0x10de   :  { %v11235_v12 = vor.u32 %v12310_v19, %v11234_v49  ;;  %v11188_v19 = vld [vmem:[#allocation19 + $0x10] sm:$0xf0] }
0x10df   :  { %8161 = vmatpush.bf16.msra.mxu2 %v11271_v23  ;;  %v11439_v23 = vor.u32 %v12357_v22, %v11436_v13  ;;  %v12315_v22 = vld [vmem:[#allocation19 + $0x94] sm:$0xf0]  ;;  %v12313_v13 = vld [vmem:[#allocation19 + $0x8c] sm:$0xf] }
0x10e0   :  { %8137 = vmatpush.bf16.msrb.mxu1 %v11235_v12 }
0x10e1   :  { %7715 = vmatpush.bf16.msra.mxu0 %v11127_v25  ;;  %v11236_v25 = vld [vmem:[#allocation19 + $0x70] sm:$0xf0] }
0x10e2   :  { %v11239_v57 = vor.u32 %v12308_v27, %v11236_v25  ;;  %v12325_v25 = vld [vmem:[#allocation19 + $0xec] sm:$0xf] }
0x10e3   :  { %8162 = vmatpush.bf16.msra.mxu2 %v11255_v50  ;;  %v12298_v50 = vld [vmem:[#allocation19 + $0xc] sm:$0xf0] }
0x10e4   :  { %8138 = vmatpush.bf16.msrb.mxu1 %v11219_v0  ;;  %v12345_v0 = vld [vmem:[#allocation19 + $0x18c] sm:$0xf] }
0x10e5   :  { %8172 = vmatpush.bf16.msrb.mxu0 %v11431_v8  ;;  %v11347_v8 = vor.u32 %v12338_v46, %v11346_v52  ;;  %v12296_v52 = vld [vmem:[#allocation19 + $0x4] sm:$0xf] }
0x10e6   :  { %v11191_v46 = vor.u32 %v12296_v52, %v11188_v19  ;;  %v11340_v52 = vld [vmem:[#allocation19 + $0x138] sm:$0xf0] }
0x10e7   :  { %8163 = vmatpush.bf16.msra.mxu2 %v11239_v57  ;;  %v11404_v57 = vld [vmem:[#allocation19 + $0x1b8] sm:$0xf0] }
0x10e8   :  { %8139 = vmatpush.bf16.msrb.mxu1 %v11203_v58 }
0x10e9   :  { %8173 = vmatpush.bf16.msrb.mxu0 %v11415_v16  ;;  %v11220_v16 = vld [vmem:[#allocation19 + $0x50] sm:$0xf0] }
0x10ea   :  { %v11223_v26 = vor.u32 %v12304_v10, %v11220_v16  ;;  %v11292_v10 = vld [vmem:[#allocation19 + $0xd8] sm:$0xf0] }
0x10ec   :  { %8164 = vmatpush.bf16.msra.mxu2 %v11223_v26 }
0x10ed   :  { %8174 = vmatpush.bf16.msrb.mxu0 %v11399_v42  ;;  %v12359_v42 = vld [vmem:[#allocation19 + $0x1f4] sm:$0xf0] }
0x10ee   :  { %v11435_v41 = vor.u32 %v12359_v42, %v11434_v48  ;;  %v11372_v48 = vld [vmem:[#allocation19 + $0x178] sm:$0xf0] }
0x10f1   :  { %8175 = vmatpush.bf16.msrb.mxu0 %v11383_v35 }
0x10f5   :  { %8176 = vmatpush.bf16.msrb.mxu0 %v11367_v63  ;;  %v12327_v63 = vld [vmem:[#allocation19 + $0xf4] sm:$0xf0] }
0x10f9   :  { %8177 = vmatpush.bf16.msrb.mxu0 %v11351_v56  ;;  %v12321_v56 = vld [vmem:[#allocation19 + $0xcc] sm:$0xf] }
0x10fa   :  { %v11295_v16 = vor.u32 %v12321_v56, %v11292_v10  ;;  %v11194_v10 = vld [vmem:[#allocation19 + $0x8] sm:$0xf] }
0x1141   :  { %v7416_v24 = vpop.f32.mrf.mxu0 }
0x1142   :  { %v14818_v34 = vadd.f32 %v7416_v24, %v14811_v33  ;;  %v11363_v33 = vor.u32 %v12342_v55, %v11362_v54  ;;  %v11207_v24 = vor.u32 %v12300_v53, %v11204_v11  ;;  %v11418_v54 = vld [vmem:[#allocation19 + $0x1c8] sm:$0xf]  ;;  %v12343_v11 = vld [vmem:[#allocation19 + $0x174] sm:$0xf0] }
0x1143   :  { %v11419_v60 = vor.u32 %v12355_v30, %v11418_v54  ;;  %v11370_v53 = vld [vmem:[#allocation19 + $0x168] sm:$0xf]  ;;  %v11356_v54 = vld [vmem:[#allocation19 + $0x158] sm:$0xf0] }
0x1144   :  { %8150 = vmatpush.bf16.msra.mxu3 %v11363_v33  ;;  %8165 = vmatpush.bf16.msra.mxu2 %v11207_v24  ;;  %v11186_v33 = vld [vmem:[#allocation19] sm:$0xf]  ;;  %v11371_v21 = vor.u32 %v12343_v11, %v11370_v53  ;;  %v11354_v24 = vld [vmem:[#allocation19 + $0x148] sm:$0xf] }
0x1145   :  { %v11187_v49 = vor.u32 %v12298_v50, %v11186_v33  ;;  %v12333_v50 = vld [vmem:[#allocation19 + $0x12c] sm:$0xf] }
0x1146   :  { %v11343_v19 = vor.u32 %v12333_v50, %v11340_v52  ;;  %v12373_v50 = vld [vmem:[#allocation22 + $0x64] sm:$0xf0]  ;;  %v11618_v52 = vld [vmem:[#allocation22 + $0x160] sm:$0xf] }
0x1147   :  { %v7429_v1 = vpop.f32.mrf.mxu2  ;;  %8140 = vmatpush.bf16.msrb.mxu1 %v11187_v49  ;;  %v11226_v49 = vld [vmem:[#allocation19 + $0x48] sm:$0xf] }
0x1148   :  { %v14821_v9 = vadd.f32 %v7429_v1, %v14809_v40  ;;  %v11332_v40 = vld [vmem:[#allocation19 + $0x130] sm:$0xf0]  ;;  %8151 = vmatpush.bf16.msra.mxu3 %v11347_v8  ;;  %v11306_v1 = vld [vmem:[#allocation19 + $0xe8] sm:$0xf]  ;;  %8166 = vmatpush.bf16.msra.mxu2 %v11191_v46  ;;  %v12349_v8 = vld [vmem:[#allocation19 + $0x1ac] sm:$0xf] }
0x1149   :  { %v7418_v51 = vpop.f32.mrf.mxu0  ;;  %v11335_v15 = vor.u32 %v12332_v31, %v11332_v40  ;;  %v11307_v27 = vor.u32 %v12327_v63, %v11306_v1  ;;  %v11407_v59 = vor.u32 %v12349_v8, %v11404_v57  ;;  %v11386_v31 = vld [vmem:[#allocation19 + $0x188] sm:$0xf]  ;;  %v12347_v40 = vld [vmem:[#allocation19 + $0x194] sm:$0xf0]  ;;  %v12305_v63 = vld [vmem:[#allocation19 + $0x4c] sm:$0xf] }
0x114a   :  { %v12351_v51 = vld [vmem:[#allocation19 + $0x1b4] sm:$0xf0]  ;;  %v11387_v28 = vor.u32 %v12347_v40, %v11386_v31  ;;  %v11228_v46 = vld [vmem:[#allocation19 + $0x58] sm:$0xf0]  ;;  %v11210_v8 = vld [vmem:[#allocation19 + $0x28] sm:$0xf] }
0x114b   :  { %8178 = vmatpush.bf16.msrb.mxu0 %v11335_v15  ;;  %8185 = vmatpush.bf16.msra.mxu1 %v11307_v27  ;;  %v11403_v12 = vor.u32 %v12351_v51, %v11402_v32  ;;  %v11276_v15 = vld [vmem:[#allocation19 + $0xb8] sm:$0xf0]  ;;  %v12307_v1 = vld [vmem:[#allocation19 + $0x54] sm:$0xf0]  ;;  %v12329_v32 = vld [vmem:[#allocation19 + $0x10c] sm:$0xf] }
0x114c   :  { %8152 = vmatpush.bf16.msra.mxu3 %v11331_v44  ;;  %v11388_v44 = vld [vmem:[#allocation19 + $0x198] sm:$0xf0]  ;;  %v11227_v27 = vor.u32 %v12307_v1, %v11226_v49  ;;  %v12303_v57 = vld [vmem:[#allocation19 + $0x34] sm:$0xf0]  ;;  %v12297_v31 = vld [vmem:[#allocation19 + $0xc] sm:$0xf] }
0x114d   :  { %v11391_v26 = vor.u32 %v12345_v0, %v11388_v44  ;;  %v11211_v56 = vor.u32 %v12303_v57, %v11210_v8  ;;  %v11196_v0 = vld [vmem:[#allocation19 + $0x18] sm:$0xf0]  ;;  %v12405_v49 = vld [vmem:[#allocation22 + $0x164] sm:$0xf0]  ;;  %v11530_v8 = vld [vmem:[#allocation22 + $0xb0] sm:$0xf] }
0x114e   :  { %v11199_v44 = vor.u32 %v12297_v31, %v11196_v0  ;;  %v12383_v57 = vld [vmem:[#allocation22 + $0xb4] sm:$0xf0]  ;;  %v11522_v31 = vld [vmem:[#allocation22 + $0xa0] sm:$0xf] }
0x114f   :  { %v7431_v47 = vpop.f32.mrf.mxu2  ;;  %8179 = vmatpush.bf16.msrb.mxu0 %v11319_v6  ;;  %8186 = vmatpush.bf16.msra.mxu1 %v11291_v29  ;;  %v12339_v6 = vld [vmem:[#allocation19 + $0x154] sm:$0xf0]  ;;  %v11215_v29 = vor.u32 %v12301_v39, %v11212_v14  ;;  %v11474_v39 = vld [vmem:[#allocation22 + $0x40] sm:$0xf] }
0x1150   :  { %v7560_v38 = vpop.f32.mrf.mxu1  ;;  %8153 = vmatpush.bf16.msra.mxu3 %v11315_v20  ;;  %v12317_v47 = vld [vmem:[#allocation19 + $0xac] sm:$0xf] }
0x1151   :  { %v14824_v4 = vadd.f32 %v7560_v38, %v14818_v34  ;;  %v7593_v36 = vpop.f32.mrf.mxu0  ;;  %v12353_v34 = vld [vmem:[#allocation19 + $0x1cc] sm:$0xf]  ;;  %v11279_v37 = vor.u32 %v12317_v47, %v11276_v15  ;;  %v11562_v47 = vld [vmem:[#allocation22 + $0xf0] sm:$0xf]  ;;  %v12391_v15 = vld [vmem:[#allocation22 + $0xf4] sm:$0xf0] }
0x1152   :  { %v7597_v2 = vpack.c.bf16 %v7593_v36, %v7593_v36  ;;  %v11423_v43 = vor.u32 %v12353_v34, %v11420_v17  ;;  %v12341_v38 = vld [vmem:[#allocation19 + $0x16c] sm:$0xf]  ;;  %v11258_v36 = vld [vmem:[#allocation19 + $0x88] sm:$0xf]  ;;  %v12311_v17 = vld [vmem:[#allocation19 + $0x74] sm:$0xf0] }
0x1153   :  { %8187 = vmatpush.bf16.msra.mxu1 %v11275_v45  ;;  %v11375_v42 = vor.u32 %v12341_v38, %v11372_v48  ;;  %v11259_v58 = vor.u32 %v12315_v22, %v11258_v36  ;;  %v11242_v34 = vld [vmem:[#allocation19 + $0x68] sm:$0xf]  ;;  %v11563_v48 = vor.u32 %v12391_v15, %v11562_v47  ;;  %v11554_v22 = vld [vmem:[#allocation22 + $0xe0] sm:$0xf]  ;;  %v12365_v47 = vld [vmem:[#allocation22 + $0x24] sm:$0xf0] }
0x1154   :  { %7703 = vmatmul.bf16.vlgmr.msrb.gmra.mxu2 %v7597_v2  ;;  %7716 = vmatmul.bf16.vlgmr.msra.gmra.mxu0 %v7597_v2  ;;  %v11260_v2 = vld [vmem:[#allocation19 + $0x98] sm:$0xf0] }
0x1155   :  { %8198 = vmatpush.bf16.msrb.mxu3 %v11435_v41  ;;  %8224 = vmatpush.bf16.msra.mxu0 %v11439_v23  ;;  %v11263_v20 = vor.u32 %v12313_v13, %v11260_v2  ;;  %v12337_v41 = vld [vmem:[#allocation19 + $0x14c] sm:$0xf]  ;;  %v11355_v23 = vor.u32 %v12339_v6, %v11354_v24  ;;  %v11498_v2 = vld [vmem:[#allocation22 + $0x70] sm:$0xf]  ;;  %v12375_v24 = vld [vmem:[#allocation22 + $0x74] sm:$0xf0] }
0x1156   :  { %v7573_v35 = vpop.f32.mrf.mxu3  ;;  %v11359_v30 = vor.u32 %v12337_v41, %v11356_v54  ;;  %v12389_v13 = vld [vmem:[#allocation22 + $0xe4] sm:$0xf0]  ;;  %v11626_v6 = vld [vmem:[#allocation22 + $0x170] sm:$0xf]  ;;  %v12407_v41 = vld [vmem:[#allocation22 + $0x174] sm:$0xf0] }
0x1157   :  { %v14827_v55 = vadd.f32 %v7573_v35, %v14821_v9  ;;  %v11308_v9 = vld [vmem:[#allocation19 + $0xf8] sm:$0xf0]  ;;  %8188 = vmatpush.bf16.msra.mxu1 %v11259_v58  ;;  %v12309_v35 = vld [vmem:[#allocation19 + $0x6c] sm:$0xf]  ;;  %v11555_v54 = vor.u32 %v12389_v13, %v11554_v22  ;;  %v11514_v13 = vld [vmem:[#allocation22 + $0x90] sm:$0xf] }
0x1158   :  { %v7562_v5 = vpop.f32.mrf.mxu1  ;;  %v11311_v18 = vor.u32 %v12325_v25, %v11308_v9  ;;  %v11231_v25 = vor.u32 %v12305_v63, %v11228_v46  ;;  %v11322_v9 = vld [vmem:[#allocation19 + $0x108] sm:$0xf]  ;;  %v11538_v63 = vld [vmem:[#allocation22 + $0xc0] sm:$0xf]  ;;  %v12385_v46 = vld [vmem:[#allocation22 + $0xc4] sm:$0xf0] }
0x1159   :  { %v7595_v61 = vpop.f32.mrf.mxu0  ;;  %8199 = vmatpush.bf16.msrb.mxu3 %v11419_v60  ;;  %8225 = vmatpush.bf16.msra.mxu0 %v11423_v43  ;;  %v11243_v60 = vor.u32 %v12311_v17, %v11242_v34  ;;  %v11244_v43 = vld [vmem:[#allocation19 + $0x78] sm:$0xf0]  ;;  %v11338_v5 = vld [vmem:[#allocation19 + $0x128] sm:$0xf]  ;;  %v11682_v17 = vld [vmem:[#allocation22 + $0x1e0] sm:$0xf] }
0x115a   :  { %8211 = vmatpush.bf16.msrb.mxu2 %v11311_v18  ;;  %v12335_v61 = vld [vmem:[#allocation19 + $0x134] sm:$0xf0]  ;;  %v12387_v34 = vld [vmem:[#allocation22 + $0xd4] sm:$0xf0] }
0x115b   :  { %v11339_v33 = vor.u32 %v12335_v61, %v11338_v5  ;;  %8189 = vmatpush.bf16.msra.mxu1 %v11243_v60  ;;  %v12331_v18 = vld [vmem:[#allocation19 + $0x114] sm:$0xf0]  ;;  %v11499_v60 = vor.u32 %v12375_v24, %v11498_v2  ;;  %v11627_v5 = vor.u32 %v12407_v41, %v11626_v6  ;;  %v12421_v61 = vld [vmem:[#allocation22 + $0x1e4] sm:$0xf0]  ;;  %v11674_v2 = vld [vmem:[#allocation22 + $0x1d0] sm:$0xf] }
0x115c   :  { %v11323_v51 = vor.u32 %v12331_v18, %v11322_v9  ;;  %v11619_v9 = vor.u32 %v12405_v49, %v11618_v52  ;;  %v12371_v18 = vld [vmem:[#allocation22 + $0x54] sm:$0xf0]  ;;  %v11594_v24 = vld [vmem:[#allocation22 + $0x130] sm:$0xf]  ;;  %v12397_v52 = vld [vmem:[#allocation22 + $0x124] sm:$0xf0] }
0x115d   :  { %8200 = vmatpush.bf16.msrb.mxu3 %v11403_v12  ;;  %8226 = vmatpush.bf16.msra.mxu0 %v11407_v59  ;;  %v11324_v12 = vld [vmem:[#allocation19 + $0x118] sm:$0xf0] }
0x115e   :  { %v7575_v62 = vpop.f32.mrf.mxu3  ;;  %8212 = vmatpush.bf16.msrb.mxu2 %v11295_v16  ;;  %v11327_v59 = vor.u32 %v12329_v32, %v11324_v12  ;;  %v12299_v16 = vld [vmem:[#allocation19 + $0x14] sm:$0xf0]  ;;  %v11610_v32 = vld [vmem:[#allocation22 + $0x150] sm:$0xf]  ;;  %v11539_v12 = vor.u32 %v12385_v46, %v11538_v63  ;;  %v12399_v6 = vld [vmem:[#allocation22 + $0x134] sm:$0xf0] }
0x115f   :  { %v11247_v62 = vor.u32 %v12309_v35, %v11244_v43  ;;  %8190 = vmatpush.bf16.msra.mxu1 %v11227_v27  ;;  %v11195_v40 = vor.u32 %v12299_v16, %v11194_v10  ;;  %v11490_v43 = vld [vmem:[#allocation22 + $0x60] sm:$0xf]  ;;  %v12401_v10 = vld [vmem:[#allocation22 + $0x144] sm:$0xf0]  ;;  %v11531_v16 = vor.u32 %v12383_v57, %v11530_v8  ;;  %v11658_v46 = vld [vmem:[#allocation22 + $0x1b0] sm:$0xf] }
0x1160   :  { %v11491_v27 = vor.u32 %v12373_v50, %v11490_v43  ;;  %v11586_v50 = vld [vmem:[#allocation22 + $0x120] sm:$0xf]  ;;  %v12368_v57 = vld [vmem:[#allocation22 + $0x44] sm:$0xf] }
0x1161   :  { %8201 = vmatpush.bf16.msrb.mxu3 %v11387_v28  ;;  %8227 = vmatpush.bf16.msra.mxu0 %v11391_v26  ;;  %v7723_v28 = vld [vmem:[#allocation18] sm:$0x3]  ;;  %v11587_v49 = vor.u32 %v12397_v52, %v11586_v50  ;;  %v11684_v50 = vld [vmem:[#allocation22 + $0x1e8] sm:$0xf0] }
0x1162   :  { %8213 = vmatpush.bf16.msrb.mxu2 %v11279_v37  ;;  %v7726_v26 = vperm.slane %v7723_v28, 1  ;;  %v7725_v53 = vperm.slane %v7723_v28, 0 }
0x1163   :  { %8191 = vmatpush.bf16.msra.mxu1 %v11211_v56  ;;  %v12369_v56 = vld [vmem:[#allocation22 + $0x44] sm:$0xf0] }
0x1164   :  { %v11475_v0 = vor.u32 %v12369_v56, %v11474_v39  ;;  %v12413_v56 = vld [vmem:[#allocation22 + $0x1a4] sm:$0xf0] }
0x1165   :  { %8202 = vmatpush.bf16.msrb.mxu3 %v11371_v21  ;;  %8228 = vmatpush.bf16.msra.mxu0 %v11375_v42 }
0x1166   :  { %8214 = vmatpush.bf16.msrb.mxu2 %v11263_v20  ;;  %v11690_v20 = vld [vmem:[#allocation22 + $0x1f0] sm:$0xf] }
0x1167   :  { %8192 = vmatpush.bf16.msra.mxu1 %v11195_v40  ;;  %v12381_v40 = vld [vmem:[#allocation22 + $0xa4] sm:$0xf0] }
0x1169   :  { %8203 = vmatpush.bf16.msrb.mxu3 %v11355_v23  ;;  %8229 = vmatpush.bf16.msra.mxu0 %v11359_v30  ;;  %v11546_v30 = vld [vmem:[#allocation22 + $0xd0] sm:$0xf] }
0x116a   :  { %8215 = vmatpush.bf16.msrb.mxu2 %v11247_v62  ;;  %v11547_v1 = vor.u32 %v12387_v34, %v11546_v30  ;;  %v11506_v30 = vld [vmem:[#allocation22 + $0x80] sm:$0xf] }
0x116d   :  { %8204 = vmatpush.bf16.msrb.mxu3 %v11339_v33  ;;  %8230 = vmatpush.bf16.msra.mxu0 %v11343_v19  ;;  %v11683_v19 = vor.u32 %v12421_v61, %v11682_v17  ;;  %v12377_v17 = vld [vmem:[#allocation22 + $0x84] sm:$0xf0]  ;;  %v12390_v61 = vld [vmem:[#allocation22 + $0xf4] sm:$0xf] }
0x116e   :  { %8216 = vmatpush.bf16.msrb.mxu2 %v11231_v25  ;;  %v11482_v25 = vld [vmem:[#allocation22 + $0x50] sm:$0xf]  ;;  %v11507_v43 = vor.u32 %v12377_v17, %v11506_v30  ;;  %v12362_v30 = vld [vmem:[#allocation22 + $0x14] sm:$0xf] }
0x116f   :  { %v12402_v17 = vld [vmem:[#allocation22 + $0x154] sm:$0xf] }
0x1171   :  { %8205 = vmatpush.bf16.msrb.mxu3 %v11323_v51  ;;  %8231 = vmatpush.bf16.msra.mxu0 %v11327_v59  ;;  %v12403_v51 = vld [vmem:[#allocation22 + $0x154] sm:$0xf0]  ;;  %v11483_v59 = vor.u32 %v12371_v18, %v11482_v25  ;;  %v11556_v18 = vld [vmem:[#allocation22 + $0xe8] sm:$0xf0] }
0x1172   :  { %8217 = vmatpush.bf16.msrb.mxu2 %v11215_v29  ;;  %v11611_v14 = vor.u32 %v12403_v51, %v11610_v32  ;;  %v11602_v29 = vld [vmem:[#allocation22 + $0x140] sm:$0xf]  ;;  %v11578_v51 = vld [vmem:[#allocation22 + $0x110] sm:$0xf] }
0x1173   :  { %v11603_v28 = vor.u32 %v12401_v10, %v11602_v29  ;;  %v12386_v10 = vld [vmem:[#allocation22 + $0xd4] sm:$0xf] }
0x1176   :  { %8218 = vmatpush.bf16.msrb.mxu2 %v11199_v44  ;;  %v11466_v44 = vld [vmem:[#allocation22 + $0x30] sm:$0xf] }
0x11d1   :  { %v7717_v3 = vpop.f32.mrf.mxu0 }
0x11d2   :  { %v7722_v7 = vadd.f32 %v7717_v3, %v14827_v55  ;;  %v12423_v55 = vld [vmem:[#allocation22 + $0x1f4] sm:$0xf0]  ;;  %v11523_v3 = vor.u32 %v12381_v40, %v11522_v31  ;;  %v11570_v40 = vld [vmem:[#allocation22 + $0x100] sm:$0xf] }
0x11d3   :  { %v11691_v23 = vor.u32 %v12423_v55, %v11690_v20  ;;  %v12419_v55 = vld [vmem:[#allocation22 + $0x1d4] sm:$0xf0] }
0x11d4   :  { %v7730_v45 = vadd.f32 %v7726_v26, %v7722_v7  ;;  %v12367_v26 = vld [vmem:[#allocation22 + $0x34] sm:$0xf0]  ;;  %v11675_v41 = vor.u32 %v12419_v55, %v11674_v2  ;;  %v12409_v2 = vld [vmem:[#allocation22 + $0x184] sm:$0xf0] }
0x11d5   :  { %v11467_v7 = vor.u32 %v12367_v26, %v11466_v44  ;;  %v12366_v44 = vld [vmem:[#allocation22 + $0x34] sm:$0xf]  ;;  %v11468_v26 = vld [vmem:[#allocation22 + $0x38] sm:$0xf0] }
0x11d6   :  { %vm7732_vm11 = vcmp.gt.f32.partialorder %v7730_v45, 0.0  ;;  %v7734_v37 = vmul.f32 0.01, %v7730_v45 }
0x11d7   :  { %v7704_v11 = vpop.f32.mrf.mxu2 }
0x11d8   :  { %v7736_v38 = vsel %vm7732_vm11, %v7730_v45, %v7734_v37  ;;  %v7721_v21 = vadd.f32 %v7704_v11, %v14824_v4  ;;  %v11458_v45 = vld [vmem:[#allocation22 + $0x20] sm:$0xf]  ;;  %v11450_v37 = vld [vmem:[#allocation22 + $0x10] sm:$0xf] }
0x11d9   :  { %v14831_v42 = vpack.c.bf16 %v7736_v38, %v7736_v38  ;;  %v7719_v36 = vpop.f32.mrf.mxu0  ;;  %v11459_v15 = vor.u32 %v12365_v47, %v11458_v45  ;;  %v11442_v38 = vld [vmem:[#allocation22] sm:$0xf]  ;;  %v11628_v45 = vld [vmem:[#allocation22 + $0x178] sm:$0xf0]  ;;  %v11642_v47 = vld [vmem:[#allocation22 + $0x190] sm:$0xf] }
0x11da   :  { %v7729_v58 = vadd.f32 %v7725_v53, %v7721_v21  ;;  %v12363_v53 = vld [vmem:[#allocation22 + $0x14] sm:$0xf0]  ;;  %v12361_v21 = vld [vmem:[#allocation22 + $0x4] sm:$0xf0]  ;;  %v11500_v36 = vld [vmem:[#allocation22 + $0x78] sm:$0xf0] }
0x11db   :  { %8154 = vmatmul.bf16.vlgmr.msra.gmra.mxu3 %v14831_v42  ;;  %8180 = vmatmul.bf16.vlgmr.msrb.gmra.mxu0 %v14831_v42  ;;  %v11451_v11 = vor.u32 %v12363_v53, %v11450_v37 }
0x11dc   :  { %vm7731_vm12 = vcmp.gt.f32.partialorder %v7729_v58, 0.0  ;;  %v7733_v4 = vmul.f32 0.01, %v7729_v58  ;;  %8648 = vmatpush.bf16.msra.mxu3 %v11563_v48  ;;  %8674 = vmatpush.bf16.msrb.mxu0 %v11691_v23  ;;  %v11443_v48 = vor.u32 %v12361_v21, %v11442_v38  ;;  %v11595_v23 = vor.u32 %v12399_v6, %v11594_v24  ;;  %v11540_v38 = vld [vmem:[#allocation22 + $0xc8] sm:$0xf0] }
0x11dd   :  { %v12382_v24 = vld [vmem:[#allocation22 + $0xb4] sm:$0xf]  ;;  %v11532_v6 = vld [vmem:[#allocation22 + $0xb8] sm:$0xf0] }
0x11de   :  { %v7735_v35 = vsel %vm7731_vm12, %v7729_v58, %v7733_v4  ;;  %v12379_v58 = vld [vmem:[#allocation22 + $0x94] sm:$0xf0]  ;;  %v12372_v4 = vld [vmem:[#allocation22 + $0x64] sm:$0xf] }
0x11df   :  { %v7737_v62 = vpack.c.bf16 %v7735_v35, %v7735_v35  ;;  %v7706_v33 = vpop.f32.mrf.mxu2  ;;  %v11515_v20 = vor.u32 %v12379_v58, %v11514_v13  ;;  %v11666_v35 = vld [vmem:[#allocation22 + $0x1c0] sm:$0xf]  ;;  %v11620_v13 = vld [vmem:[#allocation22 + $0x168] sm:$0xf0] }
0x11e0   :  { %8649 = vmatpush.bf16.msra.mxu3 %v11555_v54  ;;  %8675 = vmatpush.bf16.msrb.mxu0 %v11683_v19  ;;  %v11492_v54 = vld [vmem:[#allocation22 + $0x68] sm:$0xf0]  ;;  %v12370_v19 = vld [vmem:[#allocation22 + $0x54] sm:$0xf]  ;;  %v11634_v58 = vld [vmem:[#allocation22 + $0x180] sm:$0xf] }
0x11e1   :  { %8141 = vmatmul.bf16.vlgmr.msrb.gmra.mxu1 %v7737_v62  ;;  %8167 = vmatmul.bf16.vlgmr.msra.gmra.mxu2 %v7737_v62  ;;  %v11495_v34 = vor.u32 %v12372_v4, %v11492_v54  ;;  %v11635_v55 = vor.u32 %v12409_v2, %v11634_v58  ;;  %v11692_v4 = vld [vmem:[#allocation22 + $0x1f8] sm:$0xf0] }
0x11e2   :  { %8635 = vmatpush.bf16.msrb.mxu1 %v11499_v60  ;;  %8661 = vmatpush.bf16.msra.mxu2 %v11627_v5  ;;  %v12417_v60 = vld [vmem:[#allocation22 + $0x1c4] sm:$0xf0] }
0x11e3   :  { %v11667_v5 = vor.u32 %v12417_v60, %v11666_v35  ;;  %v11612_v60 = vld [vmem:[#allocation22 + $0x158] sm:$0xf0] }
0x11e4   :  { %8650 = vmatpush.bf16.msra.mxu3 %v11547_v1  ;;  %8676 = vmatpush.bf16.msrb.mxu0 %v11675_v41  ;;  %v11484_v1 = vld [vmem:[#allocation22 + $0x58] sm:$0xf0]  ;;  %v11535_v41 = vor.u32 %v12382_v24, %v11532_v6 }
0x11e5   :  { %v11487_v63 = vor.u32 %v12370_v19, %v11484_v1  ;;  %v11444_v19 = vld [vmem:[#allocation22 + $0x8] sm:$0xf0]  ;;  %v12400_v1 = vld [vmem:[#allocation22 + $0x144] sm:$0xf] }
0x11e6   :  { %8636 = vmatpush.bf16.msrb.mxu1 %v11491_v27  ;;  %8662 = vmatpush.bf16.msra.mxu2 %v11619_v9  ;;  %v12415_v27 = vld [vmem:[#allocation22 + $0x1b4] sm:$0xf0]  ;;  %v12388_v9 = vld [vmem:[#allocation22 + $0xe4] sm:$0xf] }
0x11e7   :  { %v11659_v25 = vor.u32 %v12415_v27, %v11658_v46  ;;  %v11559_v32 = vor.u32 %v12388_v9, %v11556_v18  ;;  %v11604_v46 = vld [vmem:[#allocation22 + $0x148] sm:$0xf0]  ;;  %v11516_v9 = vld [vmem:[#allocation22 + $0x98] sm:$0xf0] }
0x11e8   :  { %8651 = vmatpush.bf16.msra.mxu3 %v11539_v12  ;;  %8677 = vmatpush.bf16.msrb.mxu0 %v11667_v5  ;;  %v12395_v12 = vld [vmem:[#allocation22 + $0x114] sm:$0xf0]  ;;  %v12380_v5 = vld [vmem:[#allocation22 + $0xa4] sm:$0xf]  ;;  %v11607_v27 = vor.u32 %v12400_v1, %v11604_v46 }
0x11e9   :  { %v11579_v8 = vor.u32 %v12395_v12, %v11578_v51  ;;  %v11676_v51 = vld [vmem:[#allocation22 + $0x1d8] sm:$0xf0] }
0x11ea   :  { %8637 = vmatpush.bf16.msrb.mxu1 %v11483_v59  ;;  %8663 = vmatpush.bf16.msra.mxu2 %v11611_v14  ;;  %v11476_v59 = vld [vmem:[#allocation22 + $0x48] sm:$0xf0]  ;;  %v11650_v14 = vld [vmem:[#allocation22 + $0x1a0] sm:$0xf] }
0x11eb   :  { %8206 = vmatmul.bf16.vlgmr.msrb.gmra.mxu3 %v14831_v42  ;;  %8232 = vmatmul.bf16.vlgmr.msra.gmra.mxu0 %v14831_v42  ;;  %v12374_v42 = vld [vmem:[#allocation22 + $0x74] sm:$0xf]  ;;  %v11479_v39 = vor.u32 %v12368_v57, %v11476_v59  ;;  %v11651_v29 = vor.u32 %v12413_v56, %v11650_v14  ;;  %v11596_v57 = vld [vmem:[#allocation22 + $0x138] sm:$0xf0]  ;;  %v12376_v56 = vld [vmem:[#allocation22 + $0x84] sm:$0xf] }
0x11ec   :  { %8652 = vmatpush.bf16.msra.mxu3 %v11531_v16  ;;  %v11503_v22 = vor.u32 %v12374_v42, %v11500_v36  ;;  %8678 = vmatpush.bf16.msrb.mxu0 %v11659_v25  ;;  %v11548_v16 = vld [vmem:[#allocation22 + $0xd8] sm:$0xf0]  ;;  %v11460_v42 = vld [vmem:[#allocation22 + $0x28] sm:$0xf0]  ;;  %v12404_v36 = vld [vmem:[#allocation22 + $0x164] sm:$0xf] }
0x11ed   :  { %v11551_v31 = vor.u32 %v12386_v10, %v11548_v16  ;;  %v12378_v25 = vld [vmem:[#allocation22 + $0x94] sm:$0xf]  ;;  %v12416_v10 = vld [vmem:[#allocation22 + $0x1c4] sm:$0xf] }
0x11ee   :  { %8638 = vmatpush.bf16.msrb.mxu1 %v11475_v0  ;;  %8664 = vmatpush.bf16.msra.mxu2 %v11603_v28  ;;  %v12393_v0 = vld [vmem:[#allocation22 + $0x104] sm:$0xf0]  ;;  %v11519_v18 = vor.u32 %v12378_v25, %v11516_v9 }
0x11ef   :  { %v11571_v28 = vor.u32 %v12393_v0, %v11570_v40 }
0x11f0   :  { %8653 = vmatpush.bf16.msra.mxu3 %v11523_v3  ;;  %v12406_v3 = vld [vmem:[#allocation22 + $0x174] sm:$0xf]  ;;  %8679 = vmatpush.bf16.msrb.mxu0 %v11651_v29  ;;  %v11508_v29 = vld [vmem:[#allocation22 + $0x88] sm:$0xf0] }
0x11f1   :  { %8193 = vmatmul.bf16.vlgmr.msra.gmra.mxu1 %v7737_v62  ;;  %8219 = vmatmul.bf16.vlgmr.msrb.gmra.mxu2 %v7737_v62  ;;  %v11564_v62 = vld [vmem:[#allocation22 + $0xf8] sm:$0xf0]  ;;  %v11631_v37 = vor.u32 %v12406_v3, %v11628_v45  ;;  %v11511_v16 = vor.u32 %v12376_v56, %v11508_v29  ;;  %v12414_v3 = vld [vmem:[#allocation22 + $0x1b4] sm:$0xf]  ;;  %v12428_v29 = vld [vmem:[#allocation25 + $0x20] sm:$0xff] }
0x11f2   :  { %8639 = vmatpush.bf16.msrb.mxu1 %v11467_v7  ;;  %8665 = vmatpush.bf16.msra.mxu2 %v11595_v23  ;;  %v11567_v33 = vor.u32 %v12390_v61, %v11564_v62  ;;  %v11471_v7 = vor.u32 %v12366_v44, %v11468_v26  ;;  %v12422_v23 = vld [vmem:[#allocation22 + $0x1f4] sm:$0xf]  ;;  %v11524_v61 = vld [vmem:[#allocation22 + $0xa8] sm:$0xf0]  ;;  %v12420_v62 = vld [vmem:[#allocation22 + $0x1e4] sm:$0xf] }
0x11f3   :  { %v11695_v54 = vor.u32 %v12422_v23, %v11692_v4  ;;  %v11687_v52 = vor.u32 %v12420_v62, %v11684_v50  ;;  %v11588_v44 = vld [vmem:[#allocation22 + $0x128] sm:$0xf0]  ;;  %v12394_v45 = vld [vmem:[#allocation22 + $0x114] sm:$0xf] }
0x11f4   :  { %8654 = vmatpush.bf16.msra.mxu3 %v11515_v20  ;;  %v11623_v20 = vor.u32 %v12404_v36, %v11620_v13  ;;  %v12392_v36 = vld [vmem:[#allocation22 + $0x104] sm:$0xf]  ;;  %v12430_v56 = vld [vmem:[#allocation25 + $0x30] sm:$0xff] }
0x11f6   :  { %8640 = vmatpush.bf16.msrb.mxu1 %v11459_v15  ;;  %8666 = vmatpush.bf16.msra.mxu2 %v11587_v49  ;;  %v12411_v15 = vld [vmem:[#allocation22 + $0x194] sm:$0xf0]  ;;  %v12360_v49 = vld [vmem:[#allocation22 + $0x4] sm:$0xf] }
0x11f7   :  { %v11643_v53 = vor.u32 %v12411_v15, %v11642_v47 }
0x11f8   :  { %8655 = vmatpush.bf16.msra.mxu3 %v11507_v43  ;;  %v11615_v43 = vor.u32 %v12402_v17, %v11612_v60  ;;  %v11636_v60 = vld [vmem:[#allocation22 + $0x188] sm:$0xf0] }
0x11f9   :  { %8680 = vmatpush.bf16.msrb.mxu0 %v11643_v53  ;;  %v11580_v53 = vld [vmem:[#allocation22 + $0x118] sm:$0xf0] }
0x11fa   :  { %8641 = vmatpush.bf16.msrb.mxu1 %v11451_v11  ;;  %8667 = vmatpush.bf16.msra.mxu2 %v11579_v8  ;;  %v12384_v11 = vld [vmem:[#allocation22 + $0xc4] sm:$0xf]  ;;  %v12398_v8 = vld [vmem:[#allocation22 + $0x134] sm:$0xf] }
0x11fb   :  { %v11543_v21 = vor.u32 %v12384_v11, %v11540_v38  ;;  %v11599_v14 = vor.u32 %v12398_v8, %v11596_v57  ;;  %v12412_v11 = vld [vmem:[#allocation22 + $0x1a4] sm:$0xf]  ;;  %v11652_v38 = vld [vmem:[#allocation22 + $0x1a8] sm:$0xf0] }
0x11fc   :  { %8700 = vmatpush.bf16.msrb.mxu3 %v11567_v33  ;;  %v11527_v33 = vor.u32 %v12380_v5, %v11524_v61  ;;  %v11655_v2 = vor.u32 %v12412_v11, %v11652_v38  ;;  %v12432_v11 = vld [vmem:[#allocation25 + $0x40] sm:$0xff] }
0x11fd   :  { %8681 = vmatpush.bf16.msrb.mxu0 %v11635_v55  ;;  %v11644_v55 = vld [vmem:[#allocation22 + $0x198] sm:$0xf0] }
0x11fe   :  { %8642 = vmatpush.bf16.msrb.mxu1 %v11443_v48  ;;  %8668 = vmatpush.bf16.msra.mxu2 %v11571_v28  ;;  %v12364_v48 = vld [vmem:[#allocation22 + $0x24] sm:$0xf] }
0x11ff   :  { %v12396_v28 = vld [vmem:[#allocation22 + $0x124] sm:$0xf] }
0x1200   :  { %8701 = vmatpush.bf16.msrb.mxu3 %v11559_v32  ;;  %v12418_v32 = vld [vmem:[#allocation22 + $0x1d4] sm:$0xf]  ;;  %v11591_v26 = vor.u32 %v12396_v28, %v11588_v44  ;;  %v12437_v28 = vld [vmem:[#allocation25 + $0x68] sm:$0xff]  ;;  %v12424_v44 = vld [vmem:[#allocation25] sm:$0xff] }
0x1201   :  { %8726 = vmatpush.bf16.msra.mxu0 %v11695_v54  ;;  %v11679_v12 = vor.u32 %v12418_v32, %v11676_v51 }
0x1202   :  { %8687 = vmatpush.bf16.msra.mxu1 %v11503_v22  ;;  %8713 = vmatpush.bf16.msrb.mxu2 %v11631_v37  ;;  %v11463_v22 = vor.u32 %v12364_v48, %v11460_v42  ;;  %v11583_v48 = vor.u32 %v12394_v45, %v11580_v53  ;;  %v12434_v45 = vld [vmem:[#allocation25 + $0x50] sm:$0xff] }
0x1204   :  { %8702 = vmatpush.bf16.msrb.mxu3 %v11551_v31  ;;  %v11668_v31 = vld [vmem:[#allocation22 + $0x1c8] sm:$0xf0] }
0x1205   :  { %8727 = vmatpush.bf16.msra.mxu0 %v11687_v52  ;;  %v11671_v0 = vor.u32 %v12416_v10, %v11668_v31  ;;  %v12427_v10 = vld [vmem:[#allocation25 + $0x18] sm:$0xff]  ;;  %v12426_v31 = vld [vmem:[#allocation25 + $0x10] sm:$0xff] }
0x1206   :  { %8688 = vmatpush.bf16.msra.mxu1 %v11495_v34  ;;  %8714 = vmatpush.bf16.msrb.mxu2 %v11623_v20  ;;  %v11452_v34 = vld [vmem:[#allocation22 + $0x18] sm:$0xf0]  ;;  %v12410_v20 = vld [vmem:[#allocation22 + $0x194] sm:$0xf] }
0x1207   :  { %v11455_v35 = vor.u32 %v12362_v30, %v11452_v34  ;;  %v11647_v54 = vor.u32 %v12410_v20, %v11644_v55 }
0x1208   :  { %8703 = vmatpush.bf16.msrb.mxu3 %v11543_v21 }
0x1209   :  { %8728 = vmatpush.bf16.msra.mxu0 %v11679_v12 }
0x120a   :  { %8689 = vmatpush.bf16.msra.mxu1 %v11487_v63  ;;  %8715 = vmatpush.bf16.msrb.mxu2 %v11615_v43  ;;  %v11447_v63 = vor.u32 %v12360_v49, %v11444_v19 }
0x120c   :  { %8704 = vmatpush.bf16.msrb.mxu3 %v11535_v41 }
0x120d   :  { %8729 = vmatpush.bf16.msra.mxu0 %v11671_v0  ;;  %v12425_v0 = vld [vmem:[#allocation25 + $0x8] sm:$0xff] }
0x120e   :  { %8690 = vmatpush.bf16.msra.mxu1 %v11479_v39  ;;  %8716 = vmatpush.bf16.msrb.mxu2 %v11607_v27  ;;  %v14837_v39 = vld [vmem:[#allocation21] sm:$0xf] }
0x120f   :  { %v7805_v40 = vperm.slane %v14837_v39, 0  ;;  %v7806_v58 = vperm.slane %v14837_v39, 1  ;;  %v7808_v46 = vperm.slane %v14837_v39, 3 }
0x1210   :  { %8705 = vmatpush.bf16.msrb.mxu3 %v11527_v33  ;;  %v7807_v33 = vperm.slane %v14837_v39, 2  ;;  %v12429_v39 = vld [vmem:[#allocation25 + $0x28] sm:$0xff] }
0x1212   :  { %8691 = vmatpush.bf16.msra.mxu1 %v11471_v7  ;;  %8717 = vmatpush.bf16.msrb.mxu2 %v11599_v14  ;;  %v11660_v7 = vld [vmem:[#allocation22 + $0x1b8] sm:$0xf0] }
0x1213   :  { %v11663_v37 = vor.u32 %v12414_v3, %v11660_v7  ;;  %v12431_v14 = vld [vmem:[#allocation25 + $0x38] sm:$0xff] }
0x1214   :  { %8706 = vmatpush.bf16.msrb.mxu3 %v11519_v18  ;;  %v12435_v3 = vld [vmem:[#allocation25 + $0x58] sm:$0xff] }
0x1215   :  { %8730 = vmatpush.bf16.msra.mxu0 %v11663_v37  ;;  %v8309_v37 = vld [vmem:[#allocation24] sm:$0x3] }
0x1216   :  { %8692 = vmatpush.bf16.msra.mxu1 %v11463_v22  ;;  %8718 = vmatpush.bf16.msrb.mxu2 %v11591_v26  ;;  %v11572_v22 = vld [vmem:[#allocation22 + $0x108] sm:$0xf0]  ;;  %v12436_v26 = vld [vmem:[#allocation25 + $0x60] sm:$0xff]  ;;  %v8311_v38 = vperm.slane %v8309_v37, 0 }
0x1217   :  { %v11575_v6 = vor.u32 %v12392_v36, %v11572_v22 }
0x1218   :  { %8707 = vmatpush.bf16.msrb.mxu3 %v11511_v16  ;;  %v12439_v16 = vld [vmem:[#allocation25 + $0x78] sm:$0xff] }
0x1219   :  { %8731 = vmatpush.bf16.msra.mxu0 %v11655_v2 }
0x121a   :  { %8693 = vmatpush.bf16.msra.mxu1 %v11455_v35  ;;  %8719 = vmatpush.bf16.msrb.mxu2 %v11583_v48  ;;  %v12408_v35 = vld [vmem:[#allocation22 + $0x184] sm:$0xf] }
0x121b   :  { %v11639_v61 = vor.u32 %v12408_v35, %v11636_v60 }
0x121d   :  { %8732 = vmatpush.bf16.msra.mxu0 %v11647_v54 }
0x121e   :  { %8694 = vmatpush.bf16.msra.mxu1 %v11447_v63  ;;  %8720 = vmatpush.bf16.msrb.mxu2 %v11575_v6 }
0x1221   :  { %8733 = vmatpush.bf16.msra.mxu0 %v11639_v61 }
0x1258   :  { %v8181_v59 = vpop.f32.mrf.mxu0 }
0x125e   :  { %v8142_v47 = vpop.f32.mrf.mxu1  ;;  %v8155_v15 = vpop.f32.mrf.mxu3 }
0x125f   :  { %v8143_v21 = vadd.f32 %v8142_v47, %v7805_v40  ;;  %v12438_v40 = vld [vmem:[#allocation25 + $0x70] sm:$0xff] }
0x1260   :  { %v8183_v42 = vpop.f32.mrf.mxu0 }
0x1261   :  { %v8156_v13 = vadd.f32 %v8155_v15, %v8143_v21  ;;  %v12433_v15 = vld [vmem:[#allocation25 + $0x48] sm:$0xff] }
0x1263   :  { %v8237_v24 = vmax.f32 %v8156_v13, 0.0 }
0x1264   :  { %v8168_v41 = vpop.f32.mrf.mxu2 }
0x1265   :  { %v8241_v23 = vpack.c.bf16 %v8237_v24, %v8237_v24  ;;  %v8169_v4 = vadd.f32 %v8168_v41, %v7806_v58 }
0x1266   :  { %v8144_v30 = vpop.f32.mrf.mxu1  ;;  %v8157_v34 = vpop.f32.mrf.mxu3 }
0x1267   :  { %v8182_v17 = vadd.f32 %v8181_v59, %v8169_v4  ;;  %8643 = vmatmul.bf16.vlgmr.msrb.gmra.mxu1 %v8241_v23  ;;  %v8312_v4 = vperm.slane %v8309_v37, 1 }
0x1268   :  { %v8233_v43 = vpop.f32.mrf.mxu0  ;;  %8875 = vmatpush.bf16.msrb.mxu1 %v12431_v14 }
0x1269   :  { %v8238_v5 = vmax.f32 %v8182_v17, 0.0 }
0x126b   :  { %v8242_v62 = vpack.c.bf16 %v8238_v5, %v8238_v5 }
0x126c   :  { %v8170_v50 = vpop.f32.mrf.mxu2  ;;  %8876 = vmatpush.bf16.msrb.mxu1 %v12430_v56 }
0x126d   :  { %8656 = vmatmul.bf16.vlgmr.msra.gmra.mxu3 %v8242_v62 }
0x126e   :  { %v8194_v52 = vpop.f32.mrf.mxu1  ;;  %v8207_v49 = vpop.f32.mrf.mxu3  ;;  %8888 = vmatpush.bf16.msra.mxu3 %v12439_v16 }
0x126f   :  { %v8195_v19 = vadd.f32 %v8194_v52, %v7807_v33 }
0x1270   :  { %v8235_v1 = vpop.f32.mrf.mxu0  ;;  %8877 = vmatpush.bf16.msrb.mxu1 %v12429_v39 }
0x1271   :  { %v8208_v63 = vadd.f32 %v8207_v49, %v8195_v19  ;;  %v12468_v49 = vld [vmem:[#allocation27] ss:$0 sm:$0xff] }
0x1272   :  { %8889 = vmatpush.bf16.msra.mxu3 %v12438_v40 }
0x1273   :  { %v8239_v27 = vmax.f32 %v8208_v63, 0.0 }
0x1274   :  { %v8220_v25 = vpop.f32.mrf.mxu2  ;;  %8878 = vmatpush.bf16.msrb.mxu1 %v12428_v29 }
0x1275   :  { %v8243_v9 = vpack.c.bf16 %v8239_v27, %v8239_v27  ;;  %v8221_v18 = vadd.f32 %v8220_v25, %v7808_v46 }
0x1276   :  { %v8196_v32 = vpop.f32.mrf.mxu1  ;;  %v8209_v51 = vpop.f32.mrf.mxu3  ;;  %8890 = vmatpush.bf16.msra.mxu3 %v12437_v28 }
0x1277   :  { %v8234_v12 = vadd.f32 %v8233_v43, %v8221_v18  ;;  %8669 = vmatmul.bf16.vlgmr.msra.gmra.mxu2 %v8243_v9  ;;  %8695 = vmatmul.bf16.vlgmr.msra.gmra.mxu1 %v8241_v23 }
0x1278   :  { %8879 = vmatpush.bf16.msrb.mxu1 %v12427_v10 }
0x1279   :  { %v8240_v8 = vmax.f32 %v8234_v12, 0.0 }
0x127a   :  { %8891 = vmatpush.bf16.msra.mxu3 %v12436_v26 }
0x127b   :  { %v8244_v57 = vpack.c.bf16 %v8240_v8, %v8240_v8 }
0x127c   :  { %v8222_v59 = vpop.f32.mrf.mxu2  ;;  %8880 = vmatpush.bf16.msrb.mxu1 %v12426_v31 }
0x127d   :  { %8682 = vmatmul.bf16.vlgmr.msrb.gmra.mxu0 %v8244_v57  ;;  %8708 = vmatmul.bf16.vlgmr.msrb.gmra.mxu3 %v8242_v62 }
0x127e   :  { %8892 = vmatpush.bf16.msra.mxu3 %v12435_v3 }
0x1280   :  { %8881 = vmatpush.bf16.msrb.mxu1 %v12425_v0 }
0x1282   :  { %8893 = vmatpush.bf16.msra.mxu3 %v12434_v45 }
0x1284   :  { %8882 = vmatpush.bf16.msrb.mxu1 %v12424_v44 }
0x1286   :  { %8894 = vmatpush.bf16.msra.mxu3 %v12433_v15 }
0x1287   :  { %8721 = vmatmul.bf16.vlgmr.msrb.gmra.mxu2 %v8243_v9 }
0x128a   :  { %8895 = vmatpush.bf16.msra.mxu3 %v12432_v11 }
0x128d   :  { %8734 = vmatmul.bf16.vlgmr.msra.gmra.mxu0 %v8244_v57 }
0x12e4   :  { %v8644_v7 = vpop.f32.mrf.mxu1 }
0x12e5   :  { %v8645_v48 = vadd.f32 %v8644_v7, %v8311_v38 }
0x12ec   :  { %v8646_v47 = vpop.f32.mrf.mxu1 }
0x12f0   :  { %v8657_v53 = vpop.f32.mrf.mxu3 }
0x12f1   :  { %v8658_v36 = vadd.f32 %v8657_v53, %v8645_v48 }
0x12f4   :  { %v8696_v21 = vpop.f32.mrf.mxu1 }
0x12f5   :  { %v8697_v54 = vadd.f32 %v8696_v21, %v8312_v4 }
0x12f8   :  { %v8659_v42 = vpop.f32.mrf.mxu3 }
0x12fa   :  { %v8670_v22 = vpop.f32.mrf.mxu2  ;;  %v8683_v13 = vpop.f32.mrf.mxu0 }
0x12fb   :  { %v8671_v58 = vadd.f32 %v8670_v22, %v8658_v36 }
0x12fc   :  { %v8698_v2 = vpop.f32.mrf.mxu1 }
0x12fd   :  { %v8684_v20 = vadd.f32 %v8683_v13, %v8671_v58 }
0x12ff   :  { %v8739_v55 = vmax.f32 %v8684_v20, 0.0 }
0x1300   :  { %v8709_v24 = vpop.f32.mrf.mxu3 }
0x1301   :  { %v8741_v6 = vpack.c.bf16 %v8739_v55, %v8739_v55  ;;  %v8710_v34 = vadd.f32 %v8709_v24, %v8697_v54 }
0x1302   :  { %v8672_v41 = vpop.f32.mrf.mxu2  ;;  %v8685_v23 = vpop.f32.mrf.mxu0 }
0x1303   :  { %8883 = vmatmul.bf16.vlgmr.msrb.gmra.mxu1 %v8741_v6 }
0x1308   :  { %v8711_v30 = vpop.f32.mrf.mxu3 }
0x130a   :  { %v8722_v17 = vpop.f32.mrf.mxu2  ;;  %v8735_v35 = vpop.f32.mrf.mxu0 }
0x130b   :  { %v8723_v60 = vadd.f32 %v8722_v17, %v8710_v34 }
0x130d   :  { %v8736_v43 = vadd.f32 %v8735_v35, %v8723_v60 }
0x130f   :  { %v8740_v5 = vmax.f32 %v8736_v43, 0.0 }
0x1311   :  { %v8742_v61 = vpack.c.bf16 %v8740_v5, %v8740_v5 }
0x1312   :  { %v8724_v62 = vpop.f32.mrf.mxu2  ;;  %v8737_v33 = vpop.f32.mrf.mxu0 }
0x1313   :  { %8896 = vmatmul.bf16.vlgmr.msra.gmra.mxu3 %v8742_v61 }
0x1380   :  { %v8884_v50 = vpop.f32.mrf.mxu1 }
0x1381   :  { %v8885_v19 = vadd.f32 %v12468_v49, %v8884_v50 }
0x1388   :  { %v8886_v52 = vpop.f32.mrf.mxu1 }
0x1396   :  { %v8897_v1 = vpop.f32.mrf.mxu3 }
0x1397   :  { %v8898_v63 = vadd.f32 %v8897_v1, %v8885_v19 }
0x1399   :  { %8901 = vst [vmem:[%s14865_s19] sm:$0x3] %v8898_v63 }
0x139e   :  { %v8899_v46 = vpop.f32.mrf.mxu3 }
0x139f   :  { %8906 = vsyncpa [#allocation3], 1 }
0x13a0   :  { %8907 = vsyncpa [#allocation5], 1 }
0x13a1   :  { %8908 = vsyncpa [#allocation8], 1 }
0x13a2   :  { %8909 = vsyncpa [#allocation11], 1 }
0x13a3   :  { %8910 = vsyncpa [#allocation14], 1 }
0x13a4   :  { %8911 = vsyncpa [#allocation17], 1 }
0x13a5   :  { %8912 = vsyncpa [#allocation20], 1 }
0x13a6   :  { %8913 = vsyncpa [#allocation23], 1 }
0x13a7   :  { %8914 = vsyncpa [#allocation26], 1 }

</bundles_post_ra>
